<compile_context>
chip_gen: v6e
topology: v6e:2x2x1
jax: 0.10.0
libtpu: 0.0.40
codegen_flags: <defaults>
</compile_context>

<pallas_src>
import functools

import numpy as np

import jax
import jax.numpy as jnp
from jax.experimental import pallas as pl
from jax.experimental.pallas import tpu as pltpu


# ----------------------------------------------------------------------------
# The single fused VQ-VAE kernel
# ----------------------------------------------------------------------------

def _vqvae_kernel(x_ref,
                  w_c1, b_c1, w_c2, b_c2, w_c3, b_c3,        # encoder convs
                  w_er1a, w_er1b, w_er2a, w_er2b,            # encoder residual blocks
                  w_pre, b_pre,                              # pre_conv (1x1)
                  e_ref, et_ref, esq_ref,                    # VQ codebook
                  w_d1, b_d1,                                # decoder conv1
                  w_dr1a, w_dr1b, w_dr2a, w_dr2b,            # decoder residual blocks
                  w_t1, b_t1, w_t2, b_t2,                    # decoder deconvs
                  recon_ref, stats_ref,                      # outputs
                  zpx_scr, q2_scr,                           # VMEM scratch (relayout)
                  *, n_pix, emb_dim, num_codes):
    f32 = jnp.float32
    bf16 = jnp.bfloat16
    bb = x_ref.shape[0]                       # batch rows handled this grid step

    def conv(x, w_ref, b_ref=None, relu=False):
        # one wide-K bf16 matmul per layer, f32 accumulation on the MXU
        y = jnp.dot(x.astype(bf16), w_ref[...], preferred_element_type=f32)
        if b_ref is not None:
            y = y + b_ref[...]
        if relu:
            y = jnp.maximum(y, 0.0)
        return y

    def res_block(x, wa_ref, wb_ref):
        h = jnp.maximum(x, 0.0)               # leading ReLU
        h = conv(h, wa_ref, relu=True)        # 3x3 (no bias) + ReLU
        h = conv(h, wb_ref)                   # 1x1 (no bias)
        return x + h                          # residual add

    # ---------------- encoder ----------------
    a = x_ref[...]                            # (bb, 16*16*3)
    a = conv(a, w_c1, b_c1, relu=True)        # -> (bb, 8*8*16)
    a = conv(a, w_c2, b_c2, relu=True)        # -> (bb, 4*4*32)
    a = conv(a, w_c3, b_c3)                   # -> (bb, 4*4*32)
    a = res_block(a, w_er1a, w_er1b)
    a = res_block(a, w_er2a, w_er2b)
    a = jnp.maximum(a, 0.0)                   # ResidualStack final ReLU

    # ------------- pre_conv (1x1, block-diagonal matrix) -------------
    z = conv(a, w_pre, b_pre)                 # (bb, n_pix*emb_dim)

    # relayout (bb, n_pix*D) -> (n_pix*bb, D) through VMEM scratch (no matmul)
    q2_scr[...] = z
    for p_i in range(n_pix):
        zpx_scr[p_i * bb:(p_i + 1) * bb, :] = \
            q2_scr[:, p_i * emb_dim:(p_i + 1) * emb_dim]
    z_px = zpx_scr[...]                       # (n_pix*bb, D), f32

    # ---------------- vector quantizer ----------------
    # ||z - e||^2 = ||z||^2 + ||e||^2 - 2 z.e ; cross term on the MXU in bf16.
    cross = jnp.dot(z_px.astype(bf16), et_ref[...], preferred_element_type=f32)
    z_sq = jnp.sum(z_px * z_px, axis=1, keepdims=True)
    d = z_sq - 2.0 * cross + esq_ref[...]                    # (M, K)
    min_d = jnp.min(d, axis=1, keepdims=True)
    iota_k = jax.lax.broadcasted_iota(jnp.int32, d.shape, 1)
    idx = jnp.min(jnp.where(d <= min_d, iota_k, num_codes), axis=1, keepdims=True)
    onehot = (iota_k == idx).astype(f32)                     # (M, K)
    # exact codebook rows (tiny f32 matmul keeps quantized values exact)
    quantized = jnp.dot(onehot, e_ref[...], preferred_element_type=f32)

    # per-step stats: codebook usage counts + total squared error
    dq = quantized - z_px
    sq_total = jnp.sum(jnp.sum(dq * dq, axis=1, keepdims=True),
                       axis=0, keepdims=True)                # (1, 1)
    counts = jnp.sum(onehot, axis=0, keepdims=True)          # (1, K)
    stats_ref[...] = jnp.zeros(stats_ref.shape, f32)
    stats_ref[0:1, 0:num_codes] = counts
    stats_ref[0:1, num_codes:num_codes + 1] = sq_total
    # TODO(synk): straight-through / stop-gradient semantics hold for the
    # forward value only; training would need a custom_vjp.

    # relayout quantized (n_pix*bb, D) -> (bb, n_pix*D) for the decoder
    zpx_scr[...] = quantized
    for p_i in range(n_pix):
        q2_scr[:, p_i * emb_dim:(p_i + 1) * emb_dim] = \
            zpx_scr[p_i * bb:(p_i + 1) * bb, :]
    q = q2_scr[...]

    # ---------------- decoder ----------------
    a = conv(q, w_d1, b_d1)                   # (bb, 4*4*32)
    a = res_block(a, w_dr1a, w_dr1b)
    a = res_block(a, w_dr2a, w_dr2b)
    a = jnp.maximum(a, 0.0)
    a = conv(a, w_t1, b_t1, relu=True)        # -> (bb, 8*8*16)   (convT)
    a = conv(a, w_t2, b_t2)                   # -> (bb, 16*16*3)  (convT)
    recon_ref[...] = a


# ----------------------------------------------------------------------------
# Host-side (one-time) construction of the dense per-layer matrices
# ----------------------------------------------------------------------------

def _conv_dense(w, h_in, w_in, stride, pad):
    """Dense M s.t. flat_out = flat_in @ M for Conv2d over flattened NHWC.
    w: torch Conv2d layout (Cout, Cin, kh, kw)."""
    c_out, c_in, kh, kw = w.shape
    h_out = (h_in + 2 * pad - kh) // stride + 1
    w_out = (w_in + 2 * pad - kw) // stride + 1
    m = np.zeros((h_in * w_in * c_in, h_out * w_out * c_out), np.float32)
    for oy in range(h_out):
        for ox in range(w_out):
            oo = (oy * w_out + ox) * c_out
            for di in range(kh):
                iy = stride * oy + di - pad
                if not (0 <= iy < h_in):
                    continue
                for dj in range(kw):
                    ix = stride * ox + dj - pad
                    if not (0 <= ix < w_in):
                        continue
                    ii = (iy * w_in + ix) * c_in
                    m[ii:ii + c_in, oo:oo + c_out] += w[:, :, di, dj].T
    return m


def _convt_dense(w, h_in, w_in, stride, pad):
    """Dense M for ConvTranspose2d. w: torch layout (Cin, Cout, kh, kw)."""
    c_in, c_out, kh, kw = w.shape
    h_out = stride * (h_in - 1) + kh - 2 * pad
    w_out = stride * (w_in - 1) + kw - 2 * pad
    m = np.zeros((h_in * w_in * c_in, h_out * w_out * c_out), np.float32)
    for iy in range(h_in):
        for ix in range(w_in):
            ii = (iy * w_in + ix) * c_in
            for di in range(kh):
                oy = stride * iy + di - pad
                if not (0 <= oy < h_out):
                    continue
                for dj in range(kw):
                    ox = stride * ix + dj - pad
                    if not (0 <= ox < w_out):
                        continue
                    oo = (oy * w_out + ox) * c_out
                    m[ii:ii + c_in, oo:oo + c_out] += w[:, :, di, dj]
    return m


def _bias_row(b, n_pos):
    return np.tile(np.asarray(b, np.float32), n_pos)[None, :]


def prepare(params, image_size=16):
    """Fold all layer weights into dense bf16 matrices + f32 bias rows.
    Every matrix is batch-independent (no O(B^2) scaling)."""
    f = lambda a: np.asarray(a, np.float32)  # noqa: E731
    h0 = image_size
    h1 = h0 // 2
    h2 = h1 // 2
    bf = jnp.bfloat16
    j32 = jnp.float32

    assert len(params['enc_res']) == 2 and len(params['dec_res']) == 2, \
        "kernel is specialized to num_residual_layers=2"

    p = {}
    p['w_c1'] = jnp.asarray(_conv_dense(f(params['enc_c1_w']), h0, h0, 2, 1), bf)
    p['b_c1'] = jnp.asarray(_bias_row(params['enc_c1_b'], h1 * h1), j32)
    p['w_c2'] = jnp.asarray(_conv_dense(f(params['enc_c2_w']), h1, h1, 2, 1), bf)
    p['b_c2'] = jnp.asarray(_bias_row(params['enc_c2_b'], h2 * h2), j32)
    p['w_c3'] = jnp.asarray(_conv_dense(f(params['enc_c3_w']), h2, h2, 1, 1), bf)
    p['b_c3'] = jnp.asarray(_bias_row(params['enc_c3_b'], h2 * h2), j32)
    for i, (w3, w1) in enumerate(params['enc_res'], start=1):
        p[f'w_er{i}a'] = jnp.asarray(_conv_dense(f(w3), h2, h2, 1, 1), bf)
        p[f'w_er{i}b'] = jnp.asarray(_conv_dense(f(w1), h2, h2, 1, 0), bf)
    p['w_pre'] = jnp.asarray(_conv_dense(f(params['pre_w']), h2, h2, 1, 0), bf)
    p['b_pre'] = jnp.asarray(_bias_row(params['pre_b'], h2 * h2), j32)

    e = f(params['codebook'])
    p['e'] = jnp.asarray(e, j32)
    p['et'] = jnp.asarray(e.T, bf)
    p['esq'] = jnp.asarray(np.sum(e * e, axis=1)[None, :], j32)

    p['w_d1'] = jnp.asarray(_conv_dense(f(params['dec_c1_w']), h2, h2, 1, 1), bf)
    p['b_d1'] = jnp.asarray(_bias_row(params['dec_c1_b'], h2 * h2), j32)
    for i, (w3, w1) in enumerate(params['dec_res'], start=1):
        p[f'w_dr{i}a'] = jnp.asarray(_conv_dense(f(w3), h2, h2, 1, 1), bf)
        p[f'w_dr{i}b'] = jnp.asarray(_conv_dense(f(w1), h2, h2, 1, 0), bf)
    p['w_t1'] = jnp.asarray(_convt_dense(f(params['dec_t1_w']), h2, h2, 2, 1), bf)
    p['b_t1'] = jnp.asarray(_bias_row(params['dec_t1_b'], h1 * h1), j32)
    p['w_t2'] = jnp.asarray(_convt_dense(f(params['dec_t2_w']), h1, h1, 2, 1), bf)
    p['b_t2'] = jnp.asarray(_bias_row(params['dec_t2_b'], h0 * h0), j32)
    return p


# ----------------------------------------------------------------------------
# Public forward wrapper: one pallas_call for the whole model
# ----------------------------------------------------------------------------

def vqvae_forward(x_nchw, prep, commitment_cost=0.25, batch_tile=None):
    """VQ-VAE forward: returns (recon [NCHW], vq_loss, perplexity)."""
    bsz, ch, hh, ww = x_nchw.shape
    feat_in = hh * ww * ch
    assert prep['w_c1'].shape[0] == feat_in, "prep built for a different input size"

    emb_dim = int(prep['e'].shape[1])
    num_codes = int(prep['e'].shape[0])
    n_pix = int(prep['b_pre'].shape[1]) // emb_dim
    assert num_codes + 1 <= 128

    # Grid over batch tiles ("parallel" -> megacore / v7x second TC when the
    # batch is tiled).  Default: whole batch in one step (grid = 1).
    bb = bsz if batch_tile is None else int(batch_tile)
    assert bsz % bb == 0 and (bb == bsz or bb % 8 == 0), \
        "batch_tile must divide the batch and be a multiple of 8 when < batch"
    grid_n = bsz // bb

    x2d = jnp.transpose(x_nchw, (0, 2, 3, 1)).reshape(bsz, feat_in).astype(jnp.float32)

    weight_args = [
        prep['w_c1'], prep['b_c1'], prep['w_c2'], prep['b_c2'],
        prep['w_c3'], prep['b_c3'],
        prep['w_er1a'], prep['w_er1b'], prep['w_er2a'], prep['w_er2b'],
        prep['w_pre'], prep['b_pre'],
        prep['e'], prep['et'], prep['esq'],
        prep['w_d1'], prep['b_d1'],
        prep['w_dr1a'], prep['w_dr1b'], prep['w_dr2a'], prep['w_dr2b'],
        prep['w_t1'], prep['b_t1'], prep['w_t2'], prep['b_t2'],
    ]

    in_specs = [pl.BlockSpec((bb, feat_in), lambda i: (i, 0))]
    # weights stay VMEM-resident across grid steps (block index always (0,0))
    in_specs += [pl.BlockSpec(a.shape, lambda i: (0, 0)) for a in weight_args]
    out_specs = (pl.BlockSpec((bb, feat_in), lambda i: (i, 0)),
                 pl.BlockSpec((8, 128), lambda i: (i, 0)))
    out_shape = (jax.ShapeDtypeStruct((bsz, feat_in), jnp.float32),
                 jax.ShapeDtypeStruct((grid_n * 8, 128), jnp.float32))

    kernel = functools.partial(_vqvae_kernel, n_pix=n_pix, emb_dim=emb_dim,
                               num_codes=num_codes)
    recon2d, stats = pl.pallas_call(
        kernel,
        out_shape=out_shape,
        grid_spec=pltpu.PrefetchScalarGridSpec(
            num_scalar_prefetch=0,
            grid=(grid_n,),
            in_specs=in_specs,
            out_specs=out_specs,
            scratch_shapes=[pltpu.VMEM((bb * n_pix, emb_dim), jnp.float32),
                            pltpu.VMEM((bb, n_pix * emb_dim), jnp.float32)]),
        compiler_params=pltpu.CompilerParams(
            dimension_semantics=("parallel",),
            vmem_limit_bytes=40 * 1024 * 1024),
    )(x2d, *weight_args)

    recon = recon2d.reshape(bsz, hh, ww, ch).transpose(0, 3, 1, 2)

    # finish loss / perplexity from the per-step stats rows (tiny, plain JAX)
    st = stats.reshape(grid_n, 8, 128)[:, 0, :]
    counts = jnp.sum(st[:, :num_codes], axis=0)
    sq_err = jnp.sum(st[:, num_codes])
    m_total = bsz * n_pix
    mse = sq_err / float(m_total * emb_dim)
    vq_loss = (1.0 + commitment_cost) * mse        # q_latent + beta * e_latent
    avg = counts / float(m_total)
    perplexity = jnp.exp(-jnp.sum(avg * jnp.log(avg + 1e-10)))
    return recon, vq_loss, perplexity
    # TODO(synk): only the VQ-VAE branch of UnifiedModel is implemented; the
    # 'VAE' (randn reparameterization) and 'AE' branches are not exercised by
    # the chosen config.


# ----------------------------------------------------------------------------
# Deterministic parameter init (shapes from the module's __init__)
# ----------------------------------------------------------------------------

def _uniform(key, shape, fan_in):
    bound = 1.0 / (fan_in ** 0.5)
    return jax.random.uniform(key, shape, jnp.float32, -bound, bound)


def init_params(key, *, num_hiddens=32, num_residual_layers=2,
                num_residual_hiddens=8, embedding_dim=16, num_embeddings=32,
                in_channels=3):
    ks = list(jax.random.split(key, 32))
    nxt = iter(ks).__next__
    nh2 = num_hiddens // 2
    p = {}

    def conv_p(cout, cin, k):
        fan = cin * k * k
        return _uniform(nxt(), (cout, cin, k, k), fan), _uniform(nxt(), (cout,), fan)

    p['enc_c1_w'], p['enc_c1_b'] = conv_p(nh2, in_channels, 4)
    p['enc_c2_w'], p['enc_c2_b'] = conv_p(num_hiddens, nh2, 4)
    p['enc_c3_w'], p['enc_c3_b'] = conv_p(num_hiddens, num_hiddens, 3)
    p['enc_res'] = [
        (_uniform(nxt(), (num_residual_hiddens, num_hiddens, 3, 3), num_hiddens * 9),
         _uniform(nxt(), (num_hiddens, num_residual_hiddens, 1, 1), num_residual_hiddens))
        for _ in range(num_residual_layers)]
    p['pre_w'], p['pre_b'] = conv_p(embedding_dim, num_hiddens, 1)
    p['codebook'] = jax.random.uniform(nxt(), (num_embeddings, embedding_dim),
                                       jnp.float32, -1.0 / num_embeddings,
                                       1.0 / num_embeddings)
    p['dec_c1_w'], p['dec_c1_b'] = conv_p(num_hiddens, embedding_dim, 3)
    p['dec_res'] = [
        (_uniform(nxt(), (num_residual_hiddens, num_hiddens, 3, 3), num_hiddens * 9),
         _uniform(nxt(), (num_hiddens, num_residual_hiddens, 1, 1), num_residual_hiddens))
        for _ in range(num_residual_layers)]
    # ConvTranspose2d weight layout: (Cin, Cout, kh, kw)
    p['dec_t1_w'] = _uniform(nxt(), (num_hiddens, nh2, 4, 4), num_hiddens * 16)
    p['dec_t1_b'] = _uniform(nxt(), (nh2,), num_hiddens * 16)
    p['dec_t2_w'] = _uniform(nxt(), (nh2, in_channels, 4, 4), nh2 * 16)
    p['dec_t2_b'] = _uniform(nxt(), (in_channels,), nh2 * 16)
    return p


# ----------------------------------------------------------------------------

if __name__ == "__main__":
    key = jax.random.PRNGKey(0)
    kp, kx = jax.random.split(key)

    # config: architecture='VQ-VAE', image_size=16, num_hiddens=32,
    #         num_residual_layers=2, num_residual_hiddens=8,
    #         embedding_dim=16, num_embeddings=32, commitment_cost=0.25
    params = init_params(kp)
    x = jax.random.normal(kx, (2, 3, 16, 16), jnp.float32)   # NCHW like PyTorch

    prep = prepare(params, image_size=16)                    # one-time setup

    fwd = jax.jit(functools.partial(vqvae_forward, commitment_cost=0.25))
    recon, vq_loss, perplexity = fwd(x, prep)
    jax.block_until_ready((recon, vq_loss, perplexity))

    assert recon.shape == (2, 3, 16, 16)
    assert vq_loss.shape == () and perplexity.shape == ()
    assert bool(jnp.all(jnp.isfinite(recon)))
    assert bool(jnp.isfinite(vq_loss)) and bool(jnp.isfinite(perplexity))
    print("KERNEL_OK")
</pallas_src>

<mosaic_0001>
module attributes {stable_mosaic.version = 11 : i64} {
  func.func @_vqvae_kernel(%arg0: i32, %arg1: memref<2x768xf32, #tpu.memory_space<vmem>>, %arg2: memref<768x1024xbf16, #tpu.memory_space<vmem>>, %arg3: memref<1x1024xf32, #tpu.memory_space<vmem>>, %arg4: memref<1024x512xbf16, #tpu.memory_space<vmem>>, %arg5: memref<1x512xf32, #tpu.memory_space<vmem>>, %arg6: memref<512x512xbf16, #tpu.memory_space<vmem>>, %arg7: memref<1x512xf32, #tpu.memory_space<vmem>>, %arg8: memref<512x128xbf16, #tpu.memory_space<vmem>>, %arg9: memref<128x512xbf16, #tpu.memory_space<vmem>>, %arg10: memref<512x128xbf16, #tpu.memory_space<vmem>>, %arg11: memref<128x512xbf16, #tpu.memory_space<vmem>>, %arg12: memref<512x256xbf16, #tpu.memory_space<vmem>>, %arg13: memref<1x256xf32, #tpu.memory_space<vmem>>, %arg14: memref<32x16xf32, #tpu.memory_space<vmem>>, %arg15: memref<16x32xbf16, #tpu.memory_space<vmem>>, %arg16: memref<1x32xf32, #tpu.memory_space<vmem>>, %arg17: memref<256x512xbf16, #tpu.memory_space<vmem>>, %arg18: memref<1x512xf32, #tpu.memory_space<vmem>>, %arg19: memref<512x128xbf16, #tpu.memory_space<vmem>>, %arg20: memref<128x512xbf16, #tpu.memory_space<vmem>>, %arg21: memref<512x128xbf16, #tpu.memory_space<vmem>>, %arg22: memref<128x512xbf16, #tpu.memory_space<vmem>>, %arg23: memref<512x1024xbf16, #tpu.memory_space<vmem>>, %arg24: memref<1x1024xf32, #tpu.memory_space<vmem>>, %arg25: memref<1024x768xbf16, #tpu.memory_space<vmem>>, %arg26: memref<1x768xf32, #tpu.memory_space<vmem>>, %arg27: memref<2x768xf32, #tpu.memory_space<vmem>>, %arg28: memref<8x128xf32, #tpu.memory_space<vmem>>, %arg29: memref<32x16xf32, #tpu.memory_space<vmem>>, %arg30: memref<2x256xf32, #tpu.memory_space<vmem>>) attributes {dimension_semantics = [#tpu.dimension_semantics<parallel>], iteration_bounds = array<i64: 1>, scalar_prefetch = 0 : i64, scratch_operands = 2 : i64, tpu.core_type = #tpu.core_type<tc>, window_params = [{transform_indices = @transform_0, window_bounds = array<i64: 2, 768>}, {pipeline_mode = #tpu.pipeline_mode<synchronous>, transform_indices = @transform_1, window_bounds = array<i64: 768, 1024>}, {pipeline_mode = #tpu.pipeline_mode<synchronous>, transform_indices = @transform_2, window_bounds = array<i64: 1, 1024>}, {pipeline_mode = #tpu.pipeline_mode<synchronous>, transform_indices = @transform_3, window_bounds = array<i64: 1024, 512>}, {pipeline_mode = #tpu.pipeline_mode<synchronous>, transform_indices = @transform_4, window_bounds = array<i64: 1, 512>}, {pipeline_mode = #tpu.pipeline_mode<synchronous>, transform_indices = @transform_5, window_bounds = array<i64: 512, 512>}, {pipeline_mode = #tpu.pipeline_mode<synchronous>, transform_indices = @transform_6, window_bounds = array<i64: 1, 512>}, {pipeline_mode = #tpu.pipeline_mode<synchronous>, transform_indices = @transform_7, window_bounds = array<i64: 512, 128>}, {pipeline_mode = #tpu.pipeline_mode<synchronous>, transform_indices = @transform_8, window_bounds = array<i64: 128, 512>}, {pipeline_mode = #tpu.pipeline_mode<synchronous>, transform_indices = @transform_9, window_bounds = array<i64: 512, 128>}, {pipeline_mode = #tpu.pipeline_mode<synchronous>, transform_indices = @transform_10, window_bounds = array<i64: 128, 512>}, {pipeline_mode = #tpu.pipeline_mode<synchronous>, transform_indices = @transform_11, window_bounds = array<i64: 512, 256>}, {pipeline_mode = #tpu.pipeline_mode<synchronous>, transform_indices = @transform_12, window_bounds = array<i64: 1, 256>}, {pipeline_mode = #tpu.pipeline_mode<synchronous>, transform_indices = @transform_13, window_bounds = array<i64: 32, 16>}, {pipeline_mode = #tpu.pipeline_mode<synchronous>, transform_indices = @transform_14, window_bounds = array<i64: 16, 32>}, {pipeline_mode = #tpu.pipeline_mode<synchronous>, transform_indices = @transform_15, window_bounds = array<i64: 1, 32>}, {pipeline_mode = #tpu.pipeline_mode<synchronous>, transform_indices = @transform_16, window_bounds = array<i64: 256, 512>}, {pipeline_mode = #tpu.pipeline_mode<synchronous>, transform_indices = @transform_17, window_bounds = array<i64: 1, 512>}, {pipeline_mode = #tpu.pipeline_mode<synchronous>, transform_indices = @transform_18, window_bounds = array<i64: 512, 128>}, {pipeline_mode = #tpu.pipeline_mode<synchronous>, transform_indices = @transform_19, window_bounds = array<i64: 128, 512>}, {pipeline_mode = #tpu.pipeline_mode<synchronous>, transform_indices = @transform_20, window_bounds = array<i64: 512, 128>}, {pipeline_mode = #tpu.pipeline_mode<synchronous>, transform_indices = @transform_21, window_bounds = array<i64: 128, 512>}, {pipeline_mode = #tpu.pipeline_mode<synchronous>, transform_indices = @transform_22, window_bounds = array<i64: 512, 1024>}, {pipeline_mode = #tpu.pipeline_mode<synchronous>, transform_indices = @transform_23, window_bounds = array<i64: 1, 1024>}, {pipeline_mode = #tpu.pipeline_mode<synchronous>, transform_indices = @transform_24, window_bounds = array<i64: 1024, 768>}, {pipeline_mode = #tpu.pipeline_mode<synchronous>, transform_indices = @transform_25, window_bounds = array<i64: 1, 768>}, {transform_indices = @transform_26, window_bounds = array<i64: 2, 768>}, {transform_indices = @transform_27, window_bounds = array<i64: 8, 128>}]} {
    %c0 = arith.constant 0 : index
    %c0_0 = arith.constant 0 : index
    %0 = vector.load %arg1[%c0, %c0_0] : memref<2x768xf32, #tpu.memory_space<vmem>>, vector<2x768xf32>
    %1 = arith.truncf %0 : vector<2x768xf32> to vector<2x768xbf16>
    %c0_1 = arith.constant 0 : index
    %c0_2 = arith.constant 0 : index
    %2 = vector.load %arg2[%c0_1, %c0_2] : memref<768x1024xbf16, #tpu.memory_space<vmem>>, vector<768x1024xbf16>
    %cst = arith.constant dense<0.000000e+00> : vector<2x1024xf32>
    %3 = tpu.matmul %1, %2, %cst {dimension_numbers = #tpu.dot_dimension_numbers<[1], [0], [0], [1], [0, 0, 1, 1], [], []>} : vector<2x768xbf16>, vector<768x1024xbf16>, vector<2x1024xf32> -> vector<2x1024xf32>
    %c0_3 = arith.constant 0 : index
    %c0_4 = arith.constant 0 : index
    %4 = vector.load %arg3[%c0_3, %c0_4] : memref<1x1024xf32, #tpu.memory_space<vmem>>, vector<1x1024xf32>
    %5 = vector.broadcast %4 : vector<1x1024xf32> to vector<2x1024xf32>
    %6 = arith.addf %3, %5 : vector<2x1024xf32>
    %cst_5 = arith.constant 0.000000e+00 : f32
    %7 = vector.broadcast %cst_5 : f32 to vector<2x1024xf32>
    %8 = arith.maximumf %6, %7 : vector<2x1024xf32>
    %9 = arith.truncf %8 : vector<2x1024xf32> to vector<2x1024xbf16>
    %c0_6 = arith.constant 0 : index
    %c0_7 = arith.constant 0 : index
    %10 = vector.load %arg4[%c0_6, %c0_7] : memref<1024x512xbf16, #tpu.memory_space<vmem>>, vector<1024x512xbf16>
    %cst_8 = arith.constant dense<0.000000e+00> : vector<2x512xf32>
    %11 = tpu.matmul %9, %10, %cst_8 {dimension_numbers = #tpu.dot_dimension_numbers<[1], [0], [0], [1], [0, 0, 1, 1], [], []>} : vector<2x1024xbf16>, vector<1024x512xbf16>, vector<2x512xf32> -> vector<2x512xf32>
    %c0_9 = arith.constant 0 : index
    %c0_10 = arith.constant 0 : index
    %12 = vector.load %arg5[%c0_9, %c0_10] : memref<1x512xf32, #tpu.memory_space<vmem>>, vector<1x512xf32>
    %13 = vector.broadcast %12 : vector<1x512xf32> to vector<2x512xf32>
    %14 = arith.addf %11, %13 : vector<2x512xf32>
    %cst_11 = arith.constant 0.000000e+00 : f32
    %15 = vector.broadcast %cst_11 : f32 to vector<2x512xf32>
    %16 = arith.maximumf %14, %15 : vector<2x512xf32>
    %17 = arith.truncf %16 : vector<2x512xf32> to vector<2x512xbf16>
    %c0_12 = arith.constant 0 : index
    %c0_13 = arith.constant 0 : index
    %18 = vector.load %arg6[%c0_12, %c0_13] : memref<512x512xbf16, #tpu.memory_space<vmem>>, vector<512x512xbf16>
    %cst_14 = arith.constant dense<0.000000e+00> : vector<2x512xf32>
    %19 = tpu.matmul %17, %18, %cst_14 {dimension_numbers = #tpu.dot_dimension_numbers<[1], [0], [0], [1], [0, 0, 1, 1], [], []>} : vector<2x512xbf16>, vector<512x512xbf16>, vector<2x512xf32> -> vector<2x512xf32>
    %c0_15 = arith.constant 0 : index
    %c0_16 = arith.constant 0 : index
    %20 = vector.load %arg7[%c0_15, %c0_16] : memref<1x512xf32, #tpu.memory_space<vmem>>, vector<1x512xf32>
    %21 = vector.broadcast %20 : vector<1x512xf32> to vector<2x512xf32>
    %22 = arith.addf %19, %21 : vector<2x512xf32>
    %cst_17 = arith.constant 0.000000e+00 : f32
    %23 = vector.broadcast %cst_17 : f32 to vector<2x512xf32>
    %24 = arith.maximumf %22, %23 : vector<2x512xf32>
    %25 = arith.truncf %24 : vector<2x512xf32> to vector<2x512xbf16>
    %c0_18 = arith.constant 0 : index
    %c0_19 = arith.constant 0 : index
    %26 = vector.load %arg8[%c0_18, %c0_19] : memref<512x128xbf16, #tpu.memory_space<vmem>>, vector<512x128xbf16>
    %cst_20 = arith.constant dense<0.000000e+00> : vector<2x128xf32>
    %27 = tpu.matmul %25, %26, %cst_20 {dimension_numbers = #tpu.dot_dimension_numbers<[1], [0], [0], [1], [0, 0, 1, 1], [], []>} : vector<2x512xbf16>, vector<512x128xbf16>, vector<2x128xf32> -> vector<2x128xf32>
    %cst_21 = arith.constant 0.000000e+00 : f32
    %28 = vector.broadcast %cst_21 : f32 to vector<2x128xf32>
    %29 = arith.maximumf %27, %28 : vector<2x128xf32>
    %30 = arith.truncf %29 : vector<2x128xf32> to vector<2x128xbf16>
    %c0_22 = arith.constant 0 : index
    %c0_23 = arith.constant 0 : index
    %31 = vector.load %arg9[%c0_22, %c0_23] : memref<128x512xbf16, #tpu.memory_space<vmem>>, vector<128x512xbf16>
    %cst_24 = arith.constant dense<0.000000e+00> : vector<2x512xf32>
    %32 = tpu.matmul %30, %31, %cst_24 {dimension_numbers = #tpu.dot_dimension_numbers<[1], [0], [0], [1], [0, 0, 1, 1], [], []>} : vector<2x128xbf16>, vector<128x512xbf16>, vector<2x512xf32> -> vector<2x512xf32>
    %33 = arith.addf %22, %32 : vector<2x512xf32>
    %cst_25 = arith.constant 0.000000e+00 : f32
    %34 = vector.broadcast %cst_25 : f32 to vector<2x512xf32>
    %35 = arith.maximumf %33, %34 : vector<2x512xf32>
    %36 = arith.truncf %35 : vector<2x512xf32> to vector<2x512xbf16>
    %c0_26 = arith.constant 0 : index
    %c0_27 = arith.constant 0 : index
    %37 = vector.load %arg10[%c0_26, %c0_27] : memref<512x128xbf16, #tpu.memory_space<vmem>>, vector<512x128xbf16>
    %cst_28 = arith.constant dense<0.000000e+00> : vector<2x128xf32>
    %38 = tpu.matmul %36, %37, %cst_28 {dimension_numbers = #tpu.dot_dimension_numbers<[1], [0], [0], [1], [0, 0, 1, 1], [], []>} : vector<2x512xbf16>, vector<512x128xbf16>, vector<2x128xf32> -> vector<2x128xf32>
    %cst_29 = arith.constant 0.000000e+00 : f32
    %39 = vector.broadcast %cst_29 : f32 to vector<2x128xf32>
    %40 = arith.maximumf %38, %39 : vector<2x128xf32>
    %41 = arith.truncf %40 : vector<2x128xf32> to vector<2x128xbf16>
    %c0_30 = arith.constant 0 : index
    %c0_31 = arith.constant 0 : index
    %42 = vector.load %arg11[%c0_30, %c0_31] : memref<128x512xbf16, #tpu.memory_space<vmem>>, vector<128x512xbf16>
    %cst_32 = arith.constant dense<0.000000e+00> : vector<2x512xf32>
    %43 = tpu.matmul %41, %42, %cst_32 {dimension_numbers = #tpu.dot_dimension_numbers<[1], [0], [0], [1], [0, 0, 1, 1], [], []>} : vector<2x128xbf16>, vector<128x512xbf16>, vector<2x512xf32> -> vector<2x512xf32>
    %44 = arith.addf %33, %43 : vector<2x512xf32>
    %cst_33 = arith.constant 0.000000e+00 : f32
    %45 = vector.broadcast %cst_33 : f32 to vector<2x512xf32>
    %46 = arith.maximumf %44, %45 : vector<2x512xf32>
    %47 = arith.truncf %46 : vector<2x512xf32> to vector<2x512xbf16>
    %c0_34 = arith.constant 0 : index
    %c0_35 = arith.constant 0 : index
    %48 = vector.load %arg12[%c0_34, %c0_35] : memref<512x256xbf16, #tpu.memory_space<vmem>>, vector<512x256xbf16>
    %cst_36 = arith.constant dense<0.000000e+00> : vector<2x256xf32>
    %49 = tpu.matmul %47, %48, %cst_36 {dimension_numbers = #tpu.dot_dimension_numbers<[1], [0], [0], [1], [0, 0, 1, 1], [], []>} : vector<2x512xbf16>, vector<512x256xbf16>, vector<2x256xf32> -> vector<2x256xf32>
    %c0_37 = arith.constant 0 : index
    %c0_38 = arith.constant 0 : index
    %50 = vector.load %arg13[%c0_37, %c0_38] : memref<1x256xf32, #tpu.memory_space<vmem>>, vector<1x256xf32>
    %51 = vector.broadcast %50 : vector<1x256xf32> to vector<2x256xf32>
    %52 = arith.addf %49, %51 : vector<2x256xf32>
    %c0_39 = arith.constant 0 : index
    %c0_40 = arith.constant 0 : index
    %53 = vector.load %arg30[%c0_39, %c0_40] : memref<2x256xf32, #tpu.memory_space<vmem>>, vector<2x256xf32>
    tpu.vector_store %arg30[%c0_39, %c0_40], %52 {strides = array<i32>} : memref<2x256xf32, #tpu.memory_space<vmem>>, vector<2x256xf32>,
    %c0_41 = arith.constant 0 : index
    %c0_42 = arith.constant 0 : index
    %54 = vector.load %arg30[%c0_41, %c0_42] : memref<2x256xf32, #tpu.memory_space<vmem>>, vector<2x16xf32>
    %c0_43 = arith.constant 0 : index
    %c0_44 = arith.constant 0 : index
    %55 = vector.load %arg29[%c0_43, %c0_44] : memref<32x16xf32, #tpu.memory_space<vmem>>, vector<2x16xf32>
    tpu.vector_store %arg29[%c0_43, %c0_44], %54 {strides = array<i32>} : memref<32x16xf32, #tpu.memory_space<vmem>>, vector<2x16xf32>,
    %c0_45 = arith.constant 0 : index
    %c16 = arith.constant 16 : index
    %56 = vector.load %arg30[%c0_45, %c16] : memref<2x256xf32, #tpu.memory_space<vmem>>, vector<2x16xf32>
    %c2 = arith.constant 2 : index
    %c0_46 = arith.constant 0 : index
    %57 = vector.load %arg29[%c2, %c0_46] : memref<32x16xf32, #tpu.memory_space<vmem>>, vector<2x16xf32>
    tpu.vector_store %arg29[%c2, %c0_46], %56 {strides = array<i32>} : memref<32x16xf32, #tpu.memory_space<vmem>>, vector<2x16xf32>,
    %c0_47 = arith.constant 0 : index
    %c32 = arith.constant 32 : index
    %58 = vector.load %arg30[%c0_47, %c32] : memref<2x256xf32, #tpu.memory_space<vmem>>, vector<2x16xf32>
    %c4 = arith.constant 4 : index
    %c0_48 = arith.constant 0 : index
    %59 = vector.load %arg29[%c4, %c0_48] : memref<32x16xf32, #tpu.memory_space<vmem>>, vector<2x16xf32>
    tpu.vector_store %arg29[%c4, %c0_48], %58 {strides = array<i32>} : memref<32x16xf32, #tpu.memory_space<vmem>>, vector<2x16xf32>,
    %c0_49 = arith.constant 0 : index
    %c48 = arith.constant 48 : index
    %60 = vector.load %arg30[%c0_49, %c48] : memref<2x256xf32, #tpu.memory_space<vmem>>, vector<2x16xf32>
    %c6 = arith.constant 6 : index
    %c0_50 = arith.constant 0 : index
    %61 = vector.load %arg29[%c6, %c0_50] : memref<32x16xf32, #tpu.memory_space<vmem>>, vector<2x16xf32>
    tpu.vector_store %arg29[%c6, %c0_50], %60 {strides = array<i32>} : memref<32x16xf32, #tpu.memory_space<vmem>>, vector<2x16xf32>,
    %c0_51 = arith.constant 0 : index
    %c64 = arith.constant 64 : index
    %62 = vector.load %arg30[%c0_51, %c64] : memref<2x256xf32, #tpu.memory_space<vmem>>, vector<2x16xf32>
    %c8 = arith.constant 8 : index
    %c0_52 = arith.constant 0 : index
    %63 = vector.load %arg29[%c8, %c0_52] : memref<32x16xf32, #tpu.memory_space<vmem>>, vector<2x16xf32>
    tpu.vector_store %arg29[%c8, %c0_52], %62 {strides = array<i32>} : memref<32x16xf32, #tpu.memory_space<vmem>>, vector<2x16xf32>,
    %c0_53 = arith.constant 0 : index
    %c80 = arith.constant 80 : index
    %64 = vector.load %arg30[%c0_53, %c80] : memref<2x256xf32, #tpu.memory_space<vmem>>, vector<2x16xf32>
    %c10 = arith.constant 10 : index
    %c0_54 = arith.constant 0 : index
    %65 = vector.load %arg29[%c10, %c0_54] : memref<32x16xf32, #tpu.memory_space<vmem>>, vector<2x16xf32>
    tpu.vector_store %arg29[%c10, %c0_54], %64 {strides = array<i32>} : memref<32x16xf32, #tpu.memory_space<vmem>>, vector<2x16xf32>,
    %c0_55 = arith.constant 0 : index
    %c96 = arith.constant 96 : index
    %66 = vector.load %arg30[%c0_55, %c96] : memref<2x256xf32, #tpu.memory_space<vmem>>, vector<2x16xf32>
    %c12 = arith.constant 12 : index
    %c0_56 = arith.constant 0 : index
    %67 = vector.load %arg29[%c12, %c0_56] : memref<32x16xf32, #tpu.memory_space<vmem>>, vector<2x16xf32>
    tpu.vector_store %arg29[%c12, %c0_56], %66 {strides = array<i32>} : memref<32x16xf32, #tpu.memory_space<vmem>>, vector<2x16xf32>,
    %c0_57 = arith.constant 0 : index
    %c112 = arith.constant 112 : index
    %68 = vector.load %arg30[%c0_57, %c112] : memref<2x256xf32, #tpu.memory_space<vmem>>, vector<2x16xf32>
    %c14 = arith.constant 14 : index
    %c0_58 = arith.constant 0 : index
    %69 = vector.load %arg29[%c14, %c0_58] : memref<32x16xf32, #tpu.memory_space<vmem>>, vector<2x16xf32>
    tpu.vector_store %arg29[%c14, %c0_58], %68 {strides = array<i32>} : memref<32x16xf32, #tpu.memory_space<vmem>>, vector<2x16xf32>,
    %c0_59 = arith.constant 0 : index
    %c128 = arith.constant 128 : index
    %70 = vector.load %arg30[%c0_59, %c128] : memref<2x256xf32, #tpu.memory_space<vmem>>, vector<2x16xf32>
    %c16_60 = arith.constant 16 : index
    %c0_61 = arith.constant 0 : index
    %71 = vector.load %arg29[%c16_60, %c0_61] : memref<32x16xf32, #tpu.memory_space<vmem>>, vector<2x16xf32>
    tpu.vector_store %arg29[%c16_60, %c0_61], %70 {strides = array<i32>} : memref<32x16xf32, #tpu.memory_space<vmem>>, vector<2x16xf32>,
    %c0_62 = arith.constant 0 : index
    %c144 = arith.constant 144 : index
    %72 = vector.load %arg30[%c0_62, %c144] : memref<2x256xf32, #tpu.memory_space<vmem>>, vector<2x16xf32>
    %c18 = arith.constant 18 : index
    %c0_63 = arith.constant 0 : index
    %73 = vector.load %arg29[%c18, %c0_63] : memref<32x16xf32, #tpu.memory_space<vmem>>, vector<2x16xf32>
    tpu.vector_store %arg29[%c18, %c0_63], %72 {strides = array<i32>} : memref<32x16xf32, #tpu.memory_space<vmem>>, vector<2x16xf32>,
    %c0_64 = arith.constant 0 : index
    %c160 = arith.constant 160 : index
    %74 = vector.load %arg30[%c0_64, %c160] : memref<2x256xf32, #tpu.memory_space<vmem>>, vector<2x16xf32>
    %c20 = arith.constant 20 : index
    %c0_65 = arith.constant 0 : index
    %75 = vector.load %arg29[%c20, %c0_65] : memref<32x16xf32, #tpu.memory_space<vmem>>, vector<2x16xf32>
    tpu.vector_store %arg29[%c20, %c0_65], %74 {strides = array<i32>} : memref<32x16xf32, #tpu.memory_space<vmem>>, vector<2x16xf32>,
    %c0_66 = arith.constant 0 : index
    %c176 = arith.constant 176 : index
    %76 = vector.load %arg30[%c0_66, %c176] : memref<2x256xf32, #tpu.memory_space<vmem>>, vector<2x16xf32>
    %c22 = arith.constant 22 : index
    %c0_67 = arith.constant 0 : index
    %77 = vector.load %arg29[%c22, %c0_67] : memref<32x16xf32, #tpu.memory_space<vmem>>, vector<2x16xf32>
    tpu.vector_store %arg29[%c22, %c0_67], %76 {strides = array<i32>} : memref<32x16xf32, #tpu.memory_space<vmem>>, vector<2x16xf32>,
    %c0_68 = arith.constant 0 : index
    %c192 = arith.constant 192 : index
    %78 = vector.load %arg30[%c0_68, %c192] : memref<2x256xf32, #tpu.memory_space<vmem>>, vector<2x16xf32>
    %c24 = arith.constant 24 : index
    %c0_69 = arith.constant 0 : index
    %79 = vector.load %arg29[%c24, %c0_69] : memref<32x16xf32, #tpu.memory_space<vmem>>, vector<2x16xf32>
    tpu.vector_store %arg29[%c24, %c0_69], %78 {strides = array<i32>} : memref<32x16xf32, #tpu.memory_space<vmem>>, vector<2x16xf32>,
    %c0_70 = arith.constant 0 : index
    %c208 = arith.constant 208 : index
    %80 = vector.load %arg30[%c0_70, %c208] : memref<2x256xf32, #tpu.memory_space<vmem>>, vector<2x16xf32>
    %c26 = arith.constant 26 : index
    %c0_71 = arith.constant 0 : index
    %81 = vector.load %arg29[%c26, %c0_71] : memref<32x16xf32, #tpu.memory_space<vmem>>, vector<2x16xf32>
    tpu.vector_store %arg29[%c26, %c0_71], %80 {strides = array<i32>} : memref<32x16xf32, #tpu.memory_space<vmem>>, vector<2x16xf32>,
    %c0_72 = arith.constant 0 : index
    %c224 = arith.constant 224 : index
    %82 = vector.load %arg30[%c0_72, %c224] : memref<2x256xf32, #tpu.memory_space<vmem>>, vector<2x16xf32>
    %c28 = arith.constant 28 : index
    %c0_73 = arith.constant 0 : index
    %83 = vector.load %arg29[%c28, %c0_73] : memref<32x16xf32, #tpu.memory_space<vmem>>, vector<2x16xf32>
    tpu.vector_store %arg29[%c28, %c0_73], %82 {strides = array<i32>} : memref<32x16xf32, #tpu.memory_space<vmem>>, vector<2x16xf32>,
    %c0_74 = arith.constant 0 : index
    %c240 = arith.constant 240 : index
    %84 = vector.load %arg30[%c0_74, %c240] : memref<2x256xf32, #tpu.memory_space<vmem>>, vector<2x16xf32>
    %c30 = arith.constant 30 : index
    %c0_75 = arith.constant 0 : index
    %85 = vector.load %arg29[%c30, %c0_75] : memref<32x16xf32, #tpu.memory_space<vmem>>, vector<2x16xf32>
    tpu.vector_store %arg29[%c30, %c0_75], %84 {strides = array<i32>} : memref<32x16xf32, #tpu.memory_space<vmem>>, vector<2x16xf32>,
    %c0_76 = arith.constant 0 : index
    %c0_77 = arith.constant 0 : index
    %86 = vector.load %arg29[%c0_76, %c0_77] : memref<32x16xf32, #tpu.memory_space<vmem>>, vector<32x16xf32>
    %87 = arith.truncf %86 : vector<32x16xf32> to vector<32x16xbf16>
    %c0_78 = arith.constant 0 : index
    %c0_79 = arith.constant 0 : index
    %88 = vector.load %arg15[%c0_78, %c0_79] : memref<16x32xbf16, #tpu.memory_space<vmem>>, vector<16x32xbf16>
    %cst_80 = arith.constant dense<0.000000e+00> : vector<32x32xf32>
    %89 = tpu.matmul %87, %88, %cst_80 {dimension_numbers = #tpu.dot_dimension_numbers<[1], [0], [0], [1], [0, 0, 1, 1], [], []>} : vector<32x16xbf16>, vector<16x32xbf16>, vector<32x32xf32> -> vector<32x32xf32>
    %90 = arith.mulf %86, %86 : vector<32x16xf32>
    %cst_81 = arith.constant dense<0.000000e+00> : vector<32xf32>
    %91 = vector.multi_reduction <add>, %90, %cst_81 [1] : vector<32x16xf32> to vector<32xf32>
    %92 = vector.shape_cast %91 : vector<32xf32> to vector<32x1xf32>
    %cst_82 = arith.constant 2.000000e+00 : f32
    %93 = vector.broadcast %cst_82 : f32 to vector<32x32xf32>
    %94 = arith.mulf %93, %89 : vector<32x32xf32>
    %95 = vector.broadcast %92 : vector<32x1xf32> to vector<32x32xf32>
    %96 = arith.subf %95, %94 : vector<32x32xf32>
    %c0_83 = arith.constant 0 : index
    %c0_84 = arith.constant 0 : index
    %97 = vector.load %arg16[%c0_83, %c0_84] : memref<1x32xf32, #tpu.memory_space<vmem>>, vector<1x32xf32>
    %98 = vector.broadcast %97 : vector<1x32xf32> to vector<32x32xf32>
    %99 = arith.addf %96, %98 : vector<32x32xf32>
    %cst_85 = arith.constant dense<0x7F800000> : vector<32xf32>
    %100 = vector.multi_reduction <minimumf>, %99, %cst_85 [1] : vector<32x32xf32> to vector<32xf32>
    %101 = vector.shape_cast %100 : vector<32xf32> to vector<32x1xf32>
    %102 = tpu.iota {dimensions = array<i32: 1>} : vector<32x32xi32>
    %103 = vector.broadcast %101 : vector<32x1xf32> to vector<32x32xf32>
    %104 = arith.cmpf ole, %99, %103 : vector<32x32xf32>
    %c32_i32 = arith.constant 32 : i32
    %105 = vector.broadcast %c32_i32 : i32 to vector<32x32xi32>
    %106 = arith.select %104, %102, %105 : vector<32x32xi1>, vector<32x32xi32>
    %cst_86 = arith.constant dense<2147483647> : vector<32xi32>
    %107 = vector.multi_reduction <minsi>, %106, %cst_86 [1] : vector<32x32xi32> to vector<32xi32>
    %108 = vector.shape_cast %107 : vector<32xi32> to vector<32x1xi32>
    %109 = vector.broadcast %108 : vector<32x1xi32> to vector<32x32xi32>
    %110 = arith.cmpi eq, %102, %109 : vector<32x32xi32>
    %111 = arith.extui %110 : vector<32x32xi1> to vector<32x32xi32>
    %112 = arith.sitofp %111 : vector<32x32xi32> to vector<32x32xf32>
    %c0_87 = arith.constant 0 : index
    %c0_88 = arith.constant 0 : index
    %113 = vector.load %arg14[%c0_87, %c0_88] : memref<32x16xf32, #tpu.memory_space<vmem>>, vector<32x16xf32>
    %cst_89 = arith.constant dense<0.000000e+00> : vector<32x16xf32>
    %114 = tpu.matmul %112, %113, %cst_89 {dimension_numbers = #tpu.dot_dimension_numbers<[1], [0], [0], [1], [0, 0, 1, 1], [], []>} : vector<32x32xf32>, vector<32x16xf32>, vector<32x16xf32> -> vector<32x16xf32>
    %115 = arith.subf %114, %86 : vector<32x16xf32>
    %116 = arith.mulf %115, %115 : vector<32x16xf32>
    %cst_90 = arith.constant dense<0.000000e+00> : vector<32xf32>
    %117 = vector.multi_reduction <add>, %116, %cst_90 [1] : vector<32x16xf32> to vector<32xf32>
    %118 = vector.shape_cast %117 : vector<32xf32> to vector<32x1xf32>
    %cst_91 = arith.constant dense<0.000000e+00> : vector<1xf32>
    %119 = vector.multi_reduction <add>, %118, %cst_91 [0] : vector<32x1xf32> to vector<1xf32>
    %120 = vector.shape_cast %119 : vector<1xf32> to vector<1x1xf32>
    %cst_92 = arith.constant dense<0.000000e+00> : vector<32xf32>
    %121 = vector.multi_reduction <add>, %112, %cst_92 [0] : vector<32x32xf32> to vector<32xf32>
    %122 = vector.shape_cast %121 : vector<32xf32> to vector<1x32xf32>
    %cst_93 = arith.constant 0.000000e+00 : f32
    %123 = vector.broadcast %cst_93 : f32 to vector<8x128xf32>
    %c0_94 = arith.constant 0 : index
    %c0_95 = arith.constant 0 : index
    %124 = vector.load %arg28[%c0_94, %c0_95] : memref<8x128xf32, #tpu.memory_space<vmem>>, vector<8x128xf32>
    tpu.vector_store %arg28[%c0_94, %c0_95], %123 {strides = array<i32>} : memref<8x128xf32, #tpu.memory_space<vmem>>, vector<8x128xf32>,
    %c0_96 = arith.constant 0 : index
    %c0_97 = arith.constant 0 : index
    %125 = vector.load %arg28[%c0_96, %c0_97] : memref<8x128xf32, #tpu.memory_space<vmem>>, vector<1x32xf32>
    tpu.vector_store %arg28[%c0_96, %c0_97], %122 {strides = array<i32>} : memref<8x128xf32, #tpu.memory_space<vmem>>, vector<1x32xf32>,
    %c0_98 = arith.constant 0 : index
    %c32_99 = arith.constant 32 : index
    %126 = vector.load %arg28[%c0_98, %c32_99] : memref<8x128xf32, #tpu.memory_space<vmem>>, vector<1x1xf32>
    tpu.vector_store %arg28[%c0_98, %c32_99], %120 {strides = array<i32>} : memref<8x128xf32, #tpu.memory_space<vmem>>, vector<1x1xf32>,
    %c0_100 = arith.constant 0 : index
    %c0_101 = arith.constant 0 : index
    %127 = vector.load %arg29[%c0_100, %c0_101] : memref<32x16xf32, #tpu.memory_space<vmem>>, vector<32x16xf32>
    tpu.vector_store %arg29[%c0_100, %c0_101], %114 {strides = array<i32>} : memref<32x16xf32, #tpu.memory_space<vmem>>, vector<32x16xf32>,
    %c0_102 = arith.constant 0 : index
    %c0_103 = arith.constant 0 : index
    %128 = vector.load %arg29[%c0_102, %c0_103] : memref<32x16xf32, #tpu.memory_space<vmem>>, vector<2x16xf32>
    %c0_104 = arith.constant 0 : index
    %c0_105 = arith.constant 0 : index
    %129 = vector.load %arg30[%c0_104, %c0_105] : memref<2x256xf32, #tpu.memory_space<vmem>>, vector<2x16xf32>
    tpu.vector_store %arg30[%c0_104, %c0_105], %128 {strides = array<i32>} : memref<2x256xf32, #tpu.memory_space<vmem>>, vector<2x16xf32>,
    %c2_106 = arith.constant 2 : index
    %c0_107 = arith.constant 0 : index
    %130 = vector.load %arg29[%c2_106, %c0_107] : memref<32x16xf32, #tpu.memory_space<vmem>>, vector<2x16xf32>
    %c0_108 = arith.constant 0 : index
    %c16_109 = arith.constant 16 : index
    %131 = vector.load %arg30[%c0_108, %c16_109] : memref<2x256xf32, #tpu.memory_space<vmem>>, vector<2x16xf32>
    tpu.vector_store %arg30[%c0_108, %c16_109], %130 {strides = array<i32>} : memref<2x256xf32, #tpu.memory_space<vmem>>, vector<2x16xf32>,
    %c4_110 = arith.constant 4 : index
    %c0_111 = arith.constant 0 : index
    %132 = vector.load %arg29[%c4_110, %c0_111] : memref<32x16xf32, #tpu.memory_space<vmem>>, vector<2x16xf32>
    %c0_112 = arith.constant 0 : index
    %c32_113 = arith.constant 32 : index
    %133 = vector.load %arg30[%c0_112, %c32_113] : memref<2x256xf32, #tpu.memory_space<vmem>>, vector<2x16xf32>
    tpu.vector_store %arg30[%c0_112, %c32_113], %132 {strides = array<i32>} : memref<2x256xf32, #tpu.memory_space<vmem>>, vector<2x16xf32>,
    %c6_114 = arith.constant 6 : index
    %c0_115 = arith.constant 0 : index
    %134 = vector.load %arg29[%c6_114, %c0_115] : memref<32x16xf32, #tpu.memory_space<vmem>>, vector<2x16xf32>
    %c0_116 = arith.constant 0 : index
    %c48_117 = arith.constant 48 : index
    %135 = vector.load %arg30[%c0_116, %c48_117] : memref<2x256xf32, #tpu.memory_space<vmem>>, vector<2x16xf32>
    tpu.vector_store %arg30[%c0_116, %c48_117], %134 {strides = array<i32>} : memref<2x256xf32, #tpu.memory_space<vmem>>, vector<2x16xf32>,
    %c8_118 = arith.constant 8 : index
    %c0_119 = arith.constant 0 : index
    %136 = vector.load %arg29[%c8_118, %c0_119] : memref<32x16xf32, #tpu.memory_space<vmem>>, vector<2x16xf32>
    %c0_120 = arith.constant 0 : index
    %c64_121 = arith.constant 64 : index
    %137 = vector.load %arg30[%c0_120, %c64_121] : memref<2x256xf32, #tpu.memory_space<vmem>>, vector<2x16xf32>
    tpu.vector_store %arg30[%c0_120, %c64_121], %136 {strides = array<i32>} : memref<2x256xf32, #tpu.memory_space<vmem>>, vector<2x16xf32>,
    %c10_122 = arith.constant 10 : index
    %c0_123 = arith.constant 0 : index
    %138 = vector.load %arg29[%c10_122, %c0_123] : memref<32x16xf32, #tpu.memory_space<vmem>>, vector<2x16xf32>
    %c0_124 = arith.constant 0 : index
    %c80_125 = arith.constant 80 : index
    %139 = vector.load %arg30[%c0_124, %c80_125] : memref<2x256xf32, #tpu.memory_space<vmem>>, vector<2x16xf32>
    tpu.vector_store %arg30[%c0_124, %c80_125], %138 {strides = array<i32>} : memref<2x256xf32, #tpu.memory_space<vmem>>, vector<2x16xf32>,
    %c12_126 = arith.constant 12 : index
    %c0_127 = arith.constant 0 : index
    %140 = vector.load %arg29[%c12_126, %c0_127] : memref<32x16xf32, #tpu.memory_space<vmem>>, vector<2x16xf32>
    %c0_128 = arith.constant 0 : index
    %c96_129 = arith.constant 96 : index
    %141 = vector.load %arg30[%c0_128, %c96_129] : memref<2x256xf32, #tpu.memory_space<vmem>>, vector<2x16xf32>
    tpu.vector_store %arg30[%c0_128, %c96_129], %140 {strides = array<i32>} : memref<2x256xf32, #tpu.memory_space<vmem>>, vector<2x16xf32>,
    %c14_130 = arith.constant 14 : index
    %c0_131 = arith.constant 0 : index
    %142 = vector.load %arg29[%c14_130, %c0_131] : memref<32x16xf32, #tpu.memory_space<vmem>>, vector<2x16xf32>
    %c0_132 = arith.constant 0 : index
    %c112_133 = arith.constant 112 : index
    %143 = vector.load %arg30[%c0_132, %c112_133] : memref<2x256xf32, #tpu.memory_space<vmem>>, vector<2x16xf32>
    tpu.vector_store %arg30[%c0_132, %c112_133], %142 {strides = array<i32>} : memref<2x256xf32, #tpu.memory_space<vmem>>, vector<2x16xf32>,
    %c16_134 = arith.constant 16 : index
    %c0_135 = arith.constant 0 : index
    %144 = vector.load %arg29[%c16_134, %c0_135] : memref<32x16xf32, #tpu.memory_space<vmem>>, vector<2x16xf32>
    %c0_136 = arith.constant 0 : index
    %c128_137 = arith.constant 128 : index
    %145 = vector.load %arg30[%c0_136, %c128_137] : memref<2x256xf32, #tpu.memory_space<vmem>>, vector<2x16xf32>
    tpu.vector_store %arg30[%c0_136, %c128_137], %144 {strides = array<i32>} : memref<2x256xf32, #tpu.memory_space<vmem>>, vector<2x16xf32>,
    %c18_138 = arith.constant 18 : index
    %c0_139 = arith.constant 0 : index
    %146 = vector.load %arg29[%c18_138, %c0_139] : memref<32x16xf32, #tpu.memory_space<vmem>>, vector<2x16xf32>
    %c0_140 = arith.constant 0 : index
    %c144_141 = arith.constant 144 : index
    %147 = vector.load %arg30[%c0_140, %c144_141] : memref<2x256xf32, #tpu.memory_space<vmem>>, vector<2x16xf32>
    tpu.vector_store %arg30[%c0_140, %c144_141], %146 {strides = array<i32>} : memref<2x256xf32, #tpu.memory_space<vmem>>, vector<2x16xf32>,
    %c20_142 = arith.constant 20 : index
    %c0_143 = arith.constant 0 : index
    %148 = vector.load %arg29[%c20_142, %c0_143] : memref<32x16xf32, #tpu.memory_space<vmem>>, vector<2x16xf32>
    %c0_144 = arith.constant 0 : index
    %c160_145 = arith.constant 160 : index
    %149 = vector.load %arg30[%c0_144, %c160_145] : memref<2x256xf32, #tpu.memory_space<vmem>>, vector<2x16xf32>
    tpu.vector_store %arg30[%c0_144, %c160_145], %148 {strides = array<i32>} : memref<2x256xf32, #tpu.memory_space<vmem>>, vector<2x16xf32>,
    %c22_146 = arith.constant 22 : index
    %c0_147 = arith.constant 0 : index
    %150 = vector.load %arg29[%c22_146, %c0_147] : memref<32x16xf32, #tpu.memory_space<vmem>>, vector<2x16xf32>
    %c0_148 = arith.constant 0 : index
    %c176_149 = arith.constant 176 : index
    %151 = vector.load %arg30[%c0_148, %c176_149] : memref<2x256xf32, #tpu.memory_space<vmem>>, vector<2x16xf32>
    tpu.vector_store %arg30[%c0_148, %c176_149], %150 {strides = array<i32>} : memref<2x256xf32, #tpu.memory_space<vmem>>, vector<2x16xf32>,
    %c24_150 = arith.constant 24 : index
    %c0_151 = arith.constant 0 : index
    %152 = vector.load %arg29[%c24_150, %c0_151] : memref<32x16xf32, #tpu.memory_space<vmem>>, vector<2x16xf32>
    %c0_152 = arith.constant 0 : index
    %c192_153 = arith.constant 192 : index
    %153 = vector.load %arg30[%c0_152, %c192_153] : memref<2x256xf32, #tpu.memory_space<vmem>>, vector<2x16xf32>
    tpu.vector_store %arg30[%c0_152, %c192_153], %152 {strides = array<i32>} : memref<2x256xf32, #tpu.memory_space<vmem>>, vector<2x16xf32>,
    %c26_154 = arith.constant 26 : index
    %c0_155 = arith.constant 0 : index
    %154 = vector.load %arg29[%c26_154, %c0_155] : memref<32x16xf32, #tpu.memory_space<vmem>>, vector<2x16xf32>
    %c0_156 = arith.constant 0 : index
    %c208_157 = arith.constant 208 : index
    %155 = vector.load %arg30[%c0_156, %c208_157] : memref<2x256xf32, #tpu.memory_space<vmem>>, vector<2x16xf32>
    tpu.vector_store %arg30[%c0_156, %c208_157], %154 {strides = array<i32>} : memref<2x256xf32, #tpu.memory_space<vmem>>, vector<2x16xf32>,
    %c28_158 = arith.constant 28 : index
    %c0_159 = arith.constant 0 : index
    %156 = vector.load %arg29[%c28_158, %c0_159] : memref<32x16xf32, #tpu.memory_space<vmem>>, vector<2x16xf32>
    %c0_160 = arith.constant 0 : index
    %c224_161 = arith.constant 224 : index
    %157 = vector.load %arg30[%c0_160, %c224_161] : memref<2x256xf32, #tpu.memory_space<vmem>>, vector<2x16xf32>
    tpu.vector_store %arg30[%c0_160, %c224_161], %156 {strides = array<i32>} : memref<2x256xf32, #tpu.memory_space<vmem>>, vector<2x16xf32>,
    %c30_162 = arith.constant 30 : index
    %c0_163 = arith.constant 0 : index
    %158 = vector.load %arg29[%c30_162, %c0_163] : memref<32x16xf32, #tpu.memory_space<vmem>>, vector<2x16xf32>
    %c0_164 = arith.constant 0 : index
    %c240_165 = arith.constant 240 : index
    %159 = vector.load %arg30[%c0_164, %c240_165] : memref<2x256xf32, #tpu.memory_space<vmem>>, vector<2x16xf32>
    tpu.vector_store %arg30[%c0_164, %c240_165], %158 {strides = array<i32>} : memref<2x256xf32, #tpu.memory_space<vmem>>, vector<2x16xf32>,
    %c0_166 = arith.constant 0 : index
    %c0_167 = arith.constant 0 : index
    %160 = vector.load %arg30[%c0_166, %c0_167] : memref<2x256xf32, #tpu.memory_space<vmem>>, vector<2x256xf32>
    %161 = arith.truncf %160 : vector<2x256xf32> to vector<2x256xbf16>
    %c0_168 = arith.constant 0 : index
    %c0_169 = arith.constant 0 : index
    %162 = vector.load %arg17[%c0_168, %c0_169] : memref<256x512xbf16, #tpu.memory_space<vmem>>, vector<256x512xbf16>
    %cst_170 = arith.constant dense<0.000000e+00> : vector<2x512xf32>
    %163 = tpu.matmul %161, %162, %cst_170 {dimension_numbers = #tpu.dot_dimension_numbers<[1], [0], [0], [1], [0, 0, 1, 1], [], []>} : vector<2x256xbf16>, vector<256x512xbf16>, vector<2x512xf32> -> vector<2x512xf32>
    %c0_171 = arith.constant 0 : index
    %c0_172 = arith.constant 0 : index
    %164 = vector.load %arg18[%c0_171, %c0_172] : memref<1x512xf32, #tpu.memory_space<vmem>>, vector<1x512xf32>
    %165 = vector.broadcast %164 : vector<1x512xf32> to vector<2x512xf32>
    %166 = arith.addf %163, %165 : vector<2x512xf32>
    %cst_173 = arith.constant 0.000000e+00 : f32
    %167 = vector.broadcast %cst_173 : f32 to vector<2x512xf32>
    %168 = arith.maximumf %166, %167 : vector<2x512xf32>
    %169 = arith.truncf %168 : vector<2x512xf32> to vector<2x512xbf16>
    %c0_174 = arith.constant 0 : index
    %c0_175 = arith.constant 0 : index
    %170 = vector.load %arg19[%c0_174, %c0_175] : memref<512x128xbf16, #tpu.memory_space<vmem>>, vector<512x128xbf16>
    %cst_176 = arith.constant dense<0.000000e+00> : vector<2x128xf32>
    %171 = tpu.matmul %169, %170, %cst_176 {dimension_numbers = #tpu.dot_dimension_numbers<[1], [0], [0], [1], [0, 0, 1, 1], [], []>} : vector<2x512xbf16>, vector<512x128xbf16>, vector<2x128xf32> -> vector<2x128xf32>
    %cst_177 = arith.constant 0.000000e+00 : f32
    %172 = vector.broadcast %cst_177 : f32 to vector<2x128xf32>
    %173 = arith.maximumf %171, %172 : vector<2x128xf32>
    %174 = arith.truncf %173 : vector<2x128xf32> to vector<2x128xbf16>
    %c0_178 = arith.constant 0 : index
    %c0_179 = arith.constant 0 : index
    %175 = vector.load %arg20[%c0_178, %c0_179] : memref<128x512xbf16, #tpu.memory_space<vmem>>, vector<128x512xbf16>
    %cst_180 = arith.constant dense<0.000000e+00> : vector<2x512xf32>
    %176 = tpu.matmul %174, %175, %cst_180 {dimension_numbers = #tpu.dot_dimension_numbers<[1], [0], [0], [1], [0, 0, 1, 1], [], []>} : vector<2x128xbf16>, vector<128x512xbf16>, vector<2x512xf32> -> vector<2x512xf32>
    %177 = arith.addf %166, %176 : vector<2x512xf32>
    %cst_181 = arith.constant 0.000000e+00 : f32
    %178 = vector.broadcast %cst_181 : f32 to vector<2x512xf32>
    %179 = arith.maximumf %177, %178 : vector<2x512xf32>
    %180 = arith.truncf %179 : vector<2x512xf32> to vector<2x512xbf16>
    %c0_182 = arith.constant 0 : index
    %c0_183 = arith.constant 0 : index
    %181 = vector.load %arg21[%c0_182, %c0_183] : memref<512x128xbf16, #tpu.memory_space<vmem>>, vector<512x128xbf16>
    %cst_184 = arith.constant dense<0.000000e+00> : vector<2x128xf32>
    %182 = tpu.matmul %180, %181, %cst_184 {dimension_numbers = #tpu.dot_dimension_numbers<[1], [0], [0], [1], [0, 0, 1, 1], [], []>} : vector<2x512xbf16>, vector<512x128xbf16>, vector<2x128xf32> -> vector<2x128xf32>
    %cst_185 = arith.constant 0.000000e+00 : f32
    %183 = vector.broadcast %cst_185 : f32 to vector<2x128xf32>
    %184 = arith.maximumf %182, %183 : vector<2x128xf32>
    %185 = arith.truncf %184 : vector<2x128xf32> to vector<2x128xbf16>
    %c0_186 = arith.constant 0 : index
    %c0_187 = arith.constant 0 : index
    %186 = vector.load %arg22[%c0_186, %c0_187] : memref<128x512xbf16, #tpu.memory_space<vmem>>, vector<128x512xbf16>
    %cst_188 = arith.constant dense<0.000000e+00> : vector<2x512xf32>
    %187 = tpu.matmul %185, %186, %cst_188 {dimension_numbers = #tpu.dot_dimension_numbers<[1], [0], [0], [1], [0, 0, 1, 1], [], []>} : vector<2x128xbf16>, vector<128x512xbf16>, vector<2x512xf32> -> vector<2x512xf32>
    %188 = arith.addf %177, %187 : vector<2x512xf32>
    %cst_189 = arith.constant 0.000000e+00 : f32
    %189 = vector.broadcast %cst_189 : f32 to vector<2x512xf32>
    %190 = arith.maximumf %188, %189 : vector<2x512xf32>
    %191 = arith.truncf %190 : vector<2x512xf32> to vector<2x512xbf16>
    %c0_190 = arith.constant 0 : index
    %c0_191 = arith.constant 0 : index
    %192 = vector.load %arg23[%c0_190, %c0_191] : memref<512x1024xbf16, #tpu.memory_space<vmem>>, vector<512x1024xbf16>
    %cst_192 = arith.constant dense<0.000000e+00> : vector<2x1024xf32>
    %193 = tpu.matmul %191, %192, %cst_192 {dimension_numbers = #tpu.dot_dimension_numbers<[1], [0], [0], [1], [0, 0, 1, 1], [], []>} : vector<2x512xbf16>, vector<512x1024xbf16>, vector<2x1024xf32> -> vector<2x1024xf32>
    %c0_193 = arith.constant 0 : index
    %c0_194 = arith.constant 0 : index
    %194 = vector.load %arg24[%c0_193, %c0_194] : memref<1x1024xf32, #tpu.memory_space<vmem>>, vector<1x1024xf32>
    %195 = vector.broadcast %194 : vector<1x1024xf32> to vector<2x1024xf32>
    %196 = arith.addf %193, %195 : vector<2x1024xf32>
    %cst_195 = arith.constant 0.000000e+00 : f32
    %197 = vector.broadcast %cst_195 : f32 to vector<2x1024xf32>
    %198 = arith.maximumf %196, %197 : vector<2x1024xf32>
    %199 = arith.truncf %198 : vector<2x1024xf32> to vector<2x1024xbf16>
    %c0_196 = arith.constant 0 : index
    %c0_197 = arith.constant 0 : index
    %200 = vector.load %arg25[%c0_196, %c0_197] : memref<1024x768xbf16, #tpu.memory_space<vmem>>, vector<1024x768xbf16>
    %cst_198 = arith.constant dense<0.000000e+00> : vector<2x768xf32>
    %201 = tpu.matmul %199, %200, %cst_198 {dimension_numbers = #tpu.dot_dimension_numbers<[1], [0], [0], [1], [0, 0, 1, 1], [], []>} : vector<2x1024xbf16>, vector<1024x768xbf16>, vector<2x768xf32> -> vector<2x768xf32>
    %c0_199 = arith.constant 0 : index
    %c0_200 = arith.constant 0 : index
    %202 = vector.load %arg26[%c0_199, %c0_200] : memref<1x768xf32, #tpu.memory_space<vmem>>, vector<1x768xf32>
    %203 = vector.broadcast %202 : vector<1x768xf32> to vector<2x768xf32>
    %204 = arith.addf %201, %203 : vector<2x768xf32>
    %c0_201 = arith.constant 0 : index
    %c0_202 = arith.constant 0 : index
    %205 = vector.load %arg27[%c0_201, %c0_202] : memref<2x768xf32, #tpu.memory_space<vmem>>, vector<2x768xf32>
    tpu.vector_store %arg27[%c0_201, %c0_202], %204 {strides = array<i32>} : memref<2x768xf32, #tpu.memory_space<vmem>>, vector<2x768xf32>,
    return
  }
  func.func @transform_0(%arg0: i32) -> (i32, i32) {
    %c0_i32 = arith.constant 0 : i32
    %c0_i32_0 = arith.constant 0 : i32
    return %arg0, %c0_i32 : i32, i32
  }
  func.func @transform_1(%arg0: i32) -> (i32, i32) {
    %c0_i32 = arith.constant 0 : i32
    %c0_i32_0 = arith.constant 0 : i32
    %c0_i32_1 = arith.constant 0 : i32
    return %c0_i32, %c0_i32_0 : i32, i32
  }
  func.func @transform_2(%arg0: i32) -> (i32, i32) {
    %c0_i32 = arith.constant 0 : i32
    %c0_i32_0 = arith.constant 0 : i32
    %c0_i32_1 = arith.constant 0 : i32
    return %c0_i32, %c0_i32_0 : i32, i32
  }
  func.func @transform_3(%arg0: i32) -> (i32, i32) {
    %c0_i32 = arith.constant 0 : i32
    %c0_i32_0 = arith.constant 0 : i32
    %c0_i32_1 = arith.constant 0 : i32
    return %c0_i32, %c0_i32_0 : i32, i32
  }
  func.func @transform_4(%arg0: i32) -> (i32, i32) {
    %c0_i32 = arith.constant 0 : i32
    %c0_i32_0 = arith.constant 0 : i32
    %c0_i32_1 = arith.constant 0 : i32
    return %c0_i32, %c0_i32_0 : i32, i32
  }
  func.func @transform_5(%arg0: i32) -> (i32, i32) {
    %c0_i32 = arith.constant 0 : i32
    %c0_i32_0 = arith.constant 0 : i32
    %c0_i32_1 = arith.constant 0 : i32
    return %c0_i32, %c0_i32_0 : i32, i32
  }
  func.func @transform_6(%arg0: i32) -> (i32, i32) {
    %c0_i32 = arith.constant 0 : i32
    %c0_i32_0 = arith.constant 0 : i32
    %c0_i32_1 = arith.constant 0 : i32
    return %c0_i32, %c0_i32_0 : i32, i32
  }
  func.func @transform_7(%arg0: i32) -> (i32, i32) {
    %c0_i32 = arith.constant 0 : i32
    %c0_i32_0 = arith.constant 0 : i32
    %c0_i32_1 = arith.constant 0 : i32
    return %c0_i32, %c0_i32_0 : i32, i32
  }
  func.func @transform_8(%arg0: i32) -> (i32, i32) {
    %c0_i32 = arith.constant 0 : i32
    %c0_i32_0 = arith.constant 0 : i32
    %c0_i32_1 = arith.constant 0 : i32
    return %c0_i32, %c0_i32_0 : i32, i32
  }
  func.func @transform_9(%arg0: i32) -> (i32, i32) {
    %c0_i32 = arith.constant 0 : i32
    %c0_i32_0 = arith.constant 0 : i32
    %c0_i32_1 = arith.constant 0 : i32
    return %c0_i32, %c0_i32_0 : i32, i32
  }
  func.func @transform_10(%arg0: i32) -> (i32, i32) {
    %c0_i32 = arith.constant 0 : i32
    %c0_i32_0 = arith.constant 0 : i32
    %c0_i32_1 = arith.constant 0 : i32
    return %c0_i32, %c0_i32_0 : i32, i32
  }
  func.func @transform_11(%arg0: i32) -> (i32, i32) {
    %c0_i32 = arith.constant 0 : i32
    %c0_i32_0 = arith.constant 0 : i32
    %c0_i32_1 = arith.constant 0 : i32
    return %c0_i32, %c0_i32_0 : i32, i32
  }
  func.func @transform_12(%arg0: i32) -> (i32, i32) {
    %c0_i32 = arith.constant 0 : i32
    %c0_i32_0 = arith.constant 0 : i32
    %c0_i32_1 = arith.constant 0 : i32
    return %c0_i32, %c0_i32_0 : i32, i32
  }
  func.func @transform_13(%arg0: i32) -> (i32, i32) {
    %c0_i32 = arith.constant 0 : i32
    %c0_i32_0 = arith.constant 0 : i32
    %c0_i32_1 = arith.constant 0 : i32
    return %c0_i32, %c0_i32_0 : i32, i32
  }
  func.func @transform_14(%arg0: i32) -> (i32, i32) {
    %c0_i32 = arith.constant 0 : i32
    %c0_i32_0 = arith.constant 0 : i32
    %c0_i32_1 = arith.constant 0 : i32
    return %c0_i32, %c0_i32_0 : i32, i32
  }
  func.func @transform_15(%arg0: i32) -> (i32, i32) {
    %c0_i32 = arith.constant 0 : i32
    %c0_i32_0 = arith.constant 0 : i32
    %c0_i32_1 = arith.constant 0 : i32
    return %c0_i32, %c0_i32_0 : i32, i32
  }
  func.func @transform_16(%arg0: i32) -> (i32, i32) {
    %c0_i32 = arith.constant 0 : i32
    %c0_i32_0 = arith.constant 0 : i32
    %c0_i32_1 = arith.constant 0 : i32
    return %c0_i32, %c0_i32_0 : i32, i32
  }
  func.func @transform_17(%arg0: i32) -> (i32, i32) {
    %c0_i32 = arith.constant 0 : i32
    %c0_i32_0 = arith.constant 0 : i32
    %c0_i32_1 = arith.constant 0 : i32
    return %c0_i32, %c0_i32_0 : i32, i32
  }
  func.func @transform_18(%arg0: i32) -> (i32, i32) {
    %c0_i32 = arith.constant 0 : i32
    %c0_i32_0 = arith.constant 0 : i32
    %c0_i32_1 = arith.constant 0 : i32
    return %c0_i32, %c0_i32_0 : i32, i32
  }
  func.func @transform_19(%arg0: i32) -> (i32, i32) {
    %c0_i32 = arith.constant 0 : i32
    %c0_i32_0 = arith.constant 0 : i32
    %c0_i32_1 = arith.constant 0 : i32
    return %c0_i32, %c0_i32_0 : i32, i32
  }
  func.func @transform_20(%arg0: i32) -> (i32, i32) {
    %c0_i32 = arith.constant 0 : i32
    %c0_i32_0 = arith.constant 0 : i32
    %c0_i32_1 = arith.constant 0 : i32
    return %c0_i32, %c0_i32_0 : i32, i32
  }
  func.func @transform_21(%arg0: i32) -> (i32, i32) {
    %c0_i32 = arith.constant 0 : i32
    %c0_i32_0 = arith.constant 0 : i32
    %c0_i32_1 = arith.constant 0 : i32
    return %c0_i32, %c0_i32_0 : i32, i32
  }
  func.func @transform_22(%arg0: i32) -> (i32, i32) {
    %c0_i32 = arith.constant 0 : i32
    %c0_i32_0 = arith.constant 0 : i32
    %c0_i32_1 = arith.constant 0 : i32
    return %c0_i32, %c0_i32_0 : i32, i32
  }
  func.func @transform_23(%arg0: i32) -> (i32, i32) {
    %c0_i32 = arith.constant 0 : i32
    %c0_i32_0 = arith.constant 0 : i32
    %c0_i32_1 = arith.constant 0 : i32
    return %c0_i32, %c0_i32_0 : i32, i32
  }
  func.func @transform_24(%arg0: i32) -> (i32, i32) {
    %c0_i32 = arith.constant 0 : i32
    %c0_i32_0 = arith.constant 0 : i32
    %c0_i32_1 = arith.constant 0 : i32
    return %c0_i32, %c0_i32_0 : i32, i32
  }
  func.func @transform_25(%arg0: i32) -> (i32, i32) {
    %c0_i32 = arith.constant 0 : i32
    %c0_i32_0 = arith.constant 0 : i32
    %c0_i32_1 = arith.constant 0 : i32
    return %c0_i32, %c0_i32_0 : i32, i32
  }
  func.func @transform_26(%arg0: i32) -> (i32, i32) {
    %c0_i32 = arith.constant 0 : i32
    %c0_i32_0 = arith.constant 0 : i32
    return %arg0, %c0_i32 : i32, i32
  }
  func.func @transform_27(%arg0: i32) -> (i32, i32) {
    %c0_i32 = arith.constant 0 : i32
    %c0_i32_0 = arith.constant 0 : i32
    return %arg0, %c0_i32 : i32, i32
  }
}

</mosaic_0001>

<bundles_post_ra>
// kernel: vqvae_forward.1
= control target key start
LH: loop header
LB: loop body
LE: loop exit
PB: predicated region body
PF: predicated region fallthrough
CT: control target
= control target key end

     0   :  { %s20330_s0 = inlined_call_operand.vmem [shape: f32[2,768], index: 0, kind: input, shape index: {}]   ;;  %s20331_s1 = inlined_call_operand.hbm [shape: bf16[768,1024], index: 1, kind: input, shape index: {}]   ;;  %s20332_s2 = inlined_call_operand.hbm [shape: f32[1,1024], index: 2, kind: input, shape index: {}]   ;;  %s20333_s3 = inlined_call_operand.hbm [shape: bf16[1024,512], index: 3, kind: input, shape index: {}]   ;;  %s20334_s4 = inlined_call_operand.hbm [shape: f32[1,512], index: 4, kind: input, shape index: {}]   ;;  %s20335_s5 = inlined_call_operand.hbm [shape: bf16[512,512], index: 5, kind: input, shape index: {}]   ;;  %s20336_s6 = inlined_call_operand.hbm [shape: f32[1,512], index: 6, kind: input, shape index: {}]   ;;  %s20337_s7 = inlined_call_operand.hbm [shape: bf16[512,128], index: 7, kind: input, shape index: {}]   ;;  %s20338_s8 = inlined_call_operand.hbm [shape: bf16[128,512], index: 8, kind: input, shape index: {}]   ;;  %s20339_s9 = inlined_call_operand.hbm [shape: bf16[512,128], index: 9, kind: input, shape index: {}]   ;;  %s20340_s10 = inlined_call_operand.hbm [shape: bf16[128,512], index: 10, kind: input, shape index: {}]   ;;  %s20341_s11 = inlined_call_operand.hbm [shape: bf16[512,256], index: 11, kind: input, shape index: {}]   ;;  %s20342_s12 = inlined_call_operand.hbm [shape: f32[1,256], index: 12, kind: input, shape index: {}]   ;;  %s20343_s13 = inlined_call_operand.vmem [shape: f32[32,16], index: 13, kind: input, shape index: {}]   ;;  %s20344_s14 = inlined_call_operand.hbm [shape: bf16[16,32], index: 14, kind: input, shape index: {}]   ;;  %s20345_s15 = inlined_call_operand.hbm [shape: f32[1,32], index: 15, kind: input, shape index: {}]   ;;  %s20346_s16 = inlined_call_operand.hbm [shape: bf16[256,512], index: 16, kind: input, shape index: {}]   ;;  %s20347_s17 = inlined_call_operand.hbm [shape: f32[1,512], index: 17, kind: input, shape index: {}]   ;;  %s20348_s18 = inlined_call_operand.hbm [shape: bf16[512,128], index: 18, kind: input, shape index: {}]   ;;  %s20349_s19 = inlined_call_operand.hbm [shape: bf16[128,512], index: 19, kind: input, shape index: {}]   ;;  %s20350_s20 = inlined_call_operand.hbm [shape: bf16[512,128], index: 20, kind: input, shape index: {}]   ;;  %s20351_s21 = inlined_call_operand.hbm [shape: bf16[128,512], index: 21, kind: input, shape index: {}]   ;;  %s20352_s22 = inlined_call_operand.hbm [shape: bf16[512,1024], index: 22, kind: input, shape index: {}]   ;;  %s20353_s23 = inlined_call_operand.hbm [shape: f32[1,1024], index: 23, kind: input, shape index: {}]   ;;  %s20354_s24 = inlined_call_operand.hbm [shape: bf16[1024,768], index: 24, kind: input, shape index: {}]   ;;  %s20355_s25 = inlined_call_operand.hbm [shape: f32[1,768], index: 25, kind: input, shape index: {}]   ;;  %s20356_s26 = inlined_call_operand.vmem [shape: f32[2,768], index: 26, kind: output, shape index: {0}]   ;;  %s20357_s27 = inlined_call_operand.vmem [shape: f32[8,128], index: 27, kind: output, shape index: {1}]  }
   0x1   :  { %20359 = sst [smem:[#allocation54_spill]] %s20330_s0 }
   0x2   :  { %20360 = sst [smem:[#allocation55_spill]] %s20331_s1 }
   0x3   :  { %20361 = sst [smem:[#allocation56_spill]] %s20332_s2 }
   0x4   :  { %20362 = sst [smem:[#allocation57_spill]] %s20333_s3 }
   0x5   :  { %20363 = sst [smem:[#allocation58_spill]] %s20334_s4 }
   0x6   :  { %20364 = sst [smem:[#allocation59_spill]] %s20335_s5 }
   0x7   :  { %20365 = sst [smem:[#allocation60_spill]] %s20336_s6 }
   0x8   :  { %20366 = sst [smem:[#allocation61_spill]] %s20337_s7 }
   0x9   :  { %20367 = sst [smem:[#allocation62_spill]] %s20338_s8 }
   0xa   :  { %20368 = sst [smem:[#allocation63_spill]] %s20339_s9 }
   0xb   :  { %20369 = sst [smem:[#allocation64_spill]] %s20340_s10 }
   0xc   :  { %20370 = sst [smem:[#allocation65_spill]] %s20341_s11 }
   0xd   :  { %33 = vsyncpa [#allocation5], 0 }
   0xe   :  { %34 = vsyncpa [#allocation7], 0 }
   0xf   :  { %35 = vsyncpa [#allocation10], 0 }
  0x10   :  { %36 = vsyncpa [#allocation13], 0 }
  0x11   :  { %37 = vsyncpa [#allocation16], 0 }
  0x12   :  { %38 = vsyncpa [#allocation19], 0 }
  0x13   :  { %39 = vsyncpa [#allocation22], 0 }
  0x14   :  { %40 = vsyncpa [#allocation25], 0 }
  0x15   :  { %41 = vsyncpa [#allocation28], 0 }
  0x16   :  { %42 = vsyncpa [#allocation31], 0 }
  0x17   :  { %43 = vsyncpa [#allocation34], 0 }
  0x18   :  { %44 = vsyncpa [#allocation37], 0 }
  0x19   :  { %45 = vsyncpa [#allocation40], 0  ;;  %s19438_s7 = smov [#allocation6]   ;;  %s19439_s8 = smov [#allocation9]  }
  0x1a   :  { %s66_s4 = sshll.u32 %s19438_s7, 4  ;;  %s88_s30 = sshll.u32 %s19439_s8, 4  ;;  %s67_s4 = int_to_ptr.vmem [resolvable:$true] %s66_s4  ;;  %s89_s30 = int_to_ptr.vmem [resolvable:$true] %s88_s30 }
  0x1b   :  { %s18940_s9 = scalar_lea.vmem %s67_s4, 128  ;;  %p18945_p1 = scmp.lt.s32.totalorder %s67_s4, %s67_s4 }
  0x1c   :  { %p18941_p0 = scmp.ne.s32.totalorder %s67_s4, %s18940_s9  ;;  %p18946_p2 = scmp.lt.s32.totalorder %s18940_s9, %s18940_s9 }
  0x1e   :  { %p18947_p3 = por %p18946_p2, %p18945_p1 }
  0x20   :  { %p18948_p4 = pnand %p18947_p3, %p18941_p0 }
  0x22   :  { %18951 = shalt.err (!%p18948_p4)
}
  0x23   :  { %s20371_s0 = sld [smem:[#allocation56_spill]]  ;;  %s18960_s10 = scalar_lea.vmem %s89_s30, 64 }
  0x24   :  { %p18961_p5 = scmp.ne.s32.totalorder %s89_s30, %s18960_s10  ;;  %p18965_p6 = scmp.lt.s32.totalorder %s89_s30, %s89_s30 }
  0x25   :  { %p18966_p7 = scmp.lt.s32.totalorder %s18960_s10, %s18960_s10 }
  0x27   :  { %p18967_p8 = por %p18966_p7, %p18965_p6 }
  0x29   :  { %69 = dma.hbm_to_vmem [thread:$0]  %s20371_s0, 128, %s67_s4, [#allocation7]  }
  0x2a   :  { %p18968_p9 = pnand %p18967_p8, %p18961_p5 }
  0x2c   :  { %18971 = shalt.err (!%p18968_p9)
}
  0x2d   :  { %s20372_s6 = sld [smem:[#allocation58_spill]]  ;;  %s19440_s11 = smov [#allocation12]  }
  0x2e   :  { %s110_s2 = sshll.u32 %s19440_s11, 4  ;;  %s111_s2 = int_to_ptr.vmem [resolvable:$true] %s110_s2 }
  0x2f   :  { %s18980_s3 = scalar_lea.vmem %s111_s2, 64  ;;  %p18985_p11 = scmp.lt.s32.totalorder %s111_s2, %s111_s2 }
  0x30   :  { %p18981_p10 = scmp.ne.s32.totalorder %s111_s2, %s18980_s3  ;;  %p18986_p12 = scmp.lt.s32.totalorder %s18980_s3, %s18980_s3 }
  0x32   :  { %p18987_p13 = por %p18986_p12, %p18985_p11 }
  0x33   :  { %91 = dma.hbm_to_vmem [thread:$0]  %s20372_s6, 64, %s89_s30, [#allocation10]  }
  0x34   :  { %p18988_p0 = pnand %p18987_p13, %p18981_p10 }
  0x36   :  { %18991 = shalt.err (!%p18988_p0)
}
  0x37   :  { %s20373_s8 = sld [smem:[#allocation60_spill]]  ;;  %s19441_s9 = smov [#allocation15]  }
  0x38   :  { %s131_s5 = sshll.u32 %s19441_s9, 4  ;;  %s19442_s28 = smov [#allocation18]   ;;  %s132_s5 = int_to_ptr.vmem [resolvable:$true] %s131_s5 }
  0x39   :  { %s155_s0 = sshll.u32 %s19442_s28, 4  ;;  %s19000_s30 = scalar_lea.vmem %s132_s5, 4096  ;;  %s156_s0 = int_to_ptr.vmem [resolvable:$true] %s155_s0 }
  0x3a   :  { %p19001_p1 = scmp.ne.s32.totalorder %s132_s5, %s19000_s30  ;;  %p19005_p2 = scmp.lt.s32.totalorder %s132_s5, %s132_s5 }
  0x3b   :  { %p19006_p3 = scmp.lt.s32.totalorder %s19000_s30, %s19000_s30 }
  0x3d   :  { %113 = dma.hbm_to_vmem [thread:$0]  %s20373_s8, 64, %s111_s2, [#allocation13]  }
  0x3e   :  { %p19007_p4 = por %p19006_p3, %p19005_p2 }
  0x40   :  { %p19008_p5 = pnand %p19007_p4, %p19001_p1 }
  0x42   :  { %19011 = shalt.err (!%p19008_p5)
}
  0x43   :  { %s19443_s10 = smov 256   ;;  %s19444_s29 = smov 16  }
  0x44   :  { %s20374_s11 = sld [smem:[#allocation62_spill]]  ;;  %s19020_s2 = scalar_lea.vmem %s156_s0, 4096 }
  0x45   :  { %p19021_p6 = scmp.ne.s32.totalorder %s156_s0, %s19020_s2  ;;  %p19025_p7 = scmp.lt.s32.totalorder %s156_s0, %s156_s0 }
  0x46   :  { %p19026_p8 = scmp.lt.s32.totalorder %s19020_s2, %s19020_s2 }
  0x48   :  { %p19027_p9 = por %p19026_p8, %p19025_p7 }
  0x4a   :  { %137 = dma.hbm_to_vmem [thread:$0]  %s20374_s11, 4096, %s132_s5, [#allocation16], %s19443_s10, %s19443_s10, %s19444_s29  }
  0x4b   :  { %p19028_p10 = pnand %p19027_p9, %p19021_p6 }
  0x4d   :  { %19031 = shalt.err (!%p19028_p10)
}
  0x4e   :  { %s20375_s4 = sld [smem:[#allocation64_spill]]  ;;  %s19445_s8 = smov [#allocation21]  }
  0x4f   :  { %s180_s9 = sshll.u32 %s19445_s8, 4  ;;  %s19446_s28 = smov [#allocation24]   ;;  %s181_s9 = int_to_ptr.vmem [resolvable:$true] %s180_s9 }
  0x50   :  { %s204_s5 = sshll.u32 %s19446_s28, 4  ;;  %s19040_s30 = scalar_lea.vmem %s181_s9, 32  ;;  %s205_s5 = int_to_ptr.vmem [resolvable:$true] %s204_s5 }
  0x51   :  { %p19041_p11 = scmp.ne.s32.totalorder %s181_s9, %s19040_s30  ;;  %p19045_p12 = scmp.lt.s32.totalorder %s181_s9, %s181_s9 }
  0x52   :  { %p19046_p13 = scmp.lt.s32.totalorder %s19040_s30, %s19040_s30 }
  0x54   :  { %161 = dma.hbm_to_vmem [thread:$0]  %s20375_s4, 4096, %s156_s0, [#allocation19], %s19443_s10, %s19443_s10, %s19444_s29  }
  0x55   :  { %p19047_p0 = por %p19046_p13, %p19045_p12 }
  0x57   :  { %p19048_p1 = pnand %p19047_p0, %p19041_p11 }
  0x59   :  { %19051 = shalt.err (!%p19048_p1)
}
  0x5a   :  { %183 = dma.hbm_to_vmem [thread:$0]  %s20342_s12, 32, %s181_s9, [#allocation22]  }
  0x5b   :  { %s19060_s11 = scalar_lea.vmem %s205_s5, 16  ;;  %s19064_s0 = scalar_lea.vmem %s205_s5, 32 }
  0x5c   :  { %p19061_p2 = scmp.ne.s32.totalorder %s205_s5, %s19060_s11  ;;  %p19065_p3 = scmp.lt.s32.totalorder %s205_s5, %s205_s5 }
  0x5d   :  { %p19066_p4 = scmp.lt.s32.totalorder %s19064_s0, %s19060_s11 }
  0x5f   :  { %p19067_p5 = por %p19066_p4, %p19065_p3 }
  0x61   :  { %p19068_p6 = pnand %p19067_p5, %p19061_p2 }
  0x63   :  { %19071 = shalt.err (!%p19068_p6)
}
  0x64   :  { %207 = dma.hbm_to_vmem [thread:$0]  %s20345_s15, 16, %s205_s5, [#allocation25]  }
  0x65   :  { %s19447_s7 = smov [#allocation27]   ;;  %s19448_s8 = smov [#allocation30]  }
  0x66   :  { %s226_s4 = sshll.u32 %s19447_s7, 4  ;;  %s247_s28 = sshll.u32 %s19448_s8, 4  ;;  %s227_s4 = int_to_ptr.vmem [resolvable:$true] %s226_s4  ;;  %s248_s28 = int_to_ptr.vmem [resolvable:$true] %s247_s28 }
  0x67   :  { %s19080_s30 = scalar_lea.vmem %s227_s4, 64  ;;  %p19085_p8 = scmp.lt.s32.totalorder %s227_s4, %s227_s4 }
  0x68   :  { %p19081_p7 = scmp.ne.s32.totalorder %s227_s4, %s19080_s30  ;;  %p19086_p9 = scmp.lt.s32.totalorder %s19080_s30, %s19080_s30 }
  0x6a   :  { %p19087_p10 = por %p19086_p9, %p19085_p8 }
  0x6c   :  { %p19088_p11 = pnand %p19087_p10, %p19081_p7 }
  0x6e   :  { %19091 = shalt.err (!%p19088_p11)
}
  0x6f   :  { %229 = dma.hbm_to_vmem [thread:$0]  %s20347_s17, 64, %s227_s4, [#allocation28]  }
  0x70   :  { %s19100_s1 = scalar_lea.vmem %s248_s28, 4096  ;;  %p19105_p13 = scmp.lt.s32.totalorder %s248_s28, %s248_s28 }
  0x71   :  { %p19101_p12 = scmp.ne.s32.totalorder %s248_s28, %s19100_s1  ;;  %p19106_p0 = scmp.lt.s32.totalorder %s19100_s1, %s19100_s1 }
  0x73   :  { %p19107_p1 = por %p19106_p0, %p19105_p13 }
  0x75   :  { %p19108_p2 = pnand %p19107_p1, %p19101_p12 }
  0x77   :  { %19111 = shalt.err (!%p19108_p2)
}
  0x78   :  { %253 = dma.hbm_to_vmem [thread:$0]  %s20349_s19, 4096, %s248_s28, [#allocation31], %s19443_s10, %s19443_s10, %s19444_s29  }
  0x79   :  { %s19449_s6 = smov [#allocation33]   ;;  %s19450_s0 = smov [#allocation36]  }
  0x7a   :  { %s271_s11 = sshll.u32 %s19449_s6, 4  ;;  %s296_s17 = sshll.u32 %s19450_s0, 4  ;;  %s272_s11 = int_to_ptr.vmem [resolvable:$true] %s271_s11  ;;  %s297_s17 = int_to_ptr.vmem [resolvable:$true] %s296_s17 }
  0x7b   :  { %s19120_s2 = scalar_lea.vmem %s272_s11, 4096  ;;  %p19125_p4 = scmp.lt.s32.totalorder %s272_s11, %s272_s11 }
  0x7c   :  { %p19121_p3 = scmp.ne.s32.totalorder %s272_s11, %s19120_s2  ;;  %p19126_p5 = scmp.lt.s32.totalorder %s19120_s2, %s19120_s2 }
  0x7e   :  { %p19127_p6 = por %p19126_p5, %p19125_p4 }
  0x80   :  { %p19128_p7 = pnand %p19127_p6, %p19121_p3 }
  0x82   :  { %19131 = shalt.err (!%p19128_p7)
}
  0x83   :  { %277 = dma.hbm_to_vmem [thread:$0]  %s20351_s21, 4096, %s272_s11, [#allocation34], %s19443_s10, %s19443_s10, %s19444_s29  }
  0x84   :  { %s19140_s19 = scalar_lea.vmem %s297_s17, 128  ;;  %p19145_p9 = scmp.lt.s32.totalorder %s297_s17, %s297_s17 }
  0x85   :  { %p19141_p8 = scmp.ne.s32.totalorder %s297_s17, %s19140_s19  ;;  %p19146_p10 = scmp.lt.s32.totalorder %s19140_s19, %s19140_s19 }
  0x87   :  { %p19147_p11 = por %p19146_p10, %p19145_p9 }
  0x89   :  { %p19148_p12 = pnand %p19147_p11, %p19141_p8 }
  0x8b   :  { %19151 = shalt.err (!%p19148_p12)
}
  0x8c   :  { %299 = dma.hbm_to_vmem [thread:$0]  %s20353_s23, 128, %s297_s17, [#allocation37]  }
  0x8d   :  { %s19451_s28 = smov [#allocation4]  }
  0x8e   :  { %s53_s30 = sshll.u32 %s19451_s28, 4  ;;  %s54_s30 = int_to_ptr.vmem [resolvable:$true] %s53_s30 }
  0x8f   :  { %s19160_s12 = scalar_lea.vmem %s54_s30, 49152  ;;  %p19165_p0 = scmp.lt.s32.totalorder %s54_s30, %s54_s30 }
  0x90   :  { %p19161_p13 = scmp.ne.s32.totalorder %s54_s30, %s19160_s12  ;;  %p19166_p1 = scmp.lt.s32.totalorder %s19160_s12, %s19160_s12 }
  0x92   :  { %p19167_p2 = por %p19166_p1, %p19165_p0 }
  0x94   :  { %p19168_p3 = pnand %p19167_p2, %p19161_p13 }
  0x96   :  { %19171 = shalt.err (!%p19168_p3)
}
  0x97   :  { %s19452_s21 = smov 512   ;;  %s19453_s9 = smov 32  }
  0x98   :  { %s20376_s5 = sld [smem:[#allocation55_spill]]  ;;  %s19454_s23 = smov [#allocation8]  }
  0x99   :  { %s75_s6 = sshll.u32 %s19454_s23, 4  ;;  %s19455_s11 = smov [#allocation11]   ;;  %s76_s6 = int_to_ptr.vmem [resolvable:$true] %s75_s6 }
  0x9a   :  { %s97_s0 = sshll.u32 %s19455_s11, 4  ;;  %s19180_s17 = scalar_lea.vmem %s76_s6, 32768  ;;  %s98_s0 = int_to_ptr.vmem [resolvable:$true] %s97_s0 }
  0x9b   :  { %p19181_p4 = scmp.ne.s32.totalorder %s76_s6, %s19180_s17  ;;  %p19185_p5 = scmp.lt.s32.totalorder %s76_s6, %s76_s6 }
  0x9c   :  { %p19186_p6 = scmp.lt.s32.totalorder %s19180_s17, %s19180_s17 }
  0x9e   :  { %59 = dma.hbm_to_vmem [thread:$0]  %s20376_s5, 49152, %s54_s30, [#allocation5], %s19452_s21, %s19452_s21, %s19453_s9  }
  0x9f   :  { %p19187_p7 = por %p19186_p6, %p19185_p5 }
  0xa1   :  { %p19188_p8 = pnand %p19187_p7, %p19181_p4 }
  0xa3   :  { %19191 = shalt.err (!%p19188_p8)
}
  0xa4   :  { %s20377_s7 = sld [smem:[#allocation57_spill]]  ;;  %s19200_s19 = scalar_lea.vmem %s98_s0, 16384 }
  0xa5   :  { %p19201_p9 = scmp.ne.s32.totalorder %s98_s0, %s19200_s19  ;;  %p19205_p10 = scmp.lt.s32.totalorder %s98_s0, %s98_s0 }
  0xa6   :  { %p19206_p11 = scmp.lt.s32.totalorder %s19200_s19, %s19200_s19 }
  0xa8   :  { %p19207_p12 = por %p19206_p11, %p19205_p10 }
  0xaa   :  { %81 = dma.hbm_to_vmem [thread:$0]  %s20377_s7, 32768, %s76_s6, [#allocation7], %s19443_s10, %s19443_s10, %s19444_s29  }
  0xab   :  { %p19208_p13 = pnand %p19207_p12, %p19201_p9 }
  0xad   :  { %19211 = shalt.err (!%p19208_p13)
}
  0xae   :  { %s20378_s28 = sld [smem:[#allocation59_spill]]  ;;  %s19456_s30 = smov [#allocation14]  }
  0xaf   :  { %s119_s12 = sshll.u32 %s19456_s30, 4  ;;  %s120_s12 = int_to_ptr.vmem [resolvable:$true] %s119_s12 }
  0xb0   :  { %s19220_s1 = scalar_lea.vmem %s120_s12, 4096  ;;  %p19225_p1 = scmp.lt.s32.totalorder %s120_s12, %s120_s12 }
  0xb1   :  { %p19221_p0 = scmp.ne.s32.totalorder %s120_s12, %s19220_s1  ;;  %p19226_p2 = scmp.lt.s32.totalorder %s19220_s1, %s19220_s1 }
  0xb3   :  { %p19227_p3 = por %p19226_p2, %p19225_p1 }
  0xb4   :  { %103 = dma.hbm_to_vmem [thread:$0]  %s20378_s28, 16384, %s98_s0, [#allocation10], %s19443_s10, %s19443_s10, %s19444_s29  }
  0xb5   :  { %p19228_p4 = pnand %p19227_p3, %p19221_p0 }
  0xb7   :  { %19231 = shalt.err (!%p19228_p4)
}
  0xb8   :  { %s19457_s15 = smov 64   ;;  %s19458_s5 = smov 4  }
  0xb9   :  { %s20379_s11 = sld [smem:[#allocation61_spill]]  ;;  %s19459_s0 = smov [#allocation17]  }
  0xba   :  { %s143_s17 = sshll.u32 %s19459_s0, 4  ;;  %s19460_s2 = smov [#allocation20]   ;;  %s144_s17 = int_to_ptr.vmem [resolvable:$true] %s143_s17 }
  0xbb   :  { %s167_s3 = sshll.u32 %s19460_s2, 4  ;;  %s19240_s7 = scalar_lea.vmem %s144_s17, 4096  ;;  %s168_s3 = int_to_ptr.vmem [resolvable:$true] %s167_s3 }
  0xbc   :  { %p19241_p5 = scmp.ne.s32.totalorder %s144_s17, %s19240_s7  ;;  %p19245_p6 = scmp.lt.s32.totalorder %s144_s17, %s144_s17 }
  0xbd   :  { %p19246_p7 = scmp.lt.s32.totalorder %s19240_s7, %s19240_s7 }
  0xbf   :  { %125 = dma.hbm_to_vmem [thread:$0]  %s20379_s11, 4096, %s120_s12, [#allocation13], %s19457_s15, %s19457_s15, %s19458_s5  }
  0xc0   :  { %p19247_p8 = por %p19246_p7, %p19245_p6 }
  0xc2   :  { %p19248_p9 = pnand %p19247_p8, %p19241_p5 }
  0xc4   :  { %19251 = shalt.err (!%p19248_p9)
}
  0xc5   :  { %s20380_s8 = sld [smem:[#allocation63_spill]]  ;;  %s19260_s28 = scalar_lea.vmem %s168_s3, 8192 }
  0xc6   :  { %p19261_p10 = scmp.ne.s32.totalorder %s168_s3, %s19260_s28  ;;  %p19265_p11 = scmp.lt.s32.totalorder %s168_s3, %s168_s3 }
  0xc7   :  { %p19266_p12 = scmp.lt.s32.totalorder %s19260_s28, %s19260_s28 }
  0xc9   :  { %p19267_p13 = por %p19266_p12, %p19265_p11 }
  0xcb   :  { %149 = dma.hbm_to_vmem [thread:$0]  %s20380_s8, 4096, %s144_s17, [#allocation16], %s19457_s15, %s19457_s15, %s19458_s5  }
  0xcc   :  { %p19268_p0 = pnand %p19267_p13, %p19261_p10 }
  0xce   :  { %19271 = shalt.err (!%p19268_p0)
}
  0xcf   :  { %s19461_s30 = smov 128   ;;  %s19462_s12 = smov 8  }
  0xd0   :  { %s20381_s6 = sld [smem:[#allocation65_spill]]  ;;  %s19463_s11 = smov [#allocation23]  }
  0xd1   :  { %s191_s0 = sshll.u32 %s19463_s11, 4  ;;  %s19464_s2 = smov [#allocation26]   ;;  %s192_s0 = int_to_ptr.vmem [resolvable:$true] %s191_s0 }
  0xd2   :  { %s213_s7 = sshll.u32 %s19464_s2, 4  ;;  %s19280_s17 = scalar_lea.vmem %s192_s0, 128  ;;  %s214_s7 = int_to_ptr.vmem [resolvable:$true] %s213_s7 }
  0xd3   :  { %p19281_p1 = scmp.ne.s32.totalorder %s192_s0, %s19280_s17  ;;  %p19285_p2 = scmp.lt.s32.totalorder %s192_s0, %s192_s0 }
  0xd4   :  { %p19286_p3 = scmp.lt.s32.totalorder %s19280_s17, %s19280_s17 }
  0xd6   :  { %173 = dma.hbm_to_vmem [thread:$0]  %s20381_s6, 8192, %s168_s3, [#allocation19], %s19461_s30, %s19461_s30, %s19462_s12  }
  0xd7   :  { %p19287_p4 = por %p19286_p3, %p19285_p2 }
  0xd9   :  { %p19288_p5 = pnand %p19287_p4, %p19281_p1 }
  0xdb   :  { %19291 = shalt.err (!%p19288_p5)
}
  0xdc   :  { %197 = dma.hbm_to_vmem [thread:$0]  %s20344_s14, 128, %s192_s0, [#allocation22], %s19457_s15, %s19457_s15, %s19458_s5  }
  0xdd   :  { %s19300_s3 = scalar_lea.vmem %s214_s7, 8192  ;;  %p19305_p7 = scmp.lt.s32.totalorder %s214_s7, %s214_s7 }
  0xde   :  { %p19301_p6 = scmp.ne.s32.totalorder %s214_s7, %s19300_s3  ;;  %p19306_p8 = scmp.lt.s32.totalorder %s19300_s3, %s19300_s3 }
  0xe0   :  { %p19307_p9 = por %p19306_p8, %p19305_p7 }
  0xe2   :  { %p19308_p10 = pnand %p19307_p9, %p19301_p6 }
  0xe4   :  { %19311 = shalt.err (!%p19308_p10)
}
  0xe5   :  { %219 = dma.hbm_to_vmem [thread:$0]  %s20346_s16, 8192, %s214_s7, [#allocation25], %s19443_s10, %s19443_s10, %s19444_s29  }
  0xe6   :  { %s19465_s30 = smov [#allocation29]   ;;  %s19466_s1 = smov [#allocation32]  }
  0xe7   :  { %s235_s12 = sshll.u32 %s19465_s30, 4  ;;  %s259_s14 = sshll.u32 %s19466_s1, 4  ;;  %s236_s12 = int_to_ptr.vmem [resolvable:$true] %s235_s12  ;;  %s260_s14 = int_to_ptr.vmem [resolvable:$true] %s259_s14 }
  0xe8   :  { %s19320_s23 = scalar_lea.vmem %s236_s12, 4096  ;;  %p19325_p12 = scmp.lt.s32.totalorder %s236_s12, %s236_s12 }
  0xe9   :  { %p19321_p11 = scmp.ne.s32.totalorder %s236_s12, %s19320_s23  ;;  %p19326_p13 = scmp.lt.s32.totalorder %s19320_s23, %s19320_s23 }
  0xeb   :  { %p19327_p0 = por %p19326_p13, %p19325_p12 }
  0xed   :  { %p19328_p1 = pnand %p19327_p0, %p19321_p11 }
  0xef   :  { %19331 = shalt.err (!%p19328_p1)
}
  0xf0   :  { %241 = dma.hbm_to_vmem [thread:$0]  %s20348_s18, 4096, %s236_s12, [#allocation28], %s19457_s15, %s19457_s15, %s19458_s5  }
  0xf1   :  { %s19340_s16 = scalar_lea.vmem %s260_s14, 4096  ;;  %p19345_p3 = scmp.lt.s32.totalorder %s260_s14, %s260_s14 }
  0xf2   :  { %p19341_p2 = scmp.ne.s32.totalorder %s260_s14, %s19340_s16  ;;  %p19346_p4 = scmp.lt.s32.totalorder %s19340_s16, %s19340_s16 }
  0xf4   :  { %p19347_p5 = por %p19346_p4, %p19345_p3 }
  0xf6   :  { %p19348_p6 = pnand %p19347_p5, %p19341_p2 }
  0xf8   :  { %19351 = shalt.err (!%p19348_p6)
}
  0xf9   :  { %265 = dma.hbm_to_vmem [thread:$0]  %s20350_s20, 4096, %s260_s14, [#allocation31], %s19457_s15, %s19457_s15, %s19458_s5  }
  0xfa   :  { %s19467_s2 = smov [#allocation35]   ;;  %s19468_s17 = smov [#allocation38]  }
  0xfb   :  { %s283_s7 = sshll.u32 %s19467_s2, 4  ;;  %s305_s18 = sshll.u32 %s19468_s17, 4  ;;  %s284_s7 = int_to_ptr.vmem [resolvable:$true] %s283_s7  ;;  %s306_s18 = int_to_ptr.vmem [resolvable:$true] %s305_s18 }
  0xfc   :  { %s19360_s19 = scalar_lea.vmem %s284_s7, 32768  ;;  %p19365_p8 = scmp.lt.s32.totalorder %s284_s7, %s284_s7 }
  0xfd   :  { %p19361_p7 = scmp.ne.s32.totalorder %s284_s7, %s19360_s19  ;;  %p19366_p9 = scmp.lt.s32.totalorder %s19360_s19, %s19360_s19 }
  0xff   :  { %p19367_p10 = por %p19366_p9, %p19365_p8 }
 0x101   :  { %p19368_p11 = pnand %p19367_p10, %p19361_p7 }
 0x103   :  { %19371 = shalt.err (!%p19368_p11)
}
 0x104   :  { %289 = dma.hbm_to_vmem [thread:$0]  %s20352_s22, 32768, %s284_s7, [#allocation34], %s19452_s21, %s19452_s21, %s19453_s9  }
 0x105   :  { %s19380_s20 = scalar_lea.vmem %s306_s18, 49152  ;;  %p19385_p13 = scmp.lt.s32.totalorder %s306_s18, %s306_s18 }
 0x106   :  { %p19381_p12 = scmp.ne.s32.totalorder %s306_s18, %s19380_s20  ;;  %p19386_p0 = scmp.lt.s32.totalorder %s19380_s20, %s19380_s20 }
 0x108   :  { %p19387_p1 = por %p19386_p0, %p19385_p13 }
 0x10a   :  { %p19388_p2 = pnand %p19387_p1, %p19381_p12 }
 0x10c   :  { %19391 = shalt.err (!%p19388_p2)
}
 0x10d   :  { %s19469_s5 = smov 384   ;;  %s19470_s8 = smov 24  }
 0x10e   :  { %311 = dma.hbm_to_vmem [thread:$0]  %s20354_s24, 49152, %s306_s18, [#allocation37], %s19469_s5, %s19469_s5, %s19470_s8  }
 0x10f   :  { %s19471_s12 = smov [#allocation39]  }
 0x110   :  { %s318_s1 = sshll.u32 %s19471_s12, 4  ;;  %s319_s1 = int_to_ptr.vmem [resolvable:$true] %s318_s1 }
 0x111   :  { %s19400_s14 = scalar_lea.vmem %s319_s1, 96  ;;  %p19405_p4 = scmp.lt.s32.totalorder %s319_s1, %s319_s1 }
 0x112   :  { %p19401_p3 = scmp.ne.s32.totalorder %s319_s1, %s19400_s14  ;;  %p19406_p5 = scmp.lt.s32.totalorder %s19400_s14, %s19400_s14 }
 0x114   :  { %p19407_p6 = por %p19406_p5, %p19405_p4 }
 0x116   :  { %p19408_p7 = pnand %p19407_p6, %p19401_p3 }
 0x118   :  { %19411 = shalt.err (!%p19408_p7)
}
 0x119   :  { %321 = dma.hbm_to_vmem [thread:$0]  %s20355_s25, 96, %s319_s1, [#allocation40]  }
 0x11a   :  { %19412 = dma.done.wait [#allocation5], 49152  }
 0x11b   :  { %19413 = vsyncadd [#allocation5], 4294918144 }
 0x11c   :  { %19414 = dma.done.wait [#allocation7], 32896  }
 0x11d   :  { %19415 = vsyncadd [#allocation7], 4294934400 }
 0x11e   :  { %19416 = dma.done.wait [#allocation10], 16448  }
 0x11f   :  { %19417 = vsyncadd [#allocation10], 4294950848 }
 0x120   :  { %19418 = dma.done.wait [#allocation13], 4160  }
 0x121   :  { %19419 = vsyncadd [#allocation13], 4294963136 }
 0x122   :  { %19420 = dma.done.wait [#allocation16], 8192  }
 0x123   :  { %19421 = vsyncadd [#allocation16], 4294959104 }
 0x124   :  { %19422 = dma.done.wait [#allocation19], 12288  }
 0x125   :  { %19423 = vsyncadd [#allocation19], 4294955008 }
 0x126   :  { %19424 = dma.done.wait [#allocation22], 160  }
 0x127   :  { %19425 = vsyncadd [#allocation22], 4294967136 }
 0x128   :  { %19426 = dma.done.wait [#allocation25], 8208  }
 0x129   :  { %19427 = vsyncadd [#allocation25], 4294959088 }
 0x12a   :  { %19428 = dma.done.wait [#allocation28], 4160  }
 0x12b   :  { %19429 = vsyncadd [#allocation28], 4294963136 }
 0x12c   :  { %19430 = dma.done.wait [#allocation31], 8192  }
 0x12d   :  { %19431 = vsyncadd [#allocation31], 4294959104 }
 0x12e   :  { %19432 = dma.done.wait [#allocation34], 36864  }
 0x12f   :  { %19433 = vsyncadd [#allocation34], 4294930432 }
 0x130   :  { %19434 = dma.done.wait [#allocation37], 49280  }
 0x131   :  { %19435 = vsyncadd [#allocation37], 4294918016 }
 0x132   :  { %19436 = dma.done.wait [#allocation40], 96  }
 0x133   :  { %19437 = vsyncadd [#allocation40], 4294967200  ;;  %v492_v0 = vld [vmem:[#allocation4 + $0x1c0] sm:$0xff]  ;;  %v19472_v32 = vmov 1983009808   ;;  %v403_v34 = vlaneseq  ;;  %s20382_s23 = sld [smem:[#allocation54_spill]] }
 0x134   :  { %v496_v1 = vld [vmem:[#allocation4 + $0x1e0] sm:$0xff]  ;;  %v401_v33 = vunpack.c.l.s4 %v19472_v32  ;;  %vm7885_vm0 = vcmask 123904   ;;  %s19474_s16 = smov 80   ;;  %s19475_s10 = smov 112   ;;  %vm8085_vm1 = vcmask 130048   ;;  %vm8176_vm2 = vcmask 261120  }
 0x135   :  { %v620_v2 = vld [vmem:[#allocation4 + $0x5c0] sm:$0xff]  ;;  %v15238_v3 = vcombine.high %v492_v0, %v496_v1  ;;  %v15237_v5 = vcombine.low %v492_v0, %v496_v1  ;;  %v19734_v44 = vshrl.u32 %v403_v34, 7  ;;  %s19476_s0 = smov 96   ;;  %s19477_s2 = smov 48   ;;  %vm8415_vm15 = vcmask 253952  }
 0x136   :  { %v624_v4 = vld [vmem:[#allocation4 + $0x5e0] sm:$0xff]  ;;  %v402_v43 = vunpack.c.0.s8 %v401_v33 }
 0x137   :  { %v484_v6 = vld [vmem:[#allocation4 + $0x180] sm:$0xff]  ;;  %v15366_v8 = vcombine.high %v620_v2, %v624_v4  ;;  %v15365_v9 = vcombine.low %v620_v2, %v624_v4  ;;  %2782 = vmatprep.subr.bf16.mxu0 %v15238_v3 }
 0x138   :  { %v488_v7 = vld [vmem:[#allocation4 + $0x1a0] sm:$0xff]  ;;  %2783 = vmatpush1.bf16.msra.mxu0 %v15237_v5  ;;  %v19737_v53 = vsub.s32 %v402_v43, %v19734_v44 }
 0x139   :  { %v15230_v10 = vcombine.high %v484_v6, %v488_v7  ;;  %v612_v11 = vld [vmem:[#allocation4 + $0x580] sm:$0xff]  ;;  %2823 = vmatprep.subr.bf16.mxu1 %v15366_v8  ;;  %v15229_v18 = vcombine.low %v484_v6, %v488_v7 }
 0x13a   :  { %v616_v12 = vld [vmem:[#allocation4 + $0x5a0] sm:$0xff]  ;;  %2824 = vmatpush1.bf16.msra.mxu1 %v15365_v9 }
 0x13b   :  { %v476_v13 = vld [vmem:[#allocation4 + $0x140] sm:$0xff]  ;;  %v15358_v14 = vcombine.high %v612_v11, %v616_v12  ;;  %2784 = vmatprep.subr.bf16.mxu0 %v15230_v10  ;;  %v15357_v19 = vcombine.low %v612_v11, %v616_v12 }
 0x13c   :  { %v480_v15 = vld [vmem:[#allocation4 + $0x160] sm:$0xff]  ;;  %2785 = vmatpush1.bf16.msra.mxu0 %v15229_v18 }
 0x13d   :  { %v604_v16 = vld [vmem:[#allocation4 + $0x540] sm:$0xff]  ;;  %v15222_v20 = vcombine.high %v476_v13, %v480_v15  ;;  %2825 = vmatprep.subr.bf16.mxu1 %v15358_v14  ;;  %v15221_v26 = vcombine.low %v476_v13, %v480_v15 }
 0x13e   :  { %v608_v17 = vld [vmem:[#allocation4 + $0x560] sm:$0xff]  ;;  %2826 = vmatpush1.bf16.msra.mxu1 %v15357_v19 }
 0x13f   :  { %v15350_v21 = vcombine.high %v604_v16, %v608_v17  ;;  %v468_v22 = vld [vmem:[#allocation4 + $0x100] sm:$0xff]  ;;  %2786 = vmatprep.subr.bf16.mxu0 %v15222_v20  ;;  %v15349_v27 = vcombine.low %v604_v16, %v608_v17 }
 0x140   :  { %v472_v23 = vld [vmem:[#allocation4 + $0x120] sm:$0xff]  ;;  %2787 = vmatpush1.bf16.msra.mxu0 %v15221_v26 }
 0x141   :  { %v596_v24 = vld [vmem:[#allocation4 + $0x500] sm:$0xff]  ;;  %v15214_v28 = vcombine.high %v468_v22, %v472_v23  ;;  %2827 = vmatprep.subr.bf16.mxu1 %v15350_v21  ;;  %v15213_v37 = vcombine.low %v468_v22, %v472_v23 }
 0x142   :  { %v600_v25 = vld [vmem:[#allocation4 + $0x520] sm:$0xff]  ;;  %2828 = vmatpush1.bf16.msra.mxu1 %v15349_v27 }
 0x143   :  { %v15342_v29 = vcombine.high %v596_v24, %v600_v25  ;;  %v460_v30 = vld [vmem:[#allocation4 + $0xc0] sm:$0xff]  ;;  %2788 = vmatprep.subr.bf16.mxu0 %v15214_v28  ;;  %v15341_v38 = vcombine.low %v596_v24, %v600_v25 }
 0x144   :  { %v464_v31 = vld [vmem:[#allocation4 + $0xe0] sm:$0xff]  ;;  %2789 = vmatpush1.bf16.msra.mxu0 %v15213_v37 }
 0x145   :  { %v588_v35 = vld [vmem:[#allocation4 + $0x4c0] sm:$0xff]  ;;  %v15206_v39 = vcombine.high %v460_v30, %v464_v31  ;;  %2829 = vmatprep.subr.bf16.mxu1 %v15342_v29  ;;  %v15205_v47 = vcombine.low %v460_v30, %v464_v31 }
 0x146   :  { %v592_v36 = vld [vmem:[#allocation4 + $0x4e0] sm:$0xff]  ;;  %2830 = vmatpush1.bf16.msra.mxu1 %v15341_v38 }
 0x147   :  { %v15334_v40 = vcombine.high %v588_v35, %v592_v36  ;;  %v452_v41 = vld [vmem:[#allocation4 + $0x80] sm:$0xff]  ;;  %2790 = vmatprep.subr.bf16.mxu0 %v15206_v39  ;;  %v15333_v48 = vcombine.low %v588_v35, %v592_v36 }
 0x148   :  { %v456_v42 = vld [vmem:[#allocation4 + $0xa0] sm:$0xff]  ;;  %2791 = vmatpush1.bf16.msra.mxu0 %v15205_v47 }
 0x149   :  { %v580_v45 = vld [vmem:[#allocation4 + $0x480] sm:$0xff]  ;;  %v15198_v49 = vcombine.high %v452_v41, %v456_v42  ;;  %2831 = vmatprep.subr.bf16.mxu1 %v15334_v40  ;;  %v15197_v56 = vcombine.low %v452_v41, %v456_v42 }
 0x14a   :  { %v584_v46 = vld [vmem:[#allocation4 + $0x4a0] sm:$0xff]  ;;  %2832 = vmatpush1.bf16.msra.mxu1 %v15333_v48 }
 0x14b   :  { %v15326_v50 = vcombine.high %v580_v45, %v584_v46  ;;  %v444_v51 = vld [vmem:[#allocation4 + $0x40] sm:$0xff]  ;;  %2792 = vmatprep.subr.bf16.mxu0 %v15198_v49  ;;  %v15325_v57 = vcombine.low %v580_v45, %v584_v46 }
 0x14c   :  { %v448_v52 = vld [vmem:[#allocation4 + $0x60] sm:$0xff]  ;;  %2793 = vmatpush1.bf16.msra.mxu0 %v15197_v56 }
 0x14d   :  { %v572_v54 = vld [vmem:[#allocation4 + $0x440] sm:$0xff]  ;;  %v15190_v58 = vcombine.high %v444_v51, %v448_v52  ;;  %2833 = vmatprep.subr.bf16.mxu1 %v15326_v50  ;;  %v15189_v3 = vcombine.low %v444_v51, %v448_v52 }
 0x14e   :  { %v576_v55 = vld [vmem:[#allocation4 + $0x460] sm:$0xff]  ;;  %2834 = vmatpush1.bf16.msra.mxu1 %v15325_v57 }
 0x14f   :  { %v395_v59 = vld [vmem:[%s20382_s23] sm:$0xff]  ;;  %v15318_v60 = vcombine.high %v572_v54, %v576_v55  ;;  %2794 = vmatprep.subr.bf16.mxu0 %v15190_v58  ;;  %v15317_v6 = vcombine.low %v572_v54, %v576_v55 }
 0x150   :  { %v436_v61 = vld [vmem:[#allocation4] sm:$0xff]  ;;  %v19743_v63 = vrot.slane %v395_v59, %v19737_v53  ;;  %v399_v0 = vcombine.high %v395_v59, %v395_v59  ;;  %2795 = vmatpush1.bf16.msra.mxu0 %v15189_v3 }
 0x151   :  { %v440_v62 = vld [vmem:[#allocation4 + $0x20] sm:$0xff]  ;;  %2835 = vmatprep.subr.bf16.mxu1 %v15318_v60 }
 0x152   :  { %v564_v1 = vld [vmem:[#allocation4 + $0x400] sm:$0xff]  ;;  %v414_v4 = vcombine.high %v19743_v63, %v19743_v63  ;;  %v19748_v5 = vrot.slane %v399_v0, %v19737_v53  ;;  %v15182_v7 = vcombine.high %v436_v61, %v440_v62  ;;  %v15181_v15 = vcombine.low %v436_v61, %v440_v62  ;;  %2836 = vmatpush1.bf16.msra.mxu1 %v15317_v6 }
 0x153   :  { %v568_v2 = vld [vmem:[#allocation4 + $0x420] sm:$0xff] }
 0x154   :  { %v15310_v8 = vcombine.high %v564_v1, %v568_v2  ;;  %v556_v9 = vld [vmem:[#allocation4 + $0x3c0] sm:$0xff]  ;;  %v19750_v11 = vpack.c.bf16 %v414_v4, %v414_v4  ;;  %v415_v12 = vcombine.high %v19748_v5, %v19748_v5  ;;  %2796 = vmatprep.subr.bf16.mxu0 %v15182_v7  ;;  %v15309_v17 = vcombine.low %v564_v1, %v568_v2 }
 0x155   :  { %v560_v10 = vld [vmem:[#allocation4 + $0x3e0] sm:$0xff]  ;;  %2797 = vmatpush1.bf16.msra.mxu0 %v15181_v15 }
 0x156   :  { %v684_v13 = vld [vmem:[#allocation4 + $0x7c0] sm:$0xff]  ;;  %2814 = vmatprep.mubr.bf16.mxu0 %v19750_v11  ;;  %v19755_v16 = vpack.c.bf16 %v415_v12, %v415_v12  ;;  %v15302_v18 = vcombine.high %v556_v9, %v560_v10  ;;  %2837 = vmatprep.subr.bf16.mxu1 %v15310_v8  ;;  %v15301_v24 = vcombine.low %v556_v9, %v560_v10 }
 0x157   :  { %v688_v14 = vld [vmem:[#allocation4 + $0x7e0] sm:$0xff]  ;;  %2838 = vmatpush1.bf16.msra.mxu1 %v15309_v17 }
 0x158   :  { %v15430_v19 = vcombine.high %v684_v13, %v688_v14  ;;  %v548_v20 = vld [vmem:[#allocation4 + $0x380] sm:$0xff]  ;;  %2855 = vmatprep.mubr.bf16.mxu1 %v19755_v16  ;;  %2798 = vmatprep.subr.bf16.mxu0 %v15302_v18  ;;  %v15429_v25 = vcombine.low %v684_v13, %v688_v14 }
 0x159   :  { %v552_v21 = vld [vmem:[#allocation4 + $0x3a0] sm:$0xff]  ;;  %2799 = vmatpush2.bf16.msra.mxu0 %v15301_v24 }
 0x15a   :  { %v676_v22 = vld [vmem:[#allocation4 + $0x780] sm:$0xff]  ;;  %v15294_v26 = vcombine.high %v548_v20, %v552_v21  ;;  %2839 = vmatprep.subr.bf16.mxu1 %v15430_v19  ;;  %v15293_v32 = vcombine.low %v548_v20, %v552_v21  ;;  %v493_v21 = vld [vmem:[#allocation4 + $0x1c8] sm:$0xff] }
 0x15b   :  { %v680_v23 = vld [vmem:[#allocation4 + $0x7a0] sm:$0xff]  ;;  %2840 = vmatpush2.bf16.msra.mxu1 %v15429_v25 }
 0x15c   :  { %v15422_v27 = vcombine.high %v676_v22, %v680_v23  ;;  %v540_v28 = vld [vmem:[#allocation4 + $0x340] sm:$0xff]  ;;  %2800 = vmatprep.subr.bf16.mxu0 %v15294_v26  ;;  %v15421_v33 = vcombine.low %v676_v22, %v680_v23  ;;  %v497_v22 = vld [vmem:[#allocation4 + $0x1e8] sm:$0xff] }
 0x15d   :  { %v544_v29 = vld [vmem:[#allocation4 + $0x360] sm:$0xff]  ;;  %2801 = vmatpush2.bf16.msra.mxu0 %v15293_v32  ;;  %v485_v32 = vld [vmem:[#allocation4 + $0x188] sm:$0xff] }
 0x15e   :  { %v668_v30 = vld [vmem:[#allocation4 + $0x740] sm:$0xff]  ;;  %v15286_v35 = vcombine.high %v540_v28, %v544_v29  ;;  %2841 = vmatprep.subr.bf16.mxu1 %v15422_v27  ;;  %v15285_v41 = vcombine.low %v540_v28, %v544_v29  ;;  %v15240_v27 = vcombine.high %v493_v21, %v497_v22 }
 0x15f   :  { %v672_v31 = vld [vmem:[#allocation4 + $0x760] sm:$0xff]  ;;  %2842 = vmatpush2.bf16.msra.mxu1 %v15421_v33  ;;  %v489_v33 = vld [vmem:[#allocation4 + $0x1a8] sm:$0xff] }
 0x160   :  { %v15414_v36 = vcombine.high %v668_v30, %v672_v31  ;;  %v532_v37 = vld [vmem:[#allocation4 + $0x300] sm:$0xff]  ;;  %2802 = vmatprep.subr.bf16.mxu0 %v15286_v35  ;;  %v15413_v42 = vcombine.low %v668_v30, %v672_v31  ;;  %v19767_v31 = vpack.c.bf16 %v19743_v63, %v19743_v63  ;;  %v19771_v35 = vpack.c.bf16 %v19748_v5, %v19748_v5 }
 0x161   :  { %v536_v38 = vld [vmem:[#allocation4 + $0x320] sm:$0xff]  ;;  %2803 = vmatpush2.bf16.msra.mxu0 %v15285_v41  ;;  %v477_v41 = vld [vmem:[#allocation4 + $0x148] sm:$0xff] }
 0x162   :  { %v660_v39 = vld [vmem:[#allocation4 + $0x700] sm:$0xff]  ;;  %v15278_v43 = vcombine.high %v532_v37, %v536_v38  ;;  %2843 = vmatprep.subr.bf16.mxu1 %v15414_v36  ;;  %v15277_v50 = vcombine.low %v532_v37, %v536_v38  ;;  %v15239_v37 = vcombine.low %v493_v21, %v497_v22  ;;  %v437_v22 = vld [vmem:[#allocation4 + $0x8] sm:$0xff] }
 0x163   :  { %v664_v40 = vld [vmem:[#allocation4 + $0x720] sm:$0xff]  ;;  %2844 = vmatpush2.bf16.msra.mxu1 %v15413_v42  ;;  %v15232_v42 = vcombine.high %v485_v32, %v489_v33 }
 0x164   :  { %v15406_v45 = vcombine.high %v660_v39, %v664_v40  ;;  %v524_v46 = vld [vmem:[#allocation4 + $0x2c0] sm:$0xff]  ;;  %2804 = vmatprep.subr.bf16.mxu0 %v15278_v43  ;;  %v15405_v51 = vcombine.low %v660_v39, %v664_v40  ;;  %v481_v43 = vld [vmem:[#allocation4 + $0x168] sm:$0xff] }
 0x165   :  { %v528_v47 = vld [vmem:[#allocation4 + $0x2e0] sm:$0xff]  ;;  %2805 = vmatpush2.bf16.msra.mxu0 %v15277_v50  ;;  %v15224_v50 = vcombine.high %v477_v41, %v481_v43 }
 0x166   :  { %v652_v48 = vld [vmem:[#allocation4 + $0x6c0] sm:$0xff]  ;;  %v15270_v52 = vcombine.high %v524_v46, %v528_v47  ;;  %2845 = vmatprep.subr.bf16.mxu1 %v15406_v45  ;;  %v15269_v59 = vcombine.low %v524_v46, %v528_v47  ;;  %v15231_v45 = vcombine.low %v485_v32, %v489_v33  ;;  %v557_v32 = vld [vmem:[#allocation4 + $0x3c8] sm:$0xff] }
 0x167   :  { %v656_v49 = vld [vmem:[#allocation4 + $0x6e0] sm:$0xff]  ;;  %2846 = vmatpush2.bf16.msra.mxu1 %v15405_v51  ;;  %v473_v51 = vld [vmem:[#allocation4 + $0x128] sm:$0xff] }
 0x168   :  { %v15398_v54 = vcombine.high %v652_v48, %v656_v49  ;;  %v516_v55 = vld [vmem:[#allocation4 + $0x280] sm:$0xff]  ;;  %2806 = vmatprep.subr.bf16.mxu0 %v15270_v52  ;;  %v15397_v60 = vcombine.low %v652_v48, %v656_v49  ;;  %v469_v49 = vld [vmem:[#allocation4 + $0x108] sm:$0xff] }
 0x169   :  { %v520_v56 = vld [vmem:[#allocation4 + $0x2a0] sm:$0xff]  ;;  %2807 = vmatpush2.bf16.msra.mxu0 %v15269_v59  ;;  %v15216_v59 = vcombine.high %v469_v49, %v473_v51 }
 0x16a   :  { %v644_v57 = vld [vmem:[#allocation4 + $0x680] sm:$0xff]  ;;  %v15262_v61 = vcombine.high %v516_v55, %v520_v56  ;;  %2847 = vmatprep.subr.bf16.mxu1 %v15398_v54  ;;  %v15261_v4 = vcombine.low %v516_v55, %v520_v56  ;;  %v15223_v54 = vcombine.low %v477_v41, %v481_v43 }
 0x16b   :  { %v648_v58 = vld [vmem:[#allocation4 + $0x6a0] sm:$0xff]  ;;  %2848 = vmatpush2.bf16.msra.mxu1 %v15397_v60  ;;  %v465_v60 = vld [vmem:[#allocation4 + $0xe8] sm:$0xff] }
 0x16c   :  { %v15390_v62 = vcombine.high %v644_v57, %v648_v58  ;;  %v508_v0 = vld [vmem:[#allocation4 + $0x240] sm:$0xff]  ;;  %2808 = vmatprep.subr.bf16.mxu0 %v15262_v61  ;;  %v15389_v6 = vcombine.low %v644_v57, %v648_v58  ;;  %v461_v58 = vld [vmem:[#allocation4 + $0xc8] sm:$0xff] }
 0x16d   :  { %v512_v1 = vld [vmem:[#allocation4 + $0x260] sm:$0xff]  ;;  %2809 = vmatpush2.bf16.msra.mxu0 %v15261_v4  ;;  %v15208_v4 = vcombine.high %v461_v58, %v465_v60 }
 0x16e   :  { %v636_v2 = vld [vmem:[#allocation4 + $0x640] sm:$0xff]  ;;  %v15254_v7 = vcombine.high %v508_v0, %v512_v1  ;;  %2849 = vmatprep.subr.bf16.mxu1 %v15390_v62  ;;  %v15253_v14 = vcombine.low %v508_v0, %v512_v1  ;;  %v15215_v62 = vcombine.low %v469_v49, %v473_v51 }
 0x16f   :  { %v640_v3 = vld [vmem:[#allocation4 + $0x660] sm:$0xff]  ;;  %2850 = vmatpush2.bf16.msra.mxu1 %v15389_v6  ;;  %v457_v6 = vld [vmem:[#allocation4 + $0xa8] sm:$0xff] }
 0x170   :  { %v15382_v8 = vcombine.high %v636_v2, %v640_v3  ;;  %v500_v9 = vld [vmem:[#allocation4 + $0x200] sm:$0xff]  ;;  %2810 = vmatprep.subr.bf16.mxu0 %v15254_v7  ;;  %v15381_v15 = vcombine.low %v636_v2, %v640_v3  ;;  %v453_v3 = vld [vmem:[#allocation4 + $0x88] sm:$0xff] }
 0x171   :  { %v504_v10 = vld [vmem:[#allocation4 + $0x220] sm:$0xff]  ;;  %2811 = vmatpush2.bf16.msra.mxu0 %v15253_v14  ;;  %v15200_v14 = vcombine.high %v453_v3, %v457_v6 }
 0x172   :  { %v628_v12 = vld [vmem:[#allocation4 + $0x600] sm:$0xff]  ;;  %v15246_v17 = vcombine.high %v500_v9, %v504_v10  ;;  %2851 = vmatprep.subr.bf16.mxu1 %v15382_v8  ;;  %v15245_v24 = vcombine.low %v500_v9, %v504_v10  ;;  %v15207_v8 = vcombine.low %v461_v58, %v465_v60 }
 0x173   :  { %v632_v13 = vld [vmem:[#allocation4 + $0x620] sm:$0xff]  ;;  %2852 = vmatpush2.bf16.msra.mxu1 %v15381_v15  ;;  %v449_v15 = vld [vmem:[#allocation4 + $0x68] sm:$0xff] }
 0x174   :  { %v15374_v18 = vcombine.high %v628_v12, %v632_v13  ;;  %v748_v19 = vld [vmem:[#allocation4 + $0x9c0] sm:$0xff]  ;;  %2812 = vmatprep.subr.bf16.mxu0 %v15246_v17  ;;  %v15373_v25 = vcombine.low %v628_v12, %v632_v13  ;;  %v445_v13 = vld [vmem:[#allocation4 + $0x48] sm:$0xff] }
 0x175   :  { %v752_v20 = vld [vmem:[#allocation4 + $0x9e0] sm:$0xff]  ;;  %2813 = vmatpush2.bf16.msra.mxu0 %v15245_v24  ;;  %v15192_v24 = vcombine.high %v445_v13, %v449_v15 }
 0x176   :  { %v19761_v23 = vld.sshfl [vmem:[%s20382_s23 + $0x8] sm:$0x33 pattern:$0x76325410]  ;;  %v15494_v26 = vcombine.high %v748_v19, %v752_v20  ;;  %2853 = vmatprep.subr.bf16.mxu1 %v15374_v18  ;;  %v15493_v36 = vcombine.low %v748_v19, %v752_v20  ;;  %v15199_v18 = vcombine.low %v453_v3, %v457_v6 }
 0x177   :  { %v740_v28 = vld [vmem:[#allocation4 + $0x980] sm:$0xff]  ;;  %v423_v30 = vcombine.high %v19761_v23, %v19761_v23  ;;  %2854 = vmatpush2.bf16.msra.mxu1 %v15373_v25  ;;  %v441_v25 = vld [vmem:[#allocation4 + $0x28] sm:$0xff] }
 0x178   :  { %v744_v29 = vld [vmem:[#allocation4 + $0x9a0] sm:$0xff]  ;;  %2864 = vmatprep.subr.bf16.mxu0 %v15494_v26  ;;  %2905 = vmatprep.subr.bf16.mxu1 %v15240_v27  ;;  %v15191_v27 = vcombine.low %v445_v13, %v449_v15  ;;  %v15184_v33 = vcombine.high %v437_v22, %v441_v25 }
 0x179   :  { %v15486_v38 = vcombine.high %v740_v28, %v744_v29  ;;  %v732_v39 = vld [vmem:[#allocation4 + $0x940] sm:$0xff]  ;;  %v19773_v63 = vpack.c.bf16 %v423_v30, %v423_v30  ;;  %2815 = vmatmul.mubr.bf16.vlgmr.msra.gmra.mxu0 %v19767_v31  ;;  %v15485_v5 = vcombine.low %v740_v28, %v744_v29 }
 0x17a   :  { %v736_v40 = vld [vmem:[#allocation4 + $0x960] sm:$0xff]  ;;  %2856 = vmatmul.mubr.bf16.vlgmr.msra.gmra.mxu1 %v19771_v35  ;;  %2865 = vmatpush1.bf16.msra.mxu0 %v15493_v36  ;;  %v561_v36 = vld [vmem:[#allocation4 + $0x3e8] sm:$0xff] }
 0x17b   :  { %2906 = vmatpush1.bf16.msra.mxu1 %v15239_v37  ;;  %2866 = vmatprep.subr.bf16.mxu0 %v15486_v38  ;;  %v15478_v46 = vcombine.high %v732_v39, %v736_v40  ;;  %v724_v47 = vld [vmem:[#allocation4 + $0x900] sm:$0xff]  ;;  %v15477_v52 = vcombine.low %v732_v39, %v736_v40  ;;  %v15183_v38 = vcombine.low %v437_v22, %v441_v25 }
 0x17c   :  { %v728_v48 = vld [vmem:[#allocation4 + $0x920] sm:$0xff]  ;;  %2907 = vmatprep.subr.bf16.mxu1 %v15232_v42  ;;  %2896 = vmatprep.mubr.bf16.mxu0 %v19773_v63  ;;  %v549_v42 = vld [vmem:[#allocation4 + $0x388] sm:$0xff]  ;;  %v15304_v43 = vcombine.high %v557_v32, %v561_v36 }
 0x17d   :  { %2937 = vmatprep.mubr.bf16.mxu1 %v19750_v11  ;;  %v15470_v55 = vcombine.high %v724_v47, %v728_v48  ;;  %v716_v56 = vld [vmem:[#allocation4 + $0x8c0] sm:$0xff]  ;;  %v15469_v61 = vcombine.low %v724_v47, %v728_v48 }
 0x17e   :  { %2867 = vmatpush1.bf16.msra.mxu0 %v15485_v5  ;;  %v720_v57 = vld [vmem:[#allocation4 + $0x8e0] sm:$0xff]  ;;  %v553_v5 = vld [vmem:[#allocation4 + $0x3a8] sm:$0xff] }
 0x17f   :  { %2908 = vmatpush1.bf16.msra.mxu1 %v15231_v45  ;;  %2868 = vmatprep.subr.bf16.mxu0 %v15478_v46  ;;  %v15462_v0 = vcombine.high %v716_v56, %v720_v57  ;;  %v708_v1 = vld [vmem:[#allocation4 + $0x880] sm:$0xff]  ;;  %v15461_v7 = vcombine.low %v716_v56, %v720_v57  ;;  %v15303_v46 = vcombine.low %v557_v32, %v561_v36 }
 0x180   :  { %2909 = vmatprep.subr.bf16.mxu1 %v15224_v50  ;;  %v712_v2 = vld [vmem:[#allocation4 + $0x8a0] sm:$0xff]  ;;  %v541_v50 = vld [vmem:[#allocation4 + $0x348] sm:$0xff]  ;;  %v15296_v51 = vcombine.high %v549_v42, %v553_v5 }
 0x181   :  { %v15454_v9 = vcombine.high %v708_v1, %v712_v2  ;;  %v700_v10 = vld [vmem:[#allocation4 + $0x840] sm:$0xff]  ;;  %v15453_v17 = vcombine.low %v708_v1, %v712_v2 }
 0x182   :  { %2869 = vmatpush1.bf16.msra.mxu0 %v15477_v52  ;;  %v704_v12 = vld [vmem:[#allocation4 + $0x860] sm:$0xff]  ;;  %v545_v52 = vld [vmem:[#allocation4 + $0x368] sm:$0xff] }
 0x183   :  { %2910 = vmatpush1.bf16.msra.mxu1 %v15223_v54  ;;  %2870 = vmatprep.subr.bf16.mxu0 %v15470_v55  ;;  %v15446_v19 = vcombine.high %v700_v10, %v704_v12  ;;  %v692_v20 = vld [vmem:[#allocation4 + $0x800] sm:$0xff]  ;;  %v15445_v26 = vcombine.low %v700_v10, %v704_v12  ;;  %v15295_v55 = vcombine.low %v549_v42, %v553_v5  ;;  %v625_v42 = vld [vmem:[#allocation4 + $0x5e8] sm:$0xff] }
 0x184   :  { %2911 = vmatprep.subr.bf16.mxu1 %v15216_v59  ;;  %v696_v21 = vld [vmem:[#allocation4 + $0x820] sm:$0xff]  ;;  %v533_v59 = vld [vmem:[#allocation4 + $0x308] sm:$0xff]  ;;  %v15288_v60 = vcombine.high %v541_v50, %v545_v52 }
 0x185   :  { %v15438_v28 = vcombine.high %v692_v20, %v696_v21  ;;  %v812_v29 = vld [vmem:[#allocation4 + $0xbc0] sm:$0xff]  ;;  %v15437_v37 = vcombine.low %v692_v20, %v696_v21 }
 0x186   :  { %2871 = vmatpush1.bf16.msra.mxu0 %v15469_v61  ;;  %v816_v30 = vld [vmem:[#allocation4 + $0xbe0] sm:$0xff]  ;;  %v537_v61 = vld [vmem:[#allocation4 + $0x328] sm:$0xff] }
 0x187   :  { %2912 = vmatpush1.bf16.msra.mxu1 %v15215_v62  ;;  %2872 = vmatprep.subr.bf16.mxu0 %v15462_v0  ;;  %v15558_v39 = vcombine.high %v812_v29, %v816_v30  ;;  %v804_v40 = vld [vmem:[#allocation4 + $0xb80] sm:$0xff]  ;;  %v15557_v45 = vcombine.low %v812_v29, %v816_v30  ;;  %v15287_v0 = vcombine.low %v541_v50, %v545_v52  ;;  %v617_v50 = vld [vmem:[#allocation4 + $0x5a8] sm:$0xff] }
 0x188   :  { %2913 = vmatprep.subr.bf16.mxu1 %v15208_v4  ;;  %v808_v41 = vld [vmem:[#allocation4 + $0xba0] sm:$0xff]  ;;  %v525_v4 = vld [vmem:[#allocation4 + $0x2c8] sm:$0xff]  ;;  %v15280_v6 = vcombine.high %v533_v59, %v537_v61 }
 0x189   :  { %v15550_v47 = vcombine.high %v804_v40, %v808_v41  ;;  %v796_v48 = vld [vmem:[#allocation4 + $0xb40] sm:$0xff]  ;;  %v15549_v54 = vcombine.low %v804_v40, %v808_v41  ;;  %v621_v41 = vld [vmem:[#allocation4 + $0x5c8] sm:$0xff] }
 0x18a   :  { %2873 = vmatpush1.bf16.msra.mxu0 %v15461_v7  ;;  %v800_v49 = vld [vmem:[#allocation4 + $0xb60] sm:$0xff]  ;;  %v529_v7 = vld [vmem:[#allocation4 + $0x2e8] sm:$0xff] }
 0x18b   :  { %2914 = vmatpush1.bf16.msra.mxu1 %v15207_v8  ;;  %2874 = vmatprep.subr.bf16.mxu0 %v15454_v9  ;;  %v15542_v56 = vcombine.high %v796_v48, %v800_v49  ;;  %v788_v57 = vld [vmem:[#allocation4 + $0xb00] sm:$0xff]  ;;  %v15541_v62 = vcombine.low %v796_v48, %v800_v49  ;;  %v15279_v9 = vcombine.low %v533_v59, %v537_v61  ;;  %v613_v49 = vld [vmem:[#allocation4 + $0x588] sm:$0xff] }
 0x18c   :  { %2915 = vmatprep.subr.bf16.mxu1 %v15200_v14  ;;  %v792_v58 = vld [vmem:[#allocation4 + $0xb20] sm:$0xff]  ;;  %v517_v14 = vld [vmem:[#allocation4 + $0x288] sm:$0xff]  ;;  %v15272_v15 = vcombine.high %v525_v4, %v529_v7  ;;  %v15368_v48 = vcombine.high %v621_v41, %v625_v42 }
 0x18d   :  { %v15534_v1 = vcombine.high %v788_v57, %v792_v58  ;;  %v780_v2 = vld [vmem:[#allocation4 + $0xac0] sm:$0xff]  ;;  %v15533_v8 = vcombine.low %v788_v57, %v792_v58  ;;  %v15360_v58 = vcombine.high %v613_v49, %v617_v50  ;;  %v605_v59 = vld [vmem:[#allocation4 + $0x548] sm:$0xff] }
 0x18e   :  { %2875 = vmatpush1.bf16.msra.mxu0 %v15453_v17  ;;  %v784_v3 = vld [vmem:[#allocation4 + $0xae0] sm:$0xff]  ;;  %v521_v17 = vld [vmem:[#allocation4 + $0x2a8] sm:$0xff] }
 0x18f   :  { %2916 = vmatpush1.bf16.msra.mxu1 %v15199_v18  ;;  %2876 = vmatprep.subr.bf16.mxu0 %v15446_v19  ;;  %v15526_v10 = vcombine.high %v780_v2, %v784_v3  ;;  %v772_v12 = vld [vmem:[#allocation4 + $0xa80] sm:$0xff]  ;;  %v15525_v18 = vcombine.low %v780_v2, %v784_v3  ;;  %v15271_v19 = vcombine.low %v525_v4, %v529_v7  ;;  %v597_v3 = vld [vmem:[#allocation4 + $0x508] sm:$0xff] }
 0x190   :  { %2917 = vmatprep.subr.bf16.mxu1 %v15192_v24  ;;  %v776_v13 = vld [vmem:[#allocation4 + $0xaa0] sm:$0xff]  ;;  %v509_v24 = vld [vmem:[#allocation4 + $0x248] sm:$0xff]  ;;  %v15264_v25 = vcombine.high %v517_v14, %v521_v17 }
 0x191   :  { %v15518_v20 = vcombine.high %v772_v12, %v776_v13  ;;  %v764_v21 = vld [vmem:[#allocation4 + $0xa40] sm:$0xff]  ;;  %v601_v4 = vld [vmem:[#allocation4 + $0x528] sm:$0xff] }
 0x192   :  { %2877 = vmatpush1.bf16.msra.mxu0 %v15445_v26  ;;  %v768_v22 = vld [vmem:[#allocation4 + $0xa60] sm:$0xff]  ;;  %v513_v26 = vld [vmem:[#allocation4 + $0x268] sm:$0xff] }
 0x193   :  { %2918 = vmatpush1.bf16.msra.mxu1 %v15191_v27  ;;  %2878 = vmatprep.subr.bf16.mxu0 %v15438_v28  ;;  %v15517_v27 = vcombine.low %v772_v12, %v776_v13  ;;  %v15263_v28 = vcombine.low %v517_v14, %v521_v17  ;;  %v15510_v29 = vcombine.high %v764_v21, %v768_v22  ;;  %v756_v30 = vld [vmem:[#allocation4 + $0xa00] sm:$0xff]  ;;  %v589_v13 = vld [vmem:[#allocation4 + $0x4c8] sm:$0xff] }
 0x194   :  { %2919 = vmatprep.subr.bf16.mxu1 %v15184_v33  ;;  %v760_v32 = vld [vmem:[#allocation4 + $0xa20] sm:$0xff]  ;;  %v501_v33 = vld [vmem:[#allocation4 + $0x208] sm:$0xff]  ;;  %v15256_v36 = vcombine.high %v509_v24, %v513_v26  ;;  %v15344_v12 = vcombine.high %v597_v3, %v601_v4 }
 0x195   :  { %v15502_v40 = vcombine.high %v756_v30, %v760_v32  ;;  %v593_v14 = vld [vmem:[#allocation4 + $0x4e8] sm:$0xff] }
 0x196   :  { %2879 = vmatpush1.bf16.msra.mxu0 %v15437_v37  ;;  %v505_v37 = vld [vmem:[#allocation4 + $0x228] sm:$0xff] }
 0x197   :  { %2920 = vmatpush1.bf16.msra.mxu1 %v15183_v38  ;;  %2880 = vmatprep.subr.bf16.mxu0 %v15558_v39  ;;  %v15509_v38 = vcombine.low %v764_v21, %v768_v22  ;;  %v15255_v39 = vcombine.low %v509_v24, %v513_v26  ;;  %v15248_v5 = vcombine.high %v501_v33, %v505_v37  ;;  %v581_v22 = vld [vmem:[#allocation4 + $0x488] sm:$0xff] }
 0x198   :  { %2921 = vmatprep.subr.bf16.mxu1 %v15304_v43  ;;  %v749_v43 = vld [vmem:[#allocation4 + $0x9c8] sm:$0xff]  ;;  %v15336_v21 = vcombine.high %v589_v13, %v593_v14 }
 0x199   :  { %v585_v24 = vld [vmem:[#allocation4 + $0x4a8] sm:$0xff] }
 0x19a   :  { %2881 = vmatpush2.bf16.msra.mxu0 %v15557_v45  ;;  %v753_v45 = vld [vmem:[#allocation4 + $0x9e8] sm:$0xff] }
 0x19b   :  { %2922 = vmatpush2.bf16.msra.mxu1 %v15303_v46  ;;  %2882 = vmatprep.subr.bf16.mxu0 %v15550_v47  ;;  %v15501_v46 = vcombine.low %v756_v30, %v760_v32  ;;  %v15247_v47 = vcombine.low %v501_v33, %v505_v37  ;;  %v15496_v52 = vcombine.high %v749_v43, %v753_v45  ;;  %v573_v32 = vld [vmem:[#allocation4 + $0x448] sm:$0xff] }
 0x19c   :  { %2923 = vmatprep.subr.bf16.mxu1 %v15296_v51  ;;  %v741_v51 = vld [vmem:[#allocation4 + $0x988] sm:$0xff]  ;;  %v15495_v57 = vcombine.low %v749_v43, %v753_v45  ;;  %v15328_v30 = vcombine.high %v581_v22, %v585_v24 }
 0x19d   :  { %v577_v33 = vld [vmem:[#allocation4 + $0x468] sm:$0xff] }
 0x19e   :  { %2883 = vmatpush2.bf16.msra.mxu0 %v15549_v54  ;;  %v745_v54 = vld [vmem:[#allocation4 + $0x9a8] sm:$0xff] }
 0x19f   :  { %2924 = vmatpush2.bf16.msra.mxu1 %v15295_v55  ;;  %2884 = vmatprep.subr.bf16.mxu0 %v15542_v56  ;;  %v19781_v55 = vpack.c.bf16 %v19761_v23, %v19761_v23  ;;  %v15367_v56 = vcombine.low %v621_v41, %v625_v42  ;;  %v15488_v61 = vcombine.high %v741_v51, %v745_v54  ;;  %v565_v42 = vld [vmem:[#allocation4 + $0x408] sm:$0xff] }
 0x1a0   :  { %2925 = vmatprep.subr.bf16.mxu1 %v15288_v60  ;;  %v609_v60 = vld [vmem:[#allocation4 + $0x568] sm:$0xff]  ;;  %v15487_v23 = vcombine.low %v741_v51, %v745_v54  ;;  %v15320_v41 = vcombine.high %v573_v32, %v577_v33 }
 0x1a1   :  { %v15352_v2 = vcombine.high %v605_v59, %v609_v60  ;;  %v569_v43 = vld [vmem:[#allocation4 + $0x428] sm:$0xff] }
 0x1a2   :  { %2885 = vmatpush2.bf16.msra.mxu0 %v15541_v62  ;;  %v733_v62 = vld [vmem:[#allocation4 + $0x948] sm:$0xff] }
 0x1a3   :  { %2926 = vmatpush2.bf16.msra.mxu1 %v15287_v0  ;;  %2886 = vmatprep.subr.bf16.mxu0 %v15534_v1  ;;  %v737_v0 = vld [vmem:[#allocation4 + $0x968] sm:$0xff]  ;;  %v15359_v1 = vcombine.low %v613_v49, %v617_v50  ;;  %v15312_v49 = vcombine.high %v565_v42, %v569_v43 }
 0x1a4   :  { %2927 = vmatprep.subr.bf16.mxu1 %v15280_v6  ;;  %v725_v6 = vld [vmem:[#allocation4 + $0x908] sm:$0xff]  ;;  %v15480_v7 = vcombine.high %v733_v62, %v737_v0 }
 0x1a5   :  { %v685_v50 = vld [vmem:[#allocation4 + $0x7c8] sm:$0xff] }
 0x1a6   :  { %2887 = vmatpush2.bf16.msra.mxu0 %v15533_v8  ;;  %v729_v8 = vld [vmem:[#allocation4 + $0x928] sm:$0xff] }
 0x1a7   :  { %2928 = vmatpush2.bf16.msra.mxu1 %v15279_v9  ;;  %2888 = vmatprep.subr.bf16.mxu0 %v15526_v10  ;;  %v15351_v9 = vcombine.low %v605_v59, %v609_v60  ;;  %v15479_v10 = vcombine.low %v733_v62, %v737_v0  ;;  %v15472_v17 = vcombine.high %v725_v6, %v729_v8  ;;  %v689_v51 = vld [vmem:[#allocation4 + $0x7e8] sm:$0xff] }
 0x1a8   :  { %2929 = vmatprep.subr.bf16.mxu1 %v15272_v15  ;;  %v717_v15 = vld [vmem:[#allocation4 + $0x8c8] sm:$0xff]  ;;  %v15432_v59 = vcombine.high %v685_v50, %v689_v51 }
 0x1a9   :  { %v677_v60 = vld [vmem:[#allocation4 + $0x788] sm:$0xff] }
 0x1aa   :  { %2889 = vmatpush2.bf16.msra.mxu0 %v15525_v18  ;;  %v721_v18 = vld [vmem:[#allocation4 + $0x8e8] sm:$0xff] }
 0x1ab   :  { %2930 = vmatpush2.bf16.msra.mxu1 %v15271_v19  ;;  %2890 = vmatprep.subr.bf16.mxu0 %v15518_v20  ;;  %v15343_v19 = vcombine.low %v597_v3, %v601_v4  ;;  %v15471_v20 = vcombine.low %v725_v6, %v729_v8  ;;  %v15464_v26 = vcombine.high %v717_v15, %v721_v18  ;;  %v805_v62 = vld [vmem:[#allocation4 + $0xb88] sm:$0xff] }
 0x1ac   :  { %2931 = vmatprep.subr.bf16.mxu1 %v15264_v25  ;;  %v709_v25 = vld [vmem:[#allocation4 + $0x888] sm:$0xff] }
 0x1ad   :  { %v669_v4 = vld [vmem:[#allocation4 + $0x748] sm:$0xff] }
 0x1ae   :  { %2891 = vmatpush2.bf16.msra.mxu0 %v15517_v27  ;;  %v713_v27 = vld [vmem:[#allocation4 + $0x8a8] sm:$0xff] }
 0x1af   :  { %2932 = vmatpush2.bf16.msra.mxu1 %v15263_v28  ;;  %2892 = vmatprep.subr.bf16.mxu0 %v15510_v29  ;;  %v15335_v28 = vcombine.low %v589_v13, %v593_v14  ;;  %v15463_v29 = vcombine.low %v717_v15, %v721_v18  ;;  %v15456_v37 = vcombine.high %v709_v25, %v713_v27  ;;  %v673_v6 = vld [vmem:[#allocation4 + $0x768] sm:$0xff] }
 0x1b0   :  { %2933 = vmatprep.subr.bf16.mxu1 %v15256_v36  ;;  %v701_v36 = vld [vmem:[#allocation4 + $0x848] sm:$0xff]  ;;  %v15416_v13 = vcombine.high %v669_v4, %v673_v6 }
 0x1b1   :  { %v661_v14 = vld [vmem:[#allocation4 + $0x708] sm:$0xff] }
 0x1b2   :  { %2893 = vmatpush2.bf16.msra.mxu0 %v15509_v38  ;;  %v705_v38 = vld [vmem:[#allocation4 + $0x868] sm:$0xff] }
 0x1b3   :  { %2934 = vmatpush2.bf16.msra.mxu1 %v15255_v39  ;;  %2894 = vmatprep.subr.bf16.mxu0 %v15502_v40  ;;  %v15327_v39 = vcombine.low %v581_v22, %v585_v24  ;;  %v15455_v40 = vcombine.low %v709_v25, %v713_v27  ;;  %v15448_v45 = vcombine.high %v701_v36, %v705_v38  ;;  %v665_v15 = vld [vmem:[#allocation4 + $0x728] sm:$0xff] }
 0x1b4   :  { %2935 = vmatprep.subr.bf16.mxu1 %v15248_v5  ;;  %v693_v5 = vld [vmem:[#allocation4 + $0x808] sm:$0xff]  ;;  %v15408_v22 = vcombine.high %v661_v14, %v665_v15 }
 0x1b5   :  { %v653_v24 = vld [vmem:[#allocation4 + $0x6c8] sm:$0xff] }
 0x1b6   :  { %2895 = vmatpush2.bf16.msra.mxu0 %v15501_v46  ;;  %v697_v46 = vld [vmem:[#allocation4 + $0x828] sm:$0xff] }
 0x1b7   :  { %2936 = vmatpush2.bf16.msra.mxu1 %v15247_v47  ;;  %2946 = vmatprep.subr.bf16.mxu0 %v15368_v48  ;;  %v15319_v47 = vcombine.low %v573_v32, %v577_v33  ;;  %v15447_v48 = vcombine.low %v701_v36, %v705_v38  ;;  %v15440_v54 = vcombine.high %v693_v5, %v697_v46  ;;  %v657_v25 = vld [vmem:[#allocation4 + $0x6e8] sm:$0xff] }
 0x1b8   :  { %2987 = vmatprep.subr.bf16.mxu1 %v15496_v52  ;;  %v813_v52 = vld [vmem:[#allocation4 + $0xbc8] sm:$0xff]  ;;  %v15400_v32 = vcombine.high %v653_v24, %v657_v25 }
 0x1b9   :  { %2897 = vmatmul.mubr.bf16.vlgmr.msra.gmra.mxu0 %v19781_v55  ;;  %v645_v33 = vld [vmem:[#allocation4 + $0x688] sm:$0xff] }
 0x1ba   :  { %2938 = vmatmul.mubr.bf16.vlgmr.msra.gmra.mxu1 %v19767_v31  ;;  %2947 = vmatpush1.bf16.msra.mxu0 %v15367_v56  ;;  %v817_v56 = vld [vmem:[#allocation4 + $0xbe8] sm:$0xff] }
 0x1bb   :  { %2988 = vmatpush1.bf16.msra.mxu1 %v15495_v57  ;;  %2948 = vmatprep.subr.bf16.mxu0 %v15360_v58  ;;  %v15311_v57 = vcombine.low %v565_v42, %v569_v43  ;;  %v15439_v58 = vcombine.low %v693_v5, %v697_v46  ;;  %v15560_v0 = vcombine.high %v813_v52, %v817_v56  ;;  %v649_v36 = vld [vmem:[#allocation4 + $0x6a8] sm:$0xff] }
 0x1bc   :  { %2989 = vmatprep.subr.bf16.mxu1 %v15488_v61  ;;  %2978 = vmatprep.mubr.bf16.mxu0 %v19755_v16  ;;  %v681_v61 = vld [vmem:[#allocation4 + $0x7a8] sm:$0xff]  ;;  %v15392_v42 = vcombine.high %v645_v33, %v649_v36 }
 0x1bd   :  { %3019 = vmatprep.mubr.bf16.mxu1 %v19773_v63  ;;  %v15424_v3 = vcombine.high %v677_v60, %v681_v61  ;;  %v637_v43 = vld [vmem:[#allocation4 + $0x648] sm:$0xff] }
 0x1be   :  { %2949 = vmatpush1.bf16.msra.mxu0 %v15359_v1  ;;  %v809_v1 = vld [vmem:[#allocation4 + $0xba8] sm:$0xff] }
 0x1bf   :  { %2990 = vmatpush1.bf16.msra.mxu1 %v15487_v23  ;;  %2950 = vmatprep.subr.bf16.mxu0 %v15352_v2  ;;  %v15431_v23 = vcombine.low %v685_v50, %v689_v51  ;;  %v15559_v2 = vcombine.low %v813_v52, %v817_v56  ;;  %v15552_v8 = vcombine.high %v805_v62, %v809_v1  ;;  %v641_v5 = vld [vmem:[#allocation4 + $0x668] sm:$0xff] }
 0x1c0   :  { %2991 = vmatprep.subr.bf16.mxu1 %v15480_v7  ;;  %v797_v7 = vld [vmem:[#allocation4 + $0xb48] sm:$0xff]  ;;  %v15384_v50 = vcombine.high %v637_v43, %v641_v5 }
 0x1c1   :  { %v629_v51 = vld [vmem:[#allocation4 + $0x608] sm:$0xff] }
 0x1c2   :  { %2951 = vmatpush1.bf16.msra.mxu0 %v15351_v9  ;;  %v801_v9 = vld [vmem:[#allocation4 + $0xb68] sm:$0xff] }
 0x1c3   :  { %2992 = vmatpush1.bf16.msra.mxu1 %v15479_v10  ;;  %2952 = vmatprep.subr.bf16.mxu0 %v15344_v12  ;;  %v15423_v10 = vcombine.low %v677_v60, %v681_v61  ;;  %v15551_v12 = vcombine.low %v805_v62, %v809_v1  ;;  %v15544_v18 = vcombine.high %v797_v7, %v801_v9  ;;  %v633_v52 = vld [vmem:[#allocation4 + $0x628] sm:$0xff]  ;;  %v494_v61 = vld [vmem:[#allocation4 + $0x1d0] sm:$0xff] }
 0x1c4   :  { %2993 = vmatprep.subr.bf16.mxu1 %v15472_v17  ;;  %v789_v17 = vld [vmem:[#allocation4 + $0xb08] sm:$0xff]  ;;  %v15376_v60 = vcombine.high %v629_v51, %v633_v52  ;;  %v498_v62 = vld [vmem:[#allocation4 + $0x1f0] sm:$0xff] }
 0x1c6   :  { %2953 = vmatpush1.bf16.msra.mxu0 %v15343_v19  ;;  %v793_v19 = vld [vmem:[#allocation4 + $0xb28] sm:$0xff] }
 0x1c7   :  { %2994 = vmatpush1.bf16.msra.mxu1 %v15471_v20  ;;  %2954 = vmatprep.subr.bf16.mxu0 %v15336_v21  ;;  %v15415_v20 = vcombine.low %v669_v4, %v673_v6  ;;  %v15543_v21 = vcombine.low %v797_v7, %v801_v9  ;;  %v15536_v27 = vcombine.high %v789_v17, %v793_v19  ;;  %v486_v6 = vld [vmem:[#allocation4 + $0x190] sm:$0xff] }
 0x1c8   :  { %2995 = vmatprep.subr.bf16.mxu1 %v15464_v26  ;;  %v781_v26 = vld [vmem:[#allocation4 + $0xac8] sm:$0xff]  ;;  %v15242_v4 = vcombine.high %v494_v61, %v498_v62  ;;  %v490_v7 = vld [vmem:[#allocation4 + $0x1b0] sm:$0xff] }
 0x1ca   :  { %2955 = vmatpush1.bf16.msra.mxu0 %v15335_v28  ;;  %v785_v28 = vld [vmem:[#allocation4 + $0xae8] sm:$0xff] }
 0x1cb   :  { %2996 = vmatpush1.bf16.msra.mxu1 %v15463_v29  ;;  %2956 = vmatprep.subr.bf16.mxu0 %v15328_v30  ;;  %v15407_v29 = vcombine.low %v661_v14, %v665_v15  ;;  %v15535_v30 = vcombine.low %v789_v17, %v793_v19  ;;  %v15528_v38 = vcombine.high %v781_v26, %v785_v28  ;;  %v478_v15 = vld [vmem:[#allocation4 + $0x150] sm:$0xff] }
 0x1cc   :  { %2997 = vmatprep.subr.bf16.mxu1 %v15456_v37  ;;  %v773_v37 = vld [vmem:[#allocation4 + $0xa88] sm:$0xff]  ;;  %v15234_v14 = vcombine.high %v486_v6, %v490_v7  ;;  %v482_v17 = vld [vmem:[#allocation4 + $0x170] sm:$0xff] }
 0x1ce   :  { %2957 = vmatpush1.bf16.msra.mxu0 %v15327_v39  ;;  %v777_v39 = vld [vmem:[#allocation4 + $0xaa8] sm:$0xff] }
 0x1cf   :  { %2998 = vmatpush1.bf16.msra.mxu1 %v15455_v40  ;;  %2958 = vmatprep.subr.bf16.mxu0 %v15320_v41  ;;  %v15399_v40 = vcombine.low %v653_v24, %v657_v25  ;;  %v15527_v41 = vcombine.low %v781_v26, %v785_v28  ;;  %v15520_v46 = vcombine.high %v773_v37, %v777_v39  ;;  %v470_v25 = vld [vmem:[#allocation4 + $0x110] sm:$0xff] }
 0x1d0   :  { %2999 = vmatprep.subr.bf16.mxu1 %v15448_v45  ;;  %v765_v45 = vld [vmem:[#allocation4 + $0xa48] sm:$0xff]  ;;  %v15226_v24 = vcombine.high %v478_v15, %v482_v17  ;;  %v474_v26 = vld [vmem:[#allocation4 + $0x130] sm:$0xff] }
 0x1d2   :  { %2959 = vmatpush1.bf16.msra.mxu0 %v15319_v47  ;;  %v769_v47 = vld [vmem:[#allocation4 + $0xa68] sm:$0xff] }
 0x1d3   :  { %3000 = vmatpush1.bf16.msra.mxu1 %v15447_v48  ;;  %2960 = vmatprep.subr.bf16.mxu0 %v15312_v49  ;;  %v15391_v48 = vcombine.low %v645_v33, %v649_v36  ;;  %v15519_v49 = vcombine.low %v773_v37, %v777_v39  ;;  %v15512_v56 = vcombine.high %v765_v45, %v769_v47  ;;  %v462_v36 = vld [vmem:[#allocation4 + $0xd0] sm:$0xff] }
 0x1d4   :  { %3001 = vmatprep.subr.bf16.mxu1 %v15440_v54  ;;  %v757_v54 = vld [vmem:[#allocation4 + $0xa08] sm:$0xff]  ;;  %v15218_v33 = vcombine.high %v470_v25, %v474_v26  ;;  %v466_v37 = vld [vmem:[#allocation4 + $0xf0] sm:$0xff] }
 0x1d6   :  { %2961 = vmatpush1.bf16.msra.mxu0 %v15311_v57  ;;  %v761_v57 = vld [vmem:[#allocation4 + $0xa28] sm:$0xff] }
 0x1d7   :  { %3002 = vmatpush1.bf16.msra.mxu1 %v15439_v58  ;;  %2962 = vmatprep.subr.bf16.mxu0 %v15432_v59  ;;  %v15383_v58 = vcombine.low %v637_v43, %v641_v5  ;;  %v15511_v59 = vcombine.low %v765_v45, %v769_v47  ;;  %v15504_v1 = vcombine.high %v757_v54, %v761_v57  ;;  %v454_v5 = vld [vmem:[#allocation4 + $0x90] sm:$0xff] }
 0x1d8   :  { %3003 = vmatprep.subr.bf16.mxu1 %v15560_v0  ;;  %v622_v0 = vld [vmem:[#allocation4 + $0x5d0] sm:$0xff]  ;;  %v15210_v43 = vcombine.high %v462_v36, %v466_v37 }
 0x1d9   :  { %v458_v45 = vld [vmem:[#allocation4 + $0xb0] sm:$0xff] }
 0x1da   :  { %2963 = vmatpush2.bf16.msra.mxu0 %v15431_v23  ;;  %v626_v23 = vld [vmem:[#allocation4 + $0x5f0] sm:$0xff] }
 0x1db   :  { %3004 = vmatpush2.bf16.msra.mxu1 %v15559_v2  ;;  %2964 = vmatprep.subr.bf16.mxu0 %v15424_v3  ;;  %v15375_v2 = vcombine.low %v629_v51, %v633_v52  ;;  %v15503_v3 = vcombine.low %v757_v54, %v761_v57  ;;  %v15370_v9 = vcombine.high %v622_v0, %v626_v23  ;;  %v446_v52 = vld [vmem:[#allocation4 + $0x50] sm:$0xff] }
 0x1dc   :  { %3005 = vmatprep.subr.bf16.mxu1 %v15552_v8  ;;  %v614_v8 = vld [vmem:[#allocation4 + $0x590] sm:$0xff]  ;;  %v15202_v51 = vcombine.high %v454_v5, %v458_v45 }
 0x1dd   :  { %v450_v54 = vld [vmem:[#allocation4 + $0x70] sm:$0xff] }
 0x1de   :  { %2965 = vmatpush2.bf16.msra.mxu0 %v15423_v10  ;;  %v618_v10 = vld [vmem:[#allocation4 + $0x5b0] sm:$0xff] }
 0x1df   :  { %3006 = vmatpush2.bf16.msra.mxu1 %v15551_v12  ;;  %2966 = vmatprep.subr.bf16.mxu0 %v15416_v13  ;;  %v15241_v12 = vcombine.low %v494_v61, %v498_v62  ;;  %v15369_v13 = vcombine.low %v622_v0, %v626_v23  ;;  %v15362_v19 = vcombine.high %v614_v8, %v618_v10  ;;  %v438_v62 = vld [vmem:[#allocation4 + $0x10] sm:$0xff] }
 0x1e0   :  { %3007 = vmatprep.subr.bf16.mxu1 %v15544_v18  ;;  %v606_v18 = vld [vmem:[#allocation4 + $0x550] sm:$0xff]  ;;  %v15194_v61 = vcombine.high %v446_v52, %v450_v54 }
 0x1e1   :  { %v442_v0 = vld [vmem:[#allocation4 + $0x30] sm:$0xff] }
 0x1e2   :  { %2967 = vmatpush2.bf16.msra.mxu0 %v15415_v20  ;;  %v610_v20 = vld [vmem:[#allocation4 + $0x570] sm:$0xff] }
 0x1e3   :  { %3008 = vmatpush2.bf16.msra.mxu1 %v15543_v21  ;;  %2968 = vmatprep.subr.bf16.mxu0 %v15408_v22  ;;  %v15233_v21 = vcombine.low %v486_v6, %v490_v7  ;;  %v15361_v22 = vcombine.low %v614_v8, %v618_v10  ;;  %v15354_v28 = vcombine.high %v606_v18, %v610_v20  ;;  %v558_v7 = vld [vmem:[#allocation4 + $0x3d0] sm:$0xff] }
 0x1e4   :  { %3009 = vmatprep.subr.bf16.mxu1 %v15536_v27  ;;  %v598_v27 = vld [vmem:[#allocation4 + $0x510] sm:$0xff]  ;;  %v15186_v6 = vcombine.high %v438_v62, %v442_v0 }
 0x1e5   :  { %v562_v8 = vld [vmem:[#allocation4 + $0x3f0] sm:$0xff] }
 0x1e6   :  { %2969 = vmatpush2.bf16.msra.mxu0 %v15407_v29  ;;  %v602_v29 = vld [vmem:[#allocation4 + $0x530] sm:$0xff] }
 0x1e7   :  { %3010 = vmatpush2.bf16.msra.mxu1 %v15535_v30  ;;  %2970 = vmatprep.subr.bf16.mxu0 %v15400_v32  ;;  %v15225_v30 = vcombine.low %v478_v15, %v482_v17  ;;  %v15353_v32 = vcombine.low %v606_v18, %v610_v20  ;;  %v15346_v39 = vcombine.high %v598_v27, %v602_v29  ;;  %v550_v17 = vld [vmem:[#allocation4 + $0x390] sm:$0xff] }
 0x1e8   :  { %3011 = vmatprep.subr.bf16.mxu1 %v15528_v38  ;;  %v590_v38 = vld [vmem:[#allocation4 + $0x4d0] sm:$0xff]  ;;  %v15306_v15 = vcombine.high %v558_v7, %v562_v8 }
 0x1e9   :  { %v554_v18 = vld [vmem:[#allocation4 + $0x3b0] sm:$0xff] }
 0x1ea   :  { %2971 = vmatpush2.bf16.msra.mxu0 %v15399_v40  ;;  %v594_v40 = vld [vmem:[#allocation4 + $0x4f0] sm:$0xff] }
 0x1eb   :  { %3012 = vmatpush2.bf16.msra.mxu1 %v15527_v41  ;;  %2972 = vmatprep.subr.bf16.mxu0 %v15392_v42  ;;  %v15217_v41 = vcombine.low %v470_v25, %v474_v26  ;;  %v15345_v42 = vcombine.low %v598_v27, %v602_v29  ;;  %v15338_v47 = vcombine.high %v590_v38, %v594_v40  ;;  %v542_v26 = vld [vmem:[#allocation4 + $0x350] sm:$0xff] }
 0x1ec   :  { %3013 = vmatprep.subr.bf16.mxu1 %v15520_v46  ;;  %v582_v46 = vld [vmem:[#allocation4 + $0x490] sm:$0xff]  ;;  %v15298_v25 = vcombine.high %v550_v17, %v554_v18 }
 0x1ed   :  { %v546_v27 = vld [vmem:[#allocation4 + $0x370] sm:$0xff] }
 0x1ee   :  { %2973 = vmatpush2.bf16.msra.mxu0 %v15391_v48  ;;  %v586_v48 = vld [vmem:[#allocation4 + $0x4b0] sm:$0xff] }
 0x1ef   :  { %3014 = vmatpush2.bf16.msra.mxu1 %v15519_v49  ;;  %2974 = vmatprep.subr.bf16.mxu0 %v15384_v50  ;;  %v15209_v49 = vcombine.low %v462_v36, %v466_v37  ;;  %v15337_v50 = vcombine.low %v590_v38, %v594_v40  ;;  %v15330_v57 = vcombine.high %v582_v46, %v586_v48  ;;  %v534_v37 = vld [vmem:[#allocation4 + $0x310] sm:$0xff] }
 0x1f0   :  { %3015 = vmatprep.subr.bf16.mxu1 %v15512_v56  ;;  %v574_v56 = vld [vmem:[#allocation4 + $0x450] sm:$0xff]  ;;  %v15290_v36 = vcombine.high %v542_v26, %v546_v27 }
 0x1f1   :  { %v538_v38 = vld [vmem:[#allocation4 + $0x330] sm:$0xff] }
 0x1f2   :  { %2975 = vmatpush2.bf16.msra.mxu0 %v15383_v58  ;;  %v578_v58 = vld [vmem:[#allocation4 + $0x470] sm:$0xff] }
 0x1f3   :  { %3016 = vmatpush2.bf16.msra.mxu1 %v15511_v59  ;;  %2976 = vmatprep.subr.bf16.mxu0 %v15376_v60  ;;  %v15201_v59 = vcombine.low %v454_v5, %v458_v45  ;;  %v15329_v60 = vcombine.low %v582_v46, %v586_v48  ;;  %v15322_v23 = vcombine.high %v574_v56, %v578_v58  ;;  %v526_v45 = vld [vmem:[#allocation4 + $0x2d0] sm:$0xff] }
 0x1f4   :  { %3017 = vmatprep.subr.bf16.mxu1 %v15504_v1  ;;  %v566_v1 = vld [vmem:[#allocation4 + $0x410] sm:$0xff]  ;;  %v15282_v5 = vcombine.high %v534_v37, %v538_v38 }
 0x1f5   :  { %v530_v46 = vld [vmem:[#allocation4 + $0x2f0] sm:$0xff] }
 0x1f6   :  { %2977 = vmatpush2.bf16.msra.mxu0 %v15375_v2  ;;  %v570_v2 = vld [vmem:[#allocation4 + $0x430] sm:$0xff] }
 0x1f7   :  { %3018 = vmatpush2.bf16.msra.mxu1 %v15503_v3  ;;  %3028 = vmatprep.subr.bf16.mxu0 %v15242_v4  ;;  %v15193_v3 = vcombine.low %v446_v52, %v450_v54  ;;  %v15321_v4 = vcombine.low %v574_v56, %v578_v58  ;;  %v15314_v10 = vcombine.high %v566_v1, %v570_v2  ;;  %v518_v54 = vld [vmem:[#allocation4 + $0x290] sm:$0xff] }
 0x1f8   :  { %3069 = vmatprep.subr.bf16.mxu1 %v15370_v9  ;;  %v686_v9 = vld [vmem:[#allocation4 + $0x7d0] sm:$0xff]  ;;  %v15274_v52 = vcombine.high %v526_v45, %v530_v46 }
 0x1f9   :  { %2979 = vmatmul.mubr.bf16.vlgmr.msra.gmra.mxu0 %v19771_v35  ;;  %v522_v56 = vld [vmem:[#allocation4 + $0x2b0] sm:$0xff] }
 0x1fa   :  { %3020 = vmatmul.mubr.bf16.vlgmr.msra.gmra.mxu1 %v19781_v55  ;;  %3029 = vmatpush1.bf16.msra.mxu0 %v15241_v12  ;;  %v690_v12 = vld [vmem:[#allocation4 + $0x7f0] sm:$0xff] }
 0x1fb   :  { %3070 = vmatpush1.bf16.msra.mxu1 %v15369_v13  ;;  %3030 = vmatprep.subr.bf16.mxu0 %v15234_v14  ;;  %v15185_v13 = vcombine.low %v438_v62, %v442_v0  ;;  %v15313_v14 = vcombine.low %v566_v1, %v570_v2  ;;  %v15434_v20 = vcombine.high %v686_v9, %v690_v12  ;;  %v510_v0 = vld [vmem:[#allocation4 + $0x250] sm:$0xff] }
 0x1fc   :  { %3071 = vmatprep.subr.bf16.mxu1 %v15362_v19  ;;  %3060 = vmatprep.mubr.bf16.mxu0 %v19750_v11  ;;  %v678_v19 = vld [vmem:[#allocation4 + $0x790] sm:$0xff]  ;;  %v15266_v62 = vcombine.high %v518_v54, %v522_v56 }
 0x1fd   :  { %3101 = vmatprep.mubr.bf16.mxu1 %v19755_v16  ;;  %v514_v1 = vld [vmem:[#allocation4 + $0x270] sm:$0xff] }
 0x1fe   :  { %3031 = vmatpush1.bf16.msra.mxu0 %v15233_v21  ;;  %v682_v21 = vld [vmem:[#allocation4 + $0x7b0] sm:$0xff] }
 0x1ff   :  { %3072 = vmatpush1.bf16.msra.mxu1 %v15361_v22  ;;  %3032 = vmatprep.subr.bf16.mxu0 %v15226_v24  ;;  %v15305_v22 = vcombine.low %v558_v7, %v562_v8  ;;  %v15433_v24 = vcombine.low %v686_v9, %v690_v12  ;;  %v15426_v29 = vcombine.high %v678_v19, %v682_v21  ;;  %v502_v8 = vld [vmem:[#allocation4 + $0x210] sm:$0xff] }
 0x200   :  { %3073 = vmatprep.subr.bf16.mxu1 %v15354_v28  ;;  %v670_v28 = vld [vmem:[#allocation4 + $0x750] sm:$0xff]  ;;  %v15258_v7 = vcombine.high %v510_v0, %v514_v1 }
 0x201   :  { %v506_v9 = vld [vmem:[#allocation4 + $0x230] sm:$0xff] }
 0x202   :  { %3033 = vmatpush1.bf16.msra.mxu0 %v15225_v30  ;;  %v674_v30 = vld [vmem:[#allocation4 + $0x770] sm:$0xff] }
 0x203   :  { %3074 = vmatpush1.bf16.msra.mxu1 %v15353_v32  ;;  %3034 = vmatprep.subr.bf16.mxu0 %v15218_v33  ;;  %v15297_v32 = vcombine.low %v550_v17, %v554_v18  ;;  %v15425_v33 = vcombine.low %v678_v19, %v682_v21  ;;  %v15418_v40 = vcombine.high %v670_v28, %v674_v30  ;;  %v750_v18 = vld [vmem:[#allocation4 + $0x9d0] sm:$0xff] }
 0x204   :  { %3075 = vmatprep.subr.bf16.mxu1 %v15346_v39  ;;  %v662_v39 = vld [vmem:[#allocation4 + $0x710] sm:$0xff]  ;;  %v15250_v17 = vcombine.high %v502_v8, %v506_v9 }
 0x205   :  { %v754_v19 = vld [vmem:[#allocation4 + $0x9f0] sm:$0xff] }
 0x206   :  { %3035 = vmatpush1.bf16.msra.mxu0 %v15217_v41  ;;  %v666_v41 = vld [vmem:[#allocation4 + $0x730] sm:$0xff] }
 0x207   :  { %3076 = vmatpush1.bf16.msra.mxu1 %v15345_v42  ;;  %3036 = vmatprep.subr.bf16.mxu0 %v15210_v43  ;;  %v15289_v42 = vcombine.low %v542_v26, %v546_v27  ;;  %v15417_v43 = vcombine.low %v670_v28, %v674_v30  ;;  %v15410_v48 = vcombine.high %v662_v39, %v666_v41  ;;  %v19792_v26 = vsub.s32 0, %v19734_v44  ;;  %v746_v30 = vld [vmem:[#allocation4 + $0x9b0] sm:$0xff] }
 0x208   :  { %3077 = vmatprep.subr.bf16.mxu1 %v15338_v47  ;;  %v654_v47 = vld [vmem:[#allocation4 + $0x6d0] sm:$0xff]  ;;  %v15498_v28 = vcombine.high %v750_v18, %v754_v19 }
 0x20a   :  { %3037 = vmatpush1.bf16.msra.mxu0 %v15209_v49  ;;  %v658_v49 = vld [vmem:[#allocation4 + $0x6f0] sm:$0xff] }
 0x20b   :  { %3078 = vmatpush1.bf16.msra.mxu1 %v15337_v50  ;;  %3038 = vmatprep.subr.bf16.mxu0 %v15202_v51  ;;  %v15281_v50 = vcombine.low %v534_v37, %v538_v38  ;;  %v15409_v51 = vcombine.low %v662_v39, %v666_v41  ;;  %v15402_v58 = vcombine.high %v654_v47, %v658_v49  ;;  %v491_v37 = vld [vmem:[#allocation4 + $0x1b8] sm:$0xff] }
 0x20c   :  { %3079 = vmatprep.subr.bf16.mxu1 %v15330_v57  ;;  %v646_v57 = vld [vmem:[#allocation4 + $0x690] sm:$0xff]  ;;  %v15497_v39 = vcombine.low %v750_v18, %v754_v19 }
 0x20e   :  { %3039 = vmatpush1.bf16.msra.mxu0 %v15201_v59  ;;  %v650_v59 = vld [vmem:[#allocation4 + $0x6b0] sm:$0xff] }
 0x20f   :  { %3080 = vmatpush1.bf16.msra.mxu1 %v15329_v60  ;;  %3040 = vmatprep.subr.bf16.mxu0 %v15194_v61  ;;  %v15273_v60 = vcombine.low %v526_v45, %v530_v46  ;;  %v15401_v61 = vcombine.low %v654_v47, %v658_v49  ;;  %v15394_v2 = vcombine.high %v646_v57, %v650_v59  ;;  %v738_v45 = vld [vmem:[#allocation4 + $0x970] sm:$0xff]  ;;  %v479_v47 = vld [vmem:[#allocation4 + $0x158] sm:$0xff] }
 0x210   :  { %3081 = vmatprep.subr.bf16.mxu1 %v15322_v23  ;;  %v638_v23 = vld [vmem:[#allocation4 + $0x650] sm:$0xff] }
 0x212   :  { %3041 = vmatpush1.bf16.msra.mxu0 %v15193_v3  ;;  %v642_v3 = vld [vmem:[#allocation4 + $0x670] sm:$0xff] }
 0x213   :  { %3082 = vmatpush1.bf16.msra.mxu1 %v15321_v4  ;;  %3042 = vmatprep.subr.bf16.mxu0 %v15186_v6  ;;  %v15265_v4 = vcombine.low %v518_v54, %v522_v56  ;;  %v15393_v6 = vcombine.low %v646_v57, %v650_v59  ;;  %v15386_v12 = vcombine.high %v638_v23, %v642_v3 }
 0x214   :  { %3083 = vmatprep.subr.bf16.mxu1 %v15314_v10  ;;  %v630_v10 = vld [vmem:[#allocation4 + $0x610] sm:$0xff] }
 0x216   :  { %3043 = vmatpush1.bf16.msra.mxu0 %v15185_v13  ;;  %v634_v13 = vld [vmem:[#allocation4 + $0x630] sm:$0xff] }
 0x217   :  { %3084 = vmatpush1.bf16.msra.mxu1 %v15313_v14  ;;  %3044 = vmatprep.subr.bf16.mxu0 %v15306_v15  ;;  %v15257_v14 = vcombine.low %v510_v0, %v514_v1  ;;  %v15385_v15 = vcombine.low %v638_v23, %v642_v3  ;;  %v15378_v21 = vcombine.high %v630_v10, %v634_v13  ;;  %v471_v1 = vld [vmem:[#allocation4 + $0x118] sm:$0xff] }
 0x218   :  { %3085 = vmatprep.subr.bf16.mxu1 %v15434_v20  ;;  %v495_v20 = vld [vmem:[#allocation4 + $0x1d8] sm:$0xff]  ;;  %v15377_v27 = vcombine.low %v630_v10, %v634_v13  ;;  %v722_v13 = vld [vmem:[#allocation4 + $0x8f0] sm:$0xff] }
 0x219   :  { %v475_v23 = vld [vmem:[#allocation4 + $0x138] sm:$0xff] }
 0x21a   :  { %3045 = vmatpush2.bf16.msra.mxu0 %v15305_v22  ;;  %v499_v22 = vld [vmem:[#allocation4 + $0x1f8] sm:$0xff]  ;;  %v15220_v10 = vcombine.high %v471_v1, %v475_v23 }
 0x21b   :  { %3086 = vmatpush2.bf16.msra.mxu1 %v15433_v24  ;;  %3046 = vmatprep.subr.bf16.mxu0 %v15298_v25  ;;  %v820_v24 = vld [vmem:[#allocation6] sm:$0xff]  ;;  %v15249_v25 = vcombine.low %v502_v8, %v506_v9 }
 0x21c   :  { %3087 = vmatprep.subr.bf16.mxu1 %v15426_v29  ;;  %v742_v29 = vld [vmem:[#allocation4 + $0x990] sm:$0xff]  ;;  %v825_v38 = vrot.slane %v820_v24, %v19792_v26 }
 0x21d   :  { %v15490_v41 = vcombine.high %v742_v29, %v746_v30 }
 0x21e   :  { %3047 = vmatpush2.bf16.msra.mxu0 %v15297_v32  ;;  %v487_v32 = vld [vmem:[#allocation4 + $0x198] sm:$0xff] }
 0x21f   :  { %3088 = vmatpush2.bf16.msra.mxu1 %v15425_v33  ;;  %3048 = vmatprep.subr.bf16.mxu0 %v15290_v36  ;;  %v15244_v33 = vcombine.high %v495_v20, %v499_v22  ;;  %v19795_v36 = vsub.s32 1, %v19734_v44  ;;  %v15235_v54 = vcombine.low %v487_v32, %v491_v37 }
 0x220   :  { %3089 = vmatprep.subr.bf16.mxu1 %v15418_v40  ;;  %v15243_v40 = vcombine.low %v495_v20, %v499_v22  ;;  %v710_v20 = vld [vmem:[#allocation4 + $0x890] sm:$0xff]  ;;  %v455_v22 = vld [vmem:[#allocation4 + $0x98] sm:$0xff] }
 0x222   :  { %3049 = vmatpush2.bf16.msra.mxu0 %v15289_v42  ;;  %v829_v42 = vrot.slane %v820_v24, %v19795_v36  ;;  %v459_v24 = vld [vmem:[#allocation4 + $0xb8] sm:$0xff] }
 0x223   :  { %3090 = vmatpush2.bf16.msra.mxu1 %v15417_v43  ;;  %3050 = vmatprep.subr.bf16.mxu0 %v15282_v5  ;;  %v15236_v43 = vcombine.high %v487_v32, %v491_v37  ;;  %v734_v5 = vld [vmem:[#allocation4 + $0x950] sm:$0xff]  ;;  %v447_v32 = vld [vmem:[#allocation4 + $0x58] sm:$0xff] }
 0x224   :  { %3091 = vmatprep.subr.bf16.mxu1 %v15410_v48  ;;  %v483_v48 = vld [vmem:[#allocation4 + $0x178] sm:$0xff]  ;;  %v15482_v56 = vcombine.high %v734_v5, %v738_v45 }
 0x225   :  { %v451_v37 = vld [vmem:[#allocation4 + $0x78] sm:$0xff] }
 0x226   :  { %3051 = vmatpush2.bf16.msra.mxu0 %v15281_v50 }
 0x227   :  { %3092 = vmatpush2.bf16.msra.mxu1 %v15409_v51  ;;  %3052 = vmatprep.subr.bf16.mxu0 %v15274_v52  ;;  %v15489_v51 = vcombine.low %v742_v29, %v746_v30  ;;  %v702_v29 = vld [vmem:[#allocation4 + $0x850] sm:$0xff] }
 0x228   :  { %3093 = vmatprep.subr.bf16.mxu1 %v15402_v58  ;;  %v706_v30 = vld [vmem:[#allocation4 + $0x870] sm:$0xff] }
 0x22a   :  { %3053 = vmatpush2.bf16.msra.mxu0 %v15273_v60  ;;  %v15228_v60 = vcombine.high %v479_v47, %v483_v48 }
 0x22b   :  { %3094 = vmatpush2.bf16.msra.mxu1 %v15401_v61  ;;  %3054 = vmatprep.subr.bf16.mxu0 %v15266_v62  ;;  %v726_v61 = vld [vmem:[#allocation4 + $0x910] sm:$0xff] }
 0x22c   :  { %3095 = vmatprep.subr.bf16.mxu1 %v15394_v2  ;;  %v730_v62 = vld [vmem:[#allocation4 + $0x930] sm:$0xff] }
 0x22d   :  { %v15474_v8 = vcombine.high %v726_v61, %v730_v62 }
 0x22e   :  { %3055 = vmatpush2.bf16.msra.mxu0 %v15265_v4  ;;  %v15481_v4 = vcombine.low %v734_v5, %v738_v45  ;;  %v15196_v5 = vcombine.high %v447_v32, %v451_v37  ;;  %v443_v45 = vld [vmem:[#allocation4 + $0x38] sm:$0xff] }
 0x22f   :  { %3096 = vmatpush2.bf16.msra.mxu1 %v15393_v6  ;;  %3056 = vmatprep.subr.bf16.mxu0 %v15258_v7  ;;  %v15227_v7 = vcombine.low %v479_v47, %v483_v48  ;;  %v15195_v47 = vcombine.low %v447_v32, %v451_v37  ;;  %v774_v37 = vld [vmem:[#allocation4 + $0xa90] sm:$0xff] }
 0x230   :  { %3097 = vmatprep.subr.bf16.mxu1 %v15386_v12  ;;  %v718_v12 = vld [vmem:[#allocation4 + $0x8d0] sm:$0xff] }
 0x231   :  { %v15466_v18 = vcombine.high %v718_v12, %v722_v13 }
 0x232   :  { %3057 = vmatpush2.bf16.msra.mxu0 %v15257_v14  ;;  %v463_v14 = vld [vmem:[#allocation4 + $0xd8] sm:$0xff] }
 0x233   :  { %3098 = vmatpush2.bf16.msra.mxu1 %v15385_v15  ;;  %3058 = vmatprep.subr.bf16.mxu0 %v15250_v17  ;;  %v467_v15 = vld [vmem:[#allocation4 + $0xf8] sm:$0xff]  ;;  %v15473_v17 = vcombine.low %v726_v61, %v730_v62  ;;  %v810_v61 = vld [vmem:[#allocation4 + $0xbb0] sm:$0xff] }
 0x234   :  { %3099 = vmatprep.subr.bf16.mxu1 %v15378_v21  ;;  %v15212_v19 = vcombine.high %v463_v14, %v467_v15  ;;  %v714_v21 = vld [vmem:[#allocation4 + $0x8b0] sm:$0xff]  ;;  %v551_v62 = vld [vmem:[#allocation4 + $0x398] sm:$0xff] }
 0x236   :  { %3059 = vmatpush2.bf16.msra.mxu0 %v15249_v25  ;;  %v15465_v25 = vcombine.low %v718_v12, %v722_v13 }
 0x237   :  { %3100 = vmatpush2.bf16.msra.mxu1 %v15377_v27  ;;  %3110 = vmatprep.subr.bf16.mxu0 %v15498_v28  ;;  %v15211_v27 = vcombine.low %v463_v14, %v467_v15  ;;  %v15458_v28 = vcombine.high %v710_v20, %v714_v21  ;;  %v790_v15 = vld [vmem:[#allocation4 + $0xb10] sm:$0xff] }
 0x238   :  { %3151 = vmatprep.subr.bf16.mxu1 %v15244_v33  ;;  %v15204_v33 = vcombine.high %v455_v22, %v459_v24 }
 0x239   :  { %v2816_v46 = vpop.f32.mrf.mxu0  ;;  %3061 = vmatmul.mubr.bf16.vlgmr.msra.gmra.mxu0 %v19767_v31 }
 0x23a   :  { %v2817_v49 = vadd.f32 %v2816_v46, %v825_v38  ;;  %v2857_v50 = vpop.f32.mrf.mxu1  ;;  %3102 = vmatmul.mubr.bf16.vlgmr.msra.gmra.mxu1 %v19771_v35  ;;  %3111 = vmatpush1.bf16.msra.mxu0 %v15497_v39  ;;  %v15457_v38 = vcombine.low %v710_v20, %v714_v21  ;;  %v15203_v39 = vcombine.low %v455_v22, %v459_v24  ;;  %v782_v24 = vld [vmem:[#allocation4 + $0xad0] sm:$0xff] }
 0x23b   :  { %3152 = vmatpush1.bf16.msra.mxu1 %v15243_v40  ;;  %v2818_v52 = vpop.f32.mrf.mxu0  ;;  %3112 = vmatprep.subr.bf16.mxu0 %v15490_v41  ;;  %v15450_v40 = vcombine.high %v702_v29, %v706_v30  ;;  %v694_v41 = vld [vmem:[#allocation4 + $0x810] sm:$0xff]  ;;  %v15449_v46 = vcombine.low %v702_v29, %v706_v30  ;;  %v531_v29 = vld [vmem:[#allocation4 + $0x2f8] sm:$0xff] }
 0x23c   :  { %v19801_v57 = vadd.f32 %v2857_v50, %v2817_v49  ;;  %v2819_v58 = vadd.f32 %v2818_v52, %v829_v42  ;;  %v2859_v59 = vpop.f32.mrf.mxu1  ;;  %3153 = vmatprep.subr.bf16.mxu1 %v15236_v43  ;;  %3142 = vmatprep.mubr.bf16.mxu0 %v19773_v63  ;;  %v698_v42 = vld [vmem:[#allocation4 + $0x830] sm:$0xff]  ;;  %v439_v43 = vld [vmem:[#allocation4 + $0x18] sm:$0xff] }
 0x23d   :  { %v2820_v0 = vpop.f32.mrf.mxu0  ;;  %3183 = vmatprep.mubr.bf16.mxu1 %v19750_v11  ;;  %v15219_v11 = vcombine.low %v471_v1, %v475_v23  ;;  %v15442_v48 = vcombine.high %v694_v41, %v698_v42  ;;  %v814_v49 = vld [vmem:[#allocation4 + $0xbd0] sm:$0xff]  ;;  %v15188_v52 = vcombine.high %v439_v43, %v443_v45  ;;  %v555_v1 = vld [vmem:[#allocation4 + $0x3b8] sm:$0xff] }
 0x23e   :  { %v19805_v2 = vadd.f32 %v2859_v59, %v2819_v58  ;;  %v2861_v3 = vpop.f32.mrf.mxu1  ;;  %3113 = vmatpush1.bf16.msra.mxu0 %v15489_v51  ;;  %v818_v50 = vld [vmem:[#allocation4 + $0xbf0] sm:$0xff]  ;;  %v559_v51 = vld [vmem:[#allocation4 + $0x3d8] sm:$0xff]  ;;  %v15187_v58 = vcombine.low %v439_v43, %v443_v45  ;;  %v15299_v13 = vcombine.low %v551_v62, %v555_v1 }
 0x23f   :  { %3154 = vmatpush1.bf16.msra.mxu1 %v15235_v54  ;;  %v2821_v6 = vpop.f32.mrf.mxu0  ;;  %3114 = vmatprep.subr.bf16.mxu0 %v15482_v56  ;;  %v563_v54 = vld [vmem:[#allocation4 + $0x3f8] sm:$0xff]  ;;  %v15441_v56 = vcombine.low %v694_v41, %v698_v42  ;;  %v15562_v59 = vcombine.high %v814_v49, %v818_v50  ;;  %v15561_v23 = vcombine.low %v814_v49, %v818_v50  ;;  %v766_v45 = vld [vmem:[#allocation4 + $0xa50] sm:$0xff] }
 0x240   :  { %v2862_v9 = vpop.f32.mrf.mxu1  ;;  %3155 = vmatprep.subr.bf16.mxu1 %v15228_v60  ;;  %v806_v60 = vld [vmem:[#allocation4 + $0xb90] sm:$0xff]  ;;  %v15308_v0 = vcombine.high %v559_v51, %v563_v54  ;;  %v15307_v3 = vcombine.low %v559_v51, %v563_v54  ;;  %v523_v41 = vld [vmem:[#allocation4 + $0x2b8] sm:$0xff] }
 0x241   :  { %v798_v6 = vld [vmem:[#allocation4 + $0xb50] sm:$0xff]  ;;  %v15300_v9 = vcombine.high %v551_v62, %v555_v1  ;;  %v15553_v12 = vcombine.low %v806_v60, %v810_v61  ;;  %v515_v49 = vld [vmem:[#allocation4 + $0x278] sm:$0xff] }
 0x242   :  { %3115 = vmatpush1.bf16.msra.mxu0 %v15481_v4  ;;  %v15554_v4 = vcombine.high %v806_v60, %v810_v61  ;;  %v758_v54 = vld [vmem:[#allocation4 + $0xa10] sm:$0xff]  ;;  %v507_v60 = vld [vmem:[#allocation4 + $0x238] sm:$0xff] }
 0x243   :  { %3156 = vmatpush1.bf16.msra.mxu1 %v15227_v7  ;;  %3116 = vmatprep.subr.bf16.mxu0 %v15474_v8  ;;  %v802_v7 = vld [vmem:[#allocation4 + $0xb70] sm:$0xff]  ;;  %v543_v8 = vld [vmem:[#allocation4 + $0x358] sm:$0xff] }
 0x244   :  { %3157 = vmatprep.subr.bf16.mxu1 %v15220_v10  ;;  %v547_v10 = vld [vmem:[#allocation4 + $0x378] sm:$0xff]  ;;  %v15546_v14 = vcombine.high %v798_v6, %v802_v7  ;;  %v15545_v20 = vcombine.low %v798_v6, %v802_v7 }
 0x245   :  { %v15291_v21 = vcombine.low %v543_v8, %v547_v10  ;;  %v623_v1 = vld [vmem:[#allocation4 + $0x5d8] sm:$0xff] }
 0x246   :  { %3117 = vmatpush1.bf16.msra.mxu0 %v15473_v17  ;;  %v794_v17 = vld [vmem:[#allocation4 + $0xb30] sm:$0xff]  ;;  %v755_v6 = vld [vmem:[#allocation4 + $0x9f8] sm:$0xff] }
 0x247   :  { %3158 = vmatpush1.bf16.msra.mxu1 %v15219_v11  ;;  %3118 = vmatprep.subr.bf16.mxu0 %v15466_v18  ;;  %v535_v11 = vld [vmem:[#allocation4 + $0x318] sm:$0xff]  ;;  %v15292_v18 = vcombine.high %v543_v8, %v547_v10  ;;  %v15538_v22 = vcombine.high %v790_v15, %v794_v17  ;;  %v15537_v30 = vcombine.low %v790_v15, %v794_v17 }
 0x248   :  { %3159 = vmatprep.subr.bf16.mxu1 %v15212_v19  ;;  %v539_v19 = vld [vmem:[#allocation4 + $0x338] sm:$0xff] }
 0x249   :  { %v15283_v32 = vcombine.low %v535_v11, %v539_v19  ;;  %v615_v10 = vld [vmem:[#allocation4 + $0x598] sm:$0xff] }
 0x24a   :  { %3119 = vmatpush1.bf16.msra.mxu0 %v15465_v25  ;;  %v786_v25 = vld [vmem:[#allocation4 + $0xaf0] sm:$0xff]  ;;  %v747_v15 = vld [vmem:[#allocation4 + $0x9b8] sm:$0xff] }
 0x24b   :  { %3160 = vmatpush1.bf16.msra.mxu1 %v15211_v27  ;;  %3120 = vmatprep.subr.bf16.mxu0 %v15458_v28  ;;  %v527_v27 = vld [vmem:[#allocation4 + $0x2d8] sm:$0xff]  ;;  %v15284_v28 = vcombine.high %v535_v11, %v539_v19  ;;  %v15529_v42 = vcombine.low %v782_v24, %v786_v25 }
 0x24c   :  { %3161 = vmatprep.subr.bf16.mxu1 %v15204_v33  ;;  %v15530_v33 = vcombine.high %v782_v24, %v786_v25  ;;  %v15275_v43 = vcombine.low %v527_v27, %v531_v29  ;;  %v607_v11 = vld [vmem:[#allocation4 + $0x558] sm:$0xff] }
 0x24e   :  { %3121 = vmatpush1.bf16.msra.mxu0 %v15457_v38  ;;  %v778_v38 = vld [vmem:[#allocation4 + $0xab0] sm:$0xff] }
 0x24f   :  { %3162 = vmatpush1.bf16.msra.mxu1 %v15203_v39  ;;  %3122 = vmatprep.subr.bf16.mxu0 %v15450_v40  ;;  %v519_v39 = vld [vmem:[#allocation4 + $0x298] sm:$0xff]  ;;  %v15276_v40 = vcombine.high %v527_v27, %v531_v29  ;;  %v15521_v50 = vcombine.low %v774_v37, %v778_v38 }
 0x250   :  { %3163 = vmatprep.subr.bf16.mxu1 %v15196_v5  ;;  %v15522_v5 = vcombine.high %v774_v37, %v778_v38  ;;  %v15267_v51 = vcombine.low %v519_v39, %v523_v41 }
 0x252   :  { %3123 = vmatpush1.bf16.msra.mxu0 %v15449_v46  ;;  %v770_v46 = vld [vmem:[#allocation4 + $0xa70] sm:$0xff] }
 0x253   :  { %3164 = vmatpush1.bf16.msra.mxu1 %v15195_v47  ;;  %3124 = vmatprep.subr.bf16.mxu0 %v15442_v48  ;;  %v511_v47 = vld [vmem:[#allocation4 + $0x258] sm:$0xff]  ;;  %v15268_v48 = vcombine.high %v519_v39, %v523_v41  ;;  %v15513_v61 = vcombine.low %v766_v45, %v770_v46 }
 0x254   :  { %3165 = vmatprep.subr.bf16.mxu1 %v15188_v52  ;;  %v15514_v52 = vcombine.high %v766_v45, %v770_v46  ;;  %v15259_v62 = vcombine.low %v511_v47, %v515_v49  ;;  %v727_v39 = vld [vmem:[#allocation4 + $0x918] sm:$0xff] }
 0x256   :  { %3125 = vmatpush1.bf16.msra.mxu0 %v15441_v56  ;;  %v762_v56 = vld [vmem:[#allocation4 + $0xa30] sm:$0xff] }
 0x257   :  { %3166 = vmatpush1.bf16.msra.mxu1 %v15187_v58  ;;  %3126 = vmatprep.subr.bf16.mxu0 %v15562_v59  ;;  %v503_v58 = vld [vmem:[#allocation4 + $0x218] sm:$0xff]  ;;  %v15260_v59 = vcombine.high %v511_v47, %v515_v49  ;;  %v15505_v7 = vcombine.low %v758_v54, %v762_v56 }
 0x258   :  { %3167 = vmatprep.subr.bf16.mxu1 %v15308_v0  ;;  %v15506_v0 = vcombine.high %v758_v54, %v762_v56  ;;  %v15251_v8 = vcombine.low %v503_v58, %v507_v60  ;;  %v591_v49 = vld [vmem:[#allocation4 + $0x4d8] sm:$0xff] }
 0x259   :  { %v583_v54 = vld [vmem:[#allocation4 + $0x498] sm:$0xff] }
 0x25a   :  { %3127 = vmatpush2.bf16.msra.mxu0 %v15561_v23  ;;  %v627_v23 = vld [vmem:[#allocation4 + $0x5f8] sm:$0xff] }
 0x25b   :  { %3168 = vmatpush2.bf16.msra.mxu1 %v15307_v3  ;;  %3128 = vmatprep.subr.bf16.mxu0 %v15554_v4  ;;  %v751_v3 = vld [vmem:[#allocation4 + $0x9d8] sm:$0xff]  ;;  %v15252_v4 = vcombine.high %v503_v58, %v507_v60  ;;  %v15371_v17 = vcombine.low %v623_v1, %v627_v23 }
 0x25c   :  { %3169 = vmatprep.subr.bf16.mxu1 %v15300_v9  ;;  %v15372_v9 = vcombine.high %v623_v1, %v627_v23  ;;  %v15499_v19 = vcombine.low %v751_v3, %v755_v6  ;;  %v587_v56 = vld [vmem:[#allocation4 + $0x4b8] sm:$0xff] }
 0x25d   :  { %v715_v60 = vld [vmem:[#allocation4 + $0x8b8] sm:$0xff] }
 0x25e   :  { %3129 = vmatpush2.bf16.msra.mxu0 %v15553_v12  ;;  %v619_v12 = vld [vmem:[#allocation4 + $0x5b8] sm:$0xff] }
 0x25f   :  { %3170 = vmatpush2.bf16.msra.mxu1 %v15299_v13  ;;  %3130 = vmatprep.subr.bf16.mxu0 %v15546_v14  ;;  %v743_v13 = vld [vmem:[#allocation4 + $0x998] sm:$0xff]  ;;  %v15500_v14 = vcombine.high %v751_v3, %v755_v6  ;;  %v15363_v29 = vcombine.low %v615_v10, %v619_v12  ;;  %v15332_v3 = vcombine.high %v583_v54, %v587_v56 }
 0x260   :  { %3171 = vmatprep.subr.bf16.mxu1 %v15292_v18  ;;  %v611_v18 = vld [vmem:[#allocation4 + $0x578] sm:$0xff]  ;;  %v15492_v24 = vcombine.high %v743_v13, %v747_v15  ;;  %v15491_v37 = vcombine.low %v743_v13, %v747_v15 }
 0x261   :  { %v15356_v38 = vcombine.high %v607_v11, %v611_v18  ;;  %v579_v1 = vld [vmem:[#allocation4 + $0x478] sm:$0xff] }
 0x262   :  { %3131 = vmatpush2.bf16.msra.mxu0 %v15545_v20  ;;  %v15364_v20 = vcombine.high %v615_v10, %v619_v12  ;;  %v707_v6 = vld [vmem:[#allocation4 + $0x878] sm:$0xff] }
 0x263   :  { %3172 = vmatpush2.bf16.msra.mxu1 %v15291_v21  ;;  %3132 = vmatprep.subr.bf16.mxu0 %v15538_v22  ;;  %v735_v21 = vld [vmem:[#allocation4 + $0x958] sm:$0xff] }
 0x264   :  { %3173 = vmatprep.subr.bf16.mxu1 %v15284_v28  ;;  %v739_v22 = vld [vmem:[#allocation4 + $0x978] sm:$0xff] }
 0x265   :  { %v15483_v45 = vcombine.low %v735_v21, %v739_v22  ;;  %v571_v10 = vld [vmem:[#allocation4 + $0x438] sm:$0xff] }
 0x266   :  { %3133 = vmatpush2.bf16.msra.mxu0 %v15537_v30  ;;  %v599_v30 = vld [vmem:[#allocation4 + $0x518] sm:$0xff] }
 0x267   :  { %3174 = vmatpush2.bf16.msra.mxu1 %v15283_v32  ;;  %3134 = vmatprep.subr.bf16.mxu0 %v15530_v33  ;;  %v603_v32 = vld [vmem:[#allocation4 + $0x538] sm:$0xff] }
 0x268   :  { %3175 = vmatprep.subr.bf16.mxu1 %v15276_v40  ;;  %v731_v40 = vld [vmem:[#allocation4 + $0x938] sm:$0xff]  ;;  %v15348_v46 = vcombine.high %v599_v30, %v603_v32 }
 0x269   :  { %v699_v15 = vld [vmem:[#allocation4 + $0x838] sm:$0xff] }
 0x26a   :  { %3135 = vmatpush2.bf16.msra.mxu0 %v15529_v42 }
 0x26b   :  { %3176 = vmatpush2.bf16.msra.mxu1 %v15275_v43  ;;  %3136 = vmatprep.subr.bf16.mxu0 %v15522_v5  ;;  %v15355_v43 = vcombine.low %v607_v11, %v611_v18  ;;  %v687_v18 = vld [vmem:[#allocation4 + $0x7d8] sm:$0xff] }
 0x26c   :  { %3177 = vmatprep.subr.bf16.mxu1 %v15268_v48  ;;  %v15476_v48 = vcombine.high %v727_v39, %v731_v40 }
 0x26e   :  { %3137 = vmatpush2.bf16.msra.mxu0 %v15521_v50  ;;  %v595_v50 = vld [vmem:[#allocation4 + $0x4f8] sm:$0xff] }
 0x26f   :  { %3178 = vmatpush2.bf16.msra.mxu1 %v15267_v51  ;;  %3138 = vmatprep.subr.bf16.mxu0 %v15514_v52  ;;  %v719_v51 = vld [vmem:[#allocation4 + $0x8d8] sm:$0xff]  ;;  %v15340_v58 = vcombine.high %v591_v49, %v595_v50 }
 0x270   :  { %3179 = vmatprep.subr.bf16.mxu1 %v15260_v59  ;;  %v723_v52 = vld [vmem:[#allocation4 + $0x8f8] sm:$0xff] }
 0x271   :  { %v711_v59 = vld [vmem:[#allocation4 + $0x898] sm:$0xff]  ;;  %v15467_v23 = vcombine.low %v719_v51, %v723_v52 }
 0x272   :  { %3139 = vmatpush2.bf16.msra.mxu0 %v15513_v61  ;;  %v15468_v61 = vcombine.high %v719_v51, %v723_v52  ;;  %v15459_v12 = vcombine.low %v711_v59, %v715_v60  ;;  %v667_v51 = vld [vmem:[#allocation4 + $0x738] sm:$0xff] }
 0x273   :  { %3180 = vmatpush2.bf16.msra.mxu1 %v15259_v62  ;;  %3140 = vmatprep.subr.bf16.mxu0 %v15506_v0  ;;  %v15339_v62 = vcombine.low %v591_v49, %v595_v50  ;;  %v575_v0 = vld [vmem:[#allocation4 + $0x458] sm:$0xff] }
 0x274   :  { %3181 = vmatprep.subr.bf16.mxu1 %v15252_v4  ;;  %v703_v4 = vld [vmem:[#allocation4 + $0x858] sm:$0xff]  ;;  %v15324_v13 = vcombine.high %v575_v0, %v579_v1  ;;  %v15323_v11 = vcombine.low %v575_v0, %v579_v1 }
 0x275   :  { %v663_v50 = vld [vmem:[#allocation4 + $0x718] sm:$0xff] }
 0x276   :  { %3141 = vmatpush2.bf16.msra.mxu0 %v15505_v7  ;;  %v15460_v7 = vcombine.high %v711_v59, %v715_v60  ;;  %v655_v59 = vld [vmem:[#allocation4 + $0x6d8] sm:$0xff] }
 0x277   :  { %3182 = vmatpush2.bf16.msra.mxu1 %v15251_v8  ;;  %3192 = vmatprep.subr.bf16.mxu0 %v15372_v9  ;;  %v15331_v8 = vcombine.low %v583_v54, %v587_v56  ;;  %v567_v9 = vld [vmem:[#allocation4 + $0x418] sm:$0xff] }
 0x278   :  { %3233 = vmatprep.subr.bf16.mxu1 %v15500_v14  ;;  %v695_v14 = vld [vmem:[#allocation4 + $0x818] sm:$0xff] }
 0x279   :  { %v2898_v25 = vpop.f32.mrf.mxu0  ;;  %3143 = vmatmul.mubr.bf16.vlgmr.msra.gmra.mxu0 %v19781_v55  ;;  %v791_v54 = vld [vmem:[#allocation4 + $0xb18] sm:$0xff] }
 0x27a   :  { %v19809_v27 = vadd.f32 %v2898_v25, %v19801_v57  ;;  %v19811_v28 = vpop.f32.mrf.mxu1  ;;  %3184 = vmatmul.mubr.bf16.vlgmr.msra.gmra.mxu1 %v19767_v31  ;;  %3193 = vmatpush1.bf16.msra.mxu0 %v15371_v17  ;;  %v15484_v57 = vcombine.high %v735_v21, %v739_v22  ;;  %v15452_v17 = vcombine.high %v703_v4, %v707_v6  ;;  %v815_v22 = vld [vmem:[#allocation4 + $0xbd8] sm:$0xff] }
 0x27b   :  { %3234 = vmatpush1.bf16.msra.mxu1 %v15499_v19  ;;  %v19814_v33 = vpop.f32.mrf.mxu0  ;;  %3194 = vmatprep.subr.bf16.mxu0 %v15364_v20  ;;  %v691_v19 = vld [vmem:[#allocation4 + $0x7f8] sm:$0xff]  ;;  %v15451_v20 = vcombine.low %v703_v4, %v707_v6  ;;  %v15316_v21 = vcombine.high %v567_v9, %v571_v10  ;;  %v15444_v25 = vcombine.high %v695_v14, %v699_v15 }
 0x27c   :  { %v19816_v41 = vpop.f32.mrf.mxu1  ;;  %3235 = vmatprep.subr.bf16.mxu1 %v15492_v24  ;;  %3224 = vmatprep.mubr.bf16.mxu0 %v19755_v16  ;;  %v15347_v16 = vcombine.low %v599_v30, %v603_v32  ;;  %v819_v24 = vld [vmem:[#allocation4 + $0xbf8] sm:$0xff] }
 0x27d   :  { %v2902_v42 = vpop.f32.mrf.mxu0  ;;  %3265 = vmatprep.mubr.bf16.mxu1 %v19773_v63  ;;  %v15475_v63 = vcombine.low %v727_v39, %v731_v40  ;;  %v679_v30 = vld [vmem:[#allocation4 + $0x798] sm:$0xff] }
 0x27e   :  { %v2943_v31 = vpop.f32.mrf.mxu1  ;;  %3195 = vmatpush1.bf16.msra.mxu0 %v15363_v29  ;;  %v15315_v29 = vcombine.low %v567_v9, %v571_v10  ;;  %v683_v32 = vld [vmem:[#allocation4 + $0x7b8] sm:$0xff]  ;;  %v15435_v42 = vcombine.low %v687_v18, %v691_v19 }
 0x27f   :  { %3236 = vmatpush1.bf16.msra.mxu1 %v15491_v37  ;;  %v2903_v5 = vpop.f32.mrf.mxu0  ;;  %3196 = vmatprep.subr.bf16.mxu0 %v15356_v38  ;;  %v15443_v37 = vcombine.low %v695_v14, %v699_v15  ;;  %v15436_v38 = vcombine.high %v687_v18, %v691_v19  ;;  %v807_v39 = vld [vmem:[#allocation4 + $0xb98] sm:$0xff]  ;;  %v15427_v49 = vcombine.low %v679_v30, %v683_v32 }
 0x280   :  { %v2944_v47 = vpop.f32.mrf.mxu1  ;;  %3237 = vmatprep.subr.bf16.mxu1 %v15484_v57  ;;  %v811_v40 = vld [vmem:[#allocation4 + $0xbb8] sm:$0xff]  ;;  %v15564_v57 = vcombine.high %v815_v22, %v819_v24  ;;  %v15563_v5 = vcombine.low %v815_v22, %v819_v24 }
 0x281   :  { %v671_v31 = vld [vmem:[#allocation4 + $0x758] sm:$0xff]  ;;  %v15555_v52 = vcombine.low %v807_v39, %v811_v40 }
 0x282   :  { %3197 = vmatpush1.bf16.msra.mxu0 %v15355_v43  ;;  %v675_v43 = vld [vmem:[#allocation4 + $0x778] sm:$0xff] }
 0x283   :  { %3238 = vmatpush1.bf16.msra.mxu1 %v15483_v45  ;;  %3198 = vmatprep.subr.bf16.mxu0 %v15348_v46  ;;  %v15428_v45 = vcombine.high %v679_v30, %v683_v32  ;;  %v799_v46 = vld [vmem:[#allocation4 + $0xb58] sm:$0xff] }
 0x284   :  { %3239 = vmatprep.subr.bf16.mxu1 %v15476_v48  ;;  %v803_v47 = vld [vmem:[#allocation4 + $0xb78] sm:$0xff]  ;;  %v15556_v48 = vcombine.high %v807_v39, %v811_v40 }
 0x285   :  { %v795_v56 = vld [vmem:[#allocation4 + $0xb38] sm:$0xff] }
 0x286   :  { %3199 = vmatpush1.bf16.msra.mxu0 %v15347_v16  ;;  %v15420_v16 = vcombine.high %v671_v31, %v675_v43  ;;  %v659_v60 = vld [vmem:[#allocation4 + $0x6f8] sm:$0xff] }
 0x287   :  { %3240 = vmatpush1.bf16.msra.mxu1 %v15475_v63  ;;  %3200 = vmatprep.subr.bf16.mxu0 %v15340_v58  ;;  %v15548_v63 = vcombine.high %v799_v46, %v803_v47  ;;  %v15419_v58 = vcombine.low %v671_v31, %v675_v43  ;;  %v783_v0 = vld [vmem:[#allocation4 + $0xad8] sm:$0xff]  ;;  %v19823_v43 = vsub.s32 3, %v19734_v44 }
 0x288   :  { %3241 = vmatprep.subr.bf16.mxu1 %v15468_v61  ;;  %v15547_v61 = vcombine.low %v799_v46, %v803_v47  ;;  %v787_v1 = vld [vmem:[#allocation4 + $0xaf8] sm:$0xff] }
 0x289   :  { %v647_v4 = vld [vmem:[#allocation4 + $0x698] sm:$0xff] }
 0x28a   :  { %3201 = vmatpush1.bf16.msra.mxu0 %v15339_v62  ;;  %v15412_v62 = vcombine.high %v663_v50, %v667_v51  ;;  %v651_v6 = vld [vmem:[#allocation4 + $0x6b8] sm:$0xff] }
 0x28b   :  { %3242 = vmatpush1.bf16.msra.mxu1 %v15467_v23  ;;  %3202 = vmatprep.subr.bf16.mxu0 %v15332_v3  ;;  %v15540_v23 = vcombine.high %v791_v54, %v795_v56  ;;  %v15411_v3 = vcombine.low %v663_v50, %v667_v51  ;;  %v775_v9 = vld [vmem:[#allocation4 + $0xa98] sm:$0xff]  ;;  %v19825_v50 = vld [vmem:[#allocation6] sm:$0xff] }
 0x28c   :  { %3243 = vmatprep.subr.bf16.mxu1 %v15460_v7  ;;  %v15539_v7 = vcombine.low %v791_v54, %v795_v56  ;;  %v779_v10 = vld [vmem:[#allocation4 + $0xab8] sm:$0xff]  ;;  %v837_v51 = vrot.slane %v19825_v50, %v19823_v43 }
 0x28d   :  { %v639_v14 = vld [vmem:[#allocation4 + $0x658] sm:$0xff] }
 0x28e   :  { %3203 = vmatpush1.bf16.msra.mxu0 %v15331_v8  ;;  %v15404_v8 = vcombine.high %v655_v59, %v659_v60  ;;  %v643_v15 = vld [vmem:[#allocation4 + $0x678] sm:$0xff] }
 0x28f   :  { %3244 = vmatpush1.bf16.msra.mxu1 %v15459_v12  ;;  %3204 = vmatprep.subr.bf16.mxu0 %v15324_v13  ;;  %v15532_v12 = vcombine.high %v783_v0, %v787_v1  ;;  %v15403_v13 = vcombine.low %v655_v59, %v659_v60  ;;  %v767_v18 = vld [vmem:[#allocation4 + $0xa58] sm:$0xff] }
 0x290   :  { %3245 = vmatprep.subr.bf16.mxu1 %v15452_v17  ;;  %v15531_v17 = vcombine.low %v783_v0, %v787_v1  ;;  %v771_v19 = vld [vmem:[#allocation4 + $0xa78] sm:$0xff] }
 0x291   :  { %v631_v22 = vld [vmem:[#allocation4 + $0x618] sm:$0xff]  ;;  %v15515_v39 = vcombine.low %v767_v18, %v771_v19 }
 0x292   :  { %3205 = vmatpush1.bf16.msra.mxu0 %v15323_v11  ;;  %v15396_v11 = vcombine.high %v647_v4, %v651_v6  ;;  %v635_v24 = vld [vmem:[#allocation4 + $0x638] sm:$0xff] }
 0x293   :  { %3246 = vmatpush1.bf16.msra.mxu1 %v15451_v20  ;;  %3206 = vmatprep.subr.bf16.mxu0 %v15316_v21  ;;  %v15524_v20 = vcombine.high %v775_v9, %v779_v10  ;;  %v15395_v21 = vcombine.low %v647_v4, %v651_v6  ;;  %v759_v30 = vld [vmem:[#allocation4 + $0xa18] sm:$0xff]  ;;  %v15380_v40 = vcombine.high %v631_v22, %v635_v24 }
 0x294   :  { %3247 = vmatprep.subr.bf16.mxu1 %v15444_v25  ;;  %v15523_v25 = vcombine.low %v775_v9, %v779_v10  ;;  %v763_v32 = vld [vmem:[#allocation4 + $0xa38] sm:$0xff] }
 0x295   :  { %v17267_v31 = vld [vmem:[#allocation8 + $0xe4] ss:$16 sps:$4 sm:$0xff]   ;;  %v15507_v46 = vcombine.low %v759_v30, %v763_v32  ;;  %v17265_v47 = vld [vmem:[#allocation8 + $0xe0] ss:$16 sps:$4 sm:$0xff]  }
 0x296   :  { %3207 = vmatpush1.bf16.msra.mxu0 %v15315_v29  ;;  %v15388_v29 = vcombine.high %v639_v14, %v643_v15  ;;  %v17274_v56 = vld [vmem:[#allocation8 + $0x2c0] ss:$16 sps:$4 sm:$0xff]   ;;  %v17282_v60 = vld [vmem:[#allocation8 + $0x2a4] ss:$16 sps:$4 sm:$0xff]  }
 0x297   :  { %3248 = vmatpush1.bf16.msra.mxu1 %v15443_v37  ;;  %3208 = vmatprep.subr.bf16.mxu0 %v15436_v38  ;;  %v15516_v37 = vcombine.high %v767_v18, %v771_v19  ;;  %v15387_v38 = vcombine.low %v639_v14, %v643_v15  ;;  %v17277_v1 = vld [vmem:[#allocation8 + $0xa0] ss:$16 sps:$4 sm:$0xff]   ;;  %v17288_v6 = vld [vmem:[#allocation8 + $0x284] ss:$16 sps:$4 sm:$0xff]  }
 0x298   :  { %3249 = vmatprep.subr.bf16.mxu1 %v15564_v57  ;;  %v15508_v57 = vcombine.high %v759_v30, %v763_v32  ;;  %v17283_v9 = vld [vmem:[#allocation8 + $0x80] ss:$16 sps:$4 sm:$0xff]   ;;  %v17294_v15 = vld [vmem:[#allocation8 + $0x264] ss:$16 sps:$4 sm:$0xff]  }
 0x299   :  { %v17289_v14 = vld [vmem:[#allocation8 + $0x60] ss:$16 sps:$4 sm:$0xff]   ;;  %v17300_v19 = vld [vmem:[#allocation8 + $0x244] ss:$16 sps:$4 sm:$0xff]  }
 0x29a   :  { %3209 = vmatpush2.bf16.msra.mxu0 %v15435_v42  ;;  %v2901_v42 = vadd.f32 %v19814_v33, %v19805_v2  ;;  %v17273_v2 = vld [vmem:[#allocation8 + $0xc4] ss:$16 sps:$4 sm:$0xff]   ;;  %v17295_v18 = vld [vmem:[#allocation8 + $0x40] ss:$16 sps:$4 sm:$0xff]  }
 0x29b   :  { %3250 = vmatpush2.bf16.msra.mxu1 %v15563_v5  ;;  %3210 = vmatprep.subr.bf16.mxu0 %v15428_v45  ;;  %v15379_v5 = vcombine.low %v631_v22, %v635_v24  ;;  %v17270_v45 = vld [vmem:[#allocation8 + $0x2e4] ss:$16 sps:$4 sm:$0xff]   ;;  %v17301_v22 = vld [vmem:[#allocation8 + $0x20] ss:$16 sps:$4 sm:$0xff]  }
 0x29c   :  { %3251 = vmatprep.subr.bf16.mxu1 %v15556_v48  ;;  %v3275_v48 = vmax.f32 %v2901_v42, 0.0  ;;  %v17276_v33 = vld [vmem:[#allocation8 + $0x2c4] ss:$16 sps:$4 sm:$0xff]   ;;  %v17307_v30 = vld [vmem:[#allocation8] ss:$16 sps:$4 sm:$0xff]  }
 0x29d   :  { %v17306_v24 = vld [vmem:[#allocation8 + $0x224] ss:$16 sps:$4 sm:$0xff]  }
 0x29e   :  { %3211 = vmatpush2.bf16.msra.mxu0 %v15427_v49  ;;  %v17268_v49 = vld [vmem:[#allocation8 + $0x2e0] ss:$16 sps:$4 sm:$0xff]   ;;  %v17312_v32 = vld [vmem:[#allocation8 + $0x204] ss:$16 sps:$4 sm:$0xff]  }
 0x29f   :  { %3252 = vmatpush2.bf16.msra.mxu1 %v15555_v52  ;;  %3212 = vmatprep.subr.bf16.mxu0 %v15420_v16  ;;  %v17271_v52 = vld [vmem:[#allocation8 + $0xc0] ss:$16 sps:$4 sm:$0xff]   ;;  %v19829_v16 = vpack.c.bf16 %v3275_v48, %v3275_v48  ;;  %v17321_v42 = vld [vmem:[#allocation8 + $0x1c4] ss:$16 sps:$4 sm:$0xff]  }
 0x2a0   :  { %3253 = vmatprep.subr.bf16.mxu1 %v15548_v63  ;;  %v17279_v63 = vld [vmem:[#allocation8 + $0xa4] ss:$16 sps:$4 sm:$0xff]  }
 0x2a1   :  { %v17330_v48 = vld [vmem:[#allocation8 + $0x3a4] ss:$16 sps:$4 sm:$0xff]  }
 0x2a2   :  { %3213 = vmatpush2.bf16.msra.mxu0 %v15419_v58  ;;  %v2942_v58 = vadd.f32 %v19816_v41, %v837_v51  ;;  %v17333_v51 = vld [vmem:[#allocation8 + $0x184] ss:$16 sps:$4 sm:$0xff]  }
 0x2a3   :  { %3254 = vmatpush2.bf16.msra.mxu1 %v15547_v61  ;;  %3214 = vmatprep.subr.bf16.mxu0 %v15412_v62 }
 0x2a4   :  { %3255 = vmatprep.subr.bf16.mxu1 %v15540_v23  ;;  %v17280_v23 = vld [vmem:[#allocation8 + $0x2a0] ss:$16 sps:$4 sm:$0xff]  }
 0x2a6   :  { %3215 = vmatpush2.bf16.msra.mxu0 %v15411_v3  ;;  %v17285_v3 = vld [vmem:[#allocation8 + $0x84] ss:$16 sps:$4 sm:$0xff]  }
 0x2a7   :  { %3256 = vmatpush2.bf16.msra.mxu1 %v15539_v7  ;;  %3216 = vmatprep.subr.bf16.mxu0 %v15404_v8 }
 0x2a8   :  { %3257 = vmatprep.subr.bf16.mxu1 %v15532_v12  ;;  %v17286_v12 = vld [vmem:[#allocation8 + $0x280] ss:$16 sps:$4 sm:$0xff]  }
 0x2aa   :  { %3217 = vmatpush2.bf16.msra.mxu0 %v15403_v13  ;;  %v17291_v13 = vld [vmem:[#allocation8 + $0x64] ss:$16 sps:$4 sm:$0xff]  }
 0x2ab   :  { %3258 = vmatpush2.bf16.msra.mxu1 %v15531_v17  ;;  %3218 = vmatprep.subr.bf16.mxu0 %v15396_v11  ;;  %v17292_v17 = vld [vmem:[#allocation8 + $0x260] ss:$16 sps:$4 sm:$0xff]   ;;  %v17297_v11 = vld [vmem:[#allocation8 + $0x44] ss:$16 sps:$4 sm:$0xff]  }
 0x2ac   :  { %3259 = vmatprep.subr.bf16.mxu1 %v15524_v20  ;;  %v17298_v20 = vld [vmem:[#allocation8 + $0x240] ss:$16 sps:$4 sm:$0xff]  }
 0x2ae   :  { %3219 = vmatpush2.bf16.msra.mxu0 %v15395_v21  ;;  %v17303_v21 = vld [vmem:[#allocation8 + $0x24] ss:$16 sps:$4 sm:$0xff]  }
 0x2af   :  { %3260 = vmatpush2.bf16.msra.mxu1 %v15523_v25  ;;  %3220 = vmatprep.subr.bf16.mxu0 %v15388_v29  ;;  %v17304_v25 = vld [vmem:[#allocation8 + $0x220] ss:$16 sps:$4 sm:$0xff]   ;;  %v17309_v29 = vld [vmem:[#allocation8 + $0x4] ss:$16 sps:$4 sm:$0xff]  }
 0x2b0   :  { %3261 = vmatprep.subr.bf16.mxu1 %v15516_v37  ;;  %v17310_v37 = vld [vmem:[#allocation8 + $0x200] ss:$16 sps:$4 sm:$0xff]  }
 0x2b2   :  { %3221 = vmatpush2.bf16.msra.mxu0 %v15387_v38  ;;  %v17315_v38 = vld [vmem:[#allocation8 + $0x1e4] ss:$16 sps:$4 sm:$0xff]  }
 0x2b3   :  { %3262 = vmatpush2.bf16.msra.mxu1 %v15515_v39  ;;  %3222 = vmatprep.subr.bf16.mxu0 %v15380_v40  ;;  %v17313_v39 = vld [vmem:[#allocation8 + $0x1e0] ss:$16 sps:$4 sm:$0xff]   ;;  %v17318_v40 = vld [vmem:[#allocation8 + $0x3e4] ss:$16 sps:$4 sm:$0xff]  }
 0x2b4   :  { %3263 = vmatprep.subr.bf16.mxu1 %v15508_v57  ;;  %v17316_v57 = vld [vmem:[#allocation8 + $0x3e0] ss:$16 sps:$4 sm:$0xff]  }
 0x2b6   :  { %3223 = vmatpush2.bf16.msra.mxu0 %v15379_v5  ;;  %v17324_v5 = vld [vmem:[#allocation8 + $0x3c4] ss:$16 sps:$4 sm:$0xff]  }
 0x2b7   :  { %3264 = vmatpush2.bf16.msra.mxu1 %v15507_v46  ;;  %4848 = vmatprep.subr.bf16.mxu0 %v17267_v31  ;;  %v17319_v31 = vld [vmem:[#allocation8 + $0x1c0] ss:$16 sps:$4 sm:$0xff]   ;;  %v17327_v46 = vld [vmem:[#allocation8 + $0x1a4] ss:$16 sps:$4 sm:$0xff]  }
 0x2b8   :  { %4889 = vmatprep.subr.bf16.mxu1 %v17270_v45  ;;  %v17322_v45 = vld [vmem:[#allocation8 + $0x3c0] ss:$16 sps:$4 sm:$0xff]  }
 0x2b9   :  { %v19831_v54 = vpop.f32.mrf.mxu0  ;;  %3225 = vmatmul.mubr.bf16.vlgmr.msra.gmra.mxu0 %v19771_v35 }
 0x2ba   :  { %v19835_v59 = vpop.f32.mrf.mxu1  ;;  %3266 = vmatmul.mubr.bf16.vlgmr.msra.gmra.mxu1 %v19781_v55  ;;  %4849 = vmatpush1.bf16.msra.mxu0 %v17265_v47  ;;  %v17325_v47 = vld [vmem:[#allocation8 + $0x1a0] ss:$16 sps:$4 sm:$0xff]  }
 0x2bb   :  { %4880 = vmatprep.mubr.bf16.mxu0 %v19829_v16  ;;  %4890 = vmatpush1.bf16.msra.mxu1 %v17268_v49  ;;  %v2982_v61 = vpop.f32.mrf.mxu0  ;;  %v17328_v49 = vld [vmem:[#allocation8 + $0x3a0] ss:$16 sps:$4 sm:$0xff]  }
 0x2bc   :  { %v2983_v62 = vadd.f32 %v2982_v61, %v2942_v58  ;;  %v3023_v0 = vpop.f32.mrf.mxu1  ;;  %4850 = vmatprep.subr.bf16.mxu0 %v17273_v2  ;;  %4891 = vmatprep.subr.bf16.mxu1 %v17276_v33  ;;  %v19843_v2 = vsub.s32 2, %v19734_v44  ;;  %v17331_v33 = vld [vmem:[#allocation8 + $0x180] ss:$16 sps:$4 sm:$0xff]  }
 0x2bd   :  { %v2984_v35 = vpop.f32.mrf.mxu0  ;;  %v17337_v58 = vld [vmem:[#allocation8 + $0x160] ss:$16 sps:$4 sm:$0xff]  }
 0x2be   :  { %v3024_v4 = vadd.f32 %v3023_v0, %v2983_v62  ;;  %v3025_v41 = vpop.f32.mrf.mxu1  ;;  %4851 = vmatpush1.bf16.msra.mxu0 %v17271_v52  ;;  %v17336_v52 = vld [vmem:[#allocation8 + $0x384] ss:$16 sps:$4 sm:$0xff]   ;;  %v17340_v61 = vld [vmem:[#allocation8 + $0x360] ss:$16 sps:$4 sm:$0xff]   ;;  %v833_v62 = vrot.slane %v19825_v50, %v19843_v2 }
 0x2bf   :  { %4892 = vmatpush1.bf16.msra.mxu1 %v17274_v56  ;;  %v2985_v55 = vpop.f32.mrf.mxu0  ;;  %4852 = vmatprep.subr.bf16.mxu0 %v17279_v63  ;;  %v17334_v56 = vld [vmem:[#allocation8 + $0x380] ss:$16 sps:$4 sm:$0xff]   ;;  %v17339_v63 = vld [vmem:[#allocation8 + $0x164] ss:$16 sps:$4 sm:$0xff]  }
 0x2c0   :  { %v3277_v7 = vmax.f32 %v3024_v4, 0.0  ;;  %v3026_v8 = vpop.f32.mrf.mxu1  ;;  %4893 = vmatprep.subr.bf16.mxu1 %v17282_v60  ;;  %v17342_v60 = vld [vmem:[#allocation8 + $0x364] ss:$16 sps:$4 sm:$0xff]   ;;  %v17352_v50 = vld [vmem:[#allocation8 + $0x320] ss:$16 sps:$4 sm:$0xff]  }
 0x2c1   :  { %v17345_v0 = vld [vmem:[#allocation8 + $0x144] ss:$16 sps:$4 sm:$0xff]  }
 0x2c2   :  { %v19839_v10 = vpack.c.bf16 %v3277_v7, %v3277_v7  ;;  %4853 = vmatpush1.bf16.msra.mxu0 %v17277_v1  ;;  %v17343_v1 = vld [vmem:[#allocation8 + $0x140] ss:$16 sps:$4 sm:$0xff]   ;;  %v17348_v35 = vld [vmem:[#allocation8 + $0x344] ss:$16 sps:$4 sm:$0xff]  }
 0x2c3   :  { %4894 = vmatpush1.bf16.msra.mxu1 %v17280_v23  ;;  %4854 = vmatprep.subr.bf16.mxu0 %v17285_v3  ;;  %v17346_v23 = vld [vmem:[#allocation8 + $0x340] ss:$16 sps:$4 sm:$0xff]   ;;  %v2940_v3 = vadd.f32 %v19811_v28, %v833_v62  ;;  %v17351_v4 = vld [vmem:[#allocation8 + $0x124] ss:$16 sps:$4 sm:$0xff]  }
 0x2c4   :  { %4921 = vmatprep.mubr.bf16.mxu1 %v19839_v10  ;;  %4895 = vmatprep.subr.bf16.mxu1 %v17288_v6  ;;  %v17349_v6 = vld [vmem:[#allocation8 + $0x120] ss:$16 sps:$4 sm:$0xff]   ;;  %v17354_v55 = vld [vmem:[#allocation8 + $0x324] ss:$16 sps:$4 sm:$0xff]  }
 0x2c5   :  { %v2981_v41 = vadd.f32 %v19831_v54, %v2940_v3  ;;  %v17357_v7 = vld [vmem:[#allocation8 + $0x104] ss:$16 sps:$4 sm:$0xff]   ;;  %v17358_v28 = vld [vmem:[#allocation8 + $0x300] ss:$16 sps:$4 sm:$0xff]  }
 0x2c6   :  { %4855 = vmatpush1.bf16.msra.mxu0 %v17283_v9  ;;  %v17355_v9 = vld [vmem:[#allocation8 + $0x100] ss:$16 sps:$4 sm:$0xff]   ;;  %v17363_v54 = vld [vmem:[#allocation8 + $0x4e4] ss:$16 sps:$4 sm:$0xff]  }
 0x2c7   :  { %4896 = vmatpush1.bf16.msra.mxu1 %v17286_v12  ;;  %4856 = vmatprep.subr.bf16.mxu0 %v17291_v13  ;;  %v3022_v8 = vadd.f32 %v19835_v59, %v2981_v41  ;;  %v17360_v12 = vld [vmem:[#allocation8 + $0x304] ss:$16 sps:$4 sm:$0xff]   ;;  %v3274_v13 = vmax.f32 %v19809_v27, 0.0  ;;  %v17412_v59 = vld [vmem:[#allocation8 + $0x6e0] ss:$16 sps:$4 sm:$0xff]  }
 0x2c8   :  { %4897 = vmatprep.subr.bf16.mxu1 %v17294_v15  ;;  %v17361_v15 = vld [vmem:[#allocation8 + $0x4e0] ss:$16 sps:$4 sm:$0xff]   ;;  %v17384_v62 = vld [vmem:[#allocation8 + $0x404] ss:$16 sps:$4 sm:$0xff]  }
 0x2c9   :  { %v17454_v3 = vld [vmem:[#allocation8 + $0x600] ss:$16 sps:$4 sm:$0xff]   ;;  %v17462_v41 = vld [vmem:[#allocation8 + $0x7e4] ss:$16 sps:$4 sm:$0xff]  }
 0x2ca   :  { %4857 = vmatpush1.bf16.msra.mxu0 %v17289_v14  ;;  %v3276_v14 = vmax.f32 %v3022_v8, 0.0  ;;  %v17393_v8 = vld [vmem:[#allocation8 + $0x5a4] ss:$16 sps:$4 sm:$0xff]  }
 0x2cb   :  { %4898 = vmatpush1.bf16.msra.mxu1 %v17292_v17  ;;  %4858 = vmatprep.subr.bf16.mxu0 %v17297_v11  ;;  %v17414_v17 = vld [vmem:[#allocation8 + $0x6e4] ss:$16 sps:$4 sm:$0xff]  }
 0x2cc   :  { %4899 = vmatprep.subr.bf16.mxu1 %v17300_v19  ;;  %v17366_v11 = vld [vmem:[#allocation8 + $0x4c4] ss:$16 sps:$4 sm:$0xff]   ;;  %v19853_v19 = vpack.c.bf16 %v3276_v14, %v3276_v14  ;;  %v17394_v14 = vld [vmem:[#allocation8 + $0x580] ss:$16 sps:$4 sm:$0xff]  }
 0x2ce   :  { %4859 = vmatpush1.bf16.msra.mxu0 %v17295_v18  ;;  %v19851_v18 = vpack.c.bf16 %v3274_v13, %v3274_v13  ;;  %v17396_v13 = vld [vmem:[#allocation8 + $0x584] ss:$16 sps:$4 sm:$0xff]  }
 0x2cf   :  { %4900 = vmatpush1.bf16.msra.mxu1 %v17298_v20  ;;  %4860 = vmatprep.subr.bf16.mxu0 %v17303_v21  ;;  %v17420_v20 = vld [vmem:[#allocation8 + $0x6c4] ss:$16 sps:$4 sm:$0xff]   ;;  %v17364_v21 = vld [vmem:[#allocation8 + $0x4c0] ss:$16 sps:$4 sm:$0xff]  }
 0x2d0   :  { %4901 = vmatprep.subr.bf16.mxu1 %v17306_v24  ;;  %v17369_v24 = vld [vmem:[#allocation8 + $0x4a4] ss:$16 sps:$4 sm:$0xff]  }
 0x2d2   :  { %4861 = vmatpush1.bf16.msra.mxu0 %v17301_v22 }
 0x2d3   :  { %4902 = vmatpush1.bf16.msra.mxu1 %v17304_v25  ;;  %4862 = vmatprep.subr.bf16.mxu0 %v17309_v29  ;;  %v17418_v29 = vld [vmem:[#allocation8 + $0x6c0] ss:$16 sps:$4 sm:$0xff]  }
 0x2d4   :  { %4903 = vmatprep.subr.bf16.mxu1 %v17312_v32  ;;  %v17426_v32 = vld [vmem:[#allocation8 + $0x6a4] ss:$16 sps:$4 sm:$0xff]  }
 0x2d6   :  { %4863 = vmatpush1.bf16.msra.mxu0 %v17307_v30 }
 0x2d7   :  { %4904 = vmatpush1.bf16.msra.mxu1 %v17310_v37  ;;  %4864 = vmatprep.subr.bf16.mxu0 %v17315_v38  ;;  %v17367_v38 = vld [vmem:[#allocation8 + $0x4a0] ss:$16 sps:$4 sm:$0xff]  }
 0x2d8   :  { %4905 = vmatprep.subr.bf16.mxu1 %v17318_v40  ;;  %v17372_v40 = vld [vmem:[#allocation8 + $0x484] ss:$16 sps:$4 sm:$0xff]  }
 0x2da   :  { %4865 = vmatpush2.bf16.msra.mxu0 %v17313_v39 }
 0x2db   :  { %4906 = vmatpush2.bf16.msra.mxu1 %v17316_v57  ;;  %4866 = vmatprep.subr.bf16.mxu0 %v17321_v42  ;;  %v17424_v42 = vld [vmem:[#allocation8 + $0x6a0] ss:$16 sps:$4 sm:$0xff]  }
 0x2dc   :  { %4907 = vmatprep.subr.bf16.mxu1 %v17324_v5  ;;  %v17432_v5 = vld [vmem:[#allocation8 + $0x684] ss:$16 sps:$4 sm:$0xff]  }
 0x2de   :  { %4867 = vmatpush2.bf16.msra.mxu0 %v17319_v31 }
 0x2df   :  { %4908 = vmatpush2.bf16.msra.mxu1 %v17322_v45  ;;  %4868 = vmatprep.subr.bf16.mxu0 %v17327_v46  ;;  %v17370_v45 = vld [vmem:[#allocation8 + $0x480] ss:$16 sps:$4 sm:$0xff]   ;;  %v17375_v46 = vld [vmem:[#allocation8 + $0x464] ss:$16 sps:$4 sm:$0xff]  }
 0x2e0   :  { %4909 = vmatprep.subr.bf16.mxu1 %v17330_v48  ;;  %v17373_v48 = vld [vmem:[#allocation8 + $0x460] ss:$16 sps:$4 sm:$0xff]  }
 0x2e2   :  { %4869 = vmatpush2.bf16.msra.mxu0 %v17325_v47  ;;  %v17430_v47 = vld [vmem:[#allocation8 + $0x680] ss:$16 sps:$4 sm:$0xff]  }
 0x2e3   :  { %4910 = vmatpush2.bf16.msra.mxu1 %v17328_v49  ;;  %4870 = vmatprep.subr.bf16.mxu0 %v17333_v51  ;;  %v17438_v49 = vld [vmem:[#allocation8 + $0x664] ss:$16 sps:$4 sm:$0xff]  }
 0x2e4   :  { %4911 = vmatprep.subr.bf16.mxu1 %v17336_v52  ;;  %v17378_v51 = vld [vmem:[#allocation8 + $0x444] ss:$16 sps:$4 sm:$0xff]   ;;  %v17376_v52 = vld [vmem:[#allocation8 + $0x440] ss:$16 sps:$4 sm:$0xff]  }
 0x2e6   :  { %4871 = vmatpush2.bf16.msra.mxu0 %v17331_v33  ;;  %v17436_v33 = vld [vmem:[#allocation8 + $0x660] ss:$16 sps:$4 sm:$0xff]  }
 0x2e7   :  { %4912 = vmatpush2.bf16.msra.mxu1 %v17334_v56  ;;  %4872 = vmatprep.subr.bf16.mxu0 %v17339_v63  ;;  %v17444_v56 = vld [vmem:[#allocation8 + $0x644] ss:$16 sps:$4 sm:$0xff]  }
 0x2e8   :  { %4913 = vmatprep.subr.bf16.mxu1 %v17342_v60  ;;  %v17381_v63 = vld [vmem:[#allocation8 + $0x424] ss:$16 sps:$4 sm:$0xff]   ;;  %v17379_v60 = vld [vmem:[#allocation8 + $0x420] ss:$16 sps:$4 sm:$0xff]  }
 0x2ea   :  { %4873 = vmatpush2.bf16.msra.mxu0 %v17337_v58  ;;  %v17442_v58 = vld [vmem:[#allocation8 + $0x640] ss:$16 sps:$4 sm:$0xff]  }
 0x2eb   :  { %4914 = vmatpush2.bf16.msra.mxu1 %v17340_v61  ;;  %4874 = vmatprep.subr.bf16.mxu0 %v17345_v0  ;;  %v17450_v61 = vld [vmem:[#allocation8 + $0x624] ss:$16 sps:$4 sm:$0xff]   ;;  %v17448_v0 = vld [vmem:[#allocation8 + $0x620] ss:$16 sps:$4 sm:$0xff]  }
 0x2ec   :  { %4915 = vmatprep.subr.bf16.mxu1 %v17348_v35  ;;  %v17456_v35 = vld [vmem:[#allocation8 + $0x604] ss:$16 sps:$4 sm:$0xff]  }
 0x2ee   :  { %4875 = vmatpush2.bf16.msra.mxu0 %v17343_v1  ;;  %v17382_v1 = vld [vmem:[#allocation8 + $0x400] ss:$16 sps:$4 sm:$0xff]  }
 0x2ef   :  { %4916 = vmatpush2.bf16.msra.mxu1 %v17346_v23  ;;  %4876 = vmatprep.subr.bf16.mxu0 %v17351_v4  ;;  %v17387_v23 = vld [vmem:[#allocation8 + $0x5e4] ss:$16 sps:$4 sm:$0xff]   ;;  %v17385_v4 = vld [vmem:[#allocation8 + $0x5e0] ss:$16 sps:$4 sm:$0xff]  }
 0x2f0   :  { %4917 = vmatprep.subr.bf16.mxu1 %v17354_v55  ;;  %v17460_v55 = vld [vmem:[#allocation8 + $0x7e0] ss:$16 sps:$4 sm:$0xff]  }
 0x2f2   :  { %4877 = vmatpush2.bf16.msra.mxu0 %v17349_v6  ;;  %v17390_v6 = vld [vmem:[#allocation8 + $0x5c4] ss:$16 sps:$4 sm:$0xff]  }
 0x2f3   :  { %4918 = vmatpush2.bf16.msra.mxu1 %v17352_v50  ;;  %4878 = vmatprep.subr.bf16.mxu0 %v17357_v7  ;;  %v17388_v50 = vld [vmem:[#allocation8 + $0x5c0] ss:$16 sps:$4 sm:$0xff]   ;;  %v17468_v7 = vld [vmem:[#allocation8 + $0x7c4] ss:$16 sps:$4 sm:$0xff]  }
 0x2f4   :  { %4919 = vmatprep.subr.bf16.mxu1 %v17360_v12  ;;  %v17391_v12 = vld [vmem:[#allocation8 + $0x5a0] ss:$16 sps:$4 sm:$0xff]  }
 0x2f6   :  { %4879 = vmatpush2.bf16.msra.mxu0 %v17355_v9  ;;  %v17466_v9 = vld [vmem:[#allocation8 + $0x7c0] ss:$16 sps:$4 sm:$0xff]  }
 0x2f7   :  { %4920 = vmatpush2.bf16.msra.mxu1 %v17358_v28  ;;  %4930 = vmatprep.subr.bf16.mxu0 %v17363_v54  ;;  %v17474_v28 = vld [vmem:[#allocation8 + $0x7a4] ss:$16 sps:$4 sm:$0xff]   ;;  %v17472_v54 = vld [vmem:[#allocation8 + $0x7a0] ss:$16 sps:$4 sm:$0xff]  }
 0x2f8   :  { %4971 = vmatprep.subr.bf16.mxu1 %v17414_v17  ;;  %v17399_v17 = vld [vmem:[#allocation8 + $0x564] ss:$16 sps:$4 sm:$0xff]  }
 0x2f9   :  { %v19855_v27 = vpop.f32.mrf.mxu0  ;;  %4881 = vmatmul.mubr.bf16.vlgmr.msra.gmra.mxu0 %v19851_v18 }
 0x2fa   :  { %v19858_v22 = vpop.f32.mrf.mxu1  ;;  %4922 = vmatmul.mubr.bf16.vlgmr.msra.gmra.mxu1 %v19853_v19  ;;  %4931 = vmatpush1.bf16.msra.mxu0 %v17361_v15  ;;  %v17480_v15 = vld [vmem:[#allocation8 + $0x784] ss:$16 sps:$4 sm:$0xff]  }
 0x2fb   :  { %v19861_v25 = vpop.f32.mrf.mxu0  ;;  %4932 = vmatprep.subr.bf16.mxu0 %v17366_v11  ;;  %4972 = vmatpush1.bf16.msra.mxu1 %v17412_v59  ;;  %v17478_v11 = vld [vmem:[#allocation8 + $0x780] ss:$16 sps:$4 sm:$0xff]  }
 0x2fc   :  { %v19863_v30 = vpop.f32.mrf.mxu1  ;;  %4973 = vmatprep.subr.bf16.mxu1 %v17420_v20  ;;  %v17397_v59 = vld [vmem:[#allocation8 + $0x560] ss:$16 sps:$4 sm:$0xff]   ;;  %v17486_v20 = vld [vmem:[#allocation8 + $0x764] ss:$16 sps:$4 sm:$0xff]  }
 0x2fd   :  { %v3066_v37 = vpop.f32.mrf.mxu0 }
 0x2fe   :  { %v3107_v39 = vpop.f32.mrf.mxu1  ;;  %4933 = vmatpush1.bf16.msra.mxu0 %v17364_v21  ;;  %v17402_v21 = vld [vmem:[#allocation8 + $0x544] ss:$16 sps:$4 sm:$0xff]  }
 0x2ff   :  { %v3067_v57 = vpop.f32.mrf.mxu0  ;;  %4934 = vmatprep.subr.bf16.mxu0 %v17369_v24  ;;  %4974 = vmatpush1.bf16.msra.mxu1 %v17418_v29  ;;  %v17484_v24 = vld [vmem:[#allocation8 + $0x760] ss:$16 sps:$4 sm:$0xff]   ;;  %v17405_v37 = vld [vmem:[#allocation8 + $0x524] ss:$16 sps:$4 sm:$0xff]   ;;  %v19866_v39 = vsub.s32 4, %v19734_v44 }
 0x300   :  { %v3108_v31 = vpop.f32.mrf.mxu1  ;;  %4975 = vmatprep.subr.bf16.mxu1 %v17426_v32  ;;  %v17400_v29 = vld [vmem:[#allocation8 + $0x540] ss:$16 sps:$4 sm:$0xff]   ;;  %v17492_v32 = vld [vmem:[#allocation8 + $0x744] ss:$16 sps:$4 sm:$0xff]  }
 0x301   :  { %v17498_v57 = vld [vmem:[#allocation8 + $0x724] ss:$16 sps:$4 sm:$0xff]  }
 0x302   :  { %4935 = vmatpush1.bf16.msra.mxu0 %v17367_v38  ;;  %v17490_v38 = vld [vmem:[#allocation8 + $0x740] ss:$16 sps:$4 sm:$0xff]   ;;  %v17408_v31 = vld [vmem:[#allocation8 + $0x504] ss:$16 sps:$4 sm:$0xff]  }
 0x303   :  { %4936 = vmatprep.subr.bf16.mxu0 %v17372_v40  ;;  %4976 = vmatpush1.bf16.msra.mxu1 %v17424_v42  ;;  %v17403_v40 = vld [vmem:[#allocation8 + $0x520] ss:$16 sps:$4 sm:$0xff]   ;;  %v19869_v42 = vsub.s32 5, %v19734_v44 }
 0x304   :  { %4977 = vmatprep.subr.bf16.mxu1 %v17432_v5  ;;  %v17496_v5 = vld [vmem:[#allocation8 + $0x720] ss:$16 sps:$4 sm:$0xff]  }
 0x306   :  { %4937 = vmatpush1.bf16.msra.mxu0 %v17370_v45  ;;  %v19871_v45 = vld [vmem:[#allocation6] sm:$0xff] }
 0x307   :  { %4938 = vmatprep.subr.bf16.mxu0 %v17375_v46  ;;  %4978 = vmatpush1.bf16.msra.mxu1 %v17430_v47  ;;  %v841_v46 = vrot.slane %v19871_v45, %v19866_v39  ;;  %v17406_v47 = vld [vmem:[#allocation8 + $0x500] ss:$16 sps:$4 sm:$0xff]  }
 0x308   :  { %4979 = vmatprep.subr.bf16.mxu1 %v17438_v49  ;;  %v845_v49 = vrot.slane %v19871_v45, %v19869_v42 }
 0x30a   :  { %4939 = vmatpush1.bf16.msra.mxu0 %v17373_v48  ;;  %v17504_v48 = vld [vmem:[#allocation8 + $0x704] ss:$16 sps:$4 sm:$0xff]  }
 0x30b   :  { %4940 = vmatprep.subr.bf16.mxu0 %v17378_v51  ;;  %4980 = vmatpush1.bf16.msra.mxu1 %v17436_v33  ;;  %v17411_v51 = vld [vmem:[#allocation8 + $0xec] ss:$16 sps:$4 sm:$0xff]   ;;  %v17502_v33 = vld [vmem:[#allocation8 + $0x700] ss:$16 sps:$4 sm:$0xff]  }
 0x30c   :  { %4981 = vmatprep.subr.bf16.mxu1 %v17444_v56  ;;  %v17510_v56 = vld [vmem:[#allocation8 + $0x2ec] ss:$16 sps:$4 sm:$0xff]  }
 0x30e   :  { %4941 = vmatpush1.bf16.msra.mxu0 %v17376_v52  ;;  %v3063_v52 = vadd.f32 %v19855_v27, %v841_v46  ;;  %v848_v46 = vsub.s32 6, %v19734_v44 }
 0x30f   :  { %4942 = vmatprep.subr.bf16.mxu0 %v17381_v63  ;;  %4982 = vmatpush1.bf16.msra.mxu1 %v17442_v58  ;;  %v3065_v63 = vadd.f32 %v19861_v25, %v845_v49  ;;  %v17495_v49 = vld [vmem:[#allocation8 + $0x12c] ss:$16 sps:$4 sm:$0xff]  }
 0x310   :  { %4983 = vmatprep.subr.bf16.mxu1 %v17450_v61  ;;  %v3104_v58 = vadd.f32 %v19858_v22, %v3063_v52  ;;  %v17409_v22 = vld [vmem:[#allocation8 + $0xe8] ss:$16 sps:$4 sm:$0xff]  }
 0x311   :  { %v3106_v61 = vadd.f32 %v19863_v30, %v3065_v63  ;;  %v17415_v30 = vld [vmem:[#allocation8 + $0xc8] ss:$16 sps:$4 sm:$0xff]  }
 0x312   :  { %4943 = vmatpush1.bf16.msra.mxu0 %v17379_v60  ;;  %v17493_v52 = vld [vmem:[#allocation8 + $0x128] ss:$16 sps:$4 sm:$0xff]  }
 0x313   :  { %4944 = vmatprep.subr.bf16.mxu0 %v17384_v62  ;;  %4984 = vmatpush1.bf16.msra.mxu1 %v17448_v0 }
 0x314   :  { %4985 = vmatprep.subr.bf16.mxu1 %v17456_v35 }
 0x316   :  { %4945 = vmatpush1.bf16.msra.mxu0 %v17382_v1 }
 0x317   :  { %4946 = vmatprep.subr.bf16.mxu0 %v17387_v23  ;;  %4986 = vmatpush1.bf16.msra.mxu1 %v17454_v3 }
 0x318   :  { %4987 = vmatprep.subr.bf16.mxu1 %v17462_v41 }
 0x31a   :  { %4947 = vmatpush2.bf16.msra.mxu0 %v17385_v4 }
 0x31b   :  { %4948 = vmatprep.subr.bf16.mxu0 %v17390_v6  ;;  %4988 = vmatpush2.bf16.msra.mxu1 %v17460_v55 }
 0x31c   :  { %4989 = vmatprep.subr.bf16.mxu1 %v17468_v7 }
 0x31e   :  { %4949 = vmatpush2.bf16.msra.mxu0 %v17388_v50  ;;  %v17417_v50 = vld [vmem:[#allocation8 + $0xcc] ss:$16 sps:$4 sm:$0xff]  }
 0x31f   :  { %4950 = vmatprep.subr.bf16.mxu0 %v17393_v8  ;;  %4990 = vmatpush2.bf16.msra.mxu1 %v17466_v9  ;;  %v17423_v8 = vld [vmem:[#allocation8 + $0xac] ss:$16 sps:$4 sm:$0xff]   ;;  %v17421_v9 = vld [vmem:[#allocation8 + $0xa8] ss:$16 sps:$4 sm:$0xff]  }
 0x320   :  { %4991 = vmatprep.subr.bf16.mxu1 %v17474_v28  ;;  %v17427_v28 = vld [vmem:[#allocation8 + $0x88] ss:$16 sps:$4 sm:$0xff]  }
 0x322   :  { %4951 = vmatpush2.bf16.msra.mxu0 %v17391_v12  ;;  %v17429_v12 = vld [vmem:[#allocation8 + $0x8c] ss:$16 sps:$4 sm:$0xff]  }
 0x323   :  { %4952 = vmatprep.subr.bf16.mxu0 %v17396_v13  ;;  %4992 = vmatpush2.bf16.msra.mxu1 %v17472_v54  ;;  %v17435_v13 = vld [vmem:[#allocation8 + $0x6c] ss:$16 sps:$4 sm:$0xff]   ;;  %v17433_v54 = vld [vmem:[#allocation8 + $0x68] ss:$16 sps:$4 sm:$0xff]  }
 0x324   :  { %4993 = vmatprep.subr.bf16.mxu1 %v17480_v15  ;;  %v17439_v15 = vld [vmem:[#allocation8 + $0x48] ss:$16 sps:$4 sm:$0xff]  }
 0x326   :  { %4953 = vmatpush2.bf16.msra.mxu0 %v17394_v14  ;;  %v17441_v14 = vld [vmem:[#allocation8 + $0x4c] ss:$16 sps:$4 sm:$0xff]  }
 0x327   :  { %4954 = vmatprep.subr.bf16.mxu0 %v17399_v17  ;;  %4994 = vmatpush2.bf16.msra.mxu1 %v17478_v11  ;;  %v17447_v17 = vld [vmem:[#allocation8 + $0x2c] ss:$16 sps:$4 sm:$0xff]  }
 0x328   :  { %4995 = vmatprep.subr.bf16.mxu1 %v17486_v20  ;;  %v17453_v11 = vld [vmem:[#allocation8 + $0xc] ss:$16 sps:$4 sm:$0xff]  }
 0x329   :  { %v17459_v20 = vld [vmem:[#allocation8 + $0x1ec] ss:$16 sps:$4 sm:$0xff]  }
 0x32a   :  { %4955 = vmatpush2.bf16.msra.mxu0 %v17397_v59  ;;  %v17451_v59 = vld [vmem:[#allocation8 + $0x8] ss:$16 sps:$4 sm:$0xff]  }
 0x32b   :  { %4956 = vmatprep.subr.bf16.mxu0 %v17402_v21  ;;  %4996 = vmatpush2.bf16.msra.mxu1 %v17484_v24  ;;  %v17457_v21 = vld [vmem:[#allocation8 + $0x1e8] ss:$16 sps:$4 sm:$0xff]   ;;  %v17465_v24 = vld [vmem:[#allocation8 + $0x1cc] ss:$16 sps:$4 sm:$0xff]  }
 0x32c   :  { %4997 = vmatprep.subr.bf16.mxu1 %v17492_v32  ;;  %v17471_v32 = vld [vmem:[#allocation8 + $0x1ac] ss:$16 sps:$4 sm:$0xff]  }
 0x32e   :  { %4957 = vmatpush2.bf16.msra.mxu0 %v17400_v29  ;;  %v17463_v29 = vld [vmem:[#allocation8 + $0x1c8] ss:$16 sps:$4 sm:$0xff]  }
 0x32f   :  { %4958 = vmatprep.subr.bf16.mxu0 %v17405_v37  ;;  %4998 = vmatpush2.bf16.msra.mxu1 %v17490_v38  ;;  %v17469_v37 = vld [vmem:[#allocation8 + $0x1a8] ss:$16 sps:$4 sm:$0xff]   ;;  %v17477_v38 = vld [vmem:[#allocation8 + $0x18c] ss:$16 sps:$4 sm:$0xff]  }
 0x330   :  { %4999 = vmatprep.subr.bf16.mxu1 %v17498_v57  ;;  %v17483_v57 = vld [vmem:[#allocation8 + $0x16c] ss:$16 sps:$4 sm:$0xff]  }
 0x332   :  { %4959 = vmatpush2.bf16.msra.mxu0 %v17403_v40  ;;  %v17475_v40 = vld [vmem:[#allocation8 + $0x188] ss:$16 sps:$4 sm:$0xff]  }
 0x333   :  { %4960 = vmatprep.subr.bf16.mxu0 %v17408_v31  ;;  %5000 = vmatpush2.bf16.msra.mxu1 %v17496_v5  ;;  %v17481_v31 = vld [vmem:[#allocation8 + $0x168] ss:$16 sps:$4 sm:$0xff]   ;;  %v17489_v5 = vld [vmem:[#allocation8 + $0x14c] ss:$16 sps:$4 sm:$0xff]  }
 0x334   :  { %5001 = vmatprep.subr.bf16.mxu1 %v17504_v48  ;;  %v17487_v48 = vld [vmem:[#allocation8 + $0x148] ss:$16 sps:$4 sm:$0xff]  }
 0x336   :  { %4961 = vmatpush2.bf16.msra.mxu0 %v17406_v47  ;;  %v852_v47 = vsub.s32 7, %v19734_v44 }
 0x337   :  { %5012 = vmatprep.subr.bf16.mxu0 %v17411_v51  ;;  %5002 = vmatpush2.bf16.msra.mxu1 %v17502_v33  ;;  %v849_v51 = vrot.slane %v19871_v45, %v848_v46 }
 0x338   :  { %5053 = vmatprep.subr.bf16.mxu1 %v17510_v56  ;;  %v853_v33 = vrot.slane %v19871_v45, %v852_v47  ;;  %v17501_v56 = vld [vmem:[#allocation8 + $0x10c] ss:$16 sps:$4 sm:$0xff]  }
 0x339   :  { %v3144_v60 = vpop.f32.mrf.mxu0 }
 0x33a   :  { %v3145_v62 = vadd.f32 %v3144_v60, %v3104_v58  ;;  %v19881_v0 = vpop.f32.mrf.mxu1 }
 0x33b   :  { %v3146_v1 = vpop.f32.mrf.mxu0  ;;  %v3186_v63 = vadd.f32 %v19881_v0, %v849_v51  ;;  %v17505_v0 = vld [vmem:[#allocation8 + $0x4e8] ss:$16 sps:$4 sm:$0xff]  }
 0x33c   :  { %v3147_v35 = vadd.f32 %v3146_v1, %v3106_v61  ;;  %v19883_v23 = vpop.f32.mrf.mxu1  ;;  %v3278_v27 = vmax.f32 %v3145_v62, 0.0  ;;  %v17547_v51 = vld [vmem:[#allocation8 + $0x408] ss:$16 sps:$4 sm:$0xff]  }
 0x33d   :  { %v3148_v3 = vpop.f32.mrf.mxu0  ;;  %v3188_v60 = vadd.f32 %v19883_v23, %v853_v33  ;;  %v17508_v23 = vld [vmem:[#allocation8 + $0x2e8] ss:$16 sps:$4 sm:$0xff]   ;;  %v17552_v33 = vld [vmem:[#allocation8 + $0x20c] ss:$16 sps:$4 sm:$0xff]  }
 0x33e   :  { %v3279_v4 = vmax.f32 %v3147_v35, 0.0  ;;  %v3189_v25 = vpop.f32.mrf.mxu1  ;;  %v19887_v7 = vpack.c.bf16 %v3278_v27, %v3278_v27  ;;  %v17499_v35 = vld [vmem:[#allocation8 + $0x108] ss:$16 sps:$4 sm:$0xff]   ;;  %v17507_v27 = vld [vmem:[#allocation8 + $0x4ec] ss:$16 sps:$4 sm:$0xff]  }
 0x33f   :  { %v3149_v41 = vpop.f32.mrf.mxu0 }
 0x340   :  { %v19885_v6 = vpack.c.bf16 %v3279_v4, %v3279_v4  ;;  %v3190_v55 = vpop.f32.mrf.mxu1 }
 0x342   :  { %4962 = vmatprep.mubr.bf16.mxu0 %v19885_v6 }
 0x343   :  { %4963 = vmatmul.mubr.bf16.vlgmr.msra.gmra.mxu0 %v19887_v7 }
 0x344   :  { %5013 = vmatpush1.bf16.msra.mxu0 %v17409_v22  ;;  %5044 = vmatprep.mubr.bf16.mxu0 %v19829_v16  ;;  %v17445_v16 = vld [vmem:[#allocation8 + $0x28] ss:$16 sps:$4 sm:$0xff]  }
 0x345   :  { %5014 = vmatprep.subr.bf16.mxu0 %v17417_v50  ;;  %v17513_v50 = vld [vmem:[#allocation8 + $0x4cc] ss:$16 sps:$4 sm:$0xff]  }
 0x348   :  { %5015 = vmatpush1.bf16.msra.mxu0 %v17415_v30 }
 0x349   :  { %5016 = vmatprep.subr.bf16.mxu0 %v17423_v8 }
 0x34c   :  { %5017 = vmatpush1.bf16.msra.mxu0 %v17421_v9 }
 0x34d   :  { %5018 = vmatprep.subr.bf16.mxu0 %v17429_v12 }
 0x350   :  { %5019 = vmatpush1.bf16.msra.mxu0 %v17427_v28  ;;  %v17511_v28 = vld [vmem:[#allocation8 + $0x4c8] ss:$16 sps:$4 sm:$0xff]  }
 0x351   :  { %5020 = vmatprep.subr.bf16.mxu0 %v17435_v13  ;;  %v17516_v13 = vld [vmem:[#allocation8 + $0x2cc] ss:$16 sps:$4 sm:$0xff]  }
 0x354   :  { %5021 = vmatpush1.bf16.msra.mxu0 %v17433_v54  ;;  %v17519_v54 = vld [vmem:[#allocation8 + $0x4ac] ss:$16 sps:$4 sm:$0xff]  }
 0x355   :  { %5022 = vmatprep.subr.bf16.mxu0 %v17441_v14 }
 0x358   :  { %5023 = vmatpush1.bf16.msra.mxu0 %v17439_v15  ;;  %v17514_v15 = vld [vmem:[#allocation8 + $0x2c8] ss:$16 sps:$4 sm:$0xff]  }
 0x359   :  { %5024 = vmatprep.subr.bf16.mxu0 %v17447_v17  ;;  %v17517_v17 = vld [vmem:[#allocation8 + $0x4a8] ss:$16 sps:$4 sm:$0xff]  }
 0x35c   :  { %5025 = vmatpush1.bf16.msra.mxu0 %v17445_v16  ;;  %v17522_v16 = vld [vmem:[#allocation8 + $0x2ac] ss:$16 sps:$4 sm:$0xff]  }
 0x35d   :  { %5026 = vmatprep.subr.bf16.mxu0 %v17453_v11  ;;  %v17520_v11 = vld [vmem:[#allocation8 + $0x2a8] ss:$16 sps:$4 sm:$0xff]  }
 0x360   :  { %5027 = vmatpush1.bf16.msra.mxu0 %v17451_v59  ;;  %v17528_v59 = vld [vmem:[#allocation8 + $0x28c] ss:$16 sps:$4 sm:$0xff]  }
 0x361   :  { %5028 = vmatprep.subr.bf16.mxu0 %v17459_v20  ;;  %v17531_v20 = vld [vmem:[#allocation8 + $0x46c] ss:$16 sps:$4 sm:$0xff]  }
 0x364   :  { %5029 = vmatpush2.bf16.msra.mxu0 %v17457_v21  ;;  %v17526_v21 = vld [vmem:[#allocation8 + $0x288] ss:$16 sps:$4 sm:$0xff]  }
 0x365   :  { %5030 = vmatprep.subr.bf16.mxu0 %v17465_v24  ;;  %v17529_v24 = vld [vmem:[#allocation8 + $0x468] ss:$16 sps:$4 sm:$0xff]  }
 0x368   :  { %5031 = vmatpush2.bf16.msra.mxu0 %v17463_v29  ;;  %v17534_v29 = vld [vmem:[#allocation8 + $0x26c] ss:$16 sps:$4 sm:$0xff]  }
 0x369   :  { %5032 = vmatprep.subr.bf16.mxu0 %v17471_v32  ;;  %v17537_v32 = vld [vmem:[#allocation8 + $0x44c] ss:$16 sps:$4 sm:$0xff]  }
 0x36c   :  { %5033 = vmatpush2.bf16.msra.mxu0 %v17469_v37  ;;  %v17535_v37 = vld [vmem:[#allocation8 + $0x448] ss:$16 sps:$4 sm:$0xff]  }
 0x36d   :  { %5034 = vmatprep.subr.bf16.mxu0 %v17477_v38  ;;  %v17540_v38 = vld [vmem:[#allocation8 + $0x24c] ss:$16 sps:$4 sm:$0xff]  }
 0x370   :  { %5035 = vmatpush2.bf16.msra.mxu0 %v17475_v40  ;;  %v17543_v40 = vld [vmem:[#allocation8 + $0x42c] ss:$16 sps:$4 sm:$0xff]  }
 0x371   :  { %5036 = vmatprep.subr.bf16.mxu0 %v17483_v57  ;;  %v17538_v57 = vld [vmem:[#allocation8 + $0x248] ss:$16 sps:$4 sm:$0xff]  }
 0x374   :  { %5037 = vmatpush2.bf16.msra.mxu0 %v17481_v31  ;;  %v17541_v31 = vld [vmem:[#allocation8 + $0x428] ss:$16 sps:$4 sm:$0xff]  }
 0x375   :  { %5038 = vmatprep.subr.bf16.mxu0 %v17489_v5  ;;  %v17546_v5 = vld [vmem:[#allocation8 + $0x22c] ss:$16 sps:$4 sm:$0xff]  }
 0x378   :  { %5039 = vmatpush2.bf16.msra.mxu0 %v17487_v48  ;;  %v17549_v48 = vld [vmem:[#allocation8 + $0x40c] ss:$16 sps:$4 sm:$0xff]  }
 0x379   :  { %v3226_v58 = vpop.f32.mrf.mxu0  ;;  %5040 = vmatprep.subr.bf16.mxu0 %v17495_v49  ;;  %v17544_v49 = vld [vmem:[#allocation8 + $0x228] ss:$16 sps:$4 sm:$0xff]  }
 0x37a   :  { %v3227_v61 = vadd.f32 %v3226_v58, %v3186_v63  ;;  %v3267_v62 = vpop.f32.mrf.mxu1  ;;  %v17553_v63 = vld [vmem:[#allocation8 + $0x5e8] ss:$16 sps:$4 sm:$0xff]   ;;  %v17558_v58 = vld [vmem:[#allocation8 + $0x3ec] ss:$16 sps:$4 sm:$0xff]  }
 0x37b   :  { %v3228_v1 = vpop.f32.mrf.mxu0 }
 0x37c   :  { %v3268_v3 = vadd.f32 %v3267_v62, %v3227_v61  ;;  %v3229_v4 = vadd.f32 %v3228_v1, %v3188_v60  ;;  %v3269_v25 = vpop.f32.mrf.mxu1  ;;  %5041 = vmatpush2.bf16.msra.mxu0 %v17493_v52  ;;  %v17555_v52 = vld [vmem:[#allocation8 + $0x5ec] ss:$16 sps:$4 sm:$0xff]   ;;  %v17556_v61 = vld [vmem:[#allocation8 + $0x3e8] ss:$16 sps:$4 sm:$0xff]  }
 0x37d   :  { %v3230_v41 = vpop.f32.mrf.mxu0  ;;  %5042 = vmatprep.subr.bf16.mxu0 %v17501_v56  ;;  %v17550_v56 = vld [vmem:[#allocation8 + $0x208] ss:$16 sps:$4 sm:$0xff]   ;;  %v17561_v60 = vld [vmem:[#allocation8 + $0x5cc] ss:$16 sps:$4 sm:$0xff]  }
 0x37e   :  { %v3270_v45 = vadd.f32 %v3269_v25, %v3229_v4  ;;  %v3271_v55 = vpop.f32.mrf.mxu1  ;;  %v3280_v30 = vmax.f32 %v3268_v3, 0.0  ;;  %v17559_v62 = vld [vmem:[#allocation8 + $0x5c8] ss:$16 sps:$4 sm:$0xff]   ;;  %v17564_v1 = vld [vmem:[#allocation8 + $0x3cc] ss:$16 sps:$4 sm:$0xff]  }
 0x37f   :  { %v3231_v22 = vpop.f32.mrf.mxu0  ;;  %v17565_v3 = vld [vmem:[#allocation8 + $0x5a8] ss:$16 sps:$4 sm:$0xff]   ;;  %v17570_v4 = vld [vmem:[#allocation8 + $0x3ac] ss:$16 sps:$4 sm:$0xff]  }
 0x380   :  { %v3281_v8 = vmax.f32 %v3270_v45, 0.0  ;;  %v3272_v9 = vpop.f32.mrf.mxu1  ;;  %5043 = vmatpush2.bf16.msra.mxu0 %v17499_v35  ;;  %v19905_v14 = vpack.c.bf16 %v3280_v30, %v3280_v30  ;;  %v17567_v35 = vld [vmem:[#allocation8 + $0x5ac] ss:$16 sps:$4 sm:$0xff]   ;;  %v17568_v41 = vld [vmem:[#allocation8 + $0x3a8] ss:$16 sps:$4 sm:$0xff]  }
 0x381   :  { %5094 = vmatprep.subr.bf16.mxu0 %v17507_v27  ;;  %v17562_v27 = vld [vmem:[#allocation8 + $0x3c8] ss:$16 sps:$4 sm:$0xff]   ;;  %v17573_v25 = vld [vmem:[#allocation8 + $0x58c] ss:$16 sps:$4 sm:$0xff]  }
 0x382   :  { %v19902_v12 = vpack.c.bf16 %v3281_v8, %v3281_v8  ;;  %v17571_v45 = vld [vmem:[#allocation8 + $0x588] ss:$16 sps:$4 sm:$0xff]   ;;  %v17576_v55 = vld [vmem:[#allocation8 + $0x38c] ss:$16 sps:$4 sm:$0xff]  }
 0x383   :  { %5045 = vmatmul.mubr.bf16.vlgmr.msra.gmra.mxu0 %v19851_v18  ;;  %v17525_v18 = vld [vmem:[#allocation8 + $0x48c] ss:$16 sps:$4 sm:$0xff]   ;;  %v17580_v9 = vld [vmem:[#allocation8 + $0x368] ss:$16 sps:$4 sm:$0xff]  }
 0x384   :  { %5095 = vmatpush1.bf16.msra.mxu0 %v17505_v0  ;;  %5126 = vmatprep.mubr.bf16.mxu0 %v19885_v6  ;;  %v17523_v6 = vld [vmem:[#allocation8 + $0x488] ss:$16 sps:$4 sm:$0xff]   ;;  %v17579_v22 = vld [vmem:[#allocation8 + $0x56c] ss:$16 sps:$4 sm:$0xff]  }
 0x385   :  { %5003 = vmatprep.mubr.bf16.mxu1 %v19902_v12  ;;  %5096 = vmatprep.subr.bf16.mxu0 %v17513_v50  ;;  %v17574_v0 = vld [vmem:[#allocation8 + $0x388] ss:$16 sps:$4 sm:$0xff]   ;;  %v17582_v30 = vld [vmem:[#allocation8 + $0x36c] ss:$16 sps:$4 sm:$0xff]  }
 0x386   :  { %5004 = vmatmul.mubr.bf16.vlgmr.msra.gmra.mxu1 %v19905_v14  ;;  %v17577_v50 = vld [vmem:[#allocation8 + $0x568] ss:$16 sps:$4 sm:$0xff]   ;;  %v17585_v8 = vld [vmem:[#allocation8 + $0x54c] ss:$16 sps:$4 sm:$0xff]  }
 0x387   :  { %5054 = vmatpush1.bf16.msra.mxu1 %v17508_v23  ;;  %5085 = vmatprep.mubr.bf16.mxu1 %v19839_v10  ;;  %v17532_v10 = vld [vmem:[#allocation8 + $0x268] ss:$16 sps:$4 sm:$0xff]   ;;  %v19911_v23 = vld [vmem:[#allocation9] sm:$0xf] }
 0x388   :  { %5097 = vmatpush1.bf16.msra.mxu0 %v17511_v28  ;;  %5055 = vmatprep.subr.bf16.mxu1 %v17516_v13  ;;  %v17583_v28 = vld [vmem:[#allocation8 + $0x548] ss:$16 sps:$4 sm:$0xff]   ;;  %v17588_v13 = vld [vmem:[#allocation8 + $0x34c] ss:$16 sps:$4 sm:$0xff]  }
 0x389   :  { %5098 = vmatprep.subr.bf16.mxu0 %v17519_v54  ;;  %v17591_v54 = vld [vmem:[#allocation8 + $0x52c] ss:$16 sps:$4 sm:$0xff]  }
 0x38b   :  { %5056 = vmatpush1.bf16.msra.mxu1 %v17514_v15  ;;  %v17586_v15 = vld [vmem:[#allocation8 + $0x348] ss:$16 sps:$4 sm:$0xff]  }
 0x38c   :  { %5099 = vmatpush1.bf16.msra.mxu0 %v17517_v17  ;;  %5057 = vmatprep.subr.bf16.mxu1 %v17522_v16  ;;  %v3551_v17 = vrot.slane %v19911_v23, %v19792_v26  ;;  %v17589_v16 = vld [vmem:[#allocation8 + $0x528] ss:$16 sps:$4 sm:$0xff]  }
 0x38d   :  { %5100 = vmatprep.subr.bf16.mxu0 %v17525_v18  ;;  %v17594_v18 = vld [vmem:[#allocation8 + $0x32c] ss:$16 sps:$4 sm:$0xff]  }
 0x38f   :  { %5058 = vmatpush1.bf16.msra.mxu1 %v17520_v11  ;;  %v17597_v11 = vld [vmem:[#allocation8 + $0x50c] ss:$16 sps:$4 sm:$0xff]  }
 0x390   :  { %5101 = vmatpush1.bf16.msra.mxu0 %v17523_v6  ;;  %5059 = vmatprep.subr.bf16.mxu1 %v17528_v59  ;;  %v3555_v6 = vrot.slane %v19911_v23, %v19795_v36 }
 0x391   :  { %5102 = vmatprep.subr.bf16.mxu0 %v17531_v20  ;;  %v17592_v20 = vld [vmem:[#allocation8 + $0x328] ss:$16 sps:$4 sm:$0xff]  }
 0x393   :  { %5060 = vmatpush1.bf16.msra.mxu1 %v17526_v21 }
 0x394   :  { %5103 = vmatpush1.bf16.msra.mxu0 %v17529_v24  ;;  %5061 = vmatprep.subr.bf16.mxu1 %v17534_v29  ;;  %v17595_v29 = vld [vmem:[#allocation8 + $0x508] ss:$16 sps:$4 sm:$0xff]  }
 0x395   :  { %5104 = vmatprep.subr.bf16.mxu0 %v17537_v32 }
 0x397   :  { %5062 = vmatpush1.bf16.msra.mxu1 %v17532_v10  ;;  %v17600_v10 = vld [vmem:[#allocation8 + $0x30c] ss:$16 sps:$4 sm:$0xff]  }
 0x398   :  { %5105 = vmatpush1.bf16.msra.mxu0 %v17535_v37  ;;  %5063 = vmatprep.subr.bf16.mxu1 %v17540_v38  ;;  %v17651_v37 = vld [vmem:[#allocation11 + $0xe4] ss:$16 sps:$4 sm:$0xff]  }
 0x399   :  { %5106 = vmatprep.subr.bf16.mxu0 %v17543_v40 }
 0x39b   :  { %5064 = vmatpush1.bf16.msra.mxu1 %v17538_v57 }
 0x39c   :  { %5107 = vmatpush1.bf16.msra.mxu0 %v17541_v31  ;;  %5065 = vmatprep.subr.bf16.mxu1 %v17546_v5  ;;  %v17598_v5 = vld [vmem:[#allocation8 + $0x308] ss:$16 sps:$4 sm:$0xff]  }
 0x39d   :  { %5108 = vmatprep.subr.bf16.mxu0 %v17549_v48 }
 0x39f   :  { %5066 = vmatpush1.bf16.msra.mxu1 %v17544_v49 }
 0x3a0   :  { %5109 = vmatpush1.bf16.msra.mxu0 %v17547_v51  ;;  %5067 = vmatprep.subr.bf16.mxu1 %v17552_v33  ;;  %v17603_v51 = vld [vmem:[#allocation8 + $0x6ec] ss:$16 sps:$4 sm:$0xff]  }
 0x3a1   :  { %5110 = vmatprep.subr.bf16.mxu0 %v17555_v52 }
 0x3a3   :  { %5068 = vmatpush1.bf16.msra.mxu1 %v17550_v56  ;;  %v17649_v56 = vld [vmem:[#allocation11 + $0xe0] ss:$16 sps:$4 sm:$0xff]  }
 0x3a4   :  { %5111 = vmatpush2.bf16.msra.mxu0 %v17553_v63  ;;  %5069 = vmatprep.subr.bf16.mxu1 %v17558_v58  ;;  %v17654_v63 = vld [vmem:[#allocation11 + $0xc4] ss:$16 sps:$4 sm:$0xff]  }
 0x3a5   :  { %5112 = vmatprep.subr.bf16.mxu0 %v17561_v60  ;;  %v17601_v58 = vld [vmem:[#allocation8 + $0x6e8] ss:$16 sps:$4 sm:$0xff]   ;;  %v17606_v60 = vld [vmem:[#allocation8 + $0x6cc] ss:$16 sps:$4 sm:$0xff]  }
 0x3a7   :  { %5070 = vmatpush2.bf16.msra.mxu1 %v17556_v61  ;;  %v17652_v61 = vld [vmem:[#allocation11 + $0xc0] ss:$16 sps:$4 sm:$0xff]  }
 0x3a8   :  { %5113 = vmatpush2.bf16.msra.mxu0 %v17559_v62  ;;  %5071 = vmatprep.subr.bf16.mxu1 %v17564_v1  ;;  %v17657_v62 = vld [vmem:[#allocation11 + $0xa4] ss:$16 sps:$4 sm:$0xff]  }
 0x3a9   :  { %5114 = vmatprep.subr.bf16.mxu0 %v17567_v35  ;;  %v17604_v1 = vld [vmem:[#allocation8 + $0x6c8] ss:$16 sps:$4 sm:$0xff]   ;;  %v17609_v35 = vld [vmem:[#allocation8 + $0x6ac] ss:$16 sps:$4 sm:$0xff]  }
 0x3ab   :  { %5072 = vmatpush2.bf16.msra.mxu1 %v17562_v27  ;;  %v17655_v27 = vld [vmem:[#allocation11 + $0xa0] ss:$16 sps:$4 sm:$0xff]  }
 0x3ac   :  { %5115 = vmatpush2.bf16.msra.mxu0 %v17565_v3  ;;  %5073 = vmatprep.subr.bf16.mxu1 %v17570_v4  ;;  %v17660_v3 = vld [vmem:[#allocation11 + $0x84] ss:$16 sps:$4 sm:$0xff]   ;;  %v17612_v4 = vld [vmem:[#allocation8 + $0x68c] ss:$16 sps:$4 sm:$0xff]  }
 0x3ad   :  { %5116 = vmatprep.subr.bf16.mxu0 %v17573_v25  ;;  %v17658_v25 = vld [vmem:[#allocation11 + $0x80] ss:$16 sps:$4 sm:$0xff]  }
 0x3af   :  { %5074 = vmatpush2.bf16.msra.mxu1 %v17568_v41  ;;  %v17663_v41 = vld [vmem:[#allocation11 + $0x64] ss:$16 sps:$4 sm:$0xff]  }
 0x3b0   :  { %5117 = vmatpush2.bf16.msra.mxu0 %v17571_v45  ;;  %5075 = vmatprep.subr.bf16.mxu1 %v17576_v55  ;;  %v17615_v45 = vld [vmem:[#allocation8 + $0x66c] ss:$16 sps:$4 sm:$0xff]   ;;  %v17666_v55 = vld [vmem:[#allocation11 + $0x44] ss:$16 sps:$4 sm:$0xff]  }
 0x3b1   :  { %5118 = vmatprep.subr.bf16.mxu0 %v17579_v22  ;;  %v17613_v22 = vld [vmem:[#allocation8 + $0x668] ss:$16 sps:$4 sm:$0xff]  }
 0x3b3   :  { %5076 = vmatpush2.bf16.msra.mxu1 %v17574_v0  ;;  %v17618_v0 = vld [vmem:[#allocation8 + $0x64c] ss:$16 sps:$4 sm:$0xff]  }
 0x3b4   :  { %5119 = vmatpush2.bf16.msra.mxu0 %v17577_v50  ;;  %5077 = vmatprep.subr.bf16.mxu1 %v17582_v30  ;;  %v17664_v50 = vld [vmem:[#allocation11 + $0x40] ss:$16 sps:$4 sm:$0xff]   ;;  %v17669_v30 = vld [vmem:[#allocation11 + $0x24] ss:$16 sps:$4 sm:$0xff]  }
 0x3b5   :  { %5120 = vmatprep.subr.bf16.mxu0 %v17585_v8  ;;  %v17616_v8 = vld [vmem:[#allocation8 + $0x648] ss:$16 sps:$4 sm:$0xff]  }
 0x3b7   :  { %5078 = vmatpush2.bf16.msra.mxu1 %v17580_v9  ;;  %v17621_v9 = vld [vmem:[#allocation8 + $0x62c] ss:$16 sps:$4 sm:$0xff]  }
 0x3b8   :  { %5121 = vmatpush2.bf16.msra.mxu0 %v17583_v28  ;;  %5079 = vmatprep.subr.bf16.mxu1 %v17588_v13  ;;  %v17667_v28 = vld [vmem:[#allocation11 + $0x20] ss:$16 sps:$4 sm:$0xff]   ;;  %v17672_v13 = vld [vmem:[#allocation11 + $0x4] ss:$16 sps:$4 sm:$0xff]  }
 0x3b9   :  { %v4882_v59 = vpop.f32.mrf.mxu0  ;;  %5122 = vmatprep.subr.bf16.mxu0 %v17591_v54  ;;  %v17619_v54 = vld [vmem:[#allocation8 + $0x628] ss:$16 sps:$4 sm:$0xff]  }
 0x3ba   :  { %v4883_v21 = vadd.f32 %v4882_v59, %v3551_v17  ;;  %v4923_v24 = vpop.f32.mrf.mxu1  ;;  %v17670_v17 = vld [vmem:[#allocation11] ss:$16 sps:$4 sm:$0xff]   ;;  %v17678_v59 = vld [vmem:[#allocation11 + $0x1c4] ss:$16 sps:$4 sm:$0xff]  }
 0x3bb   :  { %5080 = vmatpush2.bf16.msra.mxu1 %v17586_v15  ;;  %v4884_v32 = vpop.f32.mrf.mxu0  ;;  %v17624_v15 = vld [vmem:[#allocation8 + $0x60c] ss:$16 sps:$4 sm:$0xff]  }
 0x3bc   :  { %v19917_v38 = vadd.f32 %v4923_v24, %v4883_v21  ;;  %v4885_v40 = vadd.f32 %v4884_v32, %v3555_v6  ;;  %v4925_v57 = vpop.f32.mrf.mxu1  ;;  %5123 = vmatpush2.bf16.msra.mxu0 %v17589_v16  ;;  %5081 = vmatprep.subr.bf16.mxu1 %v17594_v18  ;;  %v17675_v16 = vld [vmem:[#allocation11 + $0x1e4] ss:$16 sps:$4 sm:$0xff]   ;;  %v17673_v6 = vld [vmem:[#allocation11 + $0x1e0] ss:$16 sps:$4 sm:$0xff]   ;;  %v17630_v21 = vld [vmem:[#allocation8 + $0x7cc] ss:$16 sps:$4 sm:$0xff]  }
 0x3bd   :  { %v4886_v31 = vpop.f32.mrf.mxu0  ;;  %5124 = vmatprep.subr.bf16.mxu0 %v17597_v11  ;;  %v17622_v18 = vld [vmem:[#allocation8 + $0x608] ss:$16 sps:$4 sm:$0xff]   ;;  %v17627_v11 = vld [vmem:[#allocation8 + $0x7ec] ss:$16 sps:$4 sm:$0xff]   ;;  %v17676_v24 = vld [vmem:[#allocation11 + $0x1c0] ss:$16 sps:$4 sm:$0xff]  }
 0x3be   :  { %v19919_v48 = vadd.f32 %v4925_v57, %v4885_v40  ;;  %v4927_v49 = vpop.f32.mrf.mxu1  ;;  %v17633_v32 = vld [vmem:[#allocation8 + $0x7ac] ss:$16 sps:$4 sm:$0xff]   ;;  %v17684_v40 = vld [vmem:[#allocation11 + $0x184] ss:$16 sps:$4 sm:$0xff]  }
 0x3bf   :  { %5082 = vmatpush2.bf16.msra.mxu1 %v17592_v20  ;;  %v4887_v33 = vpop.f32.mrf.mxu0  ;;  %v17625_v20 = vld [vmem:[#allocation8 + $0x7e8] ss:$16 sps:$4 sm:$0xff]   ;;  %v17636_v31 = vld [vmem:[#allocation8 + $0x78c] ss:$16 sps:$4 sm:$0xff]  }
 0x3c0   :  { %v4928_v52 = vpop.f32.mrf.mxu1  ;;  %5125 = vmatpush2.bf16.msra.mxu0 %v17595_v29  ;;  %5083 = vmatprep.subr.bf16.mxu1 %v17600_v10  ;;  %v17681_v29 = vld [vmem:[#allocation11 + $0x1a4] ss:$16 sps:$4 sm:$0xff]   ;;  %v17639_v33 = vld [vmem:[#allocation8 + $0x76c] ss:$16 sps:$4 sm:$0xff]  }
 0x3c1   :  { %5974 = vmatprep.subr.bf16.mxu0 %v17651_v37  ;;  %v17628_v10 = vld [vmem:[#allocation8 + $0x7c8] ss:$16 sps:$4 sm:$0xff]   ;;  %v17679_v37 = vld [vmem:[#allocation11 + $0x1a0] ss:$16 sps:$4 sm:$0xff]  }
 0x3c2   :  { %v17631_v57 = vld [vmem:[#allocation8 + $0x7a8] ss:$16 sps:$4 sm:$0xff]   ;;  %v17685_v52 = vld [vmem:[#allocation11 + $0x160] ss:$16 sps:$4 sm:$0xff]  }
 0x3c3   :  { %5084 = vmatpush2.bf16.msra.mxu1 %v17598_v5  ;;  %5127 = vmatmul.mubr.bf16.vlgmr.msra.gmra.mxu0 %v19887_v7  ;;  %v17607_v7 = vld [vmem:[#allocation8 + $0x6a8] ss:$16 sps:$4 sm:$0xff]   ;;  %v17682_v5 = vld [vmem:[#allocation11 + $0x180] ss:$16 sps:$4 sm:$0xff]  }
 0x3c4   :  { %5135 = vmatprep.subr.bf16.mxu1 %v17603_v51  ;;  %5975 = vmatpush1.bf16.msra.mxu0 %v17649_v56  ;;  %v17687_v49 = vld [vmem:[#allocation11 + $0x164] ss:$16 sps:$4 sm:$0xff]  }
 0x3c5   :  { %5976 = vmatprep.subr.bf16.mxu0 %v17654_v63  ;;  %v17634_v51 = vld [vmem:[#allocation8 + $0x788] ss:$16 sps:$4 sm:$0xff]  }
 0x3c6   :  { %5086 = vmatmul.mubr.bf16.vlgmr.msra.gmra.mxu1 %v19853_v19  ;;  %v17610_v19 = vld [vmem:[#allocation8 + $0x688] ss:$16 sps:$4 sm:$0xff]  }
 0x3c7   :  { %5136 = vmatpush1.bf16.msra.mxu1 %v17601_v58  ;;  %5167 = vmatprep.mubr.bf16.mxu1 %v19902_v12  ;;  %v17661_v12 = vld [vmem:[#allocation11 + $0x60] ss:$16 sps:$4 sm:$0xff]   ;;  %v17690_v56 = vld [vmem:[#allocation11 + $0x144] ss:$16 sps:$4 sm:$0xff]   ;;  %v17642_v58 = vld [vmem:[#allocation8 + $0x74c] ss:$16 sps:$4 sm:$0xff]  }
 0x3c8   :  { %5137 = vmatprep.subr.bf16.mxu1 %v17606_v60  ;;  %5977 = vmatpush1.bf16.msra.mxu0 %v17652_v61  ;;  %v17637_v63 = vld [vmem:[#allocation8 + $0x768] ss:$16 sps:$4 sm:$0xff]   ;;  %v17688_v60 = vld [vmem:[#allocation11 + $0x140] ss:$16 sps:$4 sm:$0xff]  }
 0x3c9   :  { %5978 = vmatprep.subr.bf16.mxu0 %v17657_v62  ;;  %v17693_v61 = vld [vmem:[#allocation11 + $0x124] ss:$16 sps:$4 sm:$0xff]  }
 0x3ca   :  { %v17640_v62 = vld [vmem:[#allocation8 + $0x748] ss:$16 sps:$4 sm:$0xff]  }
 0x3cb   :  { %5138 = vmatpush1.bf16.msra.mxu1 %v17604_v1  ;;  %v17645_v1 = vld [vmem:[#allocation8 + $0x72c] ss:$16 sps:$4 sm:$0xff]  }
 0x3cc   :  { %5139 = vmatprep.subr.bf16.mxu1 %v17609_v35  ;;  %5979 = vmatpush1.bf16.msra.mxu0 %v17655_v27  ;;  %v17691_v35 = vld [vmem:[#allocation11 + $0x120] ss:$16 sps:$4 sm:$0xff]   ;;  %v17696_v27 = vld [vmem:[#allocation11 + $0x104] ss:$16 sps:$4 sm:$0xff]  }
 0x3cd   :  { %5980 = vmatprep.subr.bf16.mxu0 %v17660_v3  ;;  %v17643_v3 = vld [vmem:[#allocation8 + $0x728] ss:$16 sps:$4 sm:$0xff]  }
 0x3cf   :  { %5140 = vmatpush1.bf16.msra.mxu1 %v17607_v7  ;;  %v17648_v7 = vld [vmem:[#allocation8 + $0x70c] ss:$16 sps:$4 sm:$0xff]  }
 0x3d0   :  { %5141 = vmatprep.subr.bf16.mxu1 %v17612_v4  ;;  %5981 = vmatpush1.bf16.msra.mxu0 %v17658_v25  ;;  %v17694_v4 = vld [vmem:[#allocation11 + $0x100] ss:$16 sps:$4 sm:$0xff]   ;;  %v17699_v25 = vld [vmem:[#allocation11 + $0xec] ss:$16 sps:$4 sm:$0xff]  }
 0x3d1   :  { %5982 = vmatprep.subr.bf16.mxu0 %v17663_v41  ;;  %v17646_v41 = vld [vmem:[#allocation8 + $0x708] ss:$16 sps:$4 sm:$0xff]  }
 0x3d3   :  { %5142 = vmatpush1.bf16.msra.mxu1 %v17610_v19 }
 0x3d4   :  { %5143 = vmatprep.subr.bf16.mxu1 %v17615_v45  ;;  %5983 = vmatpush1.bf16.msra.mxu0 %v17661_v12 }
 0x3d5   :  { %5984 = vmatprep.subr.bf16.mxu0 %v17666_v55 }
 0x3d7   :  { %5144 = vmatpush1.bf16.msra.mxu1 %v17613_v22 }
 0x3d8   :  { %5145 = vmatprep.subr.bf16.mxu1 %v17618_v0  ;;  %5985 = vmatpush1.bf16.msra.mxu0 %v17664_v50  ;;  %v17745_v50 = vld [vmem:[#allocation11 + $0x2e0] ss:$16 sps:$4 sm:$0xff]  }
 0x3d9   :  { %5986 = vmatprep.subr.bf16.mxu0 %v17669_v30  ;;  %v17747_v30 = vld [vmem:[#allocation11 + $0x2e4] ss:$16 sps:$4 sm:$0xff]  }
 0x3db   :  { %5146 = vmatpush1.bf16.msra.mxu1 %v17616_v8  ;;  %v17748_v8 = vld [vmem:[#allocation11 + $0x2c0] ss:$16 sps:$4 sm:$0xff]  }
 0x3dc   :  { %5147 = vmatprep.subr.bf16.mxu1 %v17621_v9  ;;  %5987 = vmatpush1.bf16.msra.mxu0 %v17667_v28  ;;  %v17750_v9 = vld [vmem:[#allocation11 + $0x2c4] ss:$16 sps:$4 sm:$0xff]  }
 0x3dd   :  { %5988 = vmatprep.subr.bf16.mxu0 %v17672_v13  ;;  %v17753_v28 = vld [vmem:[#allocation11 + $0x2a4] ss:$16 sps:$4 sm:$0xff]   ;;  %v17751_v13 = vld [vmem:[#allocation11 + $0x2a0] ss:$16 sps:$4 sm:$0xff]  }
 0x3df   :  { %5148 = vmatpush1.bf16.msra.mxu1 %v17619_v54  ;;  %v17754_v54 = vld [vmem:[#allocation11 + $0x280] ss:$16 sps:$4 sm:$0xff]  }
 0x3e0   :  { %5149 = vmatprep.subr.bf16.mxu1 %v17624_v15  ;;  %5989 = vmatpush1.bf16.msra.mxu0 %v17670_v17  ;;  %v17762_v15 = vld [vmem:[#allocation11 + $0x244] ss:$16 sps:$4 sm:$0xff]   ;;  %v17760_v17 = vld [vmem:[#allocation11 + $0x240] ss:$16 sps:$4 sm:$0xff]  }
 0x3e1   :  { %5990 = vmatprep.subr.bf16.mxu0 %v17675_v16  ;;  %v17765_v16 = vld [vmem:[#allocation11 + $0x224] ss:$16 sps:$4 sm:$0xff]  }
 0x3e3   :  { %5150 = vmatpush1.bf16.msra.mxu1 %v17622_v18  ;;  %v17763_v18 = vld [vmem:[#allocation11 + $0x220] ss:$16 sps:$4 sm:$0xff]  }
 0x3e4   :  { %5151 = vmatprep.subr.bf16.mxu1 %v17627_v11  ;;  %5991 = vmatpush2.bf16.msra.mxu0 %v17673_v6  ;;  %v17768_v11 = vld [vmem:[#allocation11 + $0x204] ss:$16 sps:$4 sm:$0xff]   ;;  %v17766_v6 = vld [vmem:[#allocation11 + $0x200] ss:$16 sps:$4 sm:$0xff]  }
 0x3e5   :  { %5992 = vmatprep.subr.bf16.mxu0 %v17678_v59  ;;  %v17771_v59 = vld [vmem:[#allocation11 + $0x3e4] ss:$16 sps:$4 sm:$0xff]  }
 0x3e7   :  { %5152 = vmatpush2.bf16.msra.mxu1 %v17625_v20  ;;  %v17769_v20 = vld [vmem:[#allocation11 + $0x3e0] ss:$16 sps:$4 sm:$0xff]  }
 0x3e8   :  { %5153 = vmatprep.subr.bf16.mxu1 %v17630_v21  ;;  %5993 = vmatpush2.bf16.msra.mxu0 %v17676_v24  ;;  %v17774_v21 = vld [vmem:[#allocation11 + $0x3c4] ss:$16 sps:$4 sm:$0xff]   ;;  %v17772_v24 = vld [vmem:[#allocation11 + $0x3c0] ss:$16 sps:$4 sm:$0xff]  }
 0x3e9   :  { %5994 = vmatprep.subr.bf16.mxu0 %v17681_v29  ;;  %v17777_v29 = vld [vmem:[#allocation11 + $0x3a4] ss:$16 sps:$4 sm:$0xff]  }
 0x3eb   :  { %5154 = vmatpush2.bf16.msra.mxu1 %v17628_v10  ;;  %v17775_v10 = vld [vmem:[#allocation11 + $0x3a0] ss:$16 sps:$4 sm:$0xff]  }
 0x3ec   :  { %5155 = vmatprep.subr.bf16.mxu1 %v17633_v32  ;;  %5995 = vmatpush2.bf16.msra.mxu0 %v17679_v37  ;;  %v17780_v32 = vld [vmem:[#allocation11 + $0x384] ss:$16 sps:$4 sm:$0xff]   ;;  %v17778_v37 = vld [vmem:[#allocation11 + $0x380] ss:$16 sps:$4 sm:$0xff]  }
 0x3ed   :  { %5996 = vmatprep.subr.bf16.mxu0 %v17684_v40  ;;  %v17783_v40 = vld [vmem:[#allocation11 + $0x364] ss:$16 sps:$4 sm:$0xff]  }
 0x3ef   :  { %5156 = vmatpush2.bf16.msra.mxu1 %v17631_v57  ;;  %v17781_v57 = vld [vmem:[#allocation11 + $0x360] ss:$16 sps:$4 sm:$0xff]  }
 0x3f0   :  { %5157 = vmatprep.subr.bf16.mxu1 %v17636_v31  ;;  %5997 = vmatpush2.bf16.msra.mxu0 %v17682_v5  ;;  %v17786_v31 = vld [vmem:[#allocation11 + $0x344] ss:$16 sps:$4 sm:$0xff]   ;;  %v17784_v5 = vld [vmem:[#allocation11 + $0x340] ss:$16 sps:$4 sm:$0xff]  }
 0x3f1   :  { %5998 = vmatprep.subr.bf16.mxu0 %v17687_v49 }
 0x3f3   :  { %5158 = vmatpush2.bf16.msra.mxu1 %v17634_v51 }
 0x3f4   :  { %5159 = vmatprep.subr.bf16.mxu1 %v17639_v33  ;;  %5999 = vmatpush2.bf16.msra.mxu0 %v17685_v52  ;;  %v17789_v33 = vld [vmem:[#allocation11 + $0x324] ss:$16 sps:$4 sm:$0xff]  }
 0x3f5   :  { %6000 = vmatprep.subr.bf16.mxu0 %v17690_v56  ;;  %v17787_v56 = vld [vmem:[#allocation11 + $0x320] ss:$16 sps:$4 sm:$0xff]  }
 0x3f7   :  { %5160 = vmatpush2.bf16.msra.mxu1 %v17637_v63 }
 0x3f8   :  { %5161 = vmatprep.subr.bf16.mxu1 %v17642_v58  ;;  %6001 = vmatpush2.bf16.msra.mxu0 %v17688_v60 }
 0x3f9   :  { %6002 = vmatprep.subr.bf16.mxu0 %v17693_v61 }
 0x3fb   :  { %5162 = vmatpush2.bf16.msra.mxu1 %v17640_v62 }
 0x3fc   :  { %5163 = vmatprep.subr.bf16.mxu1 %v17645_v1  ;;  %6003 = vmatpush2.bf16.msra.mxu0 %v17691_v35  ;;  %v17792_v1 = vld [vmem:[#allocation11 + $0x304] ss:$16 sps:$4 sm:$0xff]  }
 0x3fd   :  { %6004 = vmatprep.subr.bf16.mxu0 %v17696_v27 }
 0x3ff   :  { %5164 = vmatpush2.bf16.msra.mxu1 %v17643_v3  ;;  %v17790_v3 = vld [vmem:[#allocation11 + $0x300] ss:$16 sps:$4 sm:$0xff]  }
 0x400   :  { %5165 = vmatprep.subr.bf16.mxu1 %v17648_v7  ;;  %6005 = vmatpush2.bf16.msra.mxu0 %v17694_v4 }
 0x401   :  { %6056 = vmatprep.subr.bf16.mxu0 %v17699_v25 }
 0x403   :  { %5166 = vmatpush2.bf16.msra.mxu1 %v17646_v41  ;;  %v4964_v19 = vpop.f32.mrf.mxu0  ;;  %v17697_v41 = vld [vmem:[#allocation11 + $0xe8] ss:$16 sps:$4 sm:$0xff]  }
 0x404   :  { %v19925_v45 = vadd.f32 %v4964_v19, %v19917_v38  ;;  %6015 = vmatprep.subr.bf16.mxu1 %v17747_v30  ;;  %v17756_v38 = vld [vmem:[#allocation11 + $0x284] ss:$16 sps:$4 sm:$0xff]   ;;  %v17795_v19 = vld [vmem:[#allocation11 + $0x2ec] ss:$16 sps:$4 sm:$0xff]   ;;  %v17706_v30 = vld [vmem:[#allocation11 + $0x88] ss:$16 sps:$4 sm:$0xff]  }
 0x405   :  { %v4966_v12 = vpop.f32.mrf.mxu0 }
 0x406   :  { %5168 = vmatmul.mubr.bf16.vlgmr.msra.gmra.mxu1 %v19905_v14  ;;  %v19929_v55 = vadd.f32 %v4966_v12, %v19919_v48  ;;  %v17759_v14 = vld [vmem:[#allocation11 + $0x264] ss:$16 sps:$4 sm:$0xff]   ;;  %v17757_v48 = vld [vmem:[#allocation11 + $0x260] ss:$16 sps:$4 sm:$0xff]  }
 0x407   :  { %v4968_v22 = vpop.f32.mrf.mxu0  ;;  %6016 = vmatpush1.bf16.msra.mxu1 %v17745_v50  ;;  %v17708_v50 = vld [vmem:[#allocation11 + $0x8c] ss:$16 sps:$4 sm:$0xff]  }
 0x408   :  { %6017 = vmatprep.subr.bf16.mxu1 %v17750_v9  ;;  %v17705_v22 = vld [vmem:[#allocation11 + $0xac] ss:$16 sps:$4 sm:$0xff]   ;;  %v17709_v9 = vld [vmem:[#allocation11 + $0x68] ss:$16 sps:$4 sm:$0xff]  }
 0x409   :  { %v4969_v0 = vpop.f32.mrf.mxu0 }
 0x40a   :  { %v17703_v0 = vld [vmem:[#allocation11 + $0xa8] ss:$16 sps:$4 sm:$0xff]  }
 0x40b   :  { %6018 = vmatpush1.bf16.msra.mxu1 %v17748_v8  ;;  %v17711_v8 = vld [vmem:[#allocation11 + $0x6c] ss:$16 sps:$4 sm:$0xff]  }
 0x40c   :  { %6019 = vmatprep.subr.bf16.mxu1 %v17753_v28  ;;  %v17714_v28 = vld [vmem:[#allocation11 + $0x4c] ss:$16 sps:$4 sm:$0xff]  }
 0x40f   :  { %6020 = vmatpush1.bf16.msra.mxu1 %v17751_v13  ;;  %v17712_v13 = vld [vmem:[#allocation11 + $0x48] ss:$16 sps:$4 sm:$0xff]  }
 0x410   :  { %6021 = vmatprep.subr.bf16.mxu1 %v17756_v38  ;;  %v17717_v38 = vld [vmem:[#allocation11 + $0x2c] ss:$16 sps:$4 sm:$0xff]  }
 0x413   :  { %6022 = vmatpush1.bf16.msra.mxu1 %v17754_v54  ;;  %v17715_v54 = vld [vmem:[#allocation11 + $0x28] ss:$16 sps:$4 sm:$0xff]  }
 0x414   :  { %6023 = vmatprep.subr.bf16.mxu1 %v17759_v14  ;;  %v17720_v14 = vld [vmem:[#allocation11 + $0xc] ss:$16 sps:$4 sm:$0xff]  }
 0x417   :  { %6024 = vmatpush1.bf16.msra.mxu1 %v17757_v48  ;;  %v17718_v48 = vld [vmem:[#allocation11 + $0x8] ss:$16 sps:$4 sm:$0xff]  }
 0x418   :  { %6025 = vmatprep.subr.bf16.mxu1 %v17762_v15  ;;  %v17723_v15 = vld [vmem:[#allocation11 + $0x1ec] ss:$16 sps:$4 sm:$0xff]  }
 0x41b   :  { %6026 = vmatpush1.bf16.msra.mxu1 %v17760_v17  ;;  %v17721_v17 = vld [vmem:[#allocation11 + $0x1e8] ss:$16 sps:$4 sm:$0xff]  }
 0x41c   :  { %6027 = vmatprep.subr.bf16.mxu1 %v17765_v16  ;;  %v17726_v16 = vld [vmem:[#allocation11 + $0x1cc] ss:$16 sps:$4 sm:$0xff]  }
 0x41f   :  { %6028 = vmatpush1.bf16.msra.mxu1 %v17763_v18  ;;  %v17724_v18 = vld [vmem:[#allocation11 + $0x1c8] ss:$16 sps:$4 sm:$0xff]  }
 0x420   :  { %6029 = vmatprep.subr.bf16.mxu1 %v17768_v11  ;;  %v17729_v11 = vld [vmem:[#allocation11 + $0x1ac] ss:$16 sps:$4 sm:$0xff]  }
 0x423   :  { %6030 = vmatpush1.bf16.msra.mxu1 %v17766_v6  ;;  %v17727_v6 = vld [vmem:[#allocation11 + $0x1a8] ss:$16 sps:$4 sm:$0xff]  }
 0x424   :  { %6031 = vmatprep.subr.bf16.mxu1 %v17771_v59  ;;  %v17732_v59 = vld [vmem:[#allocation11 + $0x18c] ss:$16 sps:$4 sm:$0xff]  }
 0x427   :  { %6032 = vmatpush2.bf16.msra.mxu1 %v17769_v20  ;;  %v17730_v20 = vld [vmem:[#allocation11 + $0x188] ss:$16 sps:$4 sm:$0xff]  }
 0x428   :  { %6033 = vmatprep.subr.bf16.mxu1 %v17774_v21  ;;  %v17735_v21 = vld [vmem:[#allocation11 + $0x16c] ss:$16 sps:$4 sm:$0xff]  }
 0x42b   :  { %6034 = vmatpush2.bf16.msra.mxu1 %v17772_v24  ;;  %v17733_v24 = vld [vmem:[#allocation11 + $0x168] ss:$16 sps:$4 sm:$0xff]  }
 0x42c   :  { %6035 = vmatprep.subr.bf16.mxu1 %v17777_v29  ;;  %v17738_v29 = vld [vmem:[#allocation11 + $0x14c] ss:$16 sps:$4 sm:$0xff]  }
 0x42f   :  { %6036 = vmatpush2.bf16.msra.mxu1 %v17775_v10  ;;  %v3559_v10 = vrot.slane %v19911_v23, %v19843_v2 }
 0x430   :  { %6037 = vmatprep.subr.bf16.mxu1 %v17780_v32  ;;  %v17736_v32 = vld [vmem:[#allocation11 + $0x148] ss:$16 sps:$4 sm:$0xff]  }
 0x433   :  { %6038 = vmatpush2.bf16.msra.mxu1 %v17778_v37  ;;  %v17741_v37 = vld [vmem:[#allocation11 + $0x12c] ss:$16 sps:$4 sm:$0xff]  }
 0x434   :  { %6039 = vmatprep.subr.bf16.mxu1 %v17783_v40  ;;  %v3563_v40 = vrot.slane %v19911_v23, %v19823_v43 }
 0x437   :  { %6040 = vmatpush2.bf16.msra.mxu1 %v17781_v57 }
 0x438   :  { %6041 = vmatprep.subr.bf16.mxu1 %v17786_v31 }
 0x43b   :  { %6042 = vmatpush2.bf16.msra.mxu1 %v17784_v5 }
 0x43c   :  { %6043 = vmatprep.subr.bf16.mxu1 %v17789_v33  ;;  %v17739_v33 = vld [vmem:[#allocation11 + $0x128] ss:$16 sps:$4 sm:$0xff]  }
 0x43f   :  { %6044 = vmatpush2.bf16.msra.mxu1 %v17787_v56  ;;  %v17744_v56 = vld [vmem:[#allocation11 + $0x10c] ss:$16 sps:$4 sm:$0xff]  }
 0x440   :  { %6045 = vmatprep.subr.bf16.mxu1 %v17792_v1 }
 0x443   :  { %v19931_v49 = vpop.f32.mrf.mxu0  ;;  %6046 = vmatpush2.bf16.msra.mxu1 %v17790_v3 }
 0x444   :  { %6097 = vmatprep.subr.bf16.mxu1 %v17795_v19  ;;  %v5047_v31 = vadd.f32 %v19931_v49, %v3559_v10  ;;  %v17850_v10 = vld [vmem:[#allocation14 + $0x18] sm:$0xff]  }
 0x445   :  { %v19933_v51 = vpop.f32.mrf.mxu0 }
 0x446   :  { %v5005_v52 = vpop.f32.mrf.mxu1 }
 0x447   :  { %v5006_v63 = vadd.f32 %v5005_v52, %v19925_v45  ;;  %v5050_v58 = vpop.f32.mrf.mxu0  ;;  %v17702_v45 = vld [vmem:[#allocation11 + $0xcc] ss:$16 sps:$4 sm:$0xff]  }
 0x448   :  { %v5007_v60 = vpop.f32.mrf.mxu1 }
 0x449   :  { %v5008_v61 = vadd.f32 %v5007_v60, %v19929_v55  ;;  %v5051_v62 = vpop.f32.mrf.mxu0  ;;  %v5176_v35 = vmax.f32 %v5006_v63, 0.0  ;;  %v17700_v55 = vld [vmem:[#allocation11 + $0xc8] ss:$16 sps:$4 sm:$0xff]   ;;  %v5049_v63 = vadd.f32 %v19933_v51, %v3563_v40 }
 0x44a   :  { %v5009_v27 = vpop.f32.mrf.mxu1  ;;  %v17814_v40 = vld [vmem:[#allocation11 + $0x208] ss:$16 sps:$4 sm:$0xff]  }
 0x44b   :  { %v5177_v7 = vmax.f32 %v5008_v61, 0.0  ;;  %v19937_v12 = vpack.c.bf16 %v5176_v35, %v5176_v35  ;;  %v17742_v35 = vld [vmem:[#allocation11 + $0x108] ss:$16 sps:$4 sm:$0xff]  }
 0x44c   :  { %v5010_v4 = vpop.f32.mrf.mxu1 }
 0x44d   :  { %v5181_v25 = vpack.c.bf16 %v5177_v7, %v5177_v7 }
 0x44f   :  { %6006 = vmatprep.mubr.bf16.mxu0 %v5181_v25 }
 0x450   :  { %6007 = vmatmul.mubr.bf16.vlgmr.msra.gmra.mxu0 %v19937_v12 }
 0x451   :  { %6057 = vmatpush1.bf16.msra.mxu0 %v17697_v41  ;;  %6088 = vmatprep.mubr.bf16.mxu0 %v5181_v25 }
 0x452   :  { %6058 = vmatprep.subr.bf16.mxu0 %v17702_v45 }
 0x455   :  { %6059 = vmatpush1.bf16.msra.mxu0 %v17700_v55 }
 0x456   :  { %6060 = vmatprep.subr.bf16.mxu0 %v17705_v22 }
 0x459   :  { %6061 = vmatpush1.bf16.msra.mxu0 %v17703_v0  ;;  %v17793_v0 = vld [vmem:[#allocation11 + $0x2e8] ss:$16 sps:$4 sm:$0xff]  }
 0x45a   :  { %6062 = vmatprep.subr.bf16.mxu0 %v17708_v50 }
 0x45d   :  { %6063 = vmatpush1.bf16.msra.mxu0 %v17706_v30  ;;  %v17798_v30 = vld [vmem:[#allocation11 + $0x2cc] ss:$16 sps:$4 sm:$0xff]  }
 0x45e   :  { %6064 = vmatprep.subr.bf16.mxu0 %v17711_v8  ;;  %v17796_v8 = vld [vmem:[#allocation11 + $0x2c8] ss:$16 sps:$4 sm:$0xff]  }
 0x461   :  { %6065 = vmatpush1.bf16.msra.mxu0 %v17709_v9  ;;  %v17799_v9 = vld [vmem:[#allocation11 + $0x2a8] ss:$16 sps:$4 sm:$0xff]  }
 0x462   :  { %6066 = vmatprep.subr.bf16.mxu0 %v17714_v28  ;;  %v17804_v28 = vld [vmem:[#allocation11 + $0x28c] ss:$16 sps:$4 sm:$0xff]  }
 0x465   :  { %6067 = vmatpush1.bf16.msra.mxu0 %v17712_v13  ;;  %v17841_v13 = vld [vmem:[#allocation14 + $0x78] sm:$0xff]  }
 0x466   :  { %6068 = vmatprep.subr.bf16.mxu0 %v17717_v38  ;;  %v17842_v38 = vld [vmem:[#allocation14 + $0x38] sm:$0xff]  }
 0x469   :  { %6069 = vmatpush1.bf16.msra.mxu0 %v17715_v54  ;;  %v17843_v54 = vld [vmem:[#allocation14 + $0x70] sm:$0xff]  }
 0x46a   :  { %6070 = vmatprep.subr.bf16.mxu0 %v17720_v14  ;;  %v17802_v14 = vld [vmem:[#allocation11 + $0x288] ss:$16 sps:$4 sm:$0xff]  }
 0x46d   :  { %6071 = vmatpush1.bf16.msra.mxu0 %v17718_v48  ;;  %v17844_v48 = vld [vmem:[#allocation14 + $0x30] sm:$0xff]  }
 0x46e   :  { %6072 = vmatprep.subr.bf16.mxu0 %v17723_v15  ;;  %v17807_v15 = vld [vmem:[#allocation11 + $0x26c] ss:$16 sps:$4 sm:$0xff]  }
 0x471   :  { %6073 = vmatpush2.bf16.msra.mxu0 %v17721_v17  ;;  %v17845_v17 = vld [vmem:[#allocation14 + $0x68] sm:$0xff]  }
 0x472   :  { %6074 = vmatprep.subr.bf16.mxu0 %v17726_v16  ;;  %v17805_v16 = vld [vmem:[#allocation11 + $0x268] ss:$16 sps:$4 sm:$0xff]  }
 0x475   :  { %6075 = vmatpush2.bf16.msra.mxu0 %v17724_v18  ;;  %v17846_v18 = vld [vmem:[#allocation14 + $0x28] sm:$0xff]  }
 0x476   :  { %6076 = vmatprep.subr.bf16.mxu0 %v17729_v11  ;;  %v17810_v11 = vld [vmem:[#allocation11 + $0x24c] ss:$16 sps:$4 sm:$0xff]  }
 0x479   :  { %6077 = vmatpush2.bf16.msra.mxu0 %v17727_v6  ;;  %v17847_v6 = vld [vmem:[#allocation14 + $0x60] sm:$0xff]  }
 0x47a   :  { %6078 = vmatprep.subr.bf16.mxu0 %v17732_v59  ;;  %v17808_v59 = vld [vmem:[#allocation11 + $0x248] ss:$16 sps:$4 sm:$0xff]  }
 0x47d   :  { %6079 = vmatpush2.bf16.msra.mxu0 %v17730_v20  ;;  %v17848_v20 = vld [vmem:[#allocation14 + $0x20] sm:$0xff]  }
 0x47e   :  { %6080 = vmatprep.subr.bf16.mxu0 %v17735_v21  ;;  %v17813_v21 = vld [vmem:[#allocation11 + $0x22c] ss:$16 sps:$4 sm:$0xff]  }
 0x481   :  { %6081 = vmatpush2.bf16.msra.mxu0 %v17733_v24  ;;  %v17849_v24 = vld [vmem:[#allocation14 + $0x58] sm:$0xff]  }
 0x482   :  { %6082 = vmatprep.subr.bf16.mxu0 %v17738_v29  ;;  %v17811_v29 = vld [vmem:[#allocation11 + $0x228] ss:$16 sps:$4 sm:$0xff]  }
 0x483   :  { %v5128_v57 = vpop.f32.mrf.mxu0 }
 0x485   :  { %6083 = vmatpush2.bf16.msra.mxu0 %v17736_v32  ;;  %v5130_v5 = vpop.f32.mrf.mxu0  ;;  %v17816_v32 = vld [vmem:[#allocation11 + $0x20c] ss:$16 sps:$4 sm:$0xff]  }
 0x486   :  { %v5087_v52 = vpop.f32.mrf.mxu1  ;;  %6084 = vmatprep.subr.bf16.mxu0 %v17741_v37  ;;  %v17851_v37 = vld [vmem:[#allocation14 + $0x50] sm:$0xff]  }
 0x487   :  { %v5088_v58 = vadd.f32 %v5087_v52, %v5047_v31  ;;  %v5132_v60 = vpop.f32.mrf.mxu0  ;;  %v17819_v31 = vld [vmem:[#allocation11 + $0x3ec] ss:$16 sps:$4 sm:$0xff]   ;;  %v17820_v52 = vld [vmem:[#allocation11 + $0x3c8] ss:$16 sps:$4 sm:$0xff]  }
 0x488   :  { %v5089_v61 = vpop.f32.mrf.mxu1  ;;  %v17826_v60 = vld [vmem:[#allocation11 + $0x388] ss:$16 sps:$4 sm:$0xff]  }
 0x489   :  { %v5090_v62 = vadd.f32 %v5089_v61, %v5049_v63  ;;  %6085 = vmatpush2.bf16.msra.mxu0 %v17739_v33  ;;  %v5133_v1 = vpop.f32.mrf.mxu0  ;;  %v5129_v27 = vadd.f32 %v5128_v57, %v5088_v58  ;;  %v17852_v57 = vld [vmem:[#allocation14 + $0x10] sm:$0xff]   ;;  %v17822_v33 = vld [vmem:[#allocation11 + $0x3cc] ss:$16 sps:$4 sm:$0xff]  }
 0x48a   :  { %v5091_v23 = vpop.f32.mrf.mxu1  ;;  %6086 = vmatprep.subr.bf16.mxu0 %v17744_v56  ;;  %v17825_v56 = vld [vmem:[#allocation11 + $0x3ac] ss:$16 sps:$4 sm:$0xff]   ;;  %v17823_v63 = vld [vmem:[#allocation11 + $0x3a8] ss:$16 sps:$4 sm:$0xff]  }
 0x48b   :  { %v5131_v3 = vadd.f32 %v5130_v5, %v5090_v62  ;;  %v17817_v5 = vld [vmem:[#allocation11 + $0x3e8] ss:$16 sps:$4 sm:$0xff]   ;;  %v17828_v58 = vld [vmem:[#allocation11 + $0x38c] ss:$16 sps:$4 sm:$0xff]  }
 0x48c   :  { %v5092_v49 = vpop.f32.mrf.mxu1  ;;  %v17831_v61 = vld [vmem:[#allocation11 + $0x36c] ss:$16 sps:$4 sm:$0xff]   ;;  %v17829_v62 = vld [vmem:[#allocation11 + $0x368] ss:$16 sps:$4 sm:$0xff]  }
 0x48d   :  { %6087 = vmatpush2.bf16.msra.mxu0 %v17742_v35  ;;  %v17834_v1 = vld [vmem:[#allocation11 + $0x34c] ss:$16 sps:$4 sm:$0xff]   ;;  %v17832_v35 = vld [vmem:[#allocation11 + $0x348] ss:$16 sps:$4 sm:$0xff]  }
 0x48e   :  { %17016 = vmatprep.subr.bf16.mxu0 %v17841_v13  ;;  %v17835_v23 = vld [vmem:[#allocation11 + $0x328] ss:$16 sps:$4 sm:$0xff]   ;;  %v17865_v13 = vld [vmem:[#allocation14 + $0xd8] sm:$0xff]  }
 0x48f   :  { %v17838_v49 = vld [vmem:[#allocation11 + $0x308] ss:$16 sps:$4 sm:$0xff]  }
 0x490   :  { %6089 = vmatmul.mubr.bf16.vlgmr.msra.gmra.mxu0 %v19937_v12  ;;  %v17801_v12 = vld [vmem:[#allocation11 + $0x2ac] ss:$16 sps:$4 sm:$0xff]  }
 0x491   :  { %17017 = vmatpush3.bf16.msra.mxu0 %v17842_v38  ;;  %v17866_v38 = vld [vmem:[#allocation14 + $0x98] sm:$0xff]  }
 0x492   :  { %17018 = vmatprep.subr.bf16.mxu0 %v17843_v54  ;;  %v17867_v54 = vld [vmem:[#allocation14 + $0xd0] sm:$0xff]  }
 0x495   :  { %17019 = vmatpush3.bf16.msra.mxu0 %v17844_v48  ;;  %v5312_v48 = vld [vmem:[#allocation12] sm:$0xf] }
 0x496   :  { %17020 = vmatprep.subr.bf16.mxu0 %v17845_v17  ;;  %v5329_v17 = vrot.slane %v5312_v48, %v19823_v43 }
 0x499   :  { %17021 = vmatpush3.bf16.msra.mxu0 %v17846_v18  ;;  %v17869_v18 = vld [vmem:[#allocation14 + $0xc8] sm:$0xff]  }
 0x49a   :  { %17022 = vmatprep.subr.bf16.mxu0 %v17847_v6  ;;  %v17870_v6 = vld [vmem:[#allocation14 + $0x88] sm:$0xff]  }
 0x49d   :  { %17023 = vmatpush3.bf16.msra.mxu0 %v17848_v20 }
 0x49e   :  { %17024 = vmatprep.subr.bf16.mxu0 %v17849_v24  ;;  %v17871_v24 = vld [vmem:[#allocation14 + $0xc0] sm:$0xff]  }
 0x4a1   :  { %17025 = vmatpush3.bf16.msra.mxu0 %v17850_v10 }
 0x4a2   :  { %17026 = vmatprep.subr.bf16.mxu0 %v17851_v37  ;;  %v5321_v37 = vrot.slane %v5312_v48, %v19795_v36 }
 0x4a5   :  { %17027 = vmatpush3.bf16.msra.mxu0 %v17852_v57 }
 0x4c6   :  { %v5169_v7 = vpop.f32.mrf.mxu1 }
 0x4c7   :  { %v5170_v4 = vadd.f32 %v5169_v7, %v5129_v27  ;;  %v17837_v27 = vld [vmem:[#allocation11 + $0x32c] ss:$16 sps:$4 sm:$0xff]  }
 0x4c8   :  { %v5171_v25 = vpop.f32.mrf.mxu1 }
 0x4c9   :  { %v5172_v41 = vadd.f32 %v5171_v25, %v5131_v3  ;;  %v5178_v51 = vmax.f32 %v5170_v4, 0.0  ;;  %v17840_v3 = vld [vmem:[#allocation11 + $0x30c] ss:$16 sps:$4 sm:$0xff]  }
 0x4ca   :  { %v5173_v19 = vpop.f32.mrf.mxu1  ;;  %v17853_v4 = vld [vmem:[#allocation14 + $0x48] sm:$0xff]  }
 0x4cb   :  { %v5179_v45 = vmax.f32 %v5172_v41, 0.0  ;;  %v19947_v50 = vpack.c.bf16 %v5178_v51, %v5178_v51  ;;  %v17854_v41 = vld [vmem:[#allocation14 + $0x8] sm:$0xff]   ;;  %17028 = vmatprep.subr.bf16.mxu0 %v17853_v4  ;;  %v17855_v19 = vld [vmem:[#allocation14 + $0x40] sm:$0xff]  }
 0x4cc   :  { %v5174_v55 = vpop.f32.mrf.mxu1  ;;  %17029 = vmatpush3.bf16.msra.mxu0 %v17854_v41 }
 0x4cd   :  { %v5183_v22 = vpack.c.bf16 %v5179_v45, %v5179_v45  ;;  %v17856_v55 = vld [vmem:[#allocation14] sm:$0xff]   ;;  %17030 = vmatprep.subr.bf16.mxu0 %v17855_v19 }
 0x4ce   :  { %v17875_v19 = vld [vmem:[#allocation15 + $0xe4] ss:$16 sps:$4 sm:$0xff]  }
 0x4cf   :  { %6047 = vmatprep.mubr.bf16.mxu1 %v5183_v22 }
 0x4d0   :  { %6048 = vmatmul.mubr.bf16.vlgmr.msra.gmra.mxu1 %v19947_v50  ;;  %17031 = vmatpush3.bf16.msra.mxu0 %v17856_v55  ;;  %v17878_v55 = vld [vmem:[#allocation15 + $0xec] ss:$16 sps:$4 sm:$0xff]  }
 0x4d1   :  { %6098 = vmatpush1.bf16.msra.mxu1 %v17793_v0  ;;  %6129 = vmatprep.mubr.bf16.mxu1 %v5183_v22  ;;  %v17857_v22 = vld [vmem:[#allocation14 + $0xf8] sm:$0xff]  }
 0x4d2   :  { %6099 = vmatprep.subr.bf16.mxu1 %v17798_v30  ;;  %v17858_v0 = vld [vmem:[#allocation14 + $0xb8] sm:$0xff]   ;;  %v17859_v30 = vld [vmem:[#allocation14 + $0xf0] sm:$0xff]   ;;  %6676 = vmatprep.subr.bf16.mxu0 %v17875_v19 }
 0x4d3   :  { %v17925_v19 = vld [vmem:[#allocation17 + $0x70] sm:$0xff]  }
 0x4d5   :  { %6100 = vmatpush1.bf16.msra.mxu1 %v17796_v8  ;;  %v17860_v8 = vld [vmem:[#allocation14 + $0xb0] sm:$0xff]  }
 0x4d6   :  { %6101 = vmatprep.subr.bf16.mxu1 %v17801_v12  ;;  %v17862_v12 = vld [vmem:[#allocation14 + $0xa8] sm:$0xff]  }
 0x4d9   :  { %6102 = vmatpush1.bf16.msra.mxu1 %v17799_v9  ;;  %v17863_v9 = vld [vmem:[#allocation14 + $0xe0] sm:$0xff]  }
 0x4da   :  { %6103 = vmatprep.subr.bf16.mxu1 %v17804_v28  ;;  %v17864_v28 = vld [vmem:[#allocation14 + $0xa0] sm:$0xff]  }
 0x4dd   :  { %6104 = vmatpush1.bf16.msra.mxu1 %v17802_v14  ;;  %v17868_v14 = vld [vmem:[#allocation14 + $0x90] sm:$0xff]  }
 0x4de   :  { %6105 = vmatprep.subr.bf16.mxu1 %v17807_v15  ;;  %v5325_v15 = vrot.slane %v5312_v48, %v19843_v2 }
 0x4e1   :  { %6106 = vmatpush1.bf16.msra.mxu1 %v17805_v16 }
 0x4e2   :  { %6107 = vmatprep.subr.bf16.mxu1 %v17810_v11 }
 0x4e5   :  { %6108 = vmatpush1.bf16.msra.mxu1 %v17808_v59 }
 0x4e6   :  { %6109 = vmatprep.subr.bf16.mxu1 %v17813_v21 }
 0x4e9   :  { %6110 = vmatpush1.bf16.msra.mxu1 %v17811_v29  ;;  %v17872_v29 = vld [vmem:[#allocation14 + $0x80] sm:$0xff]  }
 0x4ea   :  { %6111 = vmatprep.subr.bf16.mxu1 %v17816_v32  ;;  %v5317_v32 = vrot.slane %v5312_v48, %v19792_v26  ;;  %v17899_v48 = vld [vmem:[#allocation15 + $0x64] ss:$16 sps:$4 sm:$0xff]  }
 0x4ed   :  { %6112 = vmatpush1.bf16.msra.mxu1 %v17814_v40 }
 0x4ee   :  { %6113 = vmatprep.subr.bf16.mxu1 %v17819_v31 }
 0x4f1   :  { %6114 = vmatpush2.bf16.msra.mxu1 %v17817_v5 }
 0x4f2   :  { %6115 = vmatprep.subr.bf16.mxu1 %v17822_v33 }
 0x4f5   :  { %6116 = vmatpush2.bf16.msra.mxu1 %v17820_v52 }
 0x4f6   :  { %6117 = vmatprep.subr.bf16.mxu1 %v17825_v56 }
 0x4f9   :  { %6118 = vmatpush2.bf16.msra.mxu1 %v17823_v63 }
 0x4fa   :  { %6119 = vmatprep.subr.bf16.mxu1 %v17828_v58 }
 0x4fd   :  { %6120 = vmatpush2.bf16.msra.mxu1 %v17826_v60 }
 0x4fe   :  { %6121 = vmatprep.subr.bf16.mxu1 %v17831_v61 }
 0x501   :  { %6122 = vmatpush2.bf16.msra.mxu1 %v17829_v62 }
 0x502   :  { %6123 = vmatprep.subr.bf16.mxu1 %v17834_v1 }
 0x505   :  { %6124 = vmatpush2.bf16.msra.mxu1 %v17832_v35 }
 0x506   :  { %6125 = vmatprep.subr.bf16.mxu1 %v17837_v27 }
 0x509   :  { %6126 = vmatpush2.bf16.msra.mxu1 %v17835_v23 }
 0x50a   :  { %6127 = vmatprep.subr.bf16.mxu1 %v17840_v3 }
 0x50d   :  { %6128 = vmatpush2.bf16.msra.mxu1 %v17838_v49 }
 0x50e   :  { %17038 = vmatprep.subr.bf16.mxu1 %v17857_v22  ;;  %v17881_v22 = vld [vmem:[#allocation15 + $0xc4] ss:$16 sps:$4 sm:$0xff]  }
 0x510   :  { %6130 = vmatmul.mubr.bf16.vlgmr.msra.gmra.mxu1 %v19947_v50  ;;  %v6008_v7 = vpop.f32.mrf.mxu0  ;;  %v17861_v50 = vld [vmem:[#allocation14 + $0xe8] sm:$0xff]  }
 0x511   :  { %17039 = vmatpush3.bf16.msra.mxu1 %v17858_v0  ;;  %v6009_v40 = vadd.f32 %v6008_v7, %v5317_v32  ;;  %v17884_v0 = vld [vmem:[#allocation15 + $0xcc] ss:$16 sps:$4 sm:$0xff]  }
 0x512   :  { %v6010_v25 = vpop.f32.mrf.mxu0  ;;  %17040 = vmatprep.subr.bf16.mxu1 %v17859_v30  ;;  %v17879_v30 = vld [vmem:[#allocation15 + $0xc0] ss:$16 sps:$4 sm:$0xff]   ;;  %v17920_v32 = vld [vmem:[#allocation15 + $0xc] ss:$16 sps:$4 sm:$0xff]  }
 0x513   :  { %v6011_v31 = vadd.f32 %v6010_v25, %v5321_v37  ;;  %v17915_v37 = vld [vmem:[#allocation15] ss:$16 sps:$4 sm:$0xff]  }
 0x514   :  { %v6012_v51 = vpop.f32.mrf.mxu0 }
 0x515   :  { %17041 = vmatpush3.bf16.msra.mxu1 %v17860_v8  ;;  %v17873_v51 = vld [vmem:[#allocation15 + $0xe0] ss:$16 sps:$4 sm:$0xff]   ;;  %v17882_v8 = vld [vmem:[#allocation15 + $0xc8] ss:$16 sps:$4 sm:$0xff]  }
 0x516   :  { %v6013_v45 = vpop.f32.mrf.mxu0  ;;  %17042 = vmatprep.subr.bf16.mxu1 %v17861_v50  ;;  %v17887_v50 = vld [vmem:[#allocation15 + $0xa4] ss:$16 sps:$4 sm:$0xff]  }
 0x517   :  { %v17876_v45 = vld [vmem:[#allocation15 + $0xe8] ss:$16 sps:$4 sm:$0xff]  }
 0x519   :  { %17043 = vmatpush3.bf16.msra.mxu1 %v17862_v12  ;;  %v17890_v12 = vld [vmem:[#allocation15 + $0xac] ss:$16 sps:$4 sm:$0xff]  }
 0x51a   :  { %17044 = vmatprep.subr.bf16.mxu1 %v17863_v9  ;;  %v17885_v9 = vld [vmem:[#allocation15 + $0xa0] ss:$16 sps:$4 sm:$0xff]  }
 0x51d   :  { %17045 = vmatpush3.bf16.msra.mxu1 %v17864_v28  ;;  %v17888_v28 = vld [vmem:[#allocation15 + $0xa8] ss:$16 sps:$4 sm:$0xff]  }
 0x51e   :  { %17046 = vmatprep.subr.bf16.mxu1 %v17865_v13  ;;  %v17893_v13 = vld [vmem:[#allocation15 + $0x84] ss:$16 sps:$4 sm:$0xff]  }
 0x521   :  { %17047 = vmatpush3.bf16.msra.mxu1 %v17866_v38  ;;  %v17896_v38 = vld [vmem:[#allocation15 + $0x8c] ss:$16 sps:$4 sm:$0xff]  }
 0x522   :  { %17048 = vmatprep.subr.bf16.mxu1 %v17867_v54  ;;  %v17891_v54 = vld [vmem:[#allocation15 + $0x80] ss:$16 sps:$4 sm:$0xff]  }
 0x525   :  { %17049 = vmatpush3.bf16.msra.mxu1 %v17868_v14  ;;  %v17894_v14 = vld [vmem:[#allocation15 + $0x88] ss:$16 sps:$4 sm:$0xff]  }
 0x526   :  { %17050 = vmatprep.subr.bf16.mxu1 %v17869_v18  ;;  %v17905_v18 = vld [vmem:[#allocation15 + $0x44] ss:$16 sps:$4 sm:$0xff]  }
 0x529   :  { %17051 = vmatpush3.bf16.msra.mxu1 %v17870_v6  ;;  %v17903_v6 = vld [vmem:[#allocation15 + $0x40] ss:$16 sps:$4 sm:$0xff]  }
 0x52a   :  { %17052 = vmatprep.subr.bf16.mxu1 %v17871_v24  ;;  %v17909_v24 = vld [vmem:[#allocation15 + $0x20] ss:$16 sps:$4 sm:$0xff]  }
 0x52d   :  { %17053 = vmatpush3.bf16.msra.mxu1 %v17872_v29  ;;  %v17912_v29 = vld [vmem:[#allocation15 + $0x28] ss:$16 sps:$4 sm:$0xff]  }
 0x52e   :  { %6717 = vmatprep.subr.bf16.mxu1 %v17878_v55  ;;  %v17927_v55 = vld [vmem:[#allocation17 + $0x30] sm:$0xff]  }
 0x550   :  { %v6090_v16 = vpop.f32.mrf.mxu0 }
 0x551   :  { %v6091_v11 = vadd.f32 %v6090_v16, %v5325_v15  ;;  %v17902_v15 = vld [vmem:[#allocation15 + $0x6c] ss:$16 sps:$4 sm:$0xff]   ;;  %v17900_v16 = vld [vmem:[#allocation15 + $0x68] ss:$16 sps:$4 sm:$0xff]  }
 0x552   :  { %v6092_v59 = vpop.f32.mrf.mxu0 }
 0x553   :  { %v6093_v20 = vadd.f32 %v6092_v59, %v5329_v17  ;;  %v17897_v17 = vld [vmem:[#allocation15 + $0x60] ss:$16 sps:$4 sm:$0xff]   ;;  %v17906_v59 = vld [vmem:[#allocation15 + $0x48] ss:$16 sps:$4 sm:$0xff]  }
 0x554   :  { %v6094_v21 = vpop.f32.mrf.mxu0 }
 0x555   :  { %v17914_v21 = vld [vmem:[#allocation15 + $0x2c] ss:$16 sps:$4 sm:$0xff]  }
 0x556   :  { %v6095_v10 = vpop.f32.mrf.mxu0 }
 0x557   :  { %v17917_v10 = vld [vmem:[#allocation15 + $0x4] ss:$16 sps:$4 sm:$0xff]  }
 0x590   :  { %v6049_v57 = vpop.f32.mrf.mxu1 }
 0x591   :  { %v19955_v5 = vadd.f32 %v6049_v57, %v6009_v40  ;;  %v17918_v40 = vld [vmem:[#allocation15 + $0x8] ss:$16 sps:$4 sm:$0xff]   ;;  %v19473_v57 = vmov 0  }
 0x592   :  { %v6051_v33 = vpop.f32.mrf.mxu1 }
 0x593   :  { %v19957_v52 = vadd.f32 %v6051_v33, %v6011_v31  ;;  %v6138_v56 = vmax.f32 %v19955_v5, 0.0  ;;  %v17921_v31 = vld [vmem:[#allocation17 + $0x78] sm:$0xff]  }
 0x594   :  { %v6053_v63 = vpop.f32.mrf.mxu1  ;;  %v17922_v33 = vld [vmem:[#allocation17 + $0xf8] sm:$0xff]  }
 0x595   :  { %v6139_v58 = vmax.f32 %v19957_v52, 0.0  ;;  %v6142_v62 = vpack.c.bf16 %v6138_v56, %v6138_v56 }
 0x596   :  { %v6054_v60 = vpop.f32.mrf.mxu1 }
 0x597   :  { %v6143_v61 = vpack.c.bf16 %v6139_v58, %v6139_v58 }
 0x599   :  { %6434 = vmatprep.mubr.bf16.mxu0 %v6143_v61 }
 0x59a   :  { %6435 = vmatmul.mubr.bf16.vlgmr.msra.gmra.mxu0 %v6142_v62 }
 0x59b   :  { %6677 = vmatpush1.bf16.msra.mxu0 %v17873_v51  ;;  %6708 = vmatprep.mubr.bf16.mxu0 %v19473_v57 }
 0x59c   :  { %6678 = vmatprep.subr.bf16.mxu0 %v17881_v22  ;;  %v17928_v22 = vld [vmem:[#allocation17 + $0xb0] sm:$0xff]  }
 0x59f   :  { %6679 = vmatpush1.bf16.msra.mxu0 %v17879_v30  ;;  %v17930_v30 = vld [vmem:[#allocation17 + $0xe8] sm:$0xff]  }
 0x5a0   :  { %6680 = vmatprep.subr.bf16.mxu0 %v17887_v50  ;;  %v17932_v50 = vld [vmem:[#allocation17 + $0xa8] sm:$0xff]  }
 0x5a3   :  { %6681 = vmatpush1.bf16.msra.mxu0 %v17885_v9  ;;  %v17934_v9 = vld [vmem:[#allocation17 + $0xe0] sm:$0xff]  }
 0x5a4   :  { %6682 = vmatprep.subr.bf16.mxu0 %v17893_v13  ;;  %v17936_v13 = vld [vmem:[#allocation17 + $0xa0] sm:$0xff]  }
 0x5a7   :  { %6683 = vmatpush1.bf16.msra.mxu0 %v17891_v54  ;;  %v17938_v54 = vld [vmem:[#allocation17 + $0xd8] sm:$0xff]  }
 0x5a8   :  { %6684 = vmatprep.subr.bf16.mxu0 %v17899_v48  ;;  %v17940_v48 = vld [vmem:[#allocation17 + $0x98] sm:$0xff]  }
 0x5ab   :  { %6685 = vmatpush1.bf16.msra.mxu0 %v17897_v17  ;;  %v17942_v17 = vld [vmem:[#allocation17 + $0xd0] sm:$0xff]  }
 0x5ac   :  { %6686 = vmatprep.subr.bf16.mxu0 %v17905_v18  ;;  %v17944_v18 = vld [vmem:[#allocation17 + $0x90] sm:$0xff]  }
 0x5af   :  { %6687 = vmatpush1.bf16.msra.mxu0 %v17903_v6  ;;  %v17946_v6 = vld [vmem:[#allocation17 + $0xc8] sm:$0xff]  }
 0x5d0   :  { %v6131_v1 = vpop.f32.mrf.mxu1 }
 0x5d1   :  { %v19961_v35 = vadd.f32 %v6131_v1, %v6091_v11  ;;  %v17908_v11 = vld [vmem:[#allocation15 + $0x4c] ss:$16 sps:$4 sm:$0xff]  }
 0x5d2   :  { %v6133_v27 = vpop.f32.mrf.mxu1 }
 0x5d3   :  { %v19963_v23 = vadd.f32 %v6133_v27, %v6093_v20  ;;  %v6140_v3 = vmax.f32 %v19961_v35, 0.0  ;;  %v17911_v20 = vld [vmem:[#allocation15 + $0x24] ss:$16 sps:$4 sm:$0xff]  }
 0x5d4   :  { %v6135_v49 = vpop.f32.mrf.mxu1  ;;  %6688 = vmatprep.subr.bf16.mxu0 %v17911_v20  ;;  %v17948_v20 = vld [vmem:[#allocation17 + $0x88] sm:$0xff]  }
 0x5d5   :  { %v6141_v7 = vmax.f32 %v19963_v23, 0.0  ;;  %v6144_v41 = vpack.c.bf16 %v6140_v3, %v6140_v3  ;;  %6689 = vmatpush1.bf16.msra.mxu0 %v17909_v24  ;;  %v17950_v24 = vld [vmem:[#allocation17 + $0xc0] sm:$0xff]  }
 0x5d6   :  { %v6136_v4 = vpop.f32.mrf.mxu1  ;;  %6690 = vmatprep.subr.bf16.mxu0 %v17917_v10  ;;  %v17952_v10 = vld [vmem:[#allocation17 + $0x80] sm:$0xff]  }
 0x5d7   :  { %v6145_v25 = vpack.c.bf16 %v6141_v7, %v6141_v7 }
 0x5d9   :  { %6474 = vmatprep.mubr.bf16.mxu1 %v6145_v25  ;;  %6691 = vmatpush1.bf16.msra.mxu0 %v17915_v37  ;;  %v17923_v25 = vld [vmem:[#allocation17 + $0x38] sm:$0xff]  }
 0x5da   :  { %6475 = vmatmul.mubr.bf16.vlgmr.msra.gmra.mxu1 %v6144_v41  ;;  %17060 = vmatprep.subr.bf16.mxu0 %v17921_v31  ;;  %v17924_v41 = vld [vmem:[#allocation17 + $0xb8] sm:$0xff]  }
 0x5db   :  { %6718 = vmatpush1.bf16.msra.mxu1 %v17876_v45  ;;  %6749 = vmatprep.mubr.bf16.mxu1 %v19473_v57  ;;  %v17926_v45 = vld [vmem:[#allocation17 + $0xf0] sm:$0xff]   ;;  %v17958_v37 = vld [vmem:[#allocation18 + $0xec] ss:$16 sps:$4 sm:$0xff]  }
 0x5dc   :  { %6719 = vmatprep.subr.bf16.mxu1 %v17884_v0  ;;  %v17929_v0 = vld [vmem:[#allocation17 + $0x68] sm:$0xff]  }
 0x5df   :  { %6720 = vmatpush1.bf16.msra.mxu1 %v17882_v8  ;;  %v17931_v8 = vld [vmem:[#allocation17 + $0x28] sm:$0xff]  }
 0x5e0   :  { %6721 = vmatprep.subr.bf16.mxu1 %v17890_v12  ;;  %v17933_v12 = vld [vmem:[#allocation17 + $0x60] sm:$0xff]  }
 0x5e3   :  { %6722 = vmatpush1.bf16.msra.mxu1 %v17888_v28  ;;  %v17935_v28 = vld [vmem:[#allocation17 + $0x20] sm:$0xff]  }
 0x5e4   :  { %6723 = vmatprep.subr.bf16.mxu1 %v17896_v38  ;;  %v17937_v38 = vld [vmem:[#allocation17 + $0x58] sm:$0xff]  }
 0x5e7   :  { %6724 = vmatpush1.bf16.msra.mxu1 %v17894_v14  ;;  %v17939_v14 = vld [vmem:[#allocation17 + $0x18] sm:$0xff]  }
 0x5e8   :  { %6725 = vmatprep.subr.bf16.mxu1 %v17902_v15  ;;  %v17941_v15 = vld [vmem:[#allocation17 + $0x50] sm:$0xff]  }
 0x5eb   :  { %6726 = vmatpush1.bf16.msra.mxu1 %v17900_v16  ;;  %v17943_v16 = vld [vmem:[#allocation17 + $0x10] sm:$0xff]  }
 0x5ec   :  { %6727 = vmatprep.subr.bf16.mxu1 %v17908_v11  ;;  %v17945_v11 = vld [vmem:[#allocation17 + $0x48] sm:$0xff]  }
 0x5ef   :  { %6728 = vmatpush1.bf16.msra.mxu1 %v17906_v59  ;;  %v17947_v59 = vld [vmem:[#allocation17 + $0x8] sm:$0xff]  }
 0x5f0   :  { %6729 = vmatprep.subr.bf16.mxu1 %v17914_v21  ;;  %v17949_v21 = vld [vmem:[#allocation17 + $0x40] sm:$0xff]  }
 0x5f3   :  { %6730 = vmatpush1.bf16.msra.mxu1 %v17912_v29  ;;  %v17951_v29 = vld [vmem:[#allocation17] sm:$0xff]  }
 0x5f4   :  { %6731 = vmatprep.subr.bf16.mxu1 %v17920_v32  ;;  %v17955_v32 = vld [vmem:[#allocation18 + $0xe4] ss:$16 sps:$4 sm:$0xff]  }
 0x5f7   :  { %6732 = vmatpush1.bf16.msra.mxu1 %v17918_v40 }
 0x5f8   :  { %17082 = vmatprep.subr.bf16.mxu1 %v17922_v33 }
 0x65a   :  { %v17032_v56 = vpop.f32.mrf.mxu0 }
 0x65c   :  { %v17033_v63 = vpop.f32.mrf.mxu0 }
 0x65d   :  { %v17034_v58 = vadd.f32 %v17033_v63, %v17032_v56 }
 0x65e   :  { %v17035_v60 = vpop.f32.mrf.mxu0 }
 0x660   :  { %v17036_v61 = vpop.f32.mrf.mxu0 }
 0x69a   :  { %v17054_v62 = vpop.f32.mrf.mxu1 }
 0x69c   :  { %v17055_v1 = vpop.f32.mrf.mxu1 }
 0x69d   :  { %v17056_v27 = vadd.f32 %v17055_v1, %v17054_v62 }
 0x69e   :  { %v17057_v3 = vpop.f32.mrf.mxu1 }
 0x69f   :  { %v6477_v49 = vadd.f32 %v17056_v27, %v17034_v58 }
 0x6a0   :  { %v17058_v7 = vpop.f32.mrf.mxu1 }
 0x6a1   :  { %v6482_v4 = vmax.f32 %v6477_v49, 0.0 }
 0x6a3   :  { %v6483_v51 = vpack.c.bf16 %v6482_v4, %v6482_v4 }
 0x6a5   :  { %6709 = vmatmul.mubr.bf16.vlgmr.msra.gmra.mxu0 %v6483_v51  ;;  %6750 = vmatmul.mubr.bf16.vlgmr.msra.gmra.mxu1 %v6483_v51 }
 0x6a6   :  { %17061 = vmatpush3.bf16.msra.mxu0 %v17923_v25  ;;  %17083 = vmatpush3.bf16.msra.mxu1 %v17924_v41  ;;  %v17953_v41 = vld [vmem:[#allocation18 + $0xe0] ss:$16 sps:$4 sm:$0xff]  }
 0x6a7   :  { %17062 = vmatprep.subr.bf16.mxu0 %v17925_v19  ;;  %17084 = vmatprep.subr.bf16.mxu1 %v17926_v45  ;;  %v17964_v45 = vld [vmem:[#allocation18 + $0xcc] ss:$16 sps:$4 sm:$0xff]  }
 0x6aa   :  { %17063 = vmatpush3.bf16.msra.mxu0 %v17927_v55  ;;  %17085 = vmatpush3.bf16.msra.mxu1 %v17928_v22  ;;  %v17959_v55 = vld [vmem:[#allocation18 + $0xc0] ss:$16 sps:$4 sm:$0xff]   ;;  %v17962_v22 = vld [vmem:[#allocation18 + $0xc8] ss:$16 sps:$4 sm:$0xff]  }
 0x6ab   :  { %17064 = vmatprep.subr.bf16.mxu0 %v17929_v0  ;;  %17086 = vmatprep.subr.bf16.mxu1 %v17930_v30  ;;  %v17967_v0 = vld [vmem:[#allocation18 + $0xa4] ss:$16 sps:$4 sm:$0xff]   ;;  %v17970_v30 = vld [vmem:[#allocation18 + $0xac] ss:$16 sps:$4 sm:$0xff]  }
 0x6ae   :  { %17065 = vmatpush3.bf16.msra.mxu0 %v17931_v8  ;;  %17087 = vmatpush3.bf16.msra.mxu1 %v17932_v50  ;;  %v17965_v8 = vld [vmem:[#allocation18 + $0xa0] ss:$16 sps:$4 sm:$0xff]   ;;  %v17968_v50 = vld [vmem:[#allocation18 + $0xa8] ss:$16 sps:$4 sm:$0xff]  }
 0x6af   :  { %17066 = vmatprep.subr.bf16.mxu0 %v17933_v12  ;;  %17088 = vmatprep.subr.bf16.mxu1 %v17934_v9  ;;  %v17973_v12 = vld [vmem:[#allocation18 + $0x84] ss:$16 sps:$4 sm:$0xff]   ;;  %v17976_v9 = vld [vmem:[#allocation18 + $0x8c] ss:$16 sps:$4 sm:$0xff]  }
 0x6b2   :  { %17067 = vmatpush3.bf16.msra.mxu0 %v17935_v28  ;;  %17089 = vmatpush3.bf16.msra.mxu1 %v17936_v13  ;;  %v17971_v28 = vld [vmem:[#allocation18 + $0x80] ss:$16 sps:$4 sm:$0xff]   ;;  %v17974_v13 = vld [vmem:[#allocation18 + $0x88] ss:$16 sps:$4 sm:$0xff]  }
 0x6b3   :  { %17068 = vmatprep.subr.bf16.mxu0 %v17937_v38  ;;  %17090 = vmatprep.subr.bf16.mxu1 %v17938_v54  ;;  %v17979_v38 = vld [vmem:[#allocation18 + $0x64] ss:$16 sps:$4 sm:$0xff]   ;;  %v17982_v54 = vld [vmem:[#allocation18 + $0x6c] ss:$16 sps:$4 sm:$0xff]  }
 0x6b6   :  { %17069 = vmatpush3.bf16.msra.mxu0 %v17939_v14  ;;  %17091 = vmatpush3.bf16.msra.mxu1 %v17940_v48  ;;  %v17977_v14 = vld [vmem:[#allocation18 + $0x60] ss:$16 sps:$4 sm:$0xff]   ;;  %v17980_v48 = vld [vmem:[#allocation18 + $0x68] ss:$16 sps:$4 sm:$0xff]  }
 0x6b7   :  { %17070 = vmatprep.subr.bf16.mxu0 %v17941_v15  ;;  %17092 = vmatprep.subr.bf16.mxu1 %v17942_v17  ;;  %v17985_v15 = vld [vmem:[#allocation18 + $0x44] ss:$16 sps:$4 sm:$0xff]   ;;  %v17988_v17 = vld [vmem:[#allocation18 + $0x4c] ss:$16 sps:$4 sm:$0xff]  }
 0x6ba   :  { %17071 = vmatpush3.bf16.msra.mxu0 %v17943_v16  ;;  %17093 = vmatpush3.bf16.msra.mxu1 %v17944_v18  ;;  %v17983_v16 = vld [vmem:[#allocation18 + $0x40] ss:$16 sps:$4 sm:$0xff]   ;;  %v17986_v18 = vld [vmem:[#allocation18 + $0x48] ss:$16 sps:$4 sm:$0xff]  }
 0x6bb   :  { %17072 = vmatprep.subr.bf16.mxu0 %v17945_v11  ;;  %17094 = vmatprep.subr.bf16.mxu1 %v17946_v6  ;;  %v17991_v11 = vld [vmem:[#allocation18 + $0x24] ss:$16 sps:$4 sm:$0xff]   ;;  %v17994_v6 = vld [vmem:[#allocation18 + $0x2c] ss:$16 sps:$4 sm:$0xff]  }
 0x6be   :  { %17073 = vmatpush3.bf16.msra.mxu0 %v17947_v59  ;;  %17095 = vmatpush3.bf16.msra.mxu1 %v17948_v20  ;;  %v17989_v59 = vld [vmem:[#allocation18 + $0x20] ss:$16 sps:$4 sm:$0xff]   ;;  %v17992_v20 = vld [vmem:[#allocation18 + $0x28] ss:$16 sps:$4 sm:$0xff]  }
 0x6bf   :  { %17074 = vmatprep.subr.bf16.mxu0 %v17949_v21  ;;  %17096 = vmatprep.subr.bf16.mxu1 %v17950_v24  ;;  %v17997_v21 = vld [vmem:[#allocation18 + $0x4] ss:$16 sps:$4 sm:$0xff]   ;;  %v18000_v24 = vld [vmem:[#allocation18 + $0xc] ss:$16 sps:$4 sm:$0xff]  }
 0x6c2   :  { %17075 = vmatpush3.bf16.msra.mxu0 %v17951_v29  ;;  %17097 = vmatpush3.bf16.msra.mxu1 %v17952_v10  ;;  %v17995_v29 = vld [vmem:[#allocation18] ss:$16 sps:$4 sm:$0xff]   ;;  %v17998_v10 = vld [vmem:[#allocation18 + $0x8] ss:$16 sps:$4 sm:$0xff]  }
 0x6c3   :  { %7300 = vmatprep.subr.bf16.mxu0 %v17955_v32  ;;  %7341 = vmatprep.subr.bf16.mxu1 %v17958_v37  ;;  %v18003_v32 = vld [vmem:[#allocation20 + $0x74] ss:$8 sps:$4 sm:$0xff]  }
 0x6c4   :  { %v18006_v37 = vld [vmem:[#allocation20 + $0x174] ss:$8 sps:$4 sm:$0xff]  }
 0x765   :  { %v6710_v40 = vpop.f32.mrf.mxu0  ;;  %v6751_v31 = vpop.f32.mrf.mxu1 }
 0x766   :  { %v19970_v33 = vadd.f32 %v6710_v40, %v19955_v5  ;;  %v19973_v56 = vadd.f32 %v6751_v31, %v19961_v35 }
 0x767   :  { %v6712_v63 = vpop.f32.mrf.mxu0  ;;  %v6753_v58 = vpop.f32.mrf.mxu1 }
 0x768   :  { %v19976_v60 = vadd.f32 %v6712_v63, %v19957_v52  ;;  %v19979_v61 = vadd.f32 %v6753_v58, %v19963_v23  ;;  %v6762_v62 = vmax.f32 %v19970_v33, 0.0  ;;  %v6764_v1 = vmax.f32 %v19973_v56, 0.0  ;;  %v17956_v52 = vld [vmem:[#allocation18 + $0xe8] ss:$16 sps:$4 sm:$0xff]   ;;  %v17961_v23 = vld [vmem:[#allocation18 + $0xc4] ss:$16 sps:$4 sm:$0xff]  }
 0x769   :  { %v6714_v27 = vpop.f32.mrf.mxu0  ;;  %v6755_v3 = vpop.f32.mrf.mxu1 }
 0x76a   :  { %v6763_v5 = vmax.f32 %v19976_v60, 0.0  ;;  %v6765_v49 = vmax.f32 %v19979_v61, 0.0  ;;  %v6766_v51 = vpack.c.bf16 %v6762_v62, %v6762_v62  ;;  %v6768_v19 = vpack.c.bf16 %v6764_v1, %v6764_v1 }
 0x76b   :  { %v6715_v35 = vpop.f32.mrf.mxu0  ;;  %v6756_v7 = vpop.f32.mrf.mxu1 }
 0x76c   :  { %v6767_v4 = vpack.c.bf16 %v6763_v5, %v6763_v5  ;;  %v6769_v25 = vpack.c.bf16 %v6765_v49, %v6765_v49 }
 0x76e   :  { %7058 = vmatprep.mubr.bf16.mxu0 %v6767_v4  ;;  %7098 = vmatprep.mubr.bf16.mxu1 %v6769_v25  ;;  %v18001_v4 = vld [vmem:[#allocation20 + $0x70] ss:$8 sps:$4 sm:$0xff]  }
 0x76f   :  { %7059 = vmatmul.mubr.bf16.vlgmr.msra.gmra.mxu0 %v6766_v51  ;;  %7099 = vmatmul.mubr.bf16.vlgmr.msra.gmra.mxu1 %v6768_v19  ;;  %v18004_v25 = vld [vmem:[#allocation20 + $0x170] ss:$8 sps:$4 sm:$0xff]   ;;  %v18012_v51 = vld [vmem:[#allocation20 + $0x164] ss:$8 sps:$4 sm:$0xff]   ;;  %v18007_v19 = vld [vmem:[#allocation20 + $0x60] ss:$8 sps:$4 sm:$0xff]  }
 0x770   :  { %7301 = vmatpush1.bf16.msra.mxu0 %v17953_v41  ;;  %7342 = vmatpush1.bf16.msra.mxu1 %v17956_v52  ;;  %v18009_v52 = vld [vmem:[#allocation20 + $0x64] ss:$8 sps:$4 sm:$0xff]  }
 0x771   :  { %7302 = vmatprep.subr.bf16.mxu0 %v17961_v23  ;;  %7343 = vmatprep.subr.bf16.mxu1 %v17964_v45  ;;  %v18010_v23 = vld [vmem:[#allocation20 + $0x160] ss:$8 sps:$4 sm:$0xff]   ;;  %v18015_v45 = vld [vmem:[#allocation20 + $0x54] ss:$8 sps:$4 sm:$0xff]  }
 0x772   :  { %7332 = vmatprep.mubr.bf16.mxu0 %v19473_v57  ;;  %7373 = vmatprep.mubr.bf16.mxu1 %v19473_v57 }
 0x774   :  { %7303 = vmatpush1.bf16.msra.mxu0 %v17959_v55  ;;  %7344 = vmatpush1.bf16.msra.mxu1 %v17962_v22  ;;  %v18018_v55 = vld [vmem:[#allocation20 + $0x154] ss:$8 sps:$4 sm:$0xff]   ;;  %v18013_v22 = vld [vmem:[#allocation20 + $0x50] ss:$8 sps:$4 sm:$0xff]  }
 0x775   :  { %7304 = vmatprep.subr.bf16.mxu0 %v17967_v0  ;;  %7345 = vmatprep.subr.bf16.mxu1 %v17970_v30  ;;  %v18016_v0 = vld [vmem:[#allocation20 + $0x150] ss:$8 sps:$4 sm:$0xff]   ;;  %v18021_v30 = vld [vmem:[#allocation20 + $0x44] ss:$8 sps:$4 sm:$0xff]  }
 0x778   :  { %7305 = vmatpush1.bf16.msra.mxu0 %v17965_v8  ;;  %7346 = vmatpush1.bf16.msra.mxu1 %v17968_v50  ;;  %v18024_v8 = vld [vmem:[#allocation20 + $0x144] ss:$8 sps:$4 sm:$0xff]   ;;  %v18019_v50 = vld [vmem:[#allocation20 + $0x40] ss:$8 sps:$4 sm:$0xff]  }
 0x779   :  { %7306 = vmatprep.subr.bf16.mxu0 %v17973_v12  ;;  %7347 = vmatprep.subr.bf16.mxu1 %v17976_v9  ;;  %v18022_v12 = vld [vmem:[#allocation20 + $0x140] ss:$8 sps:$4 sm:$0xff]   ;;  %v18027_v9 = vld [vmem:[#allocation20 + $0x34] ss:$8 sps:$4 sm:$0xff]  }
 0x77c   :  { %7307 = vmatpush1.bf16.msra.mxu0 %v17971_v28  ;;  %7348 = vmatpush1.bf16.msra.mxu1 %v17974_v13  ;;  %v18030_v28 = vld [vmem:[#allocation20 + $0x134] ss:$8 sps:$4 sm:$0xff]   ;;  %v18025_v13 = vld [vmem:[#allocation20 + $0x30] ss:$8 sps:$4 sm:$0xff]  }
 0x77d   :  { %7308 = vmatprep.subr.bf16.mxu0 %v17979_v38  ;;  %7349 = vmatprep.subr.bf16.mxu1 %v17982_v54  ;;  %v18028_v38 = vld [vmem:[#allocation20 + $0x130] ss:$8 sps:$4 sm:$0xff]   ;;  %v18033_v54 = vld [vmem:[#allocation20 + $0x24] ss:$8 sps:$4 sm:$0xff]  }
 0x780   :  { %7309 = vmatpush1.bf16.msra.mxu0 %v17977_v14  ;;  %7350 = vmatpush1.bf16.msra.mxu1 %v17980_v48  ;;  %v18036_v14 = vld [vmem:[#allocation20 + $0x124] ss:$8 sps:$4 sm:$0xff]   ;;  %v18031_v48 = vld [vmem:[#allocation20 + $0x20] ss:$8 sps:$4 sm:$0xff]  }
 0x781   :  { %7310 = vmatprep.subr.bf16.mxu0 %v17985_v15  ;;  %7351 = vmatprep.subr.bf16.mxu1 %v17988_v17  ;;  %v18034_v15 = vld [vmem:[#allocation20 + $0x120] ss:$8 sps:$4 sm:$0xff]   ;;  %v18039_v17 = vld [vmem:[#allocation20 + $0x14] ss:$8 sps:$4 sm:$0xff]  }
 0x784   :  { %7311 = vmatpush1.bf16.msra.mxu0 %v17983_v16  ;;  %7352 = vmatpush1.bf16.msra.mxu1 %v17986_v18  ;;  %v18042_v16 = vld [vmem:[#allocation20 + $0x114] ss:$8 sps:$4 sm:$0xff]   ;;  %v18037_v18 = vld [vmem:[#allocation20 + $0x10] ss:$8 sps:$4 sm:$0xff]  }
 0x785   :  { %7312 = vmatprep.subr.bf16.mxu0 %v17991_v11  ;;  %7353 = vmatprep.subr.bf16.mxu1 %v17994_v6  ;;  %v18040_v11 = vld [vmem:[#allocation20 + $0x110] ss:$8 sps:$4 sm:$0xff]   ;;  %v18045_v6 = vld [vmem:[#allocation20 + $0x4] ss:$8 sps:$4 sm:$0xff]  }
 0x788   :  { %7313 = vmatpush1.bf16.msra.mxu0 %v17989_v59  ;;  %7354 = vmatpush1.bf16.msra.mxu1 %v17992_v20  ;;  %v18048_v59 = vld [vmem:[#allocation20 + $0x104] ss:$8 sps:$4 sm:$0xff]   ;;  %v18043_v20 = vld [vmem:[#allocation20] ss:$8 sps:$4 sm:$0xff]  }
 0x789   :  { %7314 = vmatprep.subr.bf16.mxu0 %v17997_v21  ;;  %7355 = vmatprep.subr.bf16.mxu1 %v18000_v24  ;;  %v18046_v21 = vld [vmem:[#allocation20 + $0x100] ss:$8 sps:$4 sm:$0xff]   ;;  %v18051_v24 = vld [vmem:[#allocation20 + $0xf4] ss:$8 sps:$4 sm:$0xff]  }
 0x78c   :  { %7315 = vmatpush1.bf16.msra.mxu0 %v17995_v29  ;;  %7356 = vmatpush1.bf16.msra.mxu1 %v17998_v10  ;;  %v18054_v29 = vld [vmem:[#allocation20 + $0x1f4] ss:$8 sps:$4 sm:$0xff]   ;;  %v18049_v10 = vld [vmem:[#allocation20 + $0xf0] ss:$8 sps:$4 sm:$0xff]  }
 0x78d   :  { %7790 = vmatprep.subr.bf16.mxu0 %v18003_v32  ;;  %7831 = vmatprep.subr.bf16.mxu1 %v18006_v37  ;;  %v18052_v32 = vld [vmem:[#allocation20 + $0x1f0] ss:$8 sps:$4 sm:$0xff]   ;;  %v18057_v37 = vld [vmem:[#allocation20 + $0xe4] ss:$8 sps:$4 sm:$0xff]  }
 0x82f   :  { %v17076_v40 = vpop.f32.mrf.mxu0  ;;  %v17098_v31 = vpop.f32.mrf.mxu1 }
 0x831   :  { %v17077_v63 = vpop.f32.mrf.mxu0  ;;  %v17099_v58 = vpop.f32.mrf.mxu1 }
 0x832   :  { %v17078_v62 = vadd.f32 %v17077_v63, %v17076_v40  ;;  %v17100_v1 = vadd.f32 %v17099_v58, %v17098_v31  ;;  %v18060_v40 = vld [vmem:[#allocation20 + $0x1e4] ss:$8 sps:$4 sm:$0xff]   ;;  %v18055_v31 = vld [vmem:[#allocation20 + $0xe0] ss:$8 sps:$4 sm:$0xff]   ;;  %v18063_v58 = vld [vmem:[#allocation20 + $0xd4] ss:$8 sps:$4 sm:$0xff]  }
 0x833   :  { %v17079_v27 = vpop.f32.mrf.mxu0  ;;  %v17101_v3 = vpop.f32.mrf.mxu1  ;;  %v18058_v63 = vld [vmem:[#allocation20 + $0x1e0] ss:$8 sps:$4 sm:$0xff]  }
 0x834   :  { %v7101_v5 = vadd.f32 %v17100_v1, %v17078_v62  ;;  %v18066_v62 = vld [vmem:[#allocation20 + $0x1d4] ss:$8 sps:$4 sm:$0xff]   ;;  %v18061_v1 = vld [vmem:[#allocation20 + $0xd0] ss:$8 sps:$4 sm:$0xff]   ;;  %v18069_v3 = vld [vmem:[#allocation20 + $0xc4] ss:$8 sps:$4 sm:$0xff]  }
 0x835   :  { %v17080_v49 = vpop.f32.mrf.mxu0  ;;  %v17102_v35 = vpop.f32.mrf.mxu1  ;;  %v18064_v27 = vld [vmem:[#allocation20 + $0x1d0] ss:$8 sps:$4 sm:$0xff]  }
 0x836   :  { %v7106_v7 = vmax.f32 %v7101_v5, 0.0  ;;  %v18072_v5 = vld [vmem:[#allocation20 + $0x1c4] ss:$8 sps:$4 sm:$0xff]   ;;  %v18067_v49 = vld [vmem:[#allocation20 + $0xc0] ss:$8 sps:$4 sm:$0xff]  }
 0x837   :  { %v18070_v35 = vld [vmem:[#allocation20 + $0x1c0] ss:$8 sps:$4 sm:$0xff]  }
 0x838   :  { %v7107_v41 = vpack.c.bf16 %v7106_v7, %v7106_v7  ;;  %v18075_v7 = vld [vmem:[#allocation20 + $0xb4] ss:$8 sps:$4 sm:$0xff]  }
 0x83a   :  { %7333 = vmatmul.mubr.bf16.vlgmr.msra.gmra.mxu0 %v7107_v41  ;;  %7374 = vmatmul.mubr.bf16.vlgmr.msra.gmra.mxu1 %v7107_v41  ;;  %v18076_v41 = vld [vmem:[#allocation20 + $0x1b0] ss:$8 sps:$4 sm:$0xff]  }
 0x83b   :  { %7791 = vmatpush1.bf16.msra.mxu0 %v18001_v4  ;;  %7832 = vmatpush1.bf16.msra.mxu1 %v18004_v25  ;;  %v18078_v4 = vld [vmem:[#allocation20 + $0x1b4] ss:$8 sps:$4 sm:$0xff]   ;;  %v18073_v25 = vld [vmem:[#allocation20 + $0xb0] ss:$8 sps:$4 sm:$0xff]  }
 0x83c   :  { %7792 = vmatprep.subr.bf16.mxu0 %v18009_v52  ;;  %7833 = vmatprep.subr.bf16.mxu1 %v18012_v51  ;;  %v18081_v52 = vld [vmem:[#allocation20 + $0xa4] ss:$8 sps:$4 sm:$0xff]  }
 0x83d   :  { %v18084_v51 = vld [vmem:[#allocation20 + $0x1a4] ss:$8 sps:$4 sm:$0xff]  }
 0x83f   :  { %7793 = vmatpush1.bf16.msra.mxu0 %v18007_v19  ;;  %7834 = vmatpush1.bf16.msra.mxu1 %v18010_v23  ;;  %v18079_v19 = vld [vmem:[#allocation20 + $0xa0] ss:$8 sps:$4 sm:$0xff]  }
 0x840   :  { %7794 = vmatprep.subr.bf16.mxu0 %v18015_v45  ;;  %7835 = vmatprep.subr.bf16.mxu1 %v18018_v55  ;;  %v18082_v23 = vld [vmem:[#allocation20 + $0x1a0] ss:$8 sps:$4 sm:$0xff]   ;;  %v18087_v45 = vld [vmem:[#allocation20 + $0x94] ss:$8 sps:$4 sm:$0xff]  }
 0x841   :  { %v18090_v55 = vld [vmem:[#allocation20 + $0x194] ss:$8 sps:$4 sm:$0xff]  }
 0x843   :  { %7795 = vmatpush1.bf16.msra.mxu0 %v18013_v22  ;;  %7836 = vmatpush1.bf16.msra.mxu1 %v18016_v0  ;;  %v18085_v22 = vld [vmem:[#allocation20 + $0x90] ss:$8 sps:$4 sm:$0xff]  }
 0x844   :  { %7796 = vmatprep.subr.bf16.mxu0 %v18021_v30  ;;  %7837 = vmatprep.subr.bf16.mxu1 %v18024_v8  ;;  %v18088_v0 = vld [vmem:[#allocation20 + $0x190] ss:$8 sps:$4 sm:$0xff]   ;;  %v18093_v30 = vld [vmem:[#allocation20 + $0x84] ss:$8 sps:$4 sm:$0xff]  }
 0x845   :  { %v18096_v8 = vld [vmem:[#allocation20 + $0x184] ss:$8 sps:$4 sm:$0xff]  }
 0x847   :  { %7797 = vmatpush1.bf16.msra.mxu0 %v18019_v50  ;;  %7838 = vmatpush1.bf16.msra.mxu1 %v18022_v12  ;;  %v18091_v50 = vld [vmem:[#allocation20 + $0x80] ss:$8 sps:$4 sm:$0xff]  }
 0x848   :  { %7798 = vmatprep.subr.bf16.mxu0 %v18027_v9  ;;  %7839 = vmatprep.subr.bf16.mxu1 %v18030_v28  ;;  %v18094_v12 = vld [vmem:[#allocation20 + $0x180] ss:$8 sps:$4 sm:$0xff]  }
 0x84b   :  { %7799 = vmatpush1.bf16.msra.mxu0 %v18025_v13  ;;  %7840 = vmatpush1.bf16.msra.mxu1 %v18028_v38 }
 0x84c   :  { %7800 = vmatprep.subr.bf16.mxu0 %v18033_v54  ;;  %7841 = vmatprep.subr.bf16.mxu1 %v18036_v14 }
 0x84f   :  { %7801 = vmatpush1.bf16.msra.mxu0 %v18031_v48  ;;  %7842 = vmatpush1.bf16.msra.mxu1 %v18034_v15 }
 0x850   :  { %7802 = vmatprep.subr.bf16.mxu0 %v18039_v17  ;;  %7843 = vmatprep.subr.bf16.mxu1 %v18042_v16 }
 0x853   :  { %7803 = vmatpush1.bf16.msra.mxu0 %v18037_v18  ;;  %7844 = vmatpush1.bf16.msra.mxu1 %v18040_v11 }
 0x854   :  { %7804 = vmatprep.subr.bf16.mxu0 %v18045_v6  ;;  %7845 = vmatprep.subr.bf16.mxu1 %v18048_v59 }
 0x857   :  { %7805 = vmatpush1.bf16.msra.mxu0 %v18043_v20  ;;  %7846 = vmatpush1.bf16.msra.mxu1 %v18046_v21 }
 0x858   :  { %7806 = vmatprep.subr.bf16.mxu0 %v18051_v24  ;;  %7847 = vmatprep.subr.bf16.mxu1 %v18054_v29 }
 0x85b   :  { %7807 = vmatpush2.bf16.msra.mxu0 %v18049_v10  ;;  %7848 = vmatpush2.bf16.msra.mxu1 %v18052_v32 }
 0x85c   :  { %7808 = vmatprep.subr.bf16.mxu0 %v18057_v37  ;;  %7849 = vmatprep.subr.bf16.mxu1 %v18060_v40 }
 0x85f   :  { %7809 = vmatpush2.bf16.msra.mxu0 %v18055_v31  ;;  %7850 = vmatpush2.bf16.msra.mxu1 %v18058_v63 }
 0x860   :  { %7810 = vmatprep.subr.bf16.mxu0 %v18063_v58  ;;  %7851 = vmatprep.subr.bf16.mxu1 %v18066_v62 }
 0x863   :  { %7811 = vmatpush2.bf16.msra.mxu0 %v18061_v1  ;;  %7852 = vmatpush2.bf16.msra.mxu1 %v18064_v27 }
 0x864   :  { %7812 = vmatprep.subr.bf16.mxu0 %v18069_v3  ;;  %7853 = vmatprep.subr.bf16.mxu1 %v18072_v5 }
 0x867   :  { %7813 = vmatpush2.bf16.msra.mxu0 %v18067_v49  ;;  %7854 = vmatpush2.bf16.msra.mxu1 %v18070_v35 }
 0x868   :  { %7814 = vmatprep.subr.bf16.mxu0 %v18075_v7  ;;  %7855 = vmatprep.subr.bf16.mxu1 %v18078_v4 }
 0x86b   :  { %7815 = vmatpush2.bf16.msra.mxu0 %v18073_v25  ;;  %7856 = vmatpush2.bf16.msra.mxu1 %v18076_v41 }
 0x86c   :  { %7816 = vmatprep.subr.bf16.mxu0 %v18081_v52  ;;  %7857 = vmatprep.subr.bf16.mxu1 %v18084_v51  ;;  %v18097_v52 = vld [vmem:[#allocation23] sm:$0xff]  }
 0x86f   :  { %7817 = vmatpush2.bf16.msra.mxu0 %v18079_v19  ;;  %7858 = vmatpush2.bf16.msra.mxu1 %v18082_v23 }
 0x870   :  { %7818 = vmatprep.subr.bf16.mxu0 %v18087_v45  ;;  %7859 = vmatprep.subr.bf16.mxu1 %v18090_v55 }
 0x873   :  { %7819 = vmatpush2.bf16.msra.mxu0 %v18085_v22  ;;  %7860 = vmatpush2.bf16.msra.mxu1 %v18088_v0 }
 0x874   :  { %7820 = vmatprep.subr.bf16.mxu0 %v18093_v30  ;;  %7861 = vmatprep.subr.bf16.mxu1 %v18096_v8 }
 0x877   :  { %7821 = vmatpush2.bf16.msra.mxu0 %v18091_v50  ;;  %7862 = vmatpush2.bf16.msra.mxu1 %v18094_v12 }
 0x878   :  { %17203 = vmatprep.subr.bf16.mxu0 %v18097_v52 }
 0x8fa   :  { %v7334_v9 = vpop.f32.mrf.mxu0  ;;  %v7375_v28 = vpop.f32.mrf.mxu1 }
 0x8fb   :  { %v7382_v13 = vadd.f32 %v7334_v9, %v19970_v33  ;;  %v7384_v38 = vadd.f32 %v7375_v28, %v19973_v56  ;;  %v7458_v56 = vld [vmem:[#allocation21] sm:$0x3] }
 0x8fc   :  { %v7336_v54 = vpop.f32.mrf.mxu0  ;;  %v7377_v14 = vpop.f32.mrf.mxu1 }
 0x8fd   :  { %v7383_v48 = vadd.f32 %v7336_v54, %v19976_v60  ;;  %v7385_v15 = vadd.f32 %v7377_v14, %v19979_v61  ;;  %v7386_v17 = vmax.f32 %v7382_v13, 0.0  ;;  %v7388_v16 = vmax.f32 %v7384_v38, 0.0 }
 0x8fe   :  { %v7338_v18 = vpop.f32.mrf.mxu0  ;;  %v7379_v11 = vpop.f32.mrf.mxu1  ;;  %v7463_v60 = vrot.slane %v7458_v56, %v19792_v26  ;;  %v7467_v61 = vrot.slane %v7458_v56, %v19795_v36 }
 0x8ff   :  { %v7387_v6 = vmax.f32 %v7383_v48, 0.0  ;;  %v7389_v59 = vmax.f32 %v7385_v15, 0.0  ;;  %v7390_v10 = vpack.c.bf16 %v7386_v17, %v7386_v17  ;;  %v7392_v33 = vpack.c.bf16 %v7388_v16, %v7388_v16 }
 0x900   :  { %v7339_v20 = vpop.f32.mrf.mxu0  ;;  %v7380_v21 = vpop.f32.mrf.mxu1 }
 0x901   :  { %v7391_v24 = vpack.c.bf16 %v7387_v6, %v7387_v6  ;;  %v7393_v29 = vpack.c.bf16 %v7389_v59, %v7389_v59 }
 0x903   :  { %7822 = vmatprep.mubr.bf16.mxu0 %v7391_v24  ;;  %7863 = vmatprep.mubr.bf16.mxu1 %v7393_v29 }
 0x904   :  { %7823 = vmatmul.mubr.bf16.vlgmr.msra.gmra.mxu0 %v7390_v10  ;;  %7864 = vmatmul.mubr.bf16.vlgmr.msra.gmra.mxu1 %v7392_v33 }
 0x905   :  { %17204 = vmatpush3.bf16.msra.mxu0 %v18097_v52 }
 0x9c4   :  { %v7824_v32 = vpop.f32.mrf.mxu0  ;;  %v7865_v37 = vpop.f32.mrf.mxu1 }
 0x9c5   :  { %v7825_v40 = vadd.f32 %v7824_v32, %v7463_v60 }
 0x9c6   :  { %v7826_v31 = vpop.f32.mrf.mxu0  ;;  %v7867_v63 = vpop.f32.mrf.mxu1 }
 0x9c7   :  { %v7827_v58 = vadd.f32 %v7826_v31, %v7467_v61  ;;  %v7866_v27 = vadd.f32 %v7865_v37, %v7825_v40 }
 0x9c8   :  { %v7828_v62 = vpop.f32.mrf.mxu0  ;;  %v7869_v1 = vpop.f32.mrf.mxu1 }
 0x9c9   :  { %v7868_v3 = vadd.f32 %v7867_v63, %v7827_v58  ;;  %v16159_v58 = vld [vmem:[#allocation24] ss:$0 sm:$0xff] }
 0x9ca   :  { %v7829_v5 = vpop.f32.mrf.mxu0  ;;  %v7870_v49 = vpop.f32.mrf.mxu1 }
 0x9cb   :  { %v7874_v35 = vcombine.low %v7866_v27, %v7868_v3 }
 0x9cd   :  { %16141 = vst.sshfl [vmem:[#allocation3] sm:$0x33 pattern:$0x76325410] %v7874_v35 }
 0x9d4   :  { %v7884_v7 = vld [vmem:[#allocation3] sm:$0x3]  ;;  %v7978_v4 = vld [vmem:[#allocation3 + $0x2] sm:$0x3] }
 0x9d5   :  { %v16144_v25 = vld.sshfl [vmem:[#allocation3] sm:$0x3 pattern:$0x76325410]  ;;  %7886 = vst.msk [vmem:[#allocation2] sm:$0x3] %vm7885_vm0, %v7884_v7 }
 0x9d6   :  { %7979 = vst.msk [vmem:[#allocation2 + $0x10] sm:$0x3] %vm7885_vm0, %v7978_v4  ;;  %7922 = vrot.lane.b32.xlu1 %v16144_v25, %s19474_s16  ;;  %7896 = vrot.lane.b32.xlu0 %v16144_v25, %s19475_s10  ;;  %v16149_v41 = vld.sshfl [vmem:[#allocation3 + $0x2] sm:$0x3 pattern:$0x76325410] }
 0x9da   :  { %7935 = vrot.lane.b32.xlu1 %v16144_v25, %s19457_s15  ;;  %7909 = vrot.lane.b32.xlu0 %v16144_v25, %s19476_s0 }
 0x9de   :  { %7961 = vrot.lane.b32.xlu1 %v16144_v25, %s19453_s9  ;;  %7948 = vrot.lane.b32.xlu0 %v16144_v25, %s19477_s2 }
 0x9e2   :  { %7989 = vrot.lane.b32.xlu1 %v16149_v41, %s19475_s10  ;;  %7974 = vrot.lane.b32.xlu0 %v16144_v25, %s19444_s29 }
 0x9e6   :  { %8015 = vrot.lane.b32.xlu1 %v16149_v41, %s19474_s16  ;;  %8002 = vrot.lane.b32.xlu0 %v16149_v41, %s19476_s0 }
 0x9ea   :  { %8041 = vrot.lane.b32.xlu1 %v16149_v41, %s19477_s2  ;;  %8028 = vrot.lane.b32.xlu0 %v16149_v41, %s19457_s15 }
 0x9ee   :  { %8067 = vrot.lane.b32.xlu1 %v16149_v41, %s19444_s29  ;;  %8054 = vrot.lane.b32.xlu0 %v16149_v41, %s19453_s9 }
 0xa48   :  { %v7923_v51 = vpop.permute.xlu1 %7922  ;;  %v7897_v19 = vpop.permute.xlu0 %7896 }
 0xa49   :  { %7925 = vst.msk [vmem:[#allocation2 + $0x6] sm:$0x3] %vm7885_vm0, %v7923_v51  ;;  %7899 = vst.msk [vmem:[#allocation2 + $0x2] sm:$0x3] %vm7885_vm0, %v7897_v19  ;;  %v20054_v19 = vand.u32 127, %v403_v34 }
 0xa4c   :  { %v7936_v23 = vpop.permute.xlu1 %7935  ;;  %v7910_v45 = vpop.permute.xlu0 %7909 }
 0xa4d   :  { %7938 = vst.msk [vmem:[#allocation2 + $0x8] sm:$0x3] %vm7885_vm0, %v7936_v23  ;;  %7912 = vst.msk [vmem:[#allocation2 + $0x4] sm:$0x3] %vm7885_vm0, %v7910_v45 }
 0xa50   :  { %v7962_v55 = vpop.permute.xlu1 %7961  ;;  %v7949_v22 = vpop.permute.xlu0 %7948 }
 0xa51   :  { %7964 = vst.msk [vmem:[#allocation2 + $0xc] sm:$0x3] %vm7885_vm0, %v7962_v55  ;;  %7951 = vst.msk [vmem:[#allocation2 + $0xa] sm:$0x3] %vm7885_vm0, %v7949_v22 }
 0xa54   :  { %v7990_v0 = vpop.permute.xlu1 %7989  ;;  %v7975_v30 = vpop.permute.xlu0 %7974  ;;  %v20015_v8 = vld [vmem:[#allocation2] sm:$0xff] }
 0xa55   :  { %7992 = vst.msk [vmem:[#allocation2 + $0x12] sm:$0x3] %vm7885_vm0, %v7990_v0  ;;  %7977 = vst.msk [vmem:[#allocation2 + $0xe] sm:$0x3] %vm7885_vm0, %v7975_v30  ;;  %v8141_v50 = vmul.f32 %v20015_v8, %v20015_v8 }
 0xa57   :  { %v8145_v12 = vsel %vm8085_vm1, %v8141_v50, 0.0 }
 0xa58   :  { %v8016_v9 = vpop.permute.xlu1 %8015  ;;  %v8003_v28 = vpop.permute.xlu0 %8002  ;;  %8146 = vadd.xlane.f32.xlu0 %v8145_v12 }
 0xa59   :  { %8018 = vst.msk [vmem:[#allocation2 + $0x16] sm:$0x3] %vm7885_vm0, %v8016_v9  ;;  %8005 = vst.msk [vmem:[#allocation2 + $0x14] sm:$0x3] %vm7885_vm0, %v8003_v28 }
 0xa5c   :  { %v8042_v13 = vpop.permute.xlu1 %8041  ;;  %v8029_v38 = vpop.permute.xlu0 %8028  ;;  %v20024_v54 = vld [vmem:[#allocation2 + $0x8] sm:$0xff] }
 0xa5d   :  { %8044 = vst.msk [vmem:[#allocation2 + $0x1a] sm:$0x3] %vm7885_vm0, %v8042_v13  ;;  %8031 = vst.msk [vmem:[#allocation2 + $0x18] sm:$0x3] %vm7885_vm0, %v8029_v38  ;;  %v8075_v14 = vpack.c.bf16 %v20024_v54, %v20015_v8  ;;  %v8142_v48 = vmul.f32 %v20024_v54, %v20024_v54 }
 0xa5f   :  { %17205 = vmatprep.mubr.msk.bf16.mxu0 %vm8085_vm1, %v8075_v14  ;;  %v8148_v15 = vsel %vm8085_vm1, %v8142_v48, 0.0 }
 0xa60   :  { %v8068_v17 = vpop.permute.xlu1 %8067  ;;  %8149 = vadd.xlane.f32.xlu1 %v8148_v15  ;;  %v8055_v16 = vpop.permute.xlu0 %8054  ;;  %v20034_v18 = vld [vmem:[#allocation2 + $0x10] sm:$0xff] }
 0xa61   :  { %8070 = vst.msk [vmem:[#allocation2 + $0x1e] sm:$0x3] %vm7885_vm0, %v8068_v17  ;;  %8057 = vst.msk [vmem:[#allocation2 + $0x1c] sm:$0x3] %vm7885_vm0, %v8055_v16  ;;  %v8143_v11 = vmul.f32 %v20034_v18, %v20034_v18 }
 0xa63   :  { %v8151_v6 = vsel %vm8085_vm1, %v8143_v11, 0.0 }
 0xa64   :  { %8152 = vadd.xlane.f32.xlu0 %v8151_v6 }
 0xa68   :  { %v20041_v59 = vld [vmem:[#allocation2 + $0x18] sm:$0xff] }
 0xa69   :  { %v8076_v20 = vpack.c.bf16 %v20041_v59, %v20034_v18  ;;  %v8144_v21 = vmul.f32 %v20041_v59, %v20041_v59 }
 0xa6b   :  { %17206 = vmatmul.mubr.msk.bf16.vlgmr.msra.gmra.mxu0 %vm8085_vm1, %v8076_v20  ;;  %v8154_v24 = vsel %vm8085_vm1, %v8144_v21, 0.0 }
 0xa6c   :  { %8155 = vadd.xlane.f32.xlu0 %v8154_v24 }
 0xae1   :  { %v8147_v29 = vpop.xlane.xlu0 %8146 }
 0xae9   :  { %v8150_v27 = vpop.xlane.xlu1 %8149 }
 0xaed   :  { %v8153_v61 = vpop.xlane.xlu0 %8152 }
 0xaf5   :  { %v8156_v3 = vpop.xlane.xlu0 %8155 }
 0xb2b   :  { %v17207_v10 = vpop.f32.mrf.mxu0 }
 0xb2c   :  { %v8159_v33 = vmul.f32 2.0, %v17207_v10 }
 0xb2d   :  { %v8126_v56 = vpop.f32.mrf.mxu0 }
 0xb2e   :  { %v8157_v60 = vmul.f32 2.0, %v8126_v56  ;;  %v8163_v37 = vsub.f32 %v8153_v61, %v8159_v33 }
 0xb2f   :  { %v17208_v32 = vpop.f32.mrf.mxu0 }
 0xb30   :  { %v8161_v40 = vsub.f32 %v8147_v29, %v8157_v60  ;;  %v8160_v31 = vmul.f32 2.0, %v17208_v32  ;;  %v8174_v7 = vadd.f32 %v16159_v58, %v8163_v37 }
 0xb31   :  { %v8129_v63 = vpop.f32.mrf.mxu0 }
 0xb32   :  { %v8158_v62 = vmul.f32 2.0, %v8129_v63  ;;  %v8172_v1 = vadd.f32 %v16159_v58, %v8161_v40  ;;  %v8164_v5 = vsub.f32 %v8156_v3, %v8160_v31  ;;  %v8183_v25 = vsel %vm8176_vm2, %v8174_v7, inf }
 0xb33   :  { %v19478_v3 = vmov 0.0  }
 0xb34   :  { %v8162_v49 = vsub.f32 %v8150_v27, %v8158_v62  ;;  %v8177_v35 = vsel %vm8176_vm2, %v8172_v1, inf  ;;  %v8175_v52 = vadd.f32 %v16159_v58, %v8164_v5  ;;  %v8273_v27 = vld [vmem:[%s20343_s13 + $0x10] sm:$0xff]  ;;  %8414 = vst [vmem:[%s20357_s27] sm:$0xff] %v19478_v3  ;;  %v8272_v5 = vld [vmem:[%s20343_s13 + $0x8] sm:$0xff] }
 0xb35   :  { %8178 = vmin.xlane.f32.xlu1 %v8177_v35 }
 0xb36   :  { %v8173_v4 = vadd.f32 %v16159_v58, %v8162_v49  ;;  %v8186_v51 = vsel %vm8176_vm2, %v8175_v52, inf  ;;  %v8271_v49 = vld [vmem:[%s20343_s13] sm:$0xff] }
 0xb38   :  { %v8180_v41 = vsel %vm8176_vm2, %v8173_v4, inf }
 0xb39   :  { %8184 = vmin.xlane.f32.xlu1 %v8183_v25  ;;  %8181 = vmin.xlane.f32.xlu0 %v8180_v41 }
 0xb3d   :  { %8187 = vmin.xlane.f32.xlu0 %v8186_v51 }
 0xbbe   :  { %v8179_v23 = vpop.xlane.xlu1 %8178 }
 0xbbf   :  { %vm8191_vm3 = vcmp.le.f32.partialorder %v8172_v1, %v8179_v23  ;;  %v8274_v1 = vld [vmem:[%s20343_s13 + $0x18] sm:$0xff] }
 0xbc0   :  { %v8195_v45 = vsel %vm8191_vm3, %v20054_v19, 32  ;;  %17209 = vmatprep.subr.mxu1 %v8274_v1  ;;  %vm8465_vm3 = vcmask 517504  }
 0xbc1   :  { %v8199_v55 = vsel %vm8176_vm2, %v8195_v45, 2147483647  ;;  %17210 = vmatpush3.msra.mxu1 %v8274_v1  ;;  %v18107_v1 = vld [vmem:[#allocation26 + $0xc8] ss:$16 sps:$4 sm:$0xff]  }
 0xbc2   :  { %v8185_v22 = vpop.xlane.xlu1 %8184  ;;  %v8182_v0 = vpop.xlane.xlu0 %8181  ;;  %v8201_v30 = vshra.s32 %v8199_v55, 16  ;;  %v8200_v20 = vand.u32 65535, %v8199_v55  ;;  %17211 = vmatprep.subr.mxu1 %v8273_v27 }
 0xbc3   :  { %vm8193_vm4 = vcmp.le.f32.partialorder %v8174_v7, %v8185_v22  ;;  %vm8192_vm5 = vcmp.le.f32.partialorder %v8173_v4, %v8182_v0  ;;  %17212 = vmatpush3.msra.mxu1 %v8273_v27  ;;  %v18112_v27 = vld [vmem:[#allocation26 + $0xa4] ss:$16 sps:$4 sm:$0xff]  }
 0xbc4   :  { %v8197_v50 = vsel %vm8193_vm4, %v20054_v19, 32  ;;  %v8196_v12 = vsel %vm8192_vm5, %v20054_v19, 32  ;;  %v8203_v9 = vcvt.s32.f32 %v8201_v30  ;;  %v8202_v24 = vcvt.s32.f32 %v8200_v20  ;;  %17213 = vmatprep.subr.mxu1 %v8272_v5 }
 0xbc5   :  { %v8229_v28 = vsel %vm8176_vm2, %v8197_v50, 2147483647  ;;  %v8214_v34 = vsel %vm8176_vm2, %v8196_v12, 2147483647  ;;  %17214 = vmatpush3.msra.mxu1 %v8272_v5  ;;  %v18110_v5 = vld [vmem:[#allocation26 + $0xa0] ss:$16 sps:$4 sm:$0xff]  }
 0xbc6   :  { %8204 = vmin.xlane.f32.xlu1 %v8203_v9  ;;  %v8188_v13 = vpop.xlane.xlu0 %8187  ;;  %v8231_v38 = vshra.s32 %v8229_v28, 16  ;;  %v8216_v14 = vshra.s32 %v8214_v34, 16  ;;  %v8230_v29 = vand.u32 65535, %v8229_v28  ;;  %v8215_v10 = vand.u32 65535, %v8214_v34  ;;  %17215 = vmatprep.subr.mxu1 %v8271_v49 }
 0xbc7   :  { %vm8194_vm6 = vcmp.le.f32.partialorder %v8175_v52, %v8188_v13  ;;  %17216 = vmatpush3.msra.mxu1 %v8271_v49  ;;  %v18113_v49 = vld [vmem:[#allocation26 + $0xa8] ss:$16 sps:$4 sm:$0xff]   ;;  %vm8479_vm4 = vcmask 648704   ;;  %vm8493_vm5 = vcmask 779904  }
 0xbc8   :  { %v8198_v48 = vsel %vm8194_vm6, %v20054_v19, 32  ;;  %v8233_v15 = vcvt.s32.f32 %v8231_v38  ;;  %v8218_v17 = vcvt.s32.f32 %v8216_v14  ;;  %v8232_v61 = vcvt.s32.f32 %v8230_v29 }
 0xbc9   :  { %v8244_v16 = vsel %vm8176_vm2, %v8198_v48, 2147483647  ;;  %v8217_v32 = vcvt.s32.f32 %v8215_v10  ;;  %vm8521_vm6 = vcmask 1042304  }
 0xbca   :  { %8234 = vmin.xlane.f32.xlu1 %v8233_v15  ;;  %8219 = vmin.xlane.f32.xlu0 %v8218_v17  ;;  %v8246_v11 = vshra.s32 %v8244_v16, 16  ;;  %v8245_v37 = vand.u32 65535, %v8244_v16 }
 0xbcc   :  { %v8248_v6 = vcvt.s32.f32 %v8246_v11  ;;  %v8247_v58 = vcvt.s32.f32 %v8245_v37  ;;  %v18098_v37 = vld [vmem:[#allocation26 + $0xe0] ss:$16 sps:$4 sm:$0xff]  }
 0xbce   :  { %8249 = vmin.xlane.f32.xlu0 %v8248_v6 }
 0xc4f   :  { %v8205_v21 = vpop.xlane.xlu1 %8204 }
 0xc50   :  { %vm8206_vm7 = vcmp.eq.f32.partialorder %v8203_v9, %v8205_v21  ;;  %v8211_v35 = vcvt.f32.s32 %v8205_v21 }
 0xc51   :  { %v8207_v33 = vsel %vm8206_vm7, %v8202_v24, inf  ;;  %vm8417_vm7 = vcmask 262400  }
 0xc52   :  { %8208 = vmin.xlane.f32.xlu1 %v8207_v33  ;;  %v8212_v41 = vshll.u32 %v8211_v35, 16  ;;  %v18118_v35 = vld [vmem:[#allocation26 + $0x84] ss:$16 sps:$4 sm:$0xff]  }
 0xc53   :  { %v8235_v56 = vpop.xlane.xlu1 %8234  ;;  %v8220_v60 = vpop.xlane.xlu0 %8219 }
 0xc54   :  { %vm8236_vm8 = vcmp.eq.f32.partialorder %v8233_v15, %v8235_v56  ;;  %vm8221_vm9 = vcmp.eq.f32.partialorder %v8218_v17, %v8220_v60  ;;  %v8241_v7 = vcvt.f32.s32 %v8235_v56  ;;  %v8226_v4 = vcvt.f32.s32 %v8220_v60 }
 0xc55   :  { %v8237_v40 = vsel %vm8236_vm8, %v8232_v61, inf  ;;  %v8222_v31 = vsel %vm8221_vm9, %v8217_v32, inf }
 0xc56   :  { %8238 = vmin.xlane.f32.xlu1 %v8237_v40  ;;  %8223 = vmin.xlane.f32.xlu0 %v8222_v31  ;;  %v8242_v23 = vshll.u32 %v8241_v7, 16  ;;  %v8227_v45 = vshll.u32 %v8226_v4, 16  ;;  %v18101_v40 = vld [vmem:[#allocation26 + $0xe8] ss:$16 sps:$4 sm:$0xff]   ;;  %v18103_v31 = vld [vmem:[#allocation26 + $0xec] ss:$16 sps:$4 sm:$0xff]  }
 0xc57   :  { %v8250_v63 = vpop.xlane.xlu0 %8249  ;;  %9077 = vmatprep.subr.bf16.mxu1 %v18103_v31  ;;  %v18121_v7 = vld [vmem:[#allocation26 + $0x8c] ss:$16 sps:$4 sm:$0xff]   ;;  %v18116_v4 = vld [vmem:[#allocation26 + $0x80] ss:$16 sps:$4 sm:$0xff]  }
 0xc58   :  { %vm8251_vm10 = vcmp.eq.f32.partialorder %v8248_v6, %v8250_v63  ;;  %v8256_v0 = vcvt.f32.s32 %v8250_v63  ;;  %v18106_v63 = vld [vmem:[#allocation26 + $0xc4] ss:$16 sps:$4 sm:$0xff]  }
 0xc59   :  { %v8252_v62 = vsel %vm8251_vm10, %v8247_v58, inf  ;;  %v18109_v58 = vld [vmem:[#allocation26 + $0xcc] ss:$16 sps:$4 sm:$0xff]  }
 0xc5a   :  { %8253 = vmin.xlane.f32.xlu0 %v8252_v62  ;;  %v8257_v13 = vshll.u32 %v8256_v0, 16  ;;  %v18104_v62 = vld [vmem:[#allocation26 + $0xc0] ss:$16 sps:$4 sm:$0xff]   ;;  %v18131_v0 = vld [vmem:[#allocation26 + $0x48] ss:$16 sps:$4 sm:$0xff]  }
 0xcdb   :  { %v8209_v25 = vpop.xlane.xlu1 %8208 }
 0xcdc   :  { %v8210_v52 = vcvt.f32.s32 %v8209_v25  ;;  %v18119_v25 = vld [vmem:[#allocation26 + $0x88] ss:$16 sps:$4 sm:$0xff]  }
 0xcde   :  { %v8213_v51 = vadd.s32 %v8212_v41, %v8210_v52  ;;  %v18124_v41 = vld [vmem:[#allocation26 + $0x64] ss:$16 sps:$4 sm:$0xff]   ;;  %v18127_v52 = vld [vmem:[#allocation26 + $0x6c] ss:$16 sps:$4 sm:$0xff]  }
 0xcdf   :  { %v8239_v55 = vpop.xlane.xlu1 %8238  ;;  %v8224_v22 = vpop.xlane.xlu0 %8223 }
 0xce0   :  { %v8240_v30 = vcvt.f32.s32 %v8239_v55  ;;  %v8225_v50 = vcvt.f32.s32 %v8224_v22  ;;  %vm8259_vm11 = vcmp.eq.s32.totalorder %v20054_v19, %v8213_v51  ;;  %v18122_v51 = vld [vmem:[#allocation26 + $0x60] ss:$16 sps:$4 sm:$0xff]   ;;  %v18133_v55 = vld [vmem:[#allocation26 + $0x4c] ss:$16 sps:$4 sm:$0xff]  }
 0xce1   :  { %v16160_v12 = vsel %vm8259_vm11, 1.0, %v19478_v3  ;;  %v18128_v22 = vld [vmem:[#allocation26 + $0x40] ss:$16 sps:$4 sm:$0xff]  }
 0xce2   :  { %v8243_v9 = vadd.s32 %v8242_v23, %v8240_v30  ;;  %v8228_v28 = vadd.s32 %v8227_v45, %v8225_v50  ;;  %17217 = vmatprep.mubr.msk.f32.mxu1 %vm8176_vm2, %v16160_v12  ;;  %v8401_v15 = vsel %vm8176_vm2, %v16160_v12, 0.0  ;;  %v18125_v23 = vld [vmem:[#allocation26 + $0x68] ss:$16 sps:$4 sm:$0xff]   ;;  %v18130_v45 = vld [vmem:[#allocation26 + $0x44] ss:$16 sps:$4 sm:$0xff]  }
 0xce3   :  { %v8254_v34 = vpop.xlane.xlu0 %8253  ;;  %v18134_v30 = vld [vmem:[#allocation26 + $0x20] ss:$16 sps:$4 sm:$0xff]   ;;  %v18136_v50 = vld [vmem:[#allocation26 + $0x24] ss:$16 sps:$4 sm:$0xff]   ;;  %v18137_v12 = vld [vmem:[#allocation26 + $0x28] ss:$16 sps:$4 sm:$0xff]  }
 0xce4   :  { %vm8260_vm12 = vcmp.eq.s32.totalorder %v20054_v19, %v8228_v28  ;;  %v8255_v38 = vcvt.f32.s32 %v8254_v34  ;;  %vm8261_vm13 = vcmp.eq.s32.totalorder %v20054_v19, %v8243_v9  ;;  %v18139_v9 = vld [vmem:[#allocation26 + $0x2c] ss:$16 sps:$4 sm:$0xff]  }
 0xce5   :  { %v16161_v14 = vsel %vm8260_vm12, 1.0, %v19478_v3  ;;  %v16162_v48 = vsel %vm8261_vm13, 1.0, %v19478_v3 }
 0xce6   :  { %v8402_v17 = vsel %vm8176_vm2, %v16161_v14, 0.0  ;;  %v8258_v16 = vadd.s32 %v8257_v13, %v8255_v38  ;;  %17218 = vmatmul.mubr.msk.f32.vlgmr.msra.gmra.mxu1 %vm8176_vm2, %v16161_v14  ;;  %v8404_v6 = vsel %vm8176_vm2, %v16162_v48, 0.0  ;;  %v18140_v13 = vld [vmem:[#allocation26] ss:$16 sps:$4 sm:$0xff]   ;;  %v18142_v38 = vld [vmem:[#allocation26 + $0x4] ss:$16 sps:$4 sm:$0xff]  }
 0xce7   :  { %v8403_v11 = vadd.f32 %v8402_v17, %v8401_v15  ;;  %17220 = vmatprep.mubr.msk.f32.mxu1 %vm8176_vm2, %v16162_v48  ;;  %9078 = vmatpush1.bf16.msra.mxu1 %v18101_v40  ;;  %v18143_v14 = vld [vmem:[#allocation26 + $0x8] ss:$16 sps:$4 sm:$0xff]   ;;  %v18145_v48 = vld [vmem:[#allocation26 + $0xc] ss:$16 sps:$4 sm:$0xff]   ;;  %v18146_v17 = vld [vmem:[#allocation26 + $0x1e0] ss:$16 sps:$4 sm:$0xff]  }
 0xce8   :  { %vm8262_vm14 = vcmp.eq.s32.totalorder %v20054_v19, %v8258_v16  ;;  %v18100_v19 = vld [vmem:[#allocation26 + $0xe4] ss:$16 sps:$4 sm:$0xff]   ;;  %9079 = vmatprep.subr.bf16.mxu1 %v18109_v58  ;;  %v18158_v40 = vld [vmem:[#allocation26 + $0x1a0] ss:$16 sps:$4 sm:$0xff]   ;;  %v18161_v58 = vld [vmem:[#allocation26 + $0x1a8] ss:$16 sps:$4 sm:$0xff]  }
 0xce9   :  { %v8405_v20 = vadd.f32 %v8404_v6, %v8403_v11  ;;  %v16163_v21 = vsel %vm8262_vm14, 1.0, %v19478_v3  ;;  %9036 = vmatprep.subr.bf16.mxu0 %v18100_v19  ;;  %v18115_v3 = vld [vmem:[#allocation26 + $0xac] ss:$16 sps:$4 sm:$0xff]   ;;  %v18148_v16 = vld [vmem:[#allocation26 + $0x1e4] ss:$16 sps:$4 sm:$0xff]  }
 0xcea   :  { %17221 = vmatmul.mubr.msk.f32.gmra.mxu1 %vm8176_vm2, %v16163_v21  ;;  %v8406_v24 = vsel %vm8176_vm2, %v16163_v21, 0.0  ;;  %9037 = vmatpush1.bf16.msra.mxu0 %v18098_v37  ;;  %v18149_v6 = vld [vmem:[#allocation26 + $0x1e8] ss:$16 sps:$4 sm:$0xff]   ;;  %v18157_v19 = vld [vmem:[#allocation26 + $0x1cc] ss:$16 sps:$4 sm:$0xff]   ;;  %vm8451_vm2 = vcmask 386304  }
 0xceb   :  { %v8407_v29 = vadd.f32 %v8406_v24, %v8405_v20  ;;  %9038 = vmatprep.subr.bf16.mxu0 %v18106_v63  ;;  %9080 = vmatpush1.bf16.msra.mxu1 %v18107_v1  ;;  %v18151_v20 = vld [vmem:[#allocation26 + $0x1ec] ss:$16 sps:$4 sm:$0xff]   ;;  %v18160_v63 = vld [vmem:[#allocation26 + $0x1a4] ss:$16 sps:$4 sm:$0xff]  }
 0xcec   :  { %9081 = vmatprep.subr.bf16.mxu1 %v18115_v3  ;;  %v18163_v1 = vld [vmem:[#allocation26 + $0x1ac] ss:$16 sps:$4 sm:$0xff]   ;;  %v18164_v3 = vld [vmem:[#allocation26 + $0x180] ss:$16 sps:$4 sm:$0xff]  }
 0xced   :  { %v8408_v10 = vrot.slane %v8407_v29, 4 }
 0xcee   :  { %9039 = vmatpush1.bf16.msra.mxu0 %v18104_v62 }
 0xcef   :  { %v8409_v33 = vadd.f32 %v8408_v10, %v8407_v29  ;;  %9040 = vmatprep.subr.bf16.mxu0 %v18112_v27  ;;  %9082 = vmatpush1.bf16.msra.mxu1 %v18113_v49  ;;  %v18167_v49 = vld [vmem:[#allocation26 + $0x188] ss:$16 sps:$4 sm:$0xff]  }
 0xcf0   :  { %9083 = vmatprep.subr.bf16.mxu1 %v18121_v7 }
 0xcf1   :  { %v8410_v56 = vrot.slane %v8409_v33, 2 }
 0xcf2   :  { %9041 = vmatpush1.bf16.msra.mxu0 %v18110_v5  ;;  %v18166_v5 = vld [vmem:[#allocation26 + $0x184] ss:$16 sps:$4 sm:$0xff]  }
 0xcf3   :  { %v8411_v60 = vadd.f32 %v8410_v56, %v8409_v33  ;;  %9042 = vmatprep.subr.bf16.mxu0 %v18118_v35  ;;  %9084 = vmatpush1.bf16.msra.mxu1 %v18119_v25  ;;  %v18152_v33 = vld [vmem:[#allocation26 + $0x1c0] ss:$16 sps:$4 sm:$0xff]   ;;  %v18154_v56 = vld [vmem:[#allocation26 + $0x1c4] ss:$16 sps:$4 sm:$0xff]   ;;  %v18169_v35 = vld [vmem:[#allocation26 + $0x18c] ss:$16 sps:$4 sm:$0xff]  }
 0xcf4   :  { %9085 = vmatprep.subr.bf16.mxu1 %v18127_v52  ;;  %v18175_v25 = vld [vmem:[#allocation26 + $0x16c] ss:$16 sps:$4 sm:$0xff]   ;;  %v18170_v52 = vld [vmem:[#allocation26 + $0x160] ss:$16 sps:$4 sm:$0xff]  }
 0xcf5   :  { %v8412_v61 = vrot.slane %v8411_v60, 1 }
 0xcf6   :  { %9043 = vmatpush1.bf16.msra.mxu0 %v18116_v4  ;;  %v18172_v4 = vld [vmem:[#allocation26 + $0x164] ss:$16 sps:$4 sm:$0xff]  }
 0xcf7   :  { %v8413_v32 = vadd.f32 %v8412_v61, %v8411_v60  ;;  %9044 = vmatprep.subr.bf16.mxu0 %v18124_v41  ;;  %9086 = vmatpush1.bf16.msra.mxu1 %v18125_v23  ;;  %v18173_v23 = vld [vmem:[#allocation26 + $0x168] ss:$16 sps:$4 sm:$0xff]  }
 0xcf8   :  { %9087 = vmatprep.subr.bf16.mxu1 %v18133_v55  ;;  %v18181_v55 = vld [vmem:[#allocation26 + $0x14c] ss:$16 sps:$4 sm:$0xff]  }
 0xcf9   :  { %8416 = vst.msk [vmem:[%s20357_s27] sm:$0x1] %vm8415_vm15, %v8413_v32  ;;  %v18155_v32 = vld [vmem:[#allocation26 + $0x1c8] ss:$16 sps:$4 sm:$0xff]  }
 0xcfa   :  { %9045 = vmatpush1.bf16.msra.mxu0 %v18122_v51 }
 0xcfb   :  { %9046 = vmatprep.subr.bf16.mxu0 %v18130_v45  ;;  %9088 = vmatpush1.bf16.msra.mxu1 %v18131_v0  ;;  %v18178_v45 = vld [vmem:[#allocation26 + $0x144] ss:$16 sps:$4 sm:$0xff]   ;;  %v18176_v0 = vld [vmem:[#allocation26 + $0x140] ss:$16 sps:$4 sm:$0xff]  }
 0xcfc   :  { %9089 = vmatprep.subr.bf16.mxu1 %v18139_v9 }
 0xcfe   :  { %9047 = vmatpush1.bf16.msra.mxu0 %v18128_v22 }
 0xcff   :  { %9048 = vmatprep.subr.bf16.mxu0 %v18136_v50  ;;  %9090 = vmatpush1.bf16.msra.mxu1 %v18137_v12  ;;  %v18184_v50 = vld [vmem:[#allocation26 + $0x124] ss:$16 sps:$4 sm:$0xff]   ;;  %v18187_v12 = vld [vmem:[#allocation26 + $0x12c] ss:$16 sps:$4 sm:$0xff]  }
 0xd00   :  { %9091 = vmatprep.subr.bf16.mxu1 %v18145_v48  ;;  %v18193_v48 = vld [vmem:[#allocation26 + $0x10c] ss:$16 sps:$4 sm:$0xff]  }
 0xd02   :  { %9049 = vmatpush1.bf16.msra.mxu0 %v18134_v30  ;;  %v18179_v30 = vld [vmem:[#allocation26 + $0x148] ss:$16 sps:$4 sm:$0xff]  }
 0xd03   :  { %9050 = vmatprep.subr.bf16.mxu0 %v18142_v38  ;;  %9092 = vmatpush1.bf16.msra.mxu1 %v18143_v14  ;;  %v18185_v38 = vld [vmem:[#allocation26 + $0x128] ss:$16 sps:$4 sm:$0xff]   ;;  %v18190_v14 = vld [vmem:[#allocation26 + $0x104] ss:$16 sps:$4 sm:$0xff]  }
 0xd04   :  { %9093 = vmatprep.subr.bf16.mxu1 %v18151_v20 }
 0xd06   :  { %9051 = vmatpush1.bf16.msra.mxu0 %v18140_v13  ;;  %v18182_v13 = vld [vmem:[#allocation26 + $0x120] ss:$16 sps:$4 sm:$0xff]  }
 0xd07   :  { %9052 = vmatprep.subr.bf16.mxu0 %v18148_v16  ;;  %9094 = vmatpush2.bf16.msra.mxu1 %v18149_v6  ;;  %v18188_v16 = vld [vmem:[#allocation26 + $0x100] ss:$16 sps:$4 sm:$0xff]   ;;  %v18191_v6 = vld [vmem:[#allocation26 + $0x108] ss:$16 sps:$4 sm:$0xff]  }
 0xd08   :  { %9095 = vmatprep.subr.bf16.mxu1 %v18157_v19 }
 0xd0a   :  { %9053 = vmatpush2.bf16.msra.mxu0 %v18146_v17 }
 0xd0b   :  { %9054 = vmatprep.subr.bf16.mxu0 %v18154_v56  ;;  %9096 = vmatpush2.bf16.msra.mxu1 %v18155_v32 }
 0xd0c   :  { %9097 = vmatprep.subr.bf16.mxu1 %v18163_v1 }
 0xd0e   :  { %9055 = vmatpush2.bf16.msra.mxu0 %v18152_v33 }
 0xd0f   :  { %9056 = vmatprep.subr.bf16.mxu0 %v18160_v63  ;;  %9098 = vmatpush2.bf16.msra.mxu1 %v18161_v58 }
 0xd10   :  { %9099 = vmatprep.subr.bf16.mxu1 %v18169_v35 }
 0xd12   :  { %9057 = vmatpush2.bf16.msra.mxu0 %v18158_v40 }
 0xd13   :  { %9058 = vmatprep.subr.bf16.mxu0 %v18166_v5  ;;  %9100 = vmatpush2.bf16.msra.mxu1 %v18167_v49 }
 0xd14   :  { %9101 = vmatprep.subr.bf16.mxu1 %v18175_v25 }
 0xd16   :  { %9059 = vmatpush2.bf16.msra.mxu0 %v18164_v3 }
 0xd17   :  { %9060 = vmatprep.subr.bf16.mxu0 %v18172_v4  ;;  %9102 = vmatpush2.bf16.msra.mxu1 %v18173_v23  ;;  %v18197_v4 = vld [vmem:[#allocation29 + $0xb8] sm:$0xff]   ;;  %v18201_v23 = vld [vmem:[#allocation29 + $0xb0] sm:$0xff]  }
 0xd18   :  { %9103 = vmatprep.subr.bf16.mxu1 %v18181_v55  ;;  %v18203_v55 = vld [vmem:[#allocation29 + $0xe8] sm:$0xff]  }
 0xd1a   :  { %9061 = vmatpush2.bf16.msra.mxu0 %v18170_v52  ;;  %v18199_v52 = vld [vmem:[#allocation29 + $0xf0] sm:$0xff]  }
 0xd1b   :  { %9062 = vmatprep.subr.bf16.mxu0 %v18178_v45  ;;  %9104 = vmatpush2.bf16.msra.mxu1 %v18179_v30  ;;  %v18202_v45 = vld [vmem:[#allocation29 + $0x68] sm:$0xff]   ;;  %v18206_v30 = vld [vmem:[#allocation29 + $0x60] sm:$0xff]  }
 0xd1c   :  { %9105 = vmatprep.subr.bf16.mxu1 %v18187_v12  ;;  %v18208_v12 = vld [vmem:[#allocation29 + $0x20] sm:$0xff]  }
 0xd1e   :  { %9063 = vmatpush2.bf16.msra.mxu0 %v18176_v0  ;;  %v18205_v0 = vld [vmem:[#allocation29 + $0xa8] sm:$0xff]  }
 0xd1f   :  { %9064 = vmatprep.subr.bf16.mxu0 %v18184_v50  ;;  %9106 = vmatpush2.bf16.msra.mxu1 %v18185_v38  ;;  %v18207_v50 = vld [vmem:[#allocation29 + $0xe0] sm:$0xff]   ;;  %v18211_v38 = vld [vmem:[#allocation29 + $0xd8] sm:$0xff]  }
 0xd20   :  { %9107 = vmatprep.subr.bf16.mxu1 %v18193_v48  ;;  %v18213_v48 = vld [vmem:[#allocation29 + $0x98] sm:$0xff]  }
 0xd22   :  { %9065 = vmatpush2.bf16.msra.mxu0 %v18182_v13  ;;  %v18210_v13 = vld [vmem:[#allocation29 + $0x58] sm:$0xff]  }
 0xd23   :  { %9066 = vmatprep.subr.bf16.mxu0 %v18190_v14  ;;  %9108 = vmatpush2.bf16.msra.mxu1 %v18191_v6  ;;  %v18212_v14 = vld [vmem:[#allocation29 + $0x18] sm:$0xff]   ;;  %v18216_v6 = vld [vmem:[#allocation29 + $0x10] sm:$0xff]  }
 0xd26   :  { %9067 = vmatpush2.bf16.msra.mxu0 %v18188_v16  ;;  %v18215_v16 = vld [vmem:[#allocation29 + $0xd0] sm:$0xff]  }
 0xda6   :  { %v20094_v28 = vpop.f32.mrf.mxu1 }
 0xda7   :  { %8420 = vst.msk [vmem:[#allocation2 + $0x8] sm:$0xff] %vm8085_vm1, %v20094_v28 }
 0xda8   :  { %v20098_v34 = vpop.f32.mrf.mxu1 }
 0xda9   :  { %8419 = vst.msk [vmem:[#allocation2] sm:$0xff] %vm8085_vm1, %v20098_v34  ;;  %v8372_v20 = vsub.f32 %v20098_v34, %v20015_v8 }
 0xdaa   :  { %v20102_v15 = vpop.f32.mrf.mxu1 }
 0xdab   :  { %8422 = vst.msk [vmem:[#allocation2 + $0x18] sm:$0xff] %vm8085_vm1, %v20102_v15 }
 0xdac   :  { %v20106_v11 = vpop.f32.mrf.mxu1 }
 0xdad   :  { %8421 = vst.msk [vmem:[#allocation2 + $0x10] sm:$0xff] %vm8085_vm1, %v20106_v11 }
 0xdae   :  { %v16171_v21 = vld.sshfl [vmem:[#allocation2 + $0x8] sm:$0x3 pattern:$0x76325410] }
 0xdaf   :  { %8476 = vrot.lane.b32.xlu0 %v16171_v21, %s19457_s15  ;;  %v16172_v10 = vld.sshfl [vmem:[#allocation2 + $0xa] sm:$0x3 pattern:$0x76325410]  ;;  %v8376_v21 = vmul.f32 %v8372_v20, %v8372_v20  ;;  %v18217_v20 = vld [vmem:[#allocation29 + $0x90] sm:$0xff]  }
 0xdb0   :  { %v8423_v24 = vld [vmem:[#allocation2] sm:$0x3]  ;;  %v16168_v29 = vld.sshfl [vmem:[#allocation2 + $0x2] sm:$0x3 pattern:$0x76325410] }
 0xdb1   :  { %8424 = vst.msk [vmem:[#allocation3] sm:$0x3] %vm7885_vm0, %v8423_v24  ;;  %8434 = vrot.lane.b32.xlu1 %v16168_v29, %s19444_s29  ;;  %v16169_v61 = vld.sshfl [vmem:[#allocation2 + $0x4] sm:$0x3 pattern:$0x76325410]  ;;  %v8374_v24 = vsub.f32 %v20106_v11, %v20034_v18  ;;  %v8375_v29 = vsub.f32 %v20102_v15, %v20041_v59 }
 0xdb2   :  { %v16170_v37 = vld.sshfl [vmem:[#allocation2 + $0x6] sm:$0x3 pattern:$0x76325410]  ;;  %v8380_v33 = vsel %vm8085_vm1, %v8376_v21, 0.0  ;;  %v18194_v11 = vld [vmem:[#allocation29 + $0x78] sm:$0xff]  }
 0xdb3   :  { %8490 = vrot.lane.b32.xlu0 %v16172_v10, %s19474_s16  ;;  %v16178_v31 = vld.sshfl [vmem:[#allocation2 + $0x18] sm:$0x3 pattern:$0x76325410]  ;;  %v8378_v10 = vmul.f32 %v8374_v24, %v8374_v24  ;;  %v8379_v56 = vmul.f32 %v8375_v29, %v8375_v29  ;;  %v18195_v59 = vld [vmem:[#allocation29 + $0xf8] sm:$0xff]   ;;  %17115 = vmatprep.subr.bf16.mxu0 %v18194_v11 }
 0xdb4   :  { %v8523_v60 = vld [vmem:[#allocation2 + $0x10] sm:$0x3]  ;;  %v16175_v62 = vld.sshfl [vmem:[#allocation2 + $0x12] sm:$0x3 pattern:$0x76325410]  ;;  %17137 = vmatprep.subr.bf16.mxu1 %v18195_v59 }
 0xdb5   :  { %8524 = vst.msk [vmem:[#allocation3 + $0x2] sm:$0x3] %vm7885_vm0, %v8523_v60  ;;  %8448 = vrot.lane.b32.xlu1 %v16169_v61, %s19453_s9  ;;  %v16179_v27 = vld.sshfl [vmem:[#allocation2 + $0x1a] sm:$0x3 pattern:$0x76325410]  ;;  %v8373_v61 = vsub.f32 %v20094_v28, %v20024_v54 }
 0xdb6   :  { %v16173_v7 = vld.sshfl [vmem:[#allocation2 + $0xc] sm:$0x3 pattern:$0x76325410]  ;;  %v8386_v60 = vsel %vm8085_vm1, %v8378_v10, 0.0  ;;  %v8389_v8 = vsel %vm8085_vm1, %v8379_v56, 0.0 }
 0xdb7   :  { %8462 = vrot.lane.b32.xlu0 %v16170_v37, %s19477_s2  ;;  %v16180_v41 = vld.sshfl [vmem:[#allocation2 + $0x1c] sm:$0x3 pattern:$0x76325410]  ;;  %v8377_v34 = vmul.f32 %v8373_v61, %v8373_v61  ;;  %vm8437_vm0 = vcmask 255104  }
 0xdb8   :  { %v16174_v51 = vld.sshfl [vmem:[#allocation2 + $0xe] sm:$0x3 pattern:$0x76325410] }
 0xdb9   :  { %8573 = vrot.lane.b32.xlu1 %v16178_v31, %s19457_s15  ;;  %v16176_v22 = vld.sshfl [vmem:[#allocation2 + $0x14] sm:$0x3 pattern:$0x76325410]  ;;  %v8383_v18 = vsel %vm8085_vm1, %v8377_v34, 0.0  ;;  %vm8507_vm1 = vcmask 911104  }
 0xdba   :  { %v16177_v9 = vld.sshfl [vmem:[#allocation2 + $0x16] sm:$0x3 pattern:$0x76325410] }
 0xdbb   :  { %8534 = vrot.lane.b32.xlu0 %v16175_v62, %s19444_s29  ;;  %v16181_v17 = vld.sshfl [vmem:[#allocation2 + $0x1e] sm:$0x3 pattern:$0x76325410] }
 0xdbd   :  { %8586 = vrot.lane.b32.xlu1 %v16179_v27, %s19474_s16 }
 0xdbf   :  { %8504 = vrot.lane.b32.xlu0 %v16173_v7, %s19476_s0  ;;  %v18196_v7 = vld [vmem:[#allocation29 + $0x38] sm:$0xff]  }
 0xdc1   :  { %8599 = vrot.lane.b32.xlu1 %v16180_v41, %s19476_s0  ;;  %v18198_v41 = vld [vmem:[#allocation29 + $0x70] sm:$0xff]  }
 0xdc3   :  { %8518 = vrot.lane.b32.xlu0 %v16174_v51, %s19475_s10  ;;  %v18200_v51 = vld [vmem:[#allocation29 + $0x30] sm:$0xff]  }
 0xdc5   :  { %8547 = vrot.lane.b32.xlu1 %v16176_v22, %s19453_s9  ;;  %v18204_v22 = vld [vmem:[#allocation29 + $0x28] sm:$0xff]  }
 0xdc9   :  { %8560 = vrot.lane.b32.xlu1 %v16177_v9, %s19477_s2  ;;  %v18209_v9 = vld [vmem:[#allocation29 + $0xa0] sm:$0xff]  }
 0xdcd   :  { %8612 = vrot.lane.b32.xlu1 %v16181_v17, %s19475_s10  ;;  %v18214_v17 = vld [vmem:[#allocation29 + $0x50] sm:$0xff]  }
 0xde2   :  { %8381 = vadd.xlane.f32.xlu0 %v8380_v33 }
 0xde6   :  { %8387 = vadd.xlane.f32.xlu0 %v8386_v60 }
 0xdea   :  { %8390 = vadd.xlane.f32.xlu0 %v8389_v8 }
 0xdf1   :  { %8384 = vadd.xlane.f32.xlu1 %v8383_v18 }
 0xe21   :  { %v8477_v15 = vpop.permute.xlu0 %8476 }
 0xe23   :  { %v8435_v32 = vpop.permute.xlu1 %8434 }
 0xe24   :  { %8438 = vst.msk [vmem:[#allocation3] sm:$0x3] %vm8437_vm0, %v8435_v32  ;;  %v18219_v32 = vld [vmem:[#allocation29 + $0xc8] sm:$0xff]  }
 0xe25   :  { %v8491_v37 = vpop.permute.xlu0 %8490 }
 0xe27   :  { %v8449_v19 = vpop.permute.xlu1 %8448 }
 0xe28   :  { %8452 = vst.msk [vmem:[#allocation3] sm:$0x3] %vm8451_vm2, %v8449_v19  ;;  %v18221_v19 = vld [vmem:[#allocation29 + $0x88] sm:$0xff]  }
 0xe29   :  { %v8463_v54 = vpop.permute.xlu0 %8462 }
 0xe2a   :  { %8466 = vst.msk [vmem:[#allocation3] sm:$0x3] %vm8465_vm3, %v8463_v54  ;;  %v18222_v54 = vld [vmem:[#allocation29 + $0x40] sm:$0xff]  }
 0xe2b   :  { %8480 = vst.msk [vmem:[#allocation3] sm:$0x3] %vm8479_vm4, %v8477_v15  ;;  %v8574_v28 = vpop.permute.xlu1 %8573  ;;  %v18218_v15 = vld [vmem:[#allocation29 + $0x48] sm:$0xff]  }
 0xe2c   :  { %8494 = vst.msk [vmem:[#allocation3] sm:$0x3] %vm8493_vm5, %v8491_v37  ;;  %v18220_v37 = vld [vmem:[#allocation29 + $0x8] sm:$0xff]  }
 0xe2d   :  { %v8535_v40 = vpop.permute.xlu0 %8534 }
 0xe2e   :  { %8537 = vst.msk [vmem:[#allocation3 + $0x2] sm:$0x3] %vm8437_vm0, %v8535_v40  ;;  %v18224_v40 = vld [vmem:[#allocation29] sm:$0xff]  }
 0xe2f   :  { %v8587_v31 = vpop.permute.xlu1 %8586 }
 0xe31   :  { %v8505_v63 = vpop.permute.xlu0 %8504 }
 0xe32   :  { %8508 = vst.msk [vmem:[#allocation3] sm:$0x3] %vm8507_vm1, %v8505_v63  ;;  %v18228_v63 = vld [vmem:[#allocation30 + $0xe4] ss:$16 sps:$4 sm:$0xff]  }
 0xe33   :  { %v8600_v58 = vpop.permute.xlu1 %8599 }
 0xe35   :  { %v8519_v62 = vpop.permute.xlu0 %8518 }
 0xe36   :  { %8522 = vst.msk [vmem:[#allocation3] sm:$0x3] %vm8521_vm6, %v8519_v62  ;;  %v8694_v62 = vld [vmem:[#allocation27] sm:$0xf] }
 0xe37   :  { %v8548_v1 = vpop.permute.xlu1 %8547 }
 0xe38   :  { %8550 = vst.msk [vmem:[#allocation3 + $0x2] sm:$0x3] %vm8451_vm2, %v8548_v1  ;;  %v8699_v1 = vrot.slane %v8694_v62, %v19792_v26 }
 0xe3b   :  { %v8561_v27 = vpop.permute.xlu1 %8560 }
 0xe3c   :  { %8563 = vst.msk [vmem:[#allocation3 + $0x2] sm:$0x3] %vm8465_vm3, %v8561_v27  ;;  %v8707_v27 = vrot.slane %v8694_v62, %v19843_v2 }
 0xe3d   :  { %8576 = vst.msk [vmem:[#allocation3 + $0x2] sm:$0x3] %vm8479_vm4, %v8574_v28  ;;  %v18223_v28 = vld [vmem:[#allocation29 + $0xc0] sm:$0xff]  }
 0xe3e   :  { %8589 = vst.msk [vmem:[#allocation3 + $0x2] sm:$0x3] %vm8493_vm5, %v8587_v31  ;;  %v18225_v31 = vld [vmem:[#allocation29 + $0x80] sm:$0xff]  }
 0xe3f   :  { %8602 = vst.msk [vmem:[#allocation3 + $0x2] sm:$0x3] %vm8507_vm1, %v8600_v58  ;;  %v8613_v3 = vpop.permute.xlu1 %8612  ;;  %v18231_v58 = vld [vmem:[#allocation30 + $0xec] ss:$16 sps:$4 sm:$0xff]  }
 0xe40   :  { %8615 = vst.msk [vmem:[#allocation3 + $0x2] sm:$0x3] %vm8521_vm6, %v8613_v3  ;;  %v8703_v3 = vrot.slane %v8694_v62, %v19795_v36 }
 0xe47   :  { %v16182_v5 = vld.sshfl [vmem:[#allocation3] sm:$0x33 pattern:$0x76325410] }
 0xe48   :  { %v8625_v49 = vcombine.high %v16182_v5, %v16182_v5  ;;  %v8628_v25 = vpack.c.bf16 %v16182_v5, %v16182_v5  ;;  %v8711_v5 = vrot.slane %v8694_v62, %v19823_v43  ;;  %v18268_v62 = vld [vmem:[#allocation30] ss:$16 sps:$4 sm:$0xff]  }
 0xe4a   :  { %v8629_v35 = vpack.c.bf16 %v8625_v49, %v8625_v49 }
 0xe4c   :  { %9068 = vmatprep.mubr.bf16.mxu0 %v8629_v35  ;;  %9109 = vmatprep.mubr.bf16.mxu1 %v8629_v35 }
 0xe4d   :  { %9069 = vmatmul.mubr.bf16.vlgmr.msra.gmra.mxu0 %v8628_v25  ;;  %9110 = vmatmul.mubr.bf16.vlgmr.msra.gmra.mxu1 %v8628_v25 }
 0xe4e   :  { %17116 = vmatpush3.bf16.msra.mxu0 %v18196_v7  ;;  %17138 = vmatpush3.bf16.msra.mxu1 %v18197_v4 }
 0xe4f   :  { %17117 = vmatprep.subr.bf16.mxu0 %v18198_v41  ;;  %17139 = vmatprep.subr.bf16.mxu1 %v18199_v52 }
 0xe52   :  { %17118 = vmatpush3.bf16.msra.mxu0 %v18200_v51  ;;  %17140 = vmatpush3.bf16.msra.mxu1 %v18201_v23 }
 0xe53   :  { %17119 = vmatprep.subr.bf16.mxu0 %v18202_v45  ;;  %17141 = vmatprep.subr.bf16.mxu1 %v18203_v55 }
 0xe56   :  { %17120 = vmatpush3.bf16.msra.mxu0 %v18204_v22  ;;  %17142 = vmatpush3.bf16.msra.mxu1 %v18205_v0 }
 0xe57   :  { %17121 = vmatprep.subr.bf16.mxu0 %v18206_v30  ;;  %17143 = vmatprep.subr.bf16.mxu1 %v18207_v50 }
 0xe5a   :  { %17122 = vmatpush3.bf16.msra.mxu0 %v18208_v12  ;;  %17144 = vmatpush3.bf16.msra.mxu1 %v18209_v9 }
 0xe5b   :  { %17123 = vmatprep.subr.bf16.mxu0 %v18210_v13  ;;  %17145 = vmatprep.subr.bf16.mxu1 %v18211_v38  ;;  %v18226_v38 = vld [vmem:[#allocation30 + $0xe0] ss:$16 sps:$4 sm:$0xff]  }
 0xe5e   :  { %17124 = vmatpush3.bf16.msra.mxu0 %v18212_v14  ;;  %17146 = vmatpush3.bf16.msra.mxu1 %v18213_v48  ;;  %v18229_v14 = vld [vmem:[#allocation30 + $0xe8] ss:$16 sps:$4 sm:$0xff]  }
 0xe5f   :  { %17125 = vmatprep.subr.bf16.mxu0 %v18214_v17  ;;  %17147 = vmatprep.subr.bf16.mxu1 %v18215_v16  ;;  %v18234_v16 = vld [vmem:[#allocation30 + $0xc4] ss:$16 sps:$4 sm:$0xff]  }
 0xe62   :  { %17126 = vmatpush3.bf16.msra.mxu0 %v18216_v6  ;;  %17148 = vmatpush3.bf16.msra.mxu1 %v18217_v20  ;;  %v18237_v6 = vld [vmem:[#allocation30 + $0xcc] ss:$16 sps:$4 sm:$0xff]   ;;  %v18232_v20 = vld [vmem:[#allocation30 + $0xc0] ss:$16 sps:$4 sm:$0xff]  }
 0xe63   :  { %17127 = vmatprep.subr.bf16.mxu0 %v18218_v15  ;;  %17149 = vmatprep.subr.bf16.mxu1 %v18219_v32  ;;  %v18258_v15 = vld [vmem:[#allocation30 + $0x44] ss:$16 sps:$4 sm:$0xff]   ;;  %v18261_v32 = vld [vmem:[#allocation30 + $0x4c] ss:$16 sps:$4 sm:$0xff]  }
 0xe66   :  { %17128 = vmatpush3.bf16.msra.mxu0 %v18220_v37  ;;  %17150 = vmatpush3.bf16.msra.mxu1 %v18221_v19  ;;  %v18256_v37 = vld [vmem:[#allocation30 + $0x40] ss:$16 sps:$4 sm:$0xff]   ;;  %v18259_v19 = vld [vmem:[#allocation30 + $0x48] ss:$16 sps:$4 sm:$0xff]  }
 0xe67   :  { %17129 = vmatprep.subr.bf16.mxu0 %v18222_v54  ;;  %17151 = vmatprep.subr.bf16.mxu1 %v18223_v28  ;;  %v18262_v54 = vld [vmem:[#allocation30 + $0x20] ss:$16 sps:$4 sm:$0xff]   ;;  %v18264_v28 = vld [vmem:[#allocation30 + $0x24] ss:$16 sps:$4 sm:$0xff]  }
 0xe6a   :  { %17130 = vmatpush3.bf16.msra.mxu0 %v18224_v40  ;;  %17152 = vmatpush3.bf16.msra.mxu1 %v18225_v31  ;;  %v18265_v40 = vld [vmem:[#allocation30 + $0x28] ss:$16 sps:$4 sm:$0xff]   ;;  %v18267_v31 = vld [vmem:[#allocation30 + $0x2c] ss:$16 sps:$4 sm:$0xff]  }
 0xe6b   :  { %v8382_v21 = vpop.xlane.xlu0 %8381  ;;  %9656 = vmatprep.subr.bf16.mxu0 %v18228_v63  ;;  %9697 = vmatprep.subr.bf16.mxu1 %v18231_v58  ;;  %v18270_v63 = vld [vmem:[#allocation30 + $0x4] ss:$16 sps:$4 sm:$0xff]   ;;  %v18273_v58 = vld [vmem:[#allocation30 + $0xc] ss:$16 sps:$4 sm:$0xff]  }
 0xe6f   :  { %v8388_v24 = vpop.xlane.xlu0 %8387 }
 0xe73   :  { %v8391_v56 = vpop.xlane.xlu0 %8390 }
 0xe7a   :  { %v8385_v29 = vpop.xlane.xlu1 %8384 }
 0xe7b   :  { %v8392_v10 = vadd.f32 %v8385_v29, %v8382_v21  ;;  %v18235_v21 = vld [vmem:[#allocation30 + $0xc8] ss:$16 sps:$4 sm:$0xff]   ;;  %v18243_v29 = vld [vmem:[#allocation30 + $0xac] ss:$16 sps:$4 sm:$0xff]  }
 0xe7d   :  { %v8393_v33 = vadd.f32 %v8392_v10, %v8388_v24  ;;  %v18240_v24 = vld [vmem:[#allocation30 + $0xa4] ss:$16 sps:$4 sm:$0xff]   ;;  %v18238_v10 = vld [vmem:[#allocation30 + $0xa0] ss:$16 sps:$4 sm:$0xff]  }
 0xe7f   :  { %v8394_v60 = vadd.f32 %v8393_v33, %v8391_v56  ;;  %v18241_v33 = vld [vmem:[#allocation30 + $0xa8] ss:$16 sps:$4 sm:$0xff]   ;;  %v18246_v56 = vld [vmem:[#allocation30 + $0x84] ss:$16 sps:$4 sm:$0xff]  }
 0xe81   :  { %v8395_v61 = vrot.slane %v8394_v60, 4 }
 0xe83   :  { %v8396_v8 = vadd.f32 %v8395_v61, %v8394_v60  ;;  %v18249_v60 = vld [vmem:[#allocation30 + $0x8c] ss:$16 sps:$4 sm:$0xff]   ;;  %v18244_v61 = vld [vmem:[#allocation30 + $0x80] ss:$16 sps:$4 sm:$0xff]  }
 0xe85   :  { %v8397_v34 = vrot.slane %v8396_v8, 2 }
 0xe87   :  { %v8398_v18 = vadd.f32 %v8397_v34, %v8396_v8  ;;  %v18247_v8 = vld [vmem:[#allocation30 + $0x88] ss:$16 sps:$4 sm:$0xff]   ;;  %v18252_v34 = vld [vmem:[#allocation30 + $0x64] ss:$16 sps:$4 sm:$0xff]  }
 0xe89   :  { %v8399_v11 = vrot.slane %v8398_v18, 1 }
 0xe8b   :  { %v8400_v59 = vadd.f32 %v8399_v11, %v8398_v18  ;;  %v18255_v18 = vld [vmem:[#allocation30 + $0x6c] ss:$16 sps:$4 sm:$0xff]   ;;  %v18250_v11 = vld [vmem:[#allocation30 + $0x60] ss:$16 sps:$4 sm:$0xff]  }
 0xe8d   :  { %8418 = vst.msk [vmem:[%s20357_s27] sm:$0x1] %vm8417_vm7, %v8400_v59  ;;  %v18253_v59 = vld [vmem:[#allocation30 + $0x68] ss:$16 sps:$4 sm:$0xff]  }
 0xf0d   :  { %v9070_v49 = vpop.f32.mrf.mxu0  ;;  %v9111_v35 = vpop.f32.mrf.mxu1 }
 0xf0e   :  { %v20155_v7 = vadd.f32 %v9070_v49, %v8699_v1  ;;  %v20157_v4 = vadd.f32 %v9111_v35, %v8707_v27  ;;  %v18271_v1 = vld [vmem:[#allocation30 + $0x8] ss:$16 sps:$4 sm:$0xff]  }
 0xf0f   :  { %v9072_v25 = vpop.f32.mrf.mxu0  ;;  %v9113_v41 = vpop.f32.mrf.mxu1  ;;  %v18274_v27 = vld [vmem:[#allocation32 + $0x78] sm:$0xff]  }
 0xf10   :  { %v20159_v52 = vadd.f32 %v9072_v25, %v8703_v3  ;;  %v20161_v51 = vadd.f32 %v9113_v41, %v8711_v5  ;;  %v9118_v23 = vmax.f32 %v20155_v7, 0.0  ;;  %v9120_v45 = vmax.f32 %v20157_v4, 0.0  ;;  %v18275_v3 = vld [vmem:[#allocation32 + $0xf8] sm:$0xff]  }
 0xf11   :  { %v9074_v55 = vpop.f32.mrf.mxu0  ;;  %v9115_v22 = vpop.f32.mrf.mxu1 }
 0xf12   :  { %v9119_v0 = vmax.f32 %v20159_v52, 0.0  ;;  %v9121_v30 = vmax.f32 %v20161_v51, 0.0  ;;  %v9122_v48 = vpack.c.bf16 %v9118_v23, %v9118_v23  ;;  %v9124_v17 = vpack.c.bf16 %v9120_v45, %v9120_v45 }
 0xf13   :  { %v9075_v50 = vpop.f32.mrf.mxu0  ;;  %v9116_v12 = vpop.f32.mrf.mxu1 }
 0xf14   :  { %v9123_v9 = vpack.c.bf16 %v9119_v0, %v9119_v0  ;;  %v9125_v13 = vpack.c.bf16 %v9121_v30, %v9121_v30  ;;  %v18276_v12 = vld [vmem:[#allocation32 + $0x38] sm:$0xff]  }
 0xf16   :  { %9414 = vmatprep.mubr.bf16.mxu0 %v9123_v9  ;;  %9454 = vmatprep.mubr.bf16.mxu1 %v9125_v13  ;;  %v18277_v9 = vld [vmem:[#allocation32 + $0xb8] sm:$0xff]  }
 0xf17   :  { %9415 = vmatmul.mubr.bf16.vlgmr.msra.gmra.mxu0 %v9122_v48  ;;  %9455 = vmatmul.mubr.bf16.vlgmr.msra.gmra.mxu1 %v9124_v17  ;;  %v18280_v48 = vld [vmem:[#allocation32 + $0x30] sm:$0xff]  }
 0xf18   :  { %9657 = vmatpush1.bf16.msra.mxu0 %v18226_v38  ;;  %9698 = vmatpush1.bf16.msra.mxu1 %v18229_v14  ;;  %v18278_v38 = vld [vmem:[#allocation32 + $0x70] sm:$0xff]  }
 0xf19   :  { %9658 = vmatprep.subr.bf16.mxu0 %v18234_v16  ;;  %9699 = vmatprep.subr.bf16.mxu1 %v18237_v6  ;;  %v18279_v14 = vld [vmem:[#allocation32 + $0xf0] sm:$0xff]   ;;  %v18282_v16 = vld [vmem:[#allocation32 + $0x68] sm:$0xff]  }
 0xf1a   :  { %9688 = vmatprep.mubr.bf16.mxu0 %v19473_v57  ;;  %9729 = vmatprep.mubr.bf16.mxu1 %v19473_v57  ;;  %v18281_v17 = vld [vmem:[#allocation32 + $0xb0] sm:$0xff]   ;;  %v18283_v6 = vld [vmem:[#allocation32 + $0xe8] sm:$0xff]  }
 0xf1c   :  { %9659 = vmatpush1.bf16.msra.mxu0 %v18232_v20  ;;  %9700 = vmatpush1.bf16.msra.mxu1 %v18235_v21  ;;  %v18284_v20 = vld [vmem:[#allocation32 + $0x28] sm:$0xff]  }
 0xf1d   :  { %9660 = vmatprep.subr.bf16.mxu0 %v18240_v24  ;;  %9701 = vmatprep.subr.bf16.mxu1 %v18243_v29  ;;  %v18285_v21 = vld [vmem:[#allocation32 + $0xa8] sm:$0xff]   ;;  %v18286_v24 = vld [vmem:[#allocation32 + $0x60] sm:$0xff]  }
 0xf1e   :  { %v18287_v29 = vld [vmem:[#allocation32 + $0xe0] sm:$0xff]  }
 0xf20   :  { %9661 = vmatpush1.bf16.msra.mxu0 %v18238_v10  ;;  %9702 = vmatpush1.bf16.msra.mxu1 %v18241_v33  ;;  %v18288_v10 = vld [vmem:[#allocation32 + $0x20] sm:$0xff]  }
 0xf21   :  { %9662 = vmatprep.subr.bf16.mxu0 %v18246_v56  ;;  %9703 = vmatprep.subr.bf16.mxu1 %v18249_v60  ;;  %v18289_v33 = vld [vmem:[#allocation32 + $0xa0] sm:$0xff]   ;;  %v18290_v56 = vld [vmem:[#allocation32 + $0x58] sm:$0xff]  }
 0xf22   :  { %v18291_v60 = vld [vmem:[#allocation32 + $0xd8] sm:$0xff]  }
 0xf24   :  { %9663 = vmatpush1.bf16.msra.mxu0 %v18244_v61  ;;  %9704 = vmatpush1.bf16.msra.mxu1 %v18247_v8  ;;  %v18292_v61 = vld [vmem:[#allocation32 + $0x18] sm:$0xff]  }
 0xf25   :  { %9664 = vmatprep.subr.bf16.mxu0 %v18252_v34  ;;  %9705 = vmatprep.subr.bf16.mxu1 %v18255_v18  ;;  %v18293_v8 = vld [vmem:[#allocation32 + $0x98] sm:$0xff]   ;;  %v18294_v34 = vld [vmem:[#allocation32 + $0x50] sm:$0xff]  }
 0xf26   :  { %v18295_v18 = vld [vmem:[#allocation32 + $0xd0] sm:$0xff]  }
 0xf28   :  { %9665 = vmatpush1.bf16.msra.mxu0 %v18250_v11  ;;  %9706 = vmatpush1.bf16.msra.mxu1 %v18253_v59  ;;  %v18296_v11 = vld [vmem:[#allocation32 + $0x10] sm:$0xff]  }
 0xf29   :  { %9666 = vmatprep.subr.bf16.mxu0 %v18258_v15  ;;  %9707 = vmatprep.subr.bf16.mxu1 %v18261_v32  ;;  %v18297_v59 = vld [vmem:[#allocation32 + $0x90] sm:$0xff]   ;;  %v18298_v15 = vld [vmem:[#allocation32 + $0x48] sm:$0xff]  }
 0xf2a   :  { %v18299_v32 = vld [vmem:[#allocation32 + $0xc8] sm:$0xff]  }
 0xf2c   :  { %9667 = vmatpush1.bf16.msra.mxu0 %v18256_v37  ;;  %9708 = vmatpush1.bf16.msra.mxu1 %v18259_v19  ;;  %v18300_v37 = vld [vmem:[#allocation32 + $0x8] sm:$0xff]  }
 0xf2d   :  { %9668 = vmatprep.subr.bf16.mxu0 %v18264_v28  ;;  %9709 = vmatprep.subr.bf16.mxu1 %v18267_v31  ;;  %v18301_v19 = vld [vmem:[#allocation32 + $0x88] sm:$0xff]   ;;  %v18303_v28 = vld [vmem:[#allocation32 + $0xc0] sm:$0xff]  }
 0xf2e   :  { %v18305_v31 = vld [vmem:[#allocation32 + $0x80] sm:$0xff]  }
 0xf30   :  { %9669 = vmatpush1.bf16.msra.mxu0 %v18262_v54  ;;  %9710 = vmatpush1.bf16.msra.mxu1 %v18265_v40  ;;  %v18302_v54 = vld [vmem:[#allocation32 + $0x40] sm:$0xff]  }
 0xf31   :  { %9670 = vmatprep.subr.bf16.mxu0 %v18270_v63  ;;  %9711 = vmatprep.subr.bf16.mxu1 %v18273_v58  ;;  %v18304_v40 = vld [vmem:[#allocation32] sm:$0xff]   ;;  %v18311_v58 = vld [vmem:[#allocation33 + $0xec] ss:$16 sps:$4 sm:$0xff]  }
 0xf32   :  { %v18308_v63 = vld [vmem:[#allocation33 + $0xe4] ss:$16 sps:$4 sm:$0xff]  }
 0xf34   :  { %9671 = vmatpush1.bf16.msra.mxu0 %v18268_v62  ;;  %9712 = vmatpush1.bf16.msra.mxu1 %v18271_v1 }
 0xf35   :  { %17159 = vmatprep.subr.bf16.mxu0 %v18274_v27  ;;  %17181 = vmatprep.subr.bf16.mxu1 %v18275_v3 }
 0xfd7   :  { %v17131_v5 = vpop.f32.mrf.mxu0  ;;  %v17153_v49 = vpop.f32.mrf.mxu1 }
 0xfd9   :  { %v17132_v35 = vpop.f32.mrf.mxu0  ;;  %v17154_v25 = vpop.f32.mrf.mxu1 }
 0xfda   :  { %v17133_v41 = vadd.f32 %v17132_v35, %v17131_v5  ;;  %v17155_v23 = vadd.f32 %v17154_v25, %v17153_v49 }
 0xfdb   :  { %v17134_v45 = vpop.f32.mrf.mxu0  ;;  %v17156_v55 = vpop.f32.mrf.mxu1 }
 0xfdc   :  { %v9457_v22 = vadd.f32 %v17155_v23, %v17133_v41 }
 0xfdd   :  { %v17135_v0 = vpop.f32.mrf.mxu0  ;;  %v17157_v30 = vpop.f32.mrf.mxu1 }
 0xfde   :  { %v9462_v50 = vmax.f32 %v9457_v22, 0.0 }
 0xfe0   :  { %v9463_v13 = vpack.c.bf16 %v9462_v50, %v9462_v50 }
 0xfe2   :  { %9689 = vmatmul.mubr.bf16.vlgmr.msra.gmra.mxu0 %v9463_v13  ;;  %9730 = vmatmul.mubr.bf16.vlgmr.msra.gmra.mxu1 %v9463_v13 }
 0xfe3   :  { %17160 = vmatpush3.bf16.msra.mxu0 %v18276_v12  ;;  %17182 = vmatpush3.bf16.msra.mxu1 %v18277_v9  ;;  %v18306_v12 = vld [vmem:[#allocation33 + $0xe0] ss:$16 sps:$4 sm:$0xff]  }
 0xfe4   :  { %17161 = vmatprep.subr.bf16.mxu0 %v18278_v38  ;;  %17183 = vmatprep.subr.bf16.mxu1 %v18279_v14  ;;  %v18317_v38 = vld [vmem:[#allocation33 + $0xcc] ss:$16 sps:$4 sm:$0xff]   ;;  %v18312_v14 = vld [vmem:[#allocation33 + $0xc0] ss:$16 sps:$4 sm:$0xff]  }
 0xfe7   :  { %17162 = vmatpush3.bf16.msra.mxu0 %v18280_v48  ;;  %17184 = vmatpush3.bf16.msra.mxu1 %v18281_v17  ;;  %v18315_v48 = vld [vmem:[#allocation33 + $0xc8] ss:$16 sps:$4 sm:$0xff]   ;;  %v18320_v17 = vld [vmem:[#allocation33 + $0xa4] ss:$16 sps:$4 sm:$0xff]  }
 0xfe8   :  { %17163 = vmatprep.subr.bf16.mxu0 %v18282_v16  ;;  %17185 = vmatprep.subr.bf16.mxu1 %v18283_v6  ;;  %v18323_v16 = vld [vmem:[#allocation33 + $0xac] ss:$16 sps:$4 sm:$0xff]   ;;  %v18318_v6 = vld [vmem:[#allocation33 + $0xa0] ss:$16 sps:$4 sm:$0xff]  }
 0xfeb   :  { %17164 = vmatpush3.bf16.msra.mxu0 %v18284_v20  ;;  %17186 = vmatpush3.bf16.msra.mxu1 %v18285_v21  ;;  %v18321_v20 = vld [vmem:[#allocation33 + $0xa8] ss:$16 sps:$4 sm:$0xff]   ;;  %v18326_v21 = vld [vmem:[#allocation33 + $0x84] ss:$16 sps:$4 sm:$0xff]  }
 0xfec   :  { %17165 = vmatprep.subr.bf16.mxu0 %v18286_v24  ;;  %17187 = vmatprep.subr.bf16.mxu1 %v18287_v29  ;;  %v18329_v24 = vld [vmem:[#allocation33 + $0x8c] ss:$16 sps:$4 sm:$0xff]   ;;  %v18324_v29 = vld [vmem:[#allocation33 + $0x80] ss:$16 sps:$4 sm:$0xff]  }
 0xfef   :  { %17166 = vmatpush3.bf16.msra.mxu0 %v18288_v10  ;;  %17188 = vmatpush3.bf16.msra.mxu1 %v18289_v33  ;;  %v18327_v10 = vld [vmem:[#allocation33 + $0x88] ss:$16 sps:$4 sm:$0xff]   ;;  %v18332_v33 = vld [vmem:[#allocation33 + $0x64] ss:$16 sps:$4 sm:$0xff]  }
 0xff0   :  { %17167 = vmatprep.subr.bf16.mxu0 %v18290_v56  ;;  %17189 = vmatprep.subr.bf16.mxu1 %v18291_v60  ;;  %v18335_v56 = vld [vmem:[#allocation33 + $0x6c] ss:$16 sps:$4 sm:$0xff]   ;;  %v18330_v60 = vld [vmem:[#allocation33 + $0x60] ss:$16 sps:$4 sm:$0xff]  }
 0xff3   :  { %17168 = vmatpush3.bf16.msra.mxu0 %v18292_v61  ;;  %17190 = vmatpush3.bf16.msra.mxu1 %v18293_v8  ;;  %v18338_v61 = vld [vmem:[#allocation33 + $0x44] ss:$16 sps:$4 sm:$0xff]   ;;  %v18341_v8 = vld [vmem:[#allocation33 + $0x4c] ss:$16 sps:$4 sm:$0xff]  }
 0xff4   :  { %17169 = vmatprep.subr.bf16.mxu0 %v18294_v34  ;;  %17191 = vmatprep.subr.bf16.mxu1 %v18295_v18  ;;  %v18336_v34 = vld [vmem:[#allocation33 + $0x40] ss:$16 sps:$4 sm:$0xff]   ;;  %v18339_v18 = vld [vmem:[#allocation33 + $0x48] ss:$16 sps:$4 sm:$0xff]  }
 0xff7   :  { %17170 = vmatpush3.bf16.msra.mxu0 %v18296_v11  ;;  %17192 = vmatpush3.bf16.msra.mxu1 %v18297_v59  ;;  %v18342_v11 = vld [vmem:[#allocation33 + $0x20] ss:$16 sps:$4 sm:$0xff]   ;;  %v18344_v59 = vld [vmem:[#allocation33 + $0x24] ss:$16 sps:$4 sm:$0xff]  }
 0xff8   :  { %17171 = vmatprep.subr.bf16.mxu0 %v18298_v15  ;;  %17193 = vmatprep.subr.bf16.mxu1 %v18299_v32  ;;  %v18345_v15 = vld [vmem:[#allocation33 + $0x28] ss:$16 sps:$4 sm:$0xff]   ;;  %v18347_v32 = vld [vmem:[#allocation33 + $0x2c] ss:$16 sps:$4 sm:$0xff]  }
 0xffb   :  { %17172 = vmatpush3.bf16.msra.mxu0 %v18300_v37  ;;  %17194 = vmatpush3.bf16.msra.mxu1 %v18301_v19  ;;  %v18350_v37 = vld [vmem:[#allocation33 + $0x4] ss:$16 sps:$4 sm:$0xff]   ;;  %v18348_v19 = vld [vmem:[#allocation33] ss:$16 sps:$4 sm:$0xff]  }
 0xffc   :  { %17173 = vmatprep.subr.bf16.mxu0 %v18302_v54  ;;  %17195 = vmatprep.subr.bf16.mxu1 %v18303_v28  ;;  %v18353_v54 = vld [vmem:[#allocation33 + $0xc] ss:$16 sps:$4 sm:$0xff]   ;;  %v10430_v28 = vld [vmem:[#allocation35 + $0x1c0] sm:$0xff] }
 0xfff   :  { %17174 = vmatpush3.bf16.msra.mxu0 %v18304_v40  ;;  %17196 = vmatpush3.bf16.msra.mxu1 %v18305_v31  ;;  %v10434_v40 = vld [vmem:[#allocation35 + $0x1e0] sm:$0xff] }
0x1000   :  { %10280 = vmatprep.subr.bf16.mxu0 %v18308_v63  ;;  %10321 = vmatprep.subr.bf16.mxu1 %v18311_v58  ;;  %v10558_v31 = vld [vmem:[#allocation35 + $0x5c0] sm:$0xff]  ;;  %v18351_v58 = vld [vmem:[#allocation33 + $0x8] ss:$16 sps:$4 sm:$0xff]  }
0x1001   :  { %v10562_v63 = vld [vmem:[#allocation35 + $0x5e0] sm:$0xff] }
0x10a2   :  { %v9690_v62 = vpop.f32.mrf.mxu0  ;;  %v9731_v1 = vpop.f32.mrf.mxu1 }
0x10a3   :  { %v20170_v27 = vadd.f32 %v9690_v62, %v20155_v7  ;;  %v20173_v3 = vadd.f32 %v9731_v1, %v20157_v4  ;;  %v16431_v62 = vcombine.low %v10430_v28, %v10434_v40  ;;  %v16432_v1 = vcombine.high %v10430_v28, %v10434_v40 }
0x10a4   :  { %v9692_v5 = vpop.f32.mrf.mxu0  ;;  %v9733_v49 = vpop.f32.mrf.mxu1 }
0x10a5   :  { %v20176_v35 = vadd.f32 %v9692_v5, %v20159_v52  ;;  %v20179_v25 = vadd.f32 %v9733_v49, %v20161_v51  ;;  %v9742_v41 = vmax.f32 %v20170_v27, 0.0  ;;  %v9744_v23 = vmax.f32 %v20173_v3, 0.0  ;;  %v18309_v52 = vld [vmem:[#allocation33 + $0xe8] ss:$16 sps:$4 sm:$0xff]   ;;  %v18314_v51 = vld [vmem:[#allocation33 + $0xc4] ss:$16 sps:$4 sm:$0xff]  }
0x10a6   :  { %v9694_v45 = vpop.f32.mrf.mxu0  ;;  %v9735_v55 = vpop.f32.mrf.mxu1  ;;  %v16559_v5 = vcombine.low %v10558_v31, %v10562_v63  ;;  %v16560_v49 = vcombine.high %v10558_v31, %v10562_v63  ;;  %v10390_v31 = vld [vmem:[#allocation35 + $0x80] sm:$0xff] }
0x10a7   :  { %v9743_v7 = vmax.f32 %v20176_v35, 0.0  ;;  %v9745_v22 = vmax.f32 %v20179_v25, 0.0  ;;  %v9746_v9 = vpack.c.bf16 %v9742_v41, %v9742_v41  ;;  %v9748_v13 = vpack.c.bf16 %v9744_v23, %v9744_v23  ;;  %v10394_v63 = vld [vmem:[#allocation35 + $0xa0] sm:$0xff] }
0x10a8   :  { %v9695_v4 = vpop.f32.mrf.mxu0  ;;  %v9736_v0 = vpop.f32.mrf.mxu1 }
0x10a9   :  { %v9747_v30 = vpack.c.bf16 %v9743_v7, %v9743_v7  ;;  %v9749_v50 = vpack.c.bf16 %v9745_v22, %v9745_v22 }
0x10ab   :  { %10038 = vmatprep.mubr.bf16.mxu0 %v9747_v30  ;;  %10078 = vmatprep.mubr.bf16.mxu1 %v9749_v50  ;;  %v10422_v50 = vld [vmem:[#allocation35 + $0x180] sm:$0xff] }
0x10ac   :  { %10039 = vmatmul.mubr.bf16.vlgmr.msra.gmra.mxu0 %v9746_v9  ;;  %10079 = vmatmul.mubr.bf16.vlgmr.msra.gmra.mxu1 %v9748_v13  ;;  %v10426_v9 = vld [vmem:[#allocation35 + $0x1a0] sm:$0xff] }
0x10ad   :  { %10281 = vmatpush1.bf16.msra.mxu0 %v18306_v12  ;;  %10322 = vmatpush1.bf16.msra.mxu1 %v18309_v52  ;;  %v10550_v13 = vld [vmem:[#allocation35 + $0x580] sm:$0xff] }
0x10ae   :  { %10282 = vmatprep.subr.bf16.mxu0 %v18314_v51  ;;  %10323 = vmatprep.subr.bf16.mxu1 %v18317_v38  ;;  %v10554_v51 = vld [vmem:[#allocation35 + $0x5a0] sm:$0xff] }
0x10af   :  { %10312 = vmatprep.mubr.bf16.mxu0 %v19473_v57  ;;  %10353 = vmatprep.mubr.bf16.mxu1 %v19473_v57  ;;  %v18333_v57 = vld [vmem:[#allocation33 + $0x68] ss:$16 sps:$4 sm:$0xff]  }
0x10b1   :  { %10283 = vmatpush1.bf16.msra.mxu0 %v18312_v14  ;;  %10324 = vmatpush1.bf16.msra.mxu1 %v18315_v48  ;;  %v16424_v48 = vcombine.high %v10422_v50, %v10426_v9 }
0x10b2   :  { %10284 = vmatprep.subr.bf16.mxu0 %v18320_v17  ;;  %10325 = vmatprep.subr.bf16.mxu1 %v18323_v16  ;;  %v16552_v17 = vcombine.high %v10550_v13, %v10554_v51  ;;  %v10414_v16 = vld [vmem:[#allocation35 + $0x140] sm:$0xff] }
0x10b5   :  { %10285 = vmatpush1.bf16.msra.mxu0 %v18318_v6  ;;  %10326 = vmatpush1.bf16.msra.mxu1 %v18321_v20  ;;  %v10418_v6 = vld [vmem:[#allocation35 + $0x160] sm:$0xff] }
0x10b6   :  { %10286 = vmatprep.subr.bf16.mxu0 %v18326_v21  ;;  %10327 = vmatprep.subr.bf16.mxu1 %v18329_v24  ;;  %v10542_v20 = vld [vmem:[#allocation35 + $0x540] sm:$0xff]  ;;  %v16423_v24 = vcombine.low %v10422_v50, %v10426_v9 }
0x10b7   :  { %v10546_v21 = vld [vmem:[#allocation35 + $0x560] sm:$0xff] }
0x10b8   :  { %v10374_v50 = vld [vmem:[#allocation35] sm:$0xff] }
0x10b9   :  { %10287 = vmatpush1.bf16.msra.mxu0 %v18324_v29  ;;  %10328 = vmatpush1.bf16.msra.mxu1 %v18327_v10  ;;  %v16551_v29 = vcombine.low %v10550_v13, %v10554_v51  ;;  %v16416_v10 = vcombine.high %v10414_v16, %v10418_v6  ;;  %v10506_v9 = vld [vmem:[#allocation35 + $0x420] sm:$0xff] }
0x10ba   :  { %10288 = vmatprep.subr.bf16.mxu0 %v18332_v33  ;;  %10329 = vmatprep.subr.bf16.mxu1 %v18335_v56  ;;  %v16544_v33 = vcombine.high %v10542_v20, %v10546_v21  ;;  %v10406_v56 = vld [vmem:[#allocation35 + $0x100] sm:$0xff] }
0x10bd   :  { %10289 = vmatpush1.bf16.msra.mxu0 %v18330_v60  ;;  %10330 = vmatpush1.bf16.msra.mxu1 %v18333_v57  ;;  %v10410_v60 = vld [vmem:[#allocation35 + $0x120] sm:$0xff] }
0x10be   :  { %10290 = vmatprep.subr.bf16.mxu0 %v18338_v61  ;;  %10331 = vmatprep.subr.bf16.mxu1 %v18341_v8  ;;  %v10534_v57 = vld [vmem:[#allocation35 + $0x500] sm:$0xff]  ;;  %v16415_v8 = vcombine.low %v10414_v16, %v10418_v6 }
0x10bf   :  { %v10538_v61 = vld [vmem:[#allocation35 + $0x520] sm:$0xff] }
0x10c0   :  { %v10622_v16 = vld [vmem:[#allocation35 + $0x7c0] sm:$0xff] }
0x10c1   :  { %10291 = vmatpush1.bf16.msra.mxu0 %v18336_v34  ;;  %10332 = vmatpush1.bf16.msra.mxu1 %v18339_v18  ;;  %v16543_v34 = vcombine.low %v10542_v20, %v10546_v21  ;;  %v16408_v18 = vcombine.high %v10406_v56, %v10410_v60  ;;  %v10626_v6 = vld [vmem:[#allocation35 + $0x7e0] sm:$0xff] }
0x10c2   :  { %10292 = vmatprep.subr.bf16.mxu0 %v18344_v59  ;;  %10333 = vmatprep.subr.bf16.mxu1 %v18347_v32  ;;  %v10398_v59 = vld [vmem:[#allocation35 + $0xc0] sm:$0xff] }
0x10c3   :  { %v10526_v32 = vld [vmem:[#allocation35 + $0x4c0] sm:$0xff] }
0x10c5   :  { %10293 = vmatpush1.bf16.msra.mxu0 %v18342_v11  ;;  %10334 = vmatpush1.bf16.msra.mxu1 %v18345_v15  ;;  %v16536_v11 = vcombine.high %v10534_v57, %v10538_v61  ;;  %v10402_v15 = vld [vmem:[#allocation35 + $0xe0] sm:$0xff] }
0x10c6   :  { %10294 = vmatprep.subr.bf16.mxu0 %v18350_v37  ;;  %10335 = vmatprep.subr.bf16.mxu1 %v18353_v54  ;;  %v10530_v37 = vld [vmem:[#allocation35 + $0x4e0] sm:$0xff]  ;;  %v16535_v54 = vcombine.low %v10534_v57, %v10538_v61  ;;  %v16400_v28 = vcombine.high %v10398_v59, %v10402_v15  ;;  %v16623_v61 = vcombine.low %v10622_v16, %v10626_v6 }
0x10c7   :  { %v16528_v40 = vcombine.high %v10526_v32, %v10530_v37 }
0x10c9   :  { %10295 = vmatpush1.bf16.msra.mxu0 %v18348_v19  ;;  %10336 = vmatpush1.bf16.msra.mxu1 %v18351_v58  ;;  %v16407_v19 = vcombine.low %v10406_v56, %v10410_v60  ;;  %v10518_v58 = vld [vmem:[#allocation35 + $0x480] sm:$0xff] }
0x10ca   :  { %11952 = vmatprep.subr.bf16.mxu0 %v16432_v1  ;;  %11993 = vmatprep.subr.bf16.mxu1 %v16560_v49  ;;  %v16399_v1 = vcombine.low %v10398_v59, %v10402_v15  ;;  %v16392_v49 = vcombine.high %v10390_v31, %v10394_v63  ;;  %v10614_v56 = vld [vmem:[#allocation35 + $0x780] sm:$0xff] }
0x10cb   :  { %v10618_v60 = vld [vmem:[#allocation35 + $0x7a0] sm:$0xff] }
0x10cc   :  { %v10606_v59 = vld [vmem:[#allocation35 + $0x740] sm:$0xff] }
0x10cd   :  { %v10610_v15 = vld [vmem:[#allocation35 + $0x760] sm:$0xff] }
0x116c   :  { %v17175_v41 = vpop.f32.mrf.mxu0  ;;  %v17197_v23 = vpop.f32.mrf.mxu1 }
0x116e   :  { %v17176_v45 = vpop.f32.mrf.mxu0  ;;  %v17198_v55 = vpop.f32.mrf.mxu1 }
0x116f   :  { %v17177_v7 = vadd.f32 %v17176_v45, %v17175_v41  ;;  %v17199_v22 = vadd.f32 %v17198_v55, %v17197_v23  ;;  %v10382_v23 = vld [vmem:[#allocation35 + $0x40] sm:$0xff] }
0x1170   :  { %v17178_v4 = vpop.f32.mrf.mxu0  ;;  %v17200_v0 = vpop.f32.mrf.mxu1  ;;  %v10386_v45 = vld [vmem:[#allocation35 + $0x60] sm:$0xff] }
0x1171   :  { %v10081_v30 = vadd.f32 %v17199_v22, %v17177_v7  ;;  %v10510_v55 = vld [vmem:[#allocation35 + $0x440] sm:$0xff]  ;;  %v16391_v22 = vcombine.low %v10390_v31, %v10394_v63  ;;  %v16384_v0 = vcombine.high %v10382_v23, %v10386_v45  ;;  %v16383_v13 = vcombine.low %v10382_v23, %v10386_v45 }
0x1172   :  { %v17179_v12 = vpop.f32.mrf.mxu0  ;;  %v17201_v52 = vpop.f32.mrf.mxu1  ;;  %v10514_v7 = vld [vmem:[#allocation35 + $0x460] sm:$0xff] }
0x1173   :  { %v10086_v38 = vmax.f32 %v10081_v30, 0.0  ;;  %v16512_v30 = vcombine.high %v10510_v55, %v10514_v7  ;;  %v10378_v12 = vld [vmem:[#allocation35 + $0x20] sm:$0xff]  ;;  %v16511_v51 = vcombine.low %v10510_v55, %v10514_v7 }
0x1174   :  { %v10502_v52 = vld [vmem:[#allocation35 + $0x400] sm:$0xff]  ;;  %v16375_v20 = vcombine.low %v10374_v50, %v10378_v12 }
0x1175   :  { %v10087_v14 = vpack.c.bf16 %v10086_v38, %v10086_v38  ;;  %v16376_v38 = vcombine.high %v10374_v50, %v10378_v12  ;;  %v16503_v21 = vcombine.low %v10502_v52, %v10506_v9  ;;  %v10598_v31 = vld [vmem:[#allocation35 + $0x700] sm:$0xff] }
0x1176   :  { %v10602_v63 = vld [vmem:[#allocation35 + $0x720] sm:$0xff] }
0x1177   :  { %10313 = vmatmul.mubr.bf16.vlgmr.msra.gmra.mxu0 %v10087_v14  ;;  %10354 = vmatmul.mubr.bf16.vlgmr.msra.gmra.mxu1 %v10087_v14  ;;  %v16504_v14 = vcombine.high %v10502_v52, %v10506_v9  ;;  %v10590_v23 = vld [vmem:[#allocation35 + $0x6c0] sm:$0xff]  ;;  %v16599_v7 = vcombine.low %v10598_v31, %v10602_v63 }
0x1178   :  { %11953 = vmatpush1.bf16.msra.mxu0 %v16431_v62  ;;  %11994 = vmatpush1.bf16.msra.mxu1 %v16559_v5  ;;  %v10522_v62 = vld [vmem:[#allocation35 + $0x4a0] sm:$0xff]  ;;  %v16527_v5 = vcombine.low %v10526_v32, %v10530_v37  ;;  %v16615_v37 = vcombine.low %v10614_v56, %v10618_v60 }
0x1179   :  { %11954 = vmatprep.subr.bf16.mxu0 %v16424_v48  ;;  %11995 = vmatprep.subr.bf16.mxu1 %v16552_v17  ;;  %v16520_v41 = vcombine.high %v10518_v58, %v10522_v62  ;;  %v16519_v4 = vcombine.low %v10518_v58, %v10522_v62  ;;  %v10494_v48 = vld [vmem:[#allocation35 + $0x3c0] sm:$0xff]  ;;  %v16607_v62 = vcombine.low %v10606_v59, %v10610_v15 }
0x117a   :  { %v10498_v17 = vld [vmem:[#allocation35 + $0x3e0] sm:$0xff] }
0x117b   :  { %v16495_v57 = vcombine.low %v10494_v48, %v10498_v17  ;;  %v10594_v45 = vld [vmem:[#allocation35 + $0x6e0] sm:$0xff] }
0x117c   :  { %11955 = vmatpush1.bf16.msra.mxu0 %v16423_v24  ;;  %11996 = vmatpush1.bf16.msra.mxu1 %v16551_v29  ;;  %v16496_v24 = vcombine.high %v10494_v48, %v10498_v17  ;;  %v16624_v29 = vcombine.high %v10622_v16, %v10626_v6  ;;  %v10582_v50 = vld [vmem:[#allocation35 + $0x680] sm:$0xff]  ;;  %v16591_v9 = vcombine.low %v10590_v23, %v10594_v45 }
0x117d   :  { %11956 = vmatprep.subr.bf16.mxu0 %v16416_v10  ;;  %11997 = vmatprep.subr.bf16.mxu1 %v16544_v33  ;;  %v10486_v10 = vld [vmem:[#allocation35 + $0x380] sm:$0xff] }
0x117e   :  { %v10490_v33 = vld [vmem:[#allocation35 + $0x3a0] sm:$0xff] }
0x117f   :  { %v16487_v32 = vcombine.low %v10486_v10, %v10490_v33  ;;  %v10586_v12 = vld [vmem:[#allocation35 + $0x6a0] sm:$0xff] }
0x1180   :  { %11957 = vmatpush1.bf16.msra.mxu0 %v16415_v8  ;;  %11998 = vmatpush1.bf16.msra.mxu1 %v16543_v34  ;;  %v16488_v8 = vcombine.high %v10486_v10, %v10490_v33  ;;  %v16616_v34 = vcombine.high %v10614_v56, %v10618_v60  ;;  %v10446_v48 = vld [vmem:[#allocation35 + $0x240] sm:$0xff] }
0x1181   :  { %11958 = vmatprep.subr.bf16.mxu0 %v16408_v18  ;;  %11999 = vmatprep.subr.bf16.mxu1 %v16536_v11  ;;  %v10478_v18 = vld [vmem:[#allocation35 + $0x340] sm:$0xff] }
0x1182   :  { %v10482_v11 = vld [vmem:[#allocation35 + $0x360] sm:$0xff] }
0x1183   :  { %v16479_v58 = vcombine.low %v10478_v18, %v10482_v11  ;;  %v10450_v17 = vld [vmem:[#allocation35 + $0x260] sm:$0xff] }
0x1184   :  { %11959 = vmatpush1.bf16.msra.mxu0 %v16407_v19  ;;  %12000 = vmatpush1.bf16.msra.mxu1 %v16535_v54  ;;  %v16480_v19 = vcombine.high %v10478_v18, %v10482_v11  ;;  %v16608_v54 = vcombine.high %v10606_v59, %v10610_v15  ;;  %v10574_v16 = vld [vmem:[#allocation35 + $0x640] sm:$0xff]  ;;  %v16447_v6 = vcombine.low %v10446_v48, %v10450_v17  ;;  %v10435_v18 = vld [vmem:[#allocation35 + $0x1e8] sm:$0xff] }
0x1185   :  { %11960 = vmatprep.subr.bf16.mxu0 %v16400_v28  ;;  %12001 = vmatprep.subr.bf16.mxu1 %v16528_v40  ;;  %v10470_v28 = vld [vmem:[#allocation35 + $0x300] sm:$0xff]  ;;  %v10559_v11 = vld [vmem:[#allocation35 + $0x5c8] sm:$0xff] }
0x1186   :  { %v10474_v40 = vld [vmem:[#allocation35 + $0x320] sm:$0xff] }
0x1187   :  { %v16471_v55 = vcombine.low %v10470_v28, %v10474_v40  ;;  %v10438_v10 = vld [vmem:[#allocation35 + $0x200] sm:$0xff] }
0x1188   :  { %11961 = vmatpush1.bf16.msra.mxu0 %v16399_v1  ;;  %12002 = vmatpush1.bf16.msra.mxu1 %v16527_v5  ;;  %v16472_v1 = vcombine.high %v10470_v28, %v10474_v40  ;;  %v16600_v5 = vcombine.high %v10598_v31, %v10602_v63  ;;  %v10442_v33 = vld [vmem:[#allocation35 + $0x220] sm:$0xff] }
0x1189   :  { %11962 = vmatprep.subr.bf16.mxu0 %v16392_v49  ;;  %12003 = vmatprep.subr.bf16.mxu1 %v16520_v41  ;;  %v10462_v49 = vld [vmem:[#allocation35 + $0x2c0] sm:$0xff]  ;;  %v16440_v60 = vcombine.high %v10438_v10, %v10442_v33 }
0x118a   :  { %v10466_v41 = vld [vmem:[#allocation35 + $0x2e0] sm:$0xff] }
0x118b   :  { %v16463_v52 = vcombine.low %v10462_v49, %v10466_v41  ;;  %v10566_v56 = vld [vmem:[#allocation35 + $0x600] sm:$0xff] }
0x118c   :  { %11963 = vmatpush1.bf16.msra.mxu0 %v16391_v22  ;;  %12004 = vmatpush1.bf16.msra.mxu1 %v16519_v4  ;;  %v16464_v22 = vcombine.high %v10462_v49, %v10466_v41  ;;  %v16592_v4 = vcombine.high %v10590_v23, %v10594_v45 }
0x118d   :  { %11964 = vmatprep.subr.bf16.mxu0 %v16384_v0  ;;  %12005 = vmatprep.subr.bf16.mxu1 %v16512_v30  ;;  %v10454_v0 = vld [vmem:[#allocation35 + $0x280] sm:$0xff] }
0x118e   :  { %v10458_v30 = vld [vmem:[#allocation35 + $0x2a0] sm:$0xff] }
0x1190   :  { %11965 = vmatpush1.bf16.msra.mxu0 %v16383_v13  ;;  %12006 = vmatpush1.bf16.msra.mxu1 %v16511_v51  ;;  %v16456_v13 = vcombine.high %v10454_v0, %v10458_v30  ;;  %v16584_v51 = vcombine.high %v10582_v50, %v10586_v12 }
0x1191   :  { %11966 = vmatprep.subr.bf16.mxu0 %v16376_v38  ;;  %12007 = vmatprep.subr.bf16.mxu1 %v16504_v14  ;;  %v16455_v38 = vcombine.low %v10454_v0, %v10458_v30  ;;  %v16583_v14 = vcombine.low %v10582_v50, %v10586_v12  ;;  %v10427_v30 = vld [vmem:[#allocation35 + $0x1a8] sm:$0xff] }
0x1192   :  { %v10551_v50 = vld [vmem:[#allocation35 + $0x588] sm:$0xff] }
0x1194   :  { %11967 = vmatpush1.bf16.msra.mxu0 %v16375_v20  ;;  %12008 = vmatpush1.bf16.msra.mxu1 %v16503_v21  ;;  %v16448_v20 = vcombine.high %v10446_v48, %v10450_v17  ;;  %v10578_v21 = vld [vmem:[#allocation35 + $0x660] sm:$0xff] }
0x1195   :  { %11968 = vmatprep.subr.bf16.mxu0 %v16496_v24  ;;  %12009 = vmatprep.subr.bf16.mxu1 %v16624_v29  ;;  %v16575_v24 = vcombine.low %v10574_v16, %v10578_v21  ;;  %v16576_v29 = vcombine.high %v10574_v16, %v10578_v21  ;;  %v10411_v21 = vld [vmem:[#allocation35 + $0x128] sm:$0xff] }
0x1198   :  { %11969 = vmatpush2.bf16.msra.mxu0 %v16495_v57  ;;  %12010 = vmatpush2.bf16.msra.mxu1 %v16623_v61  ;;  %v10570_v57 = vld [vmem:[#allocation35 + $0x620] sm:$0xff]  ;;  %v16439_v61 = vcombine.low %v10438_v10, %v10442_v33 }
0x1199   :  { %11970 = vmatprep.subr.bf16.mxu0 %v16488_v8  ;;  %12011 = vmatprep.subr.bf16.mxu1 %v16616_v34  ;;  %v16568_v8 = vcombine.high %v10566_v56, %v10570_v57  ;;  %v10431_v34 = vld [vmem:[#allocation35 + $0x1c8] sm:$0xff]  ;;  %v16567_v59 = vcombine.low %v10566_v56, %v10570_v57 }
0x119a   :  { %v16433_v15 = vcombine.low %v10431_v34, %v10435_v18  ;;  %v10399_v57 = vld [vmem:[#allocation35 + $0xc8] sm:$0xff] }
0x119c   :  { %11971 = vmatpush2.bf16.msra.mxu0 %v16487_v32  ;;  %12012 = vmatpush2.bf16.msra.mxu1 %v16615_v37  ;;  %v16434_v32 = vcombine.high %v10431_v34, %v10435_v18  ;;  %v10563_v37 = vld [vmem:[#allocation35 + $0x5e8] sm:$0xff] }
0x119d   :  { %11972 = vmatprep.subr.bf16.mxu0 %v16480_v19  ;;  %12013 = vmatprep.subr.bf16.mxu1 %v16608_v54  ;;  %v16561_v19 = vcombine.low %v10559_v11, %v10563_v37  ;;  %v16562_v54 = vcombine.high %v10559_v11, %v10563_v37  ;;  %v10531_v34 = vld [vmem:[#allocation35 + $0x4e8] sm:$0xff] }
0x119e   :  { %v10395_v37 = vld [vmem:[#allocation35 + $0xa8] sm:$0xff] }
0x11a0   :  { %11973 = vmatpush2.bf16.msra.mxu0 %v16479_v58  ;;  %12014 = vmatpush2.bf16.msra.mxu1 %v16607_v62 }
0x11a1   :  { %11974 = vmatprep.subr.bf16.mxu0 %v16472_v1  ;;  %12015 = vmatprep.subr.bf16.mxu1 %v16600_v5 }
0x11a4   :  { %11975 = vmatpush2.bf16.msra.mxu0 %v16471_v55  ;;  %12016 = vmatpush2.bf16.msra.mxu1 %v16599_v7 }
0x11a5   :  { %11976 = vmatprep.subr.bf16.mxu0 %v16464_v22  ;;  %12017 = vmatprep.subr.bf16.mxu1 %v16592_v4  ;;  %v10423_v22 = vld [vmem:[#allocation35 + $0x188] sm:$0xff] }
0x11a6   :  { %v16425_v48 = vcombine.low %v10423_v22, %v10427_v30 }
0x11a8   :  { %11977 = vmatpush2.bf16.msra.mxu0 %v16463_v52  ;;  %12018 = vmatpush2.bf16.msra.mxu1 %v16591_v9  ;;  %v16426_v9 = vcombine.high %v10423_v22, %v10427_v30  ;;  %v10503_v22 = vld [vmem:[#allocation35 + $0x408] sm:$0xff] }
0x11a9   :  { %11978 = vmatprep.subr.bf16.mxu0 %v16456_v13  ;;  %12019 = vmatprep.subr.bf16.mxu1 %v16584_v51  ;;  %v10419_v51 = vld [vmem:[#allocation35 + $0x168] sm:$0xff] }
0x11ac   :  { %11979 = vmatpush2.bf16.msra.mxu0 %v16455_v38  ;;  %12020 = vmatpush2.bf16.msra.mxu1 %v16583_v14  ;;  %v10543_v38 = vld [vmem:[#allocation35 + $0x548] sm:$0xff] }
0x11ad   :  { %11980 = vmatprep.subr.bf16.mxu0 %v16448_v20  ;;  %12021 = vmatprep.subr.bf16.mxu1 %v16576_v29  ;;  %v10547_v14 = vld [vmem:[#allocation35 + $0x568] sm:$0xff] }
0x11ae   :  { %v10407_v20 = vld [vmem:[#allocation35 + $0x108] sm:$0xff]  ;;  %v16545_v33 = vcombine.low %v10543_v38, %v10547_v14 }
0x11af   :  { %v10539_v29 = vld [vmem:[#allocation35 + $0x528] sm:$0xff]  ;;  %v16410_v56 = vcombine.high %v10407_v20, %v10411_v21  ;;  %v16409_v18 = vcombine.low %v10407_v20, %v10411_v21 }
0x11b0   :  { %11981 = vmatpush2.bf16.msra.mxu0 %v16447_v6  ;;  %12022 = vmatpush2.bf16.msra.mxu1 %v16575_v24  ;;  %v16546_v6 = vcombine.high %v10543_v38, %v10547_v14  ;;  %v10535_v24 = vld [vmem:[#allocation35 + $0x508] sm:$0xff] }
0x11b1   :  { %11982 = vmatprep.subr.bf16.mxu0 %v16440_v60  ;;  %12023 = vmatprep.subr.bf16.mxu1 %v16568_v8  ;;  %v16538_v60 = vcombine.high %v10535_v24, %v10539_v29  ;;  %v10527_v8 = vld [vmem:[#allocation35 + $0x4c8] sm:$0xff]  ;;  %v16537_v11 = vcombine.low %v10535_v24, %v10539_v29 }
0x11b2   :  { %v10615_v20 = vld [vmem:[#allocation35 + $0x788] sm:$0xff] }
0x11b3   :  { %v10619_v21 = vld [vmem:[#allocation35 + $0x7a8] sm:$0xff] }
0x11b4   :  { %11983 = vmatpush2.bf16.msra.mxu0 %v16439_v61  ;;  %12024 = vmatpush2.bf16.msra.mxu1 %v16567_v59  ;;  %v10403_v61 = vld [vmem:[#allocation35 + $0xe8] sm:$0xff] }
0x11b5   :  { %12034 = vmatprep.subr.bf16.mxu0 %v16434_v32  ;;  %12075 = vmatprep.subr.bf16.mxu1 %v16562_v54  ;;  %v16402_v59 = vcombine.high %v10399_v57, %v10403_v61  ;;  %v10391_v32 = vld [vmem:[#allocation35 + $0x88] sm:$0xff] }
0x11b6   :  { %v10523_v54 = vld [vmem:[#allocation35 + $0x4a8] sm:$0xff] }
0x1237   :  { %v10314_v28 = vpop.f32.mrf.mxu0  ;;  %v10355_v40 = vpop.f32.mrf.mxu1 }
0x1238   :  { %v10362_v31 = vadd.f32 %v10314_v28, %v20170_v27  ;;  %v10364_v63 = vadd.f32 %v10355_v40, %v20173_v3  ;;  %v10555_v27 = vld [vmem:[#allocation35 + $0x5a8] sm:$0xff]  ;;  %v16401_v28 = vcombine.low %v10399_v57, %v10403_v61  ;;  %v16529_v40 = vcombine.low %v10527_v8, %v10531_v34 }
0x1239   :  { %v10316_v58 = vpop.f32.mrf.mxu0  ;;  %v10357_v62 = vpop.f32.mrf.mxu1  ;;  %v16554_v13 = vcombine.high %v10551_v50, %v10555_v27  ;;  %v16553_v17 = vcombine.low %v10551_v50, %v10555_v27  ;;  %v10607_v57 = vld [vmem:[#allocation35 + $0x748] sm:$0xff] }
0x123a   :  { %v10363_v1 = vadd.f32 %v10316_v58, %v20176_v35  ;;  %v10365_v5 = vadd.f32 %v10357_v62, %v20179_v25  ;;  %v10366_v49 = vmax.f32 %v10362_v31, 0.0  ;;  %v10368_v41 = vmax.f32 %v10364_v63, 0.0  ;;  %v10415_v25 = vld [vmem:[#allocation35 + $0x148] sm:$0xff] }
0x123b   :  { %v10318_v23 = vpop.f32.mrf.mxu0  ;;  %v10359_v45 = vpop.f32.mrf.mxu1  ;;  %v16418_v16 = vcombine.high %v10415_v25, %v10419_v51  ;;  %v16417_v10 = vcombine.low %v10415_v25, %v10419_v51  ;;  %v16394_v31 = vcombine.high %v10391_v32, %v10395_v37  ;;  %v10383_v58 = vld [vmem:[#allocation35 + $0x48] sm:$0xff] }
0x123c   :  { %v10367_v55 = vmax.f32 %v10363_v1, 0.0  ;;  %v10369_v7 = vmax.f32 %v10365_v5, 0.0  ;;  %v20195_v52 = vpack.c.bf16 %v10366_v49, %v10366_v49  ;;  %v20197_v35 = vpack.c.bf16 %v10368_v41, %v10368_v41  ;;  %v10387_v62 = vld [vmem:[#allocation35 + $0x68] sm:$0xff] }
0x123d   :  { %v10319_v4 = vpop.f32.mrf.mxu0  ;;  %v10360_v0 = vpop.f32.mrf.mxu1  ;;  %v10511_v1 = vld [vmem:[#allocation35 + $0x448] sm:$0xff]  ;;  %v16393_v49 = vcombine.low %v10391_v32, %v10395_v37  ;;  %v16386_v23 = vcombine.high %v10383_v58, %v10387_v62 }
0x123e   :  { %v20191_v12 = vpack.c.bf16 %v10367_v55, %v10367_v55  ;;  %v20193_v3 = vpack.c.bf16 %v10369_v7, %v10369_v7  ;;  %v10515_v5 = vld [vmem:[#allocation35 + $0x468] sm:$0xff]  ;;  %v16385_v0 = vcombine.low %v10383_v58, %v10387_v62 }
0x123f   :  { %v16514_v45 = vcombine.high %v10511_v1, %v10515_v5  ;;  %v10375_v55 = vld [vmem:[#allocation35 + $0x8] sm:$0xff]  ;;  %v16513_v30 = vcombine.low %v10511_v1, %v10515_v5 }
0x1240   :  { %11984 = vmatprep.mubr.bf16.mxu0 %v20191_v12  ;;  %12025 = vmatprep.mubr.bf16.mxu1 %v20193_v3  ;;  %v10379_v7 = vld [vmem:[#allocation35 + $0x28] sm:$0xff] }
0x1241   :  { %11985 = vmatmul.mubr.bf16.vlgmr.msra.gmra.mxu0 %v20195_v52  ;;  %12026 = vmatmul.mubr.bf16.vlgmr.msra.gmra.mxu1 %v20197_v35  ;;  %v10507_v4 = vld [vmem:[#allocation35 + $0x428] sm:$0xff]  ;;  %v16378_v50 = vcombine.high %v10375_v55, %v10379_v7  ;;  %v16377_v38 = vcombine.low %v10375_v55, %v10379_v7 }
0x1242   :  { %12035 = vmatpush1.bf16.msra.mxu0 %v16433_v15  ;;  %12076 = vmatpush1.bf16.msra.mxu1 %v16561_v19  ;;  %v16530_v15 = vcombine.high %v10527_v8, %v10531_v34  ;;  %v10519_v19 = vld [vmem:[#allocation35 + $0x488] sm:$0xff]  ;;  %v16506_v27 = vcombine.high %v10503_v22, %v10507_v4  ;;  %v16505_v14 = vcombine.low %v10503_v22, %v10507_v4 }
0x1243   :  { %12066 = vmatprep.mubr.bf16.mxu0 %v20191_v12  ;;  %12107 = vmatprep.mubr.bf16.mxu1 %v20193_v3  ;;  %v16522_v63 = vcombine.high %v10519_v19, %v10523_v54  ;;  %v16521_v41 = vcombine.low %v10519_v19, %v10523_v54  ;;  %v10495_v25 = vld [vmem:[#allocation35 + $0x3c8] sm:$0xff]  ;;  %v16617_v34 = vcombine.low %v10615_v20, %v10619_v21 }
0x1244   :  { %12036 = vmatprep.subr.bf16.mxu0 %v16426_v9  ;;  %12077 = vmatprep.subr.bf16.mxu1 %v16554_v13  ;;  %v10499_v9 = vld [vmem:[#allocation35 + $0x3e8] sm:$0xff] }
0x1245   :  { %v10623_v13 = vld [vmem:[#allocation35 + $0x7c8] sm:$0xff]  ;;  %v16497_v24 = vcombine.low %v10495_v25, %v10499_v9 }
0x1246   :  { %12037 = vmatpush1.bf16.msra.mxu0 %v16425_v48  ;;  %12078 = vmatpush1.bf16.msra.mxu1 %v16553_v17  ;;  %v10627_v51 = vld [vmem:[#allocation35 + $0x7e8] sm:$0xff]  ;;  %v16498_v48 = vcombine.high %v10495_v25, %v10499_v9 }
0x1247   :  { %12038 = vmatprep.subr.bf16.mxu0 %v16418_v16  ;;  %12079 = vmatprep.subr.bf16.mxu1 %v16546_v6  ;;  %v16626_v17 = vcombine.high %v10623_v13, %v10627_v51  ;;  %v10487_v16 = vld [vmem:[#allocation35 + $0x388] sm:$0xff]  ;;  %v16625_v29 = vcombine.low %v10623_v13, %v10627_v51 }
0x1248   :  { %v10491_v6 = vld [vmem:[#allocation35 + $0x3a8] sm:$0xff] }
0x1249   :  { %v10611_v61 = vld [vmem:[#allocation35 + $0x768] sm:$0xff]  ;;  %v16489_v8 = vcombine.low %v10487_v16, %v10491_v6 }
0x124a   :  { %12039 = vmatpush1.bf16.msra.mxu0 %v16417_v10  ;;  %12080 = vmatpush1.bf16.msra.mxu1 %v16545_v33  ;;  %v16490_v10 = vcombine.high %v10487_v16, %v10491_v6  ;;  %v16618_v33 = vcombine.high %v10615_v20, %v10619_v21  ;;  %v10599_v32 = vld [vmem:[#allocation35 + $0x708] sm:$0xff]  ;;  %v16609_v54 = vcombine.low %v10607_v57, %v10611_v61 }
0x124b   :  { %12040 = vmatprep.subr.bf16.mxu0 %v16410_v56  ;;  %12081 = vmatprep.subr.bf16.mxu1 %v16538_v60  ;;  %v10479_v56 = vld [vmem:[#allocation35 + $0x348] sm:$0xff] }
0x124c   :  { %v10483_v60 = vld [vmem:[#allocation35 + $0x368] sm:$0xff] }
0x124d   :  { %v10603_v37 = vld [vmem:[#allocation35 + $0x728] sm:$0xff]  ;;  %v16481_v19 = vcombine.low %v10479_v56, %v10483_v60 }
0x124e   :  { %12041 = vmatpush1.bf16.msra.mxu0 %v16409_v18  ;;  %12082 = vmatpush1.bf16.msra.mxu1 %v16537_v11  ;;  %v16482_v18 = vcombine.high %v10479_v56, %v10483_v60  ;;  %v16610_v11 = vcombine.high %v10607_v57, %v10611_v61  ;;  %v10591_v58 = vld [vmem:[#allocation35 + $0x6c8] sm:$0xff]  ;;  %v16601_v5 = vcombine.low %v10599_v32, %v10603_v37  ;;  %v10560_v56 = vld [vmem:[#allocation35 + $0x5d0] sm:$0xff] }
0x124f   :  { %12042 = vmatprep.subr.bf16.mxu0 %v16402_v59  ;;  %12083 = vmatprep.subr.bf16.mxu1 %v16530_v15  ;;  %v10471_v59 = vld [vmem:[#allocation35 + $0x308] sm:$0xff]  ;;  %v10564_v60 = vld [vmem:[#allocation35 + $0x5f0] sm:$0xff] }
0x1250   :  { %v10475_v15 = vld [vmem:[#allocation35 + $0x328] sm:$0xff] }
0x1251   :  { %v10595_v62 = vld [vmem:[#allocation35 + $0x6e8] sm:$0xff]  ;;  %v16473_v1 = vcombine.low %v10471_v59, %v10475_v15 }
0x1252   :  { %12043 = vmatpush1.bf16.msra.mxu0 %v16401_v28  ;;  %12084 = vmatpush1.bf16.msra.mxu1 %v16529_v40  ;;  %v16474_v28 = vcombine.high %v10471_v59, %v10475_v15  ;;  %v16602_v40 = vcombine.high %v10599_v32, %v10603_v37  ;;  %v10583_v55 = vld [vmem:[#allocation35 + $0x688] sm:$0xff]  ;;  %v16593_v4 = vcombine.low %v10591_v58, %v10595_v62  ;;  %v10552_v59 = vld [vmem:[#allocation35 + $0x590] sm:$0xff] }
0x1253   :  { %12044 = vmatprep.subr.bf16.mxu0 %v16394_v31  ;;  %12085 = vmatprep.subr.bf16.mxu1 %v16522_v63  ;;  %v10463_v31 = vld [vmem:[#allocation35 + $0x2c8] sm:$0xff]  ;;  %v10556_v15 = vld [vmem:[#allocation35 + $0x5b0] sm:$0xff]  ;;  %v16563_v37 = vcombine.low %v10560_v56, %v10564_v60 }
0x1254   :  { %v10467_v63 = vld [vmem:[#allocation35 + $0x2e8] sm:$0xff] }
0x1255   :  { %v10587_v7 = vld [vmem:[#allocation35 + $0x6a8] sm:$0xff]  ;;  %v16465_v22 = vcombine.low %v10463_v31, %v10467_v63 }
0x1256   :  { %12045 = vmatpush1.bf16.msra.mxu0 %v16393_v49  ;;  %12086 = vmatpush1.bf16.msra.mxu1 %v16521_v41  ;;  %v16466_v49 = vcombine.high %v10463_v31, %v10467_v63  ;;  %v16594_v41 = vcombine.high %v10591_v58, %v10595_v62  ;;  %v10575_v25 = vld [vmem:[#allocation35 + $0x648] sm:$0xff]  ;;  %v16585_v51 = vcombine.low %v10583_v55, %v10587_v7  ;;  %v10544_v31 = vld [vmem:[#allocation35 + $0x550] sm:$0xff] }
0x1257   :  { %12046 = vmatprep.subr.bf16.mxu0 %v16386_v23  ;;  %12087 = vmatprep.subr.bf16.mxu1 %v16514_v45  ;;  %v10455_v23 = vld [vmem:[#allocation35 + $0x288] sm:$0xff]  ;;  %v10548_v63 = vld [vmem:[#allocation35 + $0x570] sm:$0xff]  ;;  %v16555_v62 = vcombine.low %v10552_v59, %v10556_v15 }
0x1258   :  { %v10459_v45 = vld [vmem:[#allocation35 + $0x2a8] sm:$0xff] }
0x1259   :  { %v10579_v9 = vld [vmem:[#allocation35 + $0x668] sm:$0xff]  ;;  %v16457_v13 = vcombine.low %v10455_v23, %v10459_v45 }
0x125a   :  { %12047 = vmatpush1.bf16.msra.mxu0 %v16385_v0  ;;  %12088 = vmatpush1.bf16.msra.mxu1 %v16513_v30  ;;  %v16458_v0 = vcombine.high %v10455_v23, %v10459_v45  ;;  %v16586_v30 = vcombine.high %v10583_v55, %v10587_v7  ;;  %v10567_v16 = vld [vmem:[#allocation35 + $0x608] sm:$0xff]  ;;  %v16577_v21 = vcombine.low %v10575_v25, %v10579_v9  ;;  %v10536_v23 = vld [vmem:[#allocation35 + $0x510] sm:$0xff] }
0x125b   :  { %12048 = vmatprep.subr.bf16.mxu0 %v16378_v50  ;;  %12089 = vmatprep.subr.bf16.mxu1 %v16506_v27  ;;  %v10447_v50 = vld [vmem:[#allocation35 + $0x248] sm:$0xff]  ;;  %v10540_v45 = vld [vmem:[#allocation35 + $0x530] sm:$0xff]  ;;  %v16547_v7 = vcombine.low %v10544_v31, %v10548_v63 }
0x125c   :  { %v10451_v27 = vld [vmem:[#allocation35 + $0x268] sm:$0xff] }
0x125d   :  { %v10571_v6 = vld [vmem:[#allocation35 + $0x628] sm:$0xff]  ;;  %v16449_v20 = vcombine.low %v10447_v50, %v10451_v27 }
0x125e   :  { %12049 = vmatpush1.bf16.msra.mxu0 %v16377_v38  ;;  %12090 = vmatpush1.bf16.msra.mxu1 %v16505_v14  ;;  %v16450_v38 = vcombine.high %v10447_v50, %v10451_v27  ;;  %v16578_v14 = vcombine.high %v10575_v25, %v10579_v9  ;;  %v16569_v61 = vcombine.low %v10567_v16, %v10571_v6  ;;  %v10528_v50 = vld [vmem:[#allocation35 + $0x4d0] sm:$0xff] }
0x125f   :  { %12050 = vmatprep.subr.bf16.mxu0 %v16498_v48  ;;  %12091 = vmatprep.subr.bf16.mxu1 %v16626_v17  ;;  %v10439_v48 = vld [vmem:[#allocation35 + $0x208] sm:$0xff]  ;;  %v10532_v27 = vld [vmem:[#allocation35 + $0x4f0] sm:$0xff]  ;;  %v16539_v9 = vcombine.low %v10536_v23, %v10540_v45 }
0x1260   :  { %v10443_v17 = vld [vmem:[#allocation35 + $0x228] sm:$0xff] }
0x1261   :  { %v16441_v57 = vcombine.low %v10439_v48, %v10443_v17 }
0x1262   :  { %12051 = vmatpush2.bf16.msra.mxu0 %v16497_v24  ;;  %12092 = vmatpush2.bf16.msra.mxu1 %v16625_v29  ;;  %v16442_v24 = vcombine.high %v10439_v48, %v10443_v17  ;;  %v16570_v29 = vcombine.high %v10567_v16, %v10571_v6  ;;  %v10520_v48 = vld [vmem:[#allocation35 + $0x490] sm:$0xff]  ;;  %v16531_v6 = vcombine.low %v10528_v50, %v10532_v27 }
0x1263   :  { %12052 = vmatprep.subr.bf16.mxu0 %v16490_v10  ;;  %12093 = vmatprep.subr.bf16.mxu1 %v16618_v33  ;;  %v10432_v10 = vld [vmem:[#allocation35 + $0x1d0] sm:$0xff] }
0x1264   :  { %v10436_v33 = vld [vmem:[#allocation35 + $0x1f0] sm:$0xff] }
0x1265   :  { %v16435_v32 = vcombine.low %v10432_v10, %v10436_v33  ;;  %v10524_v17 = vld [vmem:[#allocation35 + $0x4b0] sm:$0xff] }
0x1266   :  { %12053 = vmatpush2.bf16.msra.mxu0 %v16489_v8  ;;  %12094 = vmatpush2.bf16.msra.mxu1 %v16617_v34  ;;  %v16436_v8 = vcombine.high %v10432_v10, %v10436_v33  ;;  %v16564_v34 = vcombine.high %v10560_v56, %v10564_v60  ;;  %v10512_v10 = vld [vmem:[#allocation35 + $0x450] sm:$0xff]  ;;  %v16523_v60 = vcombine.low %v10520_v48, %v10524_v17 }
0x1267   :  { %12054 = vmatprep.subr.bf16.mxu0 %v16482_v18  ;;  %12095 = vmatprep.subr.bf16.mxu1 %v16610_v11  ;;  %v10424_v18 = vld [vmem:[#allocation35 + $0x190] sm:$0xff] }
0x1268   :  { %v10428_v11 = vld [vmem:[#allocation35 + $0x1b0] sm:$0xff] }
0x1269   :  { %v16427_v58 = vcombine.low %v10424_v18, %v10428_v11  ;;  %v10516_v33 = vld [vmem:[#allocation35 + $0x470] sm:$0xff] }
0x126a   :  { %12055 = vmatpush2.bf16.msra.mxu0 %v16481_v19  ;;  %12096 = vmatpush2.bf16.msra.mxu1 %v16609_v54  ;;  %v16428_v19 = vcombine.high %v10424_v18, %v10428_v11  ;;  %v16556_v54 = vcombine.high %v10552_v59, %v10556_v15  ;;  %v10504_v18 = vld [vmem:[#allocation35 + $0x410] sm:$0xff]  ;;  %v16515_v15 = vcombine.low %v10512_v10, %v10516_v33 }
0x126b   :  { %12056 = vmatprep.subr.bf16.mxu0 %v16474_v28  ;;  %12097 = vmatprep.subr.bf16.mxu1 %v16602_v40  ;;  %v10416_v28 = vld [vmem:[#allocation35 + $0x150] sm:$0xff] }
0x126c   :  { %v10420_v40 = vld [vmem:[#allocation35 + $0x170] sm:$0xff] }
0x126d   :  { %v16419_v55 = vcombine.low %v10416_v28, %v10420_v40  ;;  %v10508_v11 = vld [vmem:[#allocation35 + $0x430] sm:$0xff] }
0x126e   :  { %12057 = vmatpush2.bf16.msra.mxu0 %v16473_v1  ;;  %12098 = vmatpush2.bf16.msra.mxu1 %v16601_v5  ;;  %v16420_v1 = vcombine.high %v10416_v28, %v10420_v40  ;;  %v16548_v5 = vcombine.high %v10544_v31, %v10548_v63  ;;  %v10624_v28 = vld [vmem:[#allocation35 + $0x7d0] sm:$0xff]  ;;  %v16507_v63 = vcombine.low %v10504_v18, %v10508_v11 }
0x126f   :  { %12058 = vmatprep.subr.bf16.mxu0 %v16466_v49  ;;  %12099 = vmatprep.subr.bf16.mxu1 %v16594_v41  ;;  %v10408_v49 = vld [vmem:[#allocation35 + $0x110] sm:$0xff] }
0x1270   :  { %v10412_v41 = vld [vmem:[#allocation35 + $0x130] sm:$0xff] }
0x1271   :  { %v16411_v25 = vcombine.low %v10408_v49, %v10412_v41  ;;  %v10628_v40 = vld [vmem:[#allocation35 + $0x7f0] sm:$0xff] }
0x1272   :  { %12059 = vmatpush2.bf16.msra.mxu0 %v16465_v22  ;;  %12100 = vmatpush2.bf16.msra.mxu1 %v16593_v4  ;;  %v16412_v22 = vcombine.high %v10408_v49, %v10412_v41  ;;  %v16540_v4 = vcombine.high %v10536_v23, %v10540_v45  ;;  %v10616_v49 = vld [vmem:[#allocation35 + $0x790] sm:$0xff]  ;;  %v16627_v45 = vcombine.low %v10624_v28, %v10628_v40 }
0x1273   :  { %12060 = vmatprep.subr.bf16.mxu0 %v16458_v0  ;;  %12101 = vmatprep.subr.bf16.mxu1 %v16586_v30  ;;  %v10400_v0 = vld [vmem:[#allocation35 + $0xd0] sm:$0xff] }
0x1274   :  { %v10404_v30 = vld [vmem:[#allocation35 + $0xf0] sm:$0xff] }
0x1275   :  { %v16403_v16 = vcombine.low %v10400_v0, %v10404_v30  ;;  %v10620_v41 = vld [vmem:[#allocation35 + $0x7b0] sm:$0xff] }
0x1276   :  { %12061 = vmatpush2.bf16.msra.mxu0 %v16457_v13  ;;  %12102 = vmatpush2.bf16.msra.mxu1 %v16585_v51  ;;  %v16404_v13 = vcombine.high %v10400_v0, %v10404_v30  ;;  %v16532_v51 = vcombine.high %v10528_v50, %v10532_v27  ;;  %v10608_v0 = vld [vmem:[#allocation35 + $0x750] sm:$0xff]  ;;  %v16619_v27 = vcombine.low %v10616_v49, %v10620_v41 }
0x1277   :  { %12062 = vmatprep.subr.bf16.mxu0 %v16450_v38  ;;  %12103 = vmatprep.subr.bf16.mxu1 %v16578_v14  ;;  %v10392_v38 = vld [vmem:[#allocation35 + $0x90] sm:$0xff] }
0x1278   :  { %v10396_v14 = vld [vmem:[#allocation35 + $0xb0] sm:$0xff] }
0x1279   :  { %v16395_v56 = vcombine.low %v10392_v38, %v10396_v14  ;;  %v10612_v30 = vld [vmem:[#allocation35 + $0x770] sm:$0xff] }
0x127a   :  { %12063 = vmatpush2.bf16.msra.mxu0 %v16449_v20  ;;  %12104 = vmatpush2.bf16.msra.mxu1 %v16577_v21  ;;  %v16396_v20 = vcombine.high %v10392_v38, %v10396_v14  ;;  %v16524_v21 = vcombine.high %v10520_v48, %v10524_v17  ;;  %v10600_v38 = vld [vmem:[#allocation35 + $0x710] sm:$0xff]  ;;  %v16611_v17 = vcombine.low %v10608_v0, %v10612_v30 }
0x127b   :  { %12064 = vmatprep.subr.bf16.mxu0 %v16442_v24  ;;  %12105 = vmatprep.subr.bf16.mxu1 %v16570_v29  ;;  %v10384_v24 = vld [vmem:[#allocation35 + $0x50] sm:$0xff] }
0x127c   :  { %v10388_v29 = vld [vmem:[#allocation35 + $0x70] sm:$0xff] }
0x127d   :  { %v16387_v59 = vcombine.low %v10384_v24, %v10388_v29  ;;  %v10604_v14 = vld [vmem:[#allocation35 + $0x730] sm:$0xff] }
0x127e   :  { %12065 = vmatpush2.bf16.msra.mxu0 %v16441_v57  ;;  %12106 = vmatpush2.bf16.msra.mxu1 %v16569_v61  ;;  %v16388_v57 = vcombine.high %v10384_v24, %v10388_v29  ;;  %v16516_v61 = vcombine.high %v10512_v10, %v10516_v33  ;;  %v10592_v24 = vld [vmem:[#allocation35 + $0x6d0] sm:$0xff]  ;;  %v16603_v33 = vcombine.low %v10600_v38, %v10604_v14 }
0x127f   :  { %12116 = vmatprep.subr.bf16.mxu0 %v16436_v8  ;;  %12157 = vmatprep.subr.bf16.mxu1 %v16564_v34  ;;  %v10376_v8 = vld [vmem:[#allocation35 + $0x10] sm:$0xff] }
0x1280   :  { %v10380_v34 = vld [vmem:[#allocation35 + $0x30] sm:$0xff] }
0x1281   :  { %12067 = vmatmul.mubr.bf16.vlgmr.msra.gmra.mxu0 %v20195_v52  ;;  %12108 = vmatmul.mubr.bf16.vlgmr.msra.gmra.mxu1 %v20197_v35  ;;  %v16379_v31 = vcombine.low %v10376_v8, %v10380_v34  ;;  %v10596_v29 = vld [vmem:[#allocation35 + $0x6f0] sm:$0xff] }
0x1282   :  { %12117 = vmatpush1.bf16.msra.mxu0 %v16435_v32  ;;  %12148 = vmatprep.mubr.bf16.mxu0 %v20191_v12  ;;  %v16380_v32 = vcombine.high %v10376_v8, %v10380_v34  ;;  %v10584_v8 = vld [vmem:[#allocation35 + $0x690] sm:$0xff] }
0x1283   :  { %12158 = vmatpush1.bf16.msra.mxu1 %v16563_v37  ;;  %12189 = vmatprep.mubr.bf16.mxu1 %v20193_v3  ;;  %v16508_v37 = vcombine.high %v10504_v18, %v10508_v11  ;;  %v10588_v34 = vld [vmem:[#allocation35 + $0x6b0] sm:$0xff]  ;;  %v16595_v11 = vcombine.low %v10592_v24, %v10596_v29 }
0x1284   :  { %12118 = vmatprep.subr.bf16.mxu0 %v16428_v19  ;;  %12159 = vmatprep.subr.bf16.mxu1 %v16556_v54  ;;  %v10496_v19 = vld [vmem:[#allocation35 + $0x3d0] sm:$0xff] }
0x1285   :  { %v10500_v54 = vld [vmem:[#allocation35 + $0x3f0] sm:$0xff] }
0x1286   :  { %12119 = vmatpush1.bf16.msra.mxu0 %v16427_v58  ;;  %v16500_v58 = vcombine.high %v10496_v19, %v10500_v54  ;;  %v16499_v23 = vcombine.low %v10496_v19, %v10500_v54  ;;  %v10576_v19 = vld [vmem:[#allocation35 + $0x650] sm:$0xff] }
0x1287   :  { %12160 = vmatpush1.bf16.msra.mxu1 %v16555_v62  ;;  %12120 = vmatprep.subr.bf16.mxu0 %v16420_v1  ;;  %v16628_v62 = vcombine.high %v10624_v28, %v10628_v40  ;;  %v10488_v1 = vld [vmem:[#allocation35 + $0x390] sm:$0xff]  ;;  %v16587_v40 = vcombine.low %v10584_v8, %v10588_v34 }
0x1288   :  { %12161 = vmatprep.subr.bf16.mxu1 %v16548_v5  ;;  %v10492_v5 = vld [vmem:[#allocation35 + $0x3b0] sm:$0xff] }
0x1289   :  { %v16491_v50 = vcombine.low %v10488_v1, %v10492_v5  ;;  %v10580_v54 = vld [vmem:[#allocation35 + $0x670] sm:$0xff] }
0x128a   :  { %12121 = vmatpush1.bf16.msra.mxu0 %v16419_v55  ;;  %v16492_v55 = vcombine.high %v10488_v1, %v10492_v5  ;;  %v10568_v1 = vld [vmem:[#allocation35 + $0x610] sm:$0xff] }
0x128b   :  { %12162 = vmatpush1.bf16.msra.mxu1 %v16547_v7  ;;  %12122 = vmatprep.subr.bf16.mxu0 %v16412_v22  ;;  %v16620_v7 = vcombine.high %v10616_v49, %v10620_v41  ;;  %v10480_v22 = vld [vmem:[#allocation35 + $0x350] sm:$0xff]  ;;  %v16579_v41 = vcombine.low %v10576_v19, %v10580_v54 }
0x128c   :  { %12163 = vmatprep.subr.bf16.mxu1 %v16540_v4  ;;  %v10484_v4 = vld [vmem:[#allocation35 + $0x370] sm:$0xff] }
0x128d   :  { %v16483_v48 = vcombine.low %v10480_v22, %v10484_v4  ;;  %v10572_v5 = vld [vmem:[#allocation35 + $0x630] sm:$0xff] }
0x128e   :  { %12123 = vmatpush1.bf16.msra.mxu0 %v16411_v25  ;;  %v16484_v25 = vcombine.high %v10480_v22, %v10484_v4  ;;  %v10561_v22 = vld [vmem:[#allocation35 + $0x5d8] sm:$0xff] }
0x128f   :  { %12164 = vmatpush1.bf16.msra.mxu1 %v16539_v9  ;;  %12124 = vmatprep.subr.bf16.mxu0 %v16404_v13  ;;  %v16612_v9 = vcombine.high %v10608_v0, %v10612_v30  ;;  %v10472_v13 = vld [vmem:[#allocation35 + $0x310] sm:$0xff]  ;;  %v10565_v4 = vld [vmem:[#allocation35 + $0x5f8] sm:$0xff]  ;;  %v16571_v30 = vcombine.low %v10568_v1, %v10572_v5 }
0x1290   :  { %12165 = vmatprep.subr.bf16.mxu1 %v16532_v51  ;;  %v10476_v51 = vld [vmem:[#allocation35 + $0x330] sm:$0xff] }
0x1291   :  { %v16475_v10 = vcombine.low %v10472_v13, %v10476_v51 }
0x1292   :  { %12125 = vmatpush1.bf16.msra.mxu0 %v16403_v16  ;;  %v16476_v16 = vcombine.high %v10472_v13, %v10476_v51  ;;  %v10553_v51 = vld [vmem:[#allocation35 + $0x598] sm:$0xff] }
0x1293   :  { %12166 = vmatpush1.bf16.msra.mxu1 %v16531_v6  ;;  %12126 = vmatprep.subr.bf16.mxu0 %v16396_v20  ;;  %v16604_v6 = vcombine.high %v10600_v38, %v10604_v14  ;;  %v10464_v20 = vld [vmem:[#allocation35 + $0x2d0] sm:$0xff]  ;;  %v10557_v38 = vld [vmem:[#allocation35 + $0x5b8] sm:$0xff]  ;;  %v16565_v14 = vcombine.low %v10561_v22, %v10565_v4 }
0x1294   :  { %12167 = vmatprep.subr.bf16.mxu1 %v16524_v21  ;;  %v10468_v21 = vld [vmem:[#allocation35 + $0x2f0] sm:$0xff] }
0x1295   :  { %v16467_v18 = vcombine.low %v10464_v20, %v10468_v21 }
0x1296   :  { %12127 = vmatpush1.bf16.msra.mxu0 %v16395_v56  ;;  %v16468_v56 = vcombine.high %v10464_v20, %v10468_v21  ;;  %v10545_v20 = vld [vmem:[#allocation35 + $0x558] sm:$0xff] }
0x1297   :  { %12168 = vmatpush1.bf16.msra.mxu1 %v16523_v60  ;;  %12128 = vmatprep.subr.bf16.mxu0 %v16388_v57  ;;  %v16596_v60 = vcombine.high %v10592_v24, %v10596_v29  ;;  %v10456_v57 = vld [vmem:[#allocation35 + $0x290] sm:$0xff]  ;;  %v10549_v21 = vld [vmem:[#allocation35 + $0x578] sm:$0xff]  ;;  %v16557_v29 = vcombine.low %v10553_v51, %v10557_v38 }
0x1298   :  { %12169 = vmatprep.subr.bf16.mxu1 %v16516_v61  ;;  %v10460_v61 = vld [vmem:[#allocation35 + $0x2b0] sm:$0xff] }
0x1299   :  { %v16459_v28 = vcombine.low %v10456_v57, %v10460_v61 }
0x129a   :  { %12129 = vmatpush1.bf16.msra.mxu0 %v16387_v59  ;;  %v16460_v59 = vcombine.high %v10456_v57, %v10460_v61  ;;  %v10537_v57 = vld [vmem:[#allocation35 + $0x518] sm:$0xff] }
0x129b   :  { %12170 = vmatpush1.bf16.msra.mxu1 %v16515_v15  ;;  %12130 = vmatprep.subr.bf16.mxu0 %v16380_v32  ;;  %v16588_v15 = vcombine.high %v10584_v8, %v10588_v34  ;;  %v10448_v32 = vld [vmem:[#allocation35 + $0x250] sm:$0xff]  ;;  %v10541_v61 = vld [vmem:[#allocation35 + $0x538] sm:$0xff]  ;;  %v16549_v34 = vcombine.low %v10545_v20, %v10549_v21 }
0x129c   :  { %12171 = vmatprep.subr.bf16.mxu1 %v16508_v37  ;;  %v10452_v37 = vld [vmem:[#allocation35 + $0x270] sm:$0xff] }
0x129d   :  { %v16451_v49 = vcombine.low %v10448_v32, %v10452_v37 }
0x129e   :  { %12131 = vmatpush1.bf16.msra.mxu0 %v16379_v31  ;;  %v16452_v31 = vcombine.high %v10448_v32, %v10452_v37  ;;  %v10533_v32 = vld [vmem:[#allocation35 + $0x4f8] sm:$0xff]  ;;  %v16541_v37 = vcombine.low %v10537_v57, %v10541_v61 }
0x129f   :  { %12172 = vmatpush1.bf16.msra.mxu1 %v16507_v63  ;;  %12132 = vmatprep.subr.bf16.mxu0 %v16500_v58  ;;  %v16580_v63 = vcombine.high %v10576_v19, %v10580_v54  ;;  %v10440_v58 = vld [vmem:[#allocation35 + $0x210] sm:$0xff] }
0x12a0   :  { %12173 = vmatprep.subr.bf16.mxu1 %v16628_v62  ;;  %v10444_v62 = vld [vmem:[#allocation35 + $0x230] sm:$0xff] }
0x12a1   :  { %v16443_v0 = vcombine.low %v10440_v58, %v10444_v62 }
0x12a2   :  { %12133 = vmatpush2.bf16.msra.mxu0 %v16499_v23  ;;  %v16444_v23 = vcombine.high %v10440_v58, %v10444_v62 }
0x12a3   :  { %12174 = vmatpush2.bf16.msra.mxu1 %v16627_v45  ;;  %12134 = vmatprep.subr.bf16.mxu0 %v16492_v55  ;;  %v16572_v45 = vcombine.high %v10568_v1, %v10572_v5  ;;  %v10433_v55 = vld [vmem:[#allocation35 + $0x1d8] sm:$0xff] }
0x12a4   :  { %12175 = vmatprep.subr.bf16.mxu1 %v16620_v7  ;;  %v10437_v7 = vld [vmem:[#allocation35 + $0x1f8] sm:$0xff] }
0x12a5   :  { %v16437_v13 = vcombine.low %v10433_v55, %v10437_v7 }
0x12a6   :  { %12135 = vmatpush2.bf16.msra.mxu0 %v16491_v50  ;;  %v16438_v50 = vcombine.high %v10433_v55, %v10437_v7 }
0x12a7   :  { %12176 = vmatpush2.bf16.msra.mxu1 %v16619_v27  ;;  %12136 = vmatprep.subr.bf16.mxu0 %v16484_v25  ;;  %v16566_v27 = vcombine.high %v10561_v22, %v10565_v4  ;;  %v10425_v25 = vld [vmem:[#allocation35 + $0x198] sm:$0xff] }
0x12a8   :  { %12177 = vmatprep.subr.bf16.mxu1 %v16612_v9  ;;  %v10429_v9 = vld [vmem:[#allocation35 + $0x1b8] sm:$0xff] }
0x12a9   :  { %v16429_v24 = vcombine.low %v10425_v25, %v10429_v9 }
0x12aa   :  { %12137 = vmatpush2.bf16.msra.mxu0 %v16483_v48  ;;  %v16430_v48 = vcombine.high %v10425_v25, %v10429_v9 }
0x12ab   :  { %12178 = vmatpush2.bf16.msra.mxu1 %v16611_v17  ;;  %12138 = vmatprep.subr.bf16.mxu0 %v16476_v16  ;;  %v10417_v17 = vld [vmem:[#allocation35 + $0x158] sm:$0xff] }
0x12ac   :  { %12179 = vmatprep.subr.bf16.mxu1 %v16604_v6  ;;  %v10421_v16 = vld [vmem:[#allocation35 + $0x178] sm:$0xff]  ;;  %v16558_v6 = vcombine.high %v10553_v51, %v10557_v38 }
0x12ad   :  { %v16421_v8 = vcombine.low %v10417_v17, %v10421_v16  ;;  %v10497_v38 = vld [vmem:[#allocation35 + $0x3d8] sm:$0xff] }
0x12ae   :  { %12139 = vmatpush2.bf16.msra.mxu0 %v16475_v10  ;;  %v16422_v10 = vcombine.high %v10417_v17, %v10421_v16  ;;  %v10629_v17 = vld [vmem:[#allocation35 + $0x7f8] sm:$0xff] }
0x12af   :  { %12180 = vmatpush2.bf16.msra.mxu1 %v16603_v33  ;;  %12140 = vmatprep.subr.bf16.mxu0 %v16468_v56  ;;  %v16550_v33 = vcombine.high %v10545_v20, %v10549_v21  ;;  %v10409_v56 = vld [vmem:[#allocation35 + $0x118] sm:$0xff] }
0x12b0   :  { %12181 = vmatprep.subr.bf16.mxu1 %v16596_v60  ;;  %v10413_v60 = vld [vmem:[#allocation35 + $0x138] sm:$0xff] }
0x12b2   :  { %12141 = vmatpush2.bf16.msra.mxu0 %v16467_v18  ;;  %v16414_v18 = vcombine.high %v10409_v56, %v10413_v60 }
0x12b3   :  { %12182 = vmatpush2.bf16.msra.mxu1 %v16595_v11  ;;  %12142 = vmatprep.subr.bf16.mxu0 %v16460_v59  ;;  %v10401_v11 = vld [vmem:[#allocation35 + $0xd8] sm:$0xff] }
0x12b4   :  { %12183 = vmatprep.subr.bf16.mxu1 %v16588_v15  ;;  %v10405_v59 = vld [vmem:[#allocation35 + $0xf8] sm:$0xff] }
0x12b5   :  { %v10529_v15 = vld [vmem:[#allocation35 + $0x4d8] sm:$0xff]  ;;  %v16406_v19 = vcombine.high %v10401_v11, %v10405_v59  ;;  %v16405_v58 = vcombine.low %v10401_v11, %v10405_v59 }
0x12b6   :  { %12143 = vmatpush2.bf16.msra.mxu0 %v16459_v28  ;;  %v16534_v54 = vcombine.high %v10529_v15, %v10533_v32  ;;  %v10393_v28 = vld [vmem:[#allocation35 + $0x98] sm:$0xff]  ;;  %v16533_v62 = vcombine.low %v10529_v15, %v10533_v32 }
0x12b7   :  { %12184 = vmatpush2.bf16.msra.mxu1 %v16587_v40  ;;  %12144 = vmatprep.subr.bf16.mxu0 %v16452_v31  ;;  %v10397_v40 = vld [vmem:[#allocation35 + $0xb8] sm:$0xff] }
0x12b8   :  { %12185 = vmatprep.subr.bf16.mxu1 %v16580_v63  ;;  %v10521_v31 = vld [vmem:[#allocation35 + $0x498] sm:$0xff]  ;;  %v16398_v1 = vcombine.high %v10393_v28, %v10397_v40  ;;  %v16397_v55 = vcombine.low %v10393_v28, %v10397_v40 }
0x12b9   :  { %v10525_v63 = vld [vmem:[#allocation35 + $0x4b8] sm:$0xff] }
0x12ba   :  { %12145 = vmatpush2.bf16.msra.mxu0 %v16451_v49  ;;  %v16526_v5 = vcombine.high %v10521_v31, %v10525_v63  ;;  %v10385_v49 = vld [vmem:[#allocation35 + $0x58] sm:$0xff]  ;;  %v16525_v7 = vcombine.low %v10521_v31, %v10525_v63 }
0x12bb   :  { %12186 = vmatpush2.bf16.msra.mxu1 %v16579_v41  ;;  %12146 = vmatprep.subr.bf16.mxu0 %v16444_v23  ;;  %v10389_v41 = vld [vmem:[#allocation35 + $0x78] sm:$0xff] }
0x12bc   :  { %12187 = vmatprep.subr.bf16.mxu1 %v16572_v45  ;;  %v10513_v23 = vld [vmem:[#allocation35 + $0x458] sm:$0xff]  ;;  %v16390_v22 = vcombine.high %v10385_v49, %v10389_v41  ;;  %v16389_v25 = vcombine.low %v10385_v49, %v10389_v41 }
0x12bd   :  { %v10517_v45 = vld [vmem:[#allocation35 + $0x478] sm:$0xff] }
0x12be   :  { %12147 = vmatpush2.bf16.msra.mxu0 %v16443_v0  ;;  %v16518_v4 = vcombine.high %v10513_v23, %v10517_v45  ;;  %v10377_v0 = vld [vmem:[#allocation35 + $0x18] sm:$0xff]  ;;  %v16517_v9 = vcombine.low %v10513_v23, %v10517_v45 }
0x12bf   :  { %12188 = vmatpush2.bf16.msra.mxu1 %v16571_v30  ;;  %12198 = vmatprep.subr.bf16.mxu0 %v16438_v50  ;;  %v10381_v30 = vld [vmem:[#allocation35 + $0x38] sm:$0xff] }
0x12c0   :  { %12239 = vmatprep.subr.bf16.mxu1 %v16566_v27  ;;  %v10505_v50 = vld [vmem:[#allocation35 + $0x418] sm:$0xff]  ;;  %v16381_v16 = vcombine.low %v10377_v0, %v10381_v30 }
0x12c1   :  { %12149 = vmatmul.mubr.bf16.vlgmr.msra.gmra.mxu0 %v20195_v52  ;;  %v10509_v27 = vld [vmem:[#allocation35 + $0x438] sm:$0xff] }
0x12c2   :  { %12190 = vmatmul.mubr.bf16.vlgmr.msra.gmra.mxu1 %v20197_v35  ;;  %12199 = vmatpush1.bf16.msra.mxu0 %v16437_v13  ;;  %v16382_v13 = vcombine.high %v10377_v0, %v10381_v30  ;;  %v16510_v51 = vcombine.high %v10505_v50, %v10509_v27 }
0x12c3   :  { %12230 = vmatprep.mubr.bf16.mxu0 %v20191_v12  ;;  %12240 = vmatpush1.bf16.msra.mxu1 %v16565_v14  ;;  %v16542_v12 = vcombine.high %v10537_v57, %v10541_v61  ;;  %v10501_v14 = vld [vmem:[#allocation35 + $0x3f8] sm:$0xff] }
0x12c4   :  { %12271 = vmatprep.mubr.bf16.mxu1 %v20193_v3  ;;  %12200 = vmatprep.subr.bf16.mxu0 %v16430_v48  ;;  %v16413_v3 = vcombine.low %v10409_v56, %v10413_v60  ;;  %v10625_v48 = vld [vmem:[#allocation35 + $0x7d8] sm:$0xff]  ;;  %v16502_v20 = vcombine.high %v10497_v38, %v10501_v14  ;;  %v16501_v56 = vcombine.low %v10497_v38, %v10501_v14 }
0x12c5   :  { %12241 = vmatprep.subr.bf16.mxu1 %v16558_v6  ;;  %v16509_v6 = vcombine.low %v10505_v50, %v10509_v27  ;;  %v16630_v21 = vcombine.high %v10625_v48, %v10629_v17  ;;  %v16629_v60 = vcombine.low %v10625_v48, %v10629_v17 }
0x12c6   :  { %12201 = vmatpush1.bf16.msra.mxu0 %v16429_v24  ;;  %v10489_v24 = vld [vmem:[#allocation35 + $0x398] sm:$0xff] }
0x12c7   :  { %12242 = vmatpush1.bf16.msra.mxu1 %v16557_v29  ;;  %12202 = vmatprep.subr.bf16.mxu0 %v16422_v10  ;;  %v10493_v29 = vld [vmem:[#allocation35 + $0x3b8] sm:$0xff] }
0x12c8   :  { %12243 = vmatprep.subr.bf16.mxu1 %v16550_v33  ;;  %v10617_v10 = vld [vmem:[#allocation35 + $0x798] sm:$0xff]  ;;  %v16494_v57 = vcombine.high %v10489_v24, %v10493_v29  ;;  %v16493_v11 = vcombine.low %v10489_v24, %v10493_v29 }
0x12c9   :  { %v10621_v33 = vld [vmem:[#allocation35 + $0x7b8] sm:$0xff] }
0x12ca   :  { %12203 = vmatpush1.bf16.msra.mxu0 %v16421_v8  ;;  %v16622_v61 = vcombine.high %v10617_v10, %v10621_v33  ;;  %v10481_v8 = vld [vmem:[#allocation35 + $0x358] sm:$0xff]  ;;  %v16621_v59 = vcombine.low %v10617_v10, %v10621_v33 }
0x12cb   :  { %12244 = vmatpush1.bf16.msra.mxu1 %v16549_v34  ;;  %12204 = vmatprep.subr.bf16.mxu0 %v16414_v18  ;;  %v10485_v34 = vld [vmem:[#allocation35 + $0x378] sm:$0xff] }
0x12cc   :  { %12245 = vmatprep.subr.bf16.mxu1 %v16542_v12  ;;  %v10609_v18 = vld [vmem:[#allocation35 + $0x758] sm:$0xff]  ;;  %v16486_v15 = vcombine.high %v10481_v8, %v10485_v34  ;;  %v16485_v28 = vcombine.low %v10481_v8, %v10485_v34  ;;  %v20213_v34 = vld [vmem:[#allocation36] sm:$0xff] }
0x12cd   :  { %v10613_v12 = vld [vmem:[#allocation35 + $0x778] sm:$0xff] }
0x12ce   :  { %12205 = vmatpush1.bf16.msra.mxu0 %v16413_v3  ;;  %v16614_v32 = vcombine.high %v10609_v18, %v10613_v12  ;;  %v10473_v3 = vld [vmem:[#allocation35 + $0x318] sm:$0xff]  ;;  %v16613_v40 = vcombine.low %v10609_v18, %v10613_v12  ;;  %v18359_v18 = vld [vmem:[#allocation38 + $0x124] ss:$24 sps:$4 sm:$0xff]  }
0x12cf   :  { %12246 = vmatpush1.bf16.msra.mxu1 %v16541_v37  ;;  %12206 = vmatprep.subr.bf16.mxu0 %v16406_v19  ;;  %v10477_v37 = vld [vmem:[#allocation35 + $0x338] sm:$0xff] }
0x12d0   :  { %12247 = vmatprep.subr.bf16.mxu1 %v16534_v54  ;;  %v10601_v19 = vld [vmem:[#allocation35 + $0x718] sm:$0xff]  ;;  %v16478_v31 = vcombine.high %v10473_v3, %v10477_v37  ;;  %v16477_v49 = vcombine.low %v10473_v3, %v10477_v37  ;;  %v18357_v3 = vld [vmem:[#allocation38 + $0x120] ss:$24 sps:$4 sm:$0xff]  }
0x12d1   :  { %v10605_v54 = vld [vmem:[#allocation35 + $0x738] sm:$0xff] }
0x12d2   :  { %12207 = vmatpush1.bf16.msra.mxu0 %v16405_v58  ;;  %v16606_v63 = vcombine.high %v10601_v19, %v10605_v54  ;;  %v10465_v58 = vld [vmem:[#allocation35 + $0x2d8] sm:$0xff]  ;;  %v16605_v41 = vcombine.low %v10601_v19, %v10605_v54 }
0x12d3   :  { %12248 = vmatpush1.bf16.msra.mxu1 %v16533_v62  ;;  %12208 = vmatprep.subr.bf16.mxu0 %v16398_v1  ;;  %v10469_v62 = vld [vmem:[#allocation35 + $0x2f8] sm:$0xff] }
0x12d4   :  { %12249 = vmatprep.subr.bf16.mxu1 %v16526_v5  ;;  %v10593_v1 = vld [vmem:[#allocation35 + $0x6d8] sm:$0xff]  ;;  %v16470_v23 = vcombine.high %v10465_v58, %v10469_v62  ;;  %v16469_v0 = vcombine.low %v10465_v58, %v10469_v62 }
0x12d5   :  { %v10597_v5 = vld [vmem:[#allocation35 + $0x6f8] sm:$0xff] }
0x12d6   :  { %12209 = vmatpush1.bf16.msra.mxu0 %v16397_v55  ;;  %v16598_v45 = vcombine.high %v10593_v1, %v10597_v5  ;;  %v10457_v55 = vld [vmem:[#allocation35 + $0x298] sm:$0xff]  ;;  %v16597_v30 = vcombine.low %v10593_v1, %v10597_v5 }
0x12d7   :  { %12250 = vmatpush1.bf16.msra.mxu1 %v16525_v7  ;;  %12210 = vmatprep.subr.bf16.mxu0 %v16390_v22  ;;  %v10461_v7 = vld [vmem:[#allocation35 + $0x2b8] sm:$0xff] }
0x12d8   :  { %12251 = vmatprep.subr.bf16.mxu1 %v16518_v4  ;;  %v10585_v22 = vld [vmem:[#allocation35 + $0x698] sm:$0xff]  ;;  %v16462_v50 = vcombine.high %v10457_v55, %v10461_v7  ;;  %v16461_v38 = vcombine.low %v10457_v55, %v10461_v7  ;;  %v18363_v55 = vld [vmem:[#allocation38 + $0xc0] ss:$24 sps:$4 sm:$0xff]  }
0x12d9   :  { %v10589_v4 = vld [vmem:[#allocation35 + $0x6b8] sm:$0xff] }
0x12da   :  { %12211 = vmatpush1.bf16.msra.mxu0 %v16389_v25  ;;  %v16590_v27 = vcombine.high %v10585_v22, %v10589_v4  ;;  %v10449_v25 = vld [vmem:[#allocation35 + $0x258] sm:$0xff]  ;;  %v16589_v14 = vcombine.low %v10585_v22, %v10589_v4  ;;  %v18384_v22 = vld [vmem:[#allocation38 + $0x3c0] ss:$24 sps:$4 sm:$0xff]  }
0x12db   :  { %12252 = vmatpush1.bf16.msra.mxu1 %v16517_v9  ;;  %12212 = vmatprep.subr.bf16.mxu0 %v16382_v13  ;;  %v10453_v9 = vld [vmem:[#allocation35 + $0x278] sm:$0xff] }
0x12dc   :  { %12253 = vmatprep.subr.bf16.mxu1 %v16510_v51  ;;  %v10577_v13 = vld [vmem:[#allocation35 + $0x658] sm:$0xff]  ;;  %v16454_v48 = vcombine.high %v10449_v25, %v10453_v9  ;;  %v16453_v24 = vcombine.low %v10449_v25, %v10453_v9  ;;  %v18375_v25 = vld [vmem:[#allocation38 + $0x60] ss:$24 sps:$4 sm:$0xff]  }
0x12dd   :  { %v10581_v51 = vld [vmem:[#allocation35 + $0x678] sm:$0xff] }
0x12de   :  { %12213 = vmatpush1.bf16.msra.mxu0 %v16381_v16  ;;  %v16582_v17 = vcombine.high %v10577_v13, %v10581_v51  ;;  %v10441_v16 = vld [vmem:[#allocation35 + $0x218] sm:$0xff]  ;;  %v16581_v29 = vcombine.low %v10577_v13, %v10581_v51  ;;  %v18396_v13 = vld [vmem:[#allocation38 + $0x360] ss:$24 sps:$4 sm:$0xff]  }
0x12df   :  { %12254 = vmatpush1.bf16.msra.mxu1 %v16509_v6  ;;  %12214 = vmatprep.subr.bf16.mxu0 %v16502_v20  ;;  %v10445_v6 = vld [vmem:[#allocation35 + $0x238] sm:$0xff] }
0x12e0   :  { %12255 = vmatprep.subr.bf16.mxu1 %v16630_v21  ;;  %v10569_v20 = vld [vmem:[#allocation35 + $0x618] sm:$0xff]  ;;  %v16446_v10 = vcombine.high %v10441_v16, %v10445_v6 }
0x12e1   :  { %v10573_v21 = vld [vmem:[#allocation35 + $0x638] sm:$0xff] }
0x12e2   :  { %12215 = vmatpush2.bf16.msra.mxu0 %v16501_v56  ;;  %v16574_v33 = vcombine.high %v10569_v20, %v10573_v21  ;;  %v16445_v56 = vcombine.low %v10441_v16, %v10445_v6  ;;  %v18354_v8 = vld [vmem:[#allocation38 + $0x150] ss:$24 sps:$4 sm:$0xff]   ;;  %v18362_v54 = vld [vmem:[#allocation38 + $0xf4] ss:$24 sps:$4 sm:$0xff]   ;;  %v18387_v16 = vld [vmem:[#allocation38] ss:$24 sps:$4 sm:$0xff]  }
0x12e3   :  { %12256 = vmatpush2.bf16.msra.mxu1 %v16629_v60  ;;  %12216 = vmatprep.subr.bf16.mxu0 %v16494_v57  ;;  %v16573_v60 = vcombine.low %v10569_v20, %v10573_v21  ;;  %v18356_v57 = vld [vmem:[#allocation38 + $0x154] ss:$24 sps:$4 sm:$0xff]   ;;  %v18366_v12 = vld [vmem:[#allocation38 + $0x450] ss:$24 sps:$4 sm:$0xff]   ;;  %v18408_v20 = vld [vmem:[#allocation38 + $0x300] ss:$24 sps:$4 sm:$0xff]  }
0x12e4   :  { %12257 = vmatprep.subr.bf16.mxu1 %v16622_v61  ;;  %v18368_v61 = vld [vmem:[#allocation38 + $0x454] ss:$24 sps:$4 sm:$0xff]   ;;  %v18360_v62 = vld [vmem:[#allocation38 + $0xf0] ss:$24 sps:$4 sm:$0xff]  }
0x12e5   :  { %v18371_v7 = vld [vmem:[#allocation38 + $0x94] ss:$24 sps:$4 sm:$0xff]  }
0x12e6   :  { %12217 = vmatpush2.bf16.msra.mxu0 %v16493_v11  ;;  %v10639_v11 = vrot.slane %v20213_v34, %v19795_v36  ;;  %v18392_v4 = vld [vmem:[#allocation38 + $0x394] ss:$24 sps:$4 sm:$0xff]  }
0x12e7   :  { %12258 = vmatpush2.bf16.msra.mxu1 %v16621_v59  ;;  %12218 = vmatprep.subr.bf16.mxu0 %v16486_v15  ;;  %v18374_v59 = vld [vmem:[#allocation38 + $0x424] ss:$24 sps:$4 sm:$0xff]   ;;  %v18383_v9 = vld [vmem:[#allocation38 + $0x34] ss:$24 sps:$4 sm:$0xff]  }
0x12e8   :  { %12259 = vmatprep.subr.bf16.mxu1 %v16614_v32  ;;  %v18404_v51 = vld [vmem:[#allocation38 + $0x334] ss:$24 sps:$4 sm:$0xff]  }
0x12e9   :  { %v18395_v6 = vld [vmem:[#allocation38 + $0x2d4] ss:$24 sps:$4 sm:$0xff]  }
0x12ea   :  { %12219 = vmatpush2.bf16.msra.mxu0 %v16485_v28  ;;  %v18372_v28 = vld [vmem:[#allocation38 + $0x420] ss:$24 sps:$4 sm:$0xff]   ;;  %v18416_v21 = vld [vmem:[#allocation38 + $0x5d4] ss:$24 sps:$4 sm:$0xff]  }
0x12eb   :  { %12260 = vmatpush2.bf16.msra.mxu1 %v16613_v40  ;;  %12220 = vmatprep.subr.bf16.mxu0 %v16478_v31  ;;  %v18380_v31 = vld [vmem:[#allocation38 + $0x3f4] ss:$24 sps:$4 sm:$0xff]  }
0x12ec   :  { %12261 = vmatprep.subr.bf16.mxu1 %v16606_v63 }
0x12ee   :  { %12221 = vmatpush2.bf16.msra.mxu0 %v16477_v49  ;;  %v18378_v49 = vld [vmem:[#allocation38 + $0x3f0] ss:$24 sps:$4 sm:$0xff]  }
0x12ef   :  { %12262 = vmatpush2.bf16.msra.mxu1 %v16605_v41  ;;  %12222 = vmatprep.subr.bf16.mxu0 %v16470_v23  ;;  %v18386_v23 = vld [vmem:[#allocation38 + $0x3c4] ss:$24 sps:$4 sm:$0xff]  }
0x12f0   :  { %12263 = vmatprep.subr.bf16.mxu1 %v16598_v45 }
0x12f2   :  { %12223 = vmatpush2.bf16.msra.mxu0 %v16469_v0  ;;  %v18369_v0 = vld [vmem:[#allocation38 + $0x90] ss:$24 sps:$4 sm:$0xff]  }
0x12f3   :  { %12264 = vmatpush2.bf16.msra.mxu1 %v16597_v30  ;;  %12224 = vmatprep.subr.bf16.mxu0 %v16462_v50  ;;  %v18377_v30 = vld [vmem:[#allocation38 + $0x64] ss:$24 sps:$4 sm:$0xff]   ;;  %v18390_v50 = vld [vmem:[#allocation38 + $0x390] ss:$24 sps:$4 sm:$0xff]  }
0x12f4   :  { %12265 = vmatprep.subr.bf16.mxu1 %v16590_v27  ;;  %v18398_v27 = vld [vmem:[#allocation38 + $0x364] ss:$24 sps:$4 sm:$0xff]  }
0x12f6   :  { %12225 = vmatpush2.bf16.msra.mxu0 %v16461_v38  ;;  %v18381_v38 = vld [vmem:[#allocation38 + $0x30] ss:$24 sps:$4 sm:$0xff]  }
0x12f7   :  { %12266 = vmatpush2.bf16.msra.mxu1 %v16589_v14  ;;  %12226 = vmatprep.subr.bf16.mxu0 %v16454_v48  ;;  %v18389_v14 = vld [vmem:[#allocation38 + $0x4] ss:$24 sps:$4 sm:$0xff]   ;;  %v18402_v48 = vld [vmem:[#allocation38 + $0x330] ss:$24 sps:$4 sm:$0xff]  }
0x12f8   :  { %12267 = vmatprep.subr.bf16.mxu1 %v16582_v17  ;;  %v18410_v17 = vld [vmem:[#allocation38 + $0x304] ss:$24 sps:$4 sm:$0xff]  }
0x12fa   :  { %12227 = vmatpush2.bf16.msra.mxu0 %v16453_v24  ;;  %v18393_v24 = vld [vmem:[#allocation38 + $0x2d0] ss:$24 sps:$4 sm:$0xff]  }
0x12fb   :  { %12268 = vmatpush2.bf16.msra.mxu1 %v16581_v29  ;;  %12228 = vmatprep.subr.bf16.mxu0 %v16446_v10  ;;  %v18401_v29 = vld [vmem:[#allocation38 + $0x2a4] ss:$24 sps:$4 sm:$0xff]   ;;  %v18414_v10 = vld [vmem:[#allocation38 + $0x5d0] ss:$24 sps:$4 sm:$0xff]  }
0x12fc   :  { %12269 = vmatprep.subr.bf16.mxu1 %v16574_v33  ;;  %v18422_v33 = vld [vmem:[#allocation38 + $0x5a4] ss:$24 sps:$4 sm:$0xff]  }
0x12fe   :  { %12229 = vmatpush2.bf16.msra.mxu0 %v16445_v56  ;;  %v18399_v56 = vld [vmem:[#allocation38 + $0x2a0] ss:$24 sps:$4 sm:$0xff]  }
0x12ff   :  { %12270 = vmatpush2.bf16.msra.mxu1 %v16573_v60  ;;  %14632 = vmatprep.subr.bf16.mxu0 %v18356_v57  ;;  %v18407_v60 = vld [vmem:[#allocation38 + $0x274] ss:$24 sps:$4 sm:$0xff]   ;;  %v18420_v57 = vld [vmem:[#allocation38 + $0x5a0] ss:$24 sps:$4 sm:$0xff]  }
0x1300   :  { %14673 = vmatprep.subr.bf16.mxu1 %v18368_v61  ;;  %v18428_v61 = vld [vmem:[#allocation38 + $0x574] ss:$24 sps:$4 sm:$0xff]  }
0x1301   :  { %12231 = vmatmul.mubr.bf16.vlgmr.msra.gmra.mxu0 %v20195_v52  ;;  %v20218_v15 = vpop.f32.mrf.mxu0  ;;  %v20220_v32 = vpop.f32.mrf.mxu1 }
0x1302   :  { %12272 = vmatmul.mubr.bf16.vlgmr.msra.gmra.mxu1 %v20197_v35  ;;  %14633 = vmatpush1.bf16.msra.mxu0 %v18354_v8  ;;  %v18365_v35 = vld [vmem:[#allocation38 + $0xc4] ss:$24 sps:$4 sm:$0xff]   ;;  %v18405_v8 = vld [vmem:[#allocation38 + $0x270] ss:$24 sps:$4 sm:$0xff]  }
0x1303   :  { %v11988_v37 = vpop.f32.mrf.mxu0  ;;  %v12029_v19 = vpop.f32.mrf.mxu1  ;;  %14634 = vmatprep.subr.bf16.mxu0 %v18359_v18  ;;  %14674 = vmatpush1.bf16.msra.mxu1 %v18366_v12  ;;  %v18413_v18 = vld [vmem:[#allocation38 + $0x244] ss:$24 sps:$4 sm:$0xff]   ;;  %v18426_v12 = vld [vmem:[#allocation38 + $0x570] ss:$24 sps:$4 sm:$0xff]  }
0x1304   :  { %v11989_v40 = vadd.f32 %v11988_v37, %v10639_v11  ;;  %14675 = vmatprep.subr.bf16.mxu1 %v18374_v59  ;;  %v18434_v11 = vld [vmem:[#allocation38 + $0x544] ss:$24 sps:$4 sm:$0xff]   ;;  %v18411_v59 = vld [vmem:[#allocation38 + $0x240] ss:$24 sps:$4 sm:$0xff]  }
0x1305   :  { %v11990_v63 = vpop.f32.mrf.mxu0  ;;  %v12031_v58 = vpop.f32.mrf.mxu1  ;;  %v18432_v37 = vld [vmem:[#allocation38 + $0x540] ss:$24 sps:$4 sm:$0xff]  }
0x1306   :  { %v12030_v52 = vadd.f32 %v12029_v19, %v11989_v40  ;;  %14635 = vmatpush1.bf16.msra.mxu0 %v18357_v3  ;;  %v18419_v3 = vld [vmem:[#allocation38 + $0x214] ss:$24 sps:$4 sm:$0xff]   ;;  %v18425_v40 = vld [vmem:[#allocation38 + $0x1e4] ss:$24 sps:$4 sm:$0xff]   ;;  %v18423_v58 = vld [vmem:[#allocation38 + $0x1e0] ss:$24 sps:$4 sm:$0xff]  }
0x1307   :  { %v11991_v1 = vpop.f32.mrf.mxu0  ;;  %v12032_v5 = vpop.f32.mrf.mxu1  ;;  %14636 = vmatprep.subr.bf16.mxu0 %v18362_v54  ;;  %14676 = vmatpush1.bf16.msra.mxu1 %v18372_v28  ;;  %v18440_v19 = vld [vmem:[#allocation38 + $0x514] ss:$24 sps:$4 sm:$0xff]   ;;  %v18417_v54 = vld [vmem:[#allocation38 + $0x210] ss:$24 sps:$4 sm:$0xff]   ;;  %v10635_v28 = vrot.slane %v20213_v34, %v19792_v26  ;;  %v18443_v63 = vld [vmem:[#allocation38 + $0x4e4] ss:$24 sps:$4 sm:$0xff]  }
0x1308   :  { %v12281_v41 = vmax.f32 %v12030_v52, 0.0  ;;  %14677 = vmatprep.subr.bf16.mxu1 %v18380_v31  ;;  %v18438_v31 = vld [vmem:[#allocation38 + $0x510] ss:$24 sps:$4 sm:$0xff]   ;;  %v18441_v1 = vld [vmem:[#allocation38 + $0x4e0] ss:$24 sps:$4 sm:$0xff]  }
0x1309   :  { %v11987_v52 = vadd.f32 %v20218_v15, %v10635_v28  ;;  %v18446_v5 = vld [vmem:[#allocation38 + $0x4b4] ss:$24 sps:$4 sm:$0xff]   ;;  %v18447_v15 = vld [vmem:[#allocation38 + $0x480] ss:$24 sps:$4 sm:$0xff]  }
0x130a   :  { %v20223_v45 = vpack.c.bf16 %v12281_v41, %v12281_v41  ;;  %14637 = vmatpush1.bf16.msra.mxu0 %v18360_v62  ;;  %v18431_v62 = vld [vmem:[#allocation38 + $0x1b4] ss:$24 sps:$4 sm:$0xff]   ;;  %v18437_v41 = vld [vmem:[#allocation38 + $0x184] ss:$24 sps:$4 sm:$0xff]   ;;  %v18465_v28 = vld [vmem:[#allocation38 + $0x660] ss:$24 sps:$4 sm:$0xff]  }
0x130b   :  { %14638 = vmatprep.subr.bf16.mxu0 %v18365_v35  ;;  %14678 = vmatpush1.bf16.msra.mxu1 %v18378_v49  ;;  %v18429_v35 = vld [vmem:[#allocation38 + $0x1b0] ss:$24 sps:$4 sm:$0xff]   ;;  %v12028_v49 = vadd.f32 %v20220_v32, %v11987_v52  ;;  %v18516_v52 = vld [vmem:[#allocation38 + $0x9c0] ss:$24 sps:$4 sm:$0xff]  }
0x130c   :  { %14664 = vmatprep.mubr.bf16.mxu0 %v20223_v45  ;;  %14679 = vmatprep.subr.bf16.mxu1 %v18386_v23  ;;  %v18444_v23 = vld [vmem:[#allocation38 + $0x4b0] ss:$24 sps:$4 sm:$0xff]  }
0x130d   :  { %v18450_v32 = vld [vmem:[#allocation38 + $0x750] ss:$24 sps:$4 sm:$0xff]  }
0x130e   :  { %14639 = vmatpush1.bf16.msra.mxu0 %v18363_v55  ;;  %v18449_v55 = vld [vmem:[#allocation38 + $0x484] ss:$24 sps:$4 sm:$0xff]  }
0x130f   :  { %14640 = vmatprep.subr.bf16.mxu0 %v18371_v7  ;;  %14680 = vmatpush1.bf16.msra.mxu1 %v18384_v22  ;;  %v18435_v7 = vld [vmem:[#allocation38 + $0x180] ss:$24 sps:$4 sm:$0xff]   ;;  %v12280_v22 = vmax.f32 %v12028_v49, 0.0  ;;  %v18476_v49 = vld [vmem:[#allocation38 + $0x8d4] ss:$24 sps:$4 sm:$0xff]  }
0x1310   :  { %14681 = vmatprep.subr.bf16.mxu1 %v18392_v4  ;;  %v18452_v4 = vld [vmem:[#allocation38 + $0x754] ss:$24 sps:$4 sm:$0xff]  }
0x1312   :  { %14641 = vmatpush1.bf16.msra.mxu0 %v18369_v0  ;;  %v18500_v0 = vld [vmem:[#allocation38 + $0xa54] ss:$24 sps:$4 sm:$0xff]  }
0x1313   :  { %14642 = vmatprep.subr.bf16.mxu0 %v18377_v30  ;;  %14682 = vmatpush1.bf16.msra.mxu1 %v18390_v50  ;;  %v10643_v30 = vrot.slane %v20213_v34, %v19843_v2  ;;  %v20232_v50 = vpack.c.bf16 %v12280_v22, %v12280_v22  ;;  %v18536_v22 = vld [vmem:[#allocation38 + $0x934] ss:$24 sps:$4 sm:$0xff]  }
0x1314   :  { %14683 = vmatprep.subr.bf16.mxu1 %v18398_v27  ;;  %v18455_v27 = vld [vmem:[#allocation38 + $0x724] ss:$24 sps:$4 sm:$0xff]  }
0x1316   :  { %14643 = vmatpush1.bf16.msra.mxu0 %v18375_v25  ;;  %v10647_v25 = vrot.slane %v20213_v34, %v19823_v43 }
0x1317   :  { %14644 = vmatprep.subr.bf16.mxu0 %v18383_v9  ;;  %14684 = vmatpush1.bf16.msra.mxu1 %v18396_v13 }
0x1318   :  { %14685 = vmatprep.subr.bf16.mxu1 %v18404_v51 }
0x131a   :  { %14645 = vmatpush1.bf16.msra.mxu0 %v18381_v38  ;;  %v18453_v38 = vld [vmem:[#allocation38 + $0x720] ss:$24 sps:$4 sm:$0xff]  }
0x131b   :  { %14646 = vmatprep.subr.bf16.mxu0 %v18389_v14  ;;  %14686 = vmatpush1.bf16.msra.mxu1 %v18402_v48 }
0x131c   :  { %14687 = vmatprep.subr.bf16.mxu1 %v18410_v17  ;;  %v18458_v17 = vld [vmem:[#allocation38 + $0x6f4] ss:$24 sps:$4 sm:$0xff]  }
0x131e   :  { %14647 = vmatpush1.bf16.msra.mxu0 %v18387_v16 }
0x131f   :  { %14648 = vmatprep.subr.bf16.mxu0 %v18395_v6  ;;  %14688 = vmatpush1.bf16.msra.mxu1 %v18408_v20 }
0x1320   :  { %14689 = vmatprep.subr.bf16.mxu1 %v18416_v21 }
0x1322   :  { %14649 = vmatpush2.bf16.msra.mxu0 %v18393_v24 }
0x1323   :  { %14650 = vmatprep.subr.bf16.mxu0 %v18401_v29  ;;  %14690 = vmatpush2.bf16.msra.mxu1 %v18414_v10  ;;  %v18456_v29 = vld [vmem:[#allocation38 + $0x6f0] ss:$24 sps:$4 sm:$0xff]  }
0x1324   :  { %14691 = vmatprep.subr.bf16.mxu1 %v18422_v33 }
0x1326   :  { %14651 = vmatpush2.bf16.msra.mxu0 %v18399_v56 }
0x1327   :  { %14652 = vmatprep.subr.bf16.mxu0 %v18407_v60  ;;  %14692 = vmatpush2.bf16.msra.mxu1 %v18420_v57  ;;  %v18461_v60 = vld [vmem:[#allocation38 + $0x6c4] ss:$24 sps:$4 sm:$0xff]  }
0x1328   :  { %14693 = vmatprep.subr.bf16.mxu1 %v18428_v61 }
0x132a   :  { %14653 = vmatpush2.bf16.msra.mxu0 %v18405_v8  ;;  %v18459_v8 = vld [vmem:[#allocation38 + $0x6c0] ss:$24 sps:$4 sm:$0xff]  }
0x132b   :  { %14654 = vmatprep.subr.bf16.mxu0 %v18413_v18  ;;  %14694 = vmatpush2.bf16.msra.mxu1 %v18426_v12  ;;  %v18498_v18 = vld [vmem:[#allocation38 + $0xa50] ss:$24 sps:$4 sm:$0xff]  }
0x132c   :  { %14695 = vmatprep.subr.bf16.mxu1 %v18434_v11  ;;  %v18464_v11 = vld [vmem:[#allocation38 + $0x694] ss:$24 sps:$4 sm:$0xff]  }
0x132e   :  { %14655 = vmatpush2.bf16.msra.mxu0 %v18411_v59  ;;  %v18506_v59 = vld [vmem:[#allocation38 + $0xa24] ss:$24 sps:$4 sm:$0xff]  }
0x132f   :  { %14656 = vmatprep.subr.bf16.mxu0 %v18419_v3  ;;  %14696 = vmatpush2.bf16.msra.mxu1 %v18432_v37  ;;  %v18462_v3 = vld [vmem:[#allocation38 + $0x690] ss:$24 sps:$4 sm:$0xff]   ;;  %v18504_v37 = vld [vmem:[#allocation38 + $0xa20] ss:$24 sps:$4 sm:$0xff]  }
0x1330   :  { %14697 = vmatprep.subr.bf16.mxu1 %v18440_v19  ;;  %v18467_v19 = vld [vmem:[#allocation38 + $0x664] ss:$24 sps:$4 sm:$0xff]  }
0x1332   :  { %14657 = vmatpush2.bf16.msra.mxu0 %v18417_v54  ;;  %v18512_v54 = vld [vmem:[#allocation38 + $0x9f4] ss:$24 sps:$4 sm:$0xff]  }
0x1333   :  { %14658 = vmatprep.subr.bf16.mxu0 %v18425_v40  ;;  %14698 = vmatpush2.bf16.msra.mxu1 %v18438_v31  ;;  %v18510_v40 = vld [vmem:[#allocation38 + $0x9f0] ss:$24 sps:$4 sm:$0xff]   ;;  %v18470_v31 = vld [vmem:[#allocation38 + $0x634] ss:$24 sps:$4 sm:$0xff]  }
0x1334   :  { %14699 = vmatprep.subr.bf16.mxu1 %v18443_v63  ;;  %v18518_v63 = vld [vmem:[#allocation38 + $0x9c4] ss:$24 sps:$4 sm:$0xff]  }
0x1336   :  { %14659 = vmatpush2.bf16.msra.mxu0 %v18423_v58  ;;  %v18468_v58 = vld [vmem:[#allocation38 + $0x630] ss:$24 sps:$4 sm:$0xff]  }
0x1337   :  { %14660 = vmatprep.subr.bf16.mxu0 %v18431_v62  ;;  %14700 = vmatpush2.bf16.msra.mxu1 %v18441_v1  ;;  %v18473_v62 = vld [vmem:[#allocation38 + $0x604] ss:$24 sps:$4 sm:$0xff]   ;;  %v18524_v1 = vld [vmem:[#allocation38 + $0x994] ss:$24 sps:$4 sm:$0xff]  }
0x1338   :  { %14701 = vmatprep.subr.bf16.mxu1 %v18446_v5  ;;  %v18471_v5 = vld [vmem:[#allocation38 + $0x600] ss:$24 sps:$4 sm:$0xff]  }
0x133a   :  { %14661 = vmatpush2.bf16.msra.mxu0 %v18429_v35  ;;  %v18522_v35 = vld [vmem:[#allocation38 + $0x990] ss:$24 sps:$4 sm:$0xff]  }
0x133b   :  { %14662 = vmatprep.subr.bf16.mxu0 %v18437_v41  ;;  %14702 = vmatpush2.bf16.msra.mxu1 %v18444_v23  ;;  %v18530_v41 = vld [vmem:[#allocation38 + $0x964] ss:$24 sps:$4 sm:$0xff]   ;;  %v18474_v23 = vld [vmem:[#allocation38 + $0x8d0] ss:$24 sps:$4 sm:$0xff]  }
0x133c   :  { %14703 = vmatprep.subr.bf16.mxu1 %v18449_v55  ;;  %v18528_v55 = vld [vmem:[#allocation38 + $0x960] ss:$24 sps:$4 sm:$0xff]  }
0x133e   :  { %14663 = vmatpush2.bf16.msra.mxu0 %v18435_v7  ;;  %v18479_v7 = vld [vmem:[#allocation38 + $0x8a4] ss:$24 sps:$4 sm:$0xff]  }
0x133f   :  { %14704 = vmatpush2.bf16.msra.mxu1 %v18447_v15  ;;  %14714 = vmatprep.subr.bf16.mxu0 %v18452_v4  ;;  %v18477_v15 = vld [vmem:[#allocation38 + $0x8a0] ss:$24 sps:$4 sm:$0xff]   ;;  %v18534_v4 = vld [vmem:[#allocation38 + $0x930] ss:$24 sps:$4 sm:$0xff]  }
0x1340   :  { %14755 = vmatprep.subr.bf16.mxu1 %v18500_v0  ;;  %v18482_v0 = vld [vmem:[#allocation38 + $0x874] ss:$24 sps:$4 sm:$0xff]  }
0x1341   :  { %v12068_v9 = vpop.f32.mrf.mxu0  ;;  %v12109_v13 = vpop.f32.mrf.mxu1  ;;  %14665 = vmatmul.mubr.bf16.vlgmr.msra.gmra.mxu0 %v20232_v50 }
0x1342   :  { %v12069_v51 = vadd.f32 %v12068_v9, %v10643_v30  ;;  %14715 = vmatpush1.bf16.msra.mxu0 %v18450_v32  ;;  %v18542_v30 = vld [vmem:[#allocation38 + $0x904] ss:$24 sps:$4 sm:$0xff]   ;;  %v18480_v32 = vld [vmem:[#allocation38 + $0x870] ss:$24 sps:$4 sm:$0xff]   ;;  %v18548_v9 = vld [vmem:[#allocation38 + $0xbd4] ss:$24 sps:$4 sm:$0xff]  }
0x1343   :  { %v12070_v14 = vpop.f32.mrf.mxu0  ;;  %v12111_v48 = vpop.f32.mrf.mxu1  ;;  %14716 = vmatprep.subr.bf16.mxu0 %v18455_v27  ;;  %v18540_v27 = vld [vmem:[#allocation38 + $0x900] ss:$24 sps:$4 sm:$0xff]  }
0x1344   :  { %v12110_v16 = vadd.f32 %v12109_v13, %v12069_v51  ;;  %v12071_v6 = vadd.f32 %v12070_v14, %v10647_v25  ;;  %v18485_v25 = vld [vmem:[#allocation38 + $0x844] ss:$24 sps:$4 sm:$0xff]   ;;  %v18483_v13 = vld [vmem:[#allocation38 + $0x840] ss:$24 sps:$4 sm:$0xff]   ;;  %v18546_v51 = vld [vmem:[#allocation38 + $0xbd0] ss:$24 sps:$4 sm:$0xff]  }
0x1345   :  { %v12072_v20 = vpop.f32.mrf.mxu0  ;;  %v12113_v21 = vpop.f32.mrf.mxu1  ;;  %v18554_v14 = vld [vmem:[#allocation38 + $0xba4] ss:$24 sps:$4 sm:$0xff]  }
0x1346   :  { %v12112_v24 = vadd.f32 %v12111_v48, %v12071_v6  ;;  %14717 = vmatpush1.bf16.msra.mxu0 %v18453_v38  ;;  %v12282_v10 = vmax.f32 %v12110_v16, 0.0  ;;  %v18488_v38 = vld [vmem:[#allocation38 + $0x814] ss:$24 sps:$4 sm:$0xff]   ;;  %v18486_v48 = vld [vmem:[#allocation38 + $0x810] ss:$24 sps:$4 sm:$0xff]  }
0x1347   :  { %v12073_v33 = vpop.f32.mrf.mxu0  ;;  %v12114_v56 = vpop.f32.mrf.mxu1  ;;  %14718 = vmatprep.subr.bf16.mxu0 %v18458_v17  ;;  %v18552_v17 = vld [vmem:[#allocation38 + $0xba0] ss:$24 sps:$4 sm:$0xff]   ;;  %v18491_v16 = vld [vmem:[#allocation38 + $0x7e4] ss:$24 sps:$4 sm:$0xff]   ;;  %v18560_v6 = vld [vmem:[#allocation38 + $0xb74] ss:$24 sps:$4 sm:$0xff]  }
0x1348   :  { %v12283_v57 = vmax.f32 %v12112_v24, 0.0  ;;  %v20239_v12 = vpack.c.bf16 %v12282_v10, %v12282_v10  ;;  %v18489_v20 = vld [vmem:[#allocation38 + $0x7e0] ss:$24 sps:$4 sm:$0xff]   ;;  %v18558_v21 = vld [vmem:[#allocation38 + $0xb70] ss:$24 sps:$4 sm:$0xff]  }
0x1349   :  { %v18494_v24 = vld [vmem:[#allocation38 + $0x7b4] ss:$24 sps:$4 sm:$0xff]   ;;  %v18492_v10 = vld [vmem:[#allocation38 + $0x7b0] ss:$24 sps:$4 sm:$0xff]   ;;  %v18564_v33 = vld [vmem:[#allocation38 + $0xb40] ss:$24 sps:$4 sm:$0xff]  }
0x134a   :  { %v20237_v61 = vpack.c.bf16 %v12283_v57, %v12283_v57  ;;  %14719 = vmatpush1.bf16.msra.mxu0 %v18456_v29  ;;  %v18566_v29 = vld [vmem:[#allocation38 + $0xb44] ss:$24 sps:$4 sm:$0xff]   ;;  %v18495_v57 = vld [vmem:[#allocation38 + $0x780] ss:$24 sps:$4 sm:$0xff]  }
0x134b   :  { %14720 = vmatprep.subr.bf16.mxu0 %v18461_v60  ;;  %v18497_v56 = vld [vmem:[#allocation38 + $0x784] ss:$24 sps:$4 sm:$0xff]   ;;  %v18572_v60 = vld [vmem:[#allocation38 + $0xb14] ss:$24 sps:$4 sm:$0xff]  }
0x134c   :  { %14705 = vmatprep.mubr.bf16.mxu1 %v20237_v61 }
0x134d   :  { %14706 = vmatmul.mubr.bf16.vlgmr.msra.gmra.mxu1 %v20239_v12 }
0x134e   :  { %14721 = vmatpush1.bf16.msra.mxu0 %v18459_v8  ;;  %14756 = vmatpush1.bf16.msra.mxu1 %v18498_v18  ;;  %v18570_v8 = vld [vmem:[#allocation38 + $0xb10] ss:$24 sps:$4 sm:$0xff]   ;;  %v18503_v18 = vld [vmem:[#allocation38 + $0x15c] ss:$24 sps:$4 sm:$0xff]  }
0x134f   :  { %14722 = vmatprep.subr.bf16.mxu0 %v18464_v11  ;;  %14757 = vmatprep.subr.bf16.mxu1 %v18506_v59  ;;  %v18578_v11 = vld [vmem:[#allocation38 + $0xae4] ss:$24 sps:$4 sm:$0xff]   ;;  %v10651_v59 = vrot.slane %v20213_v34, %v19866_v39 }
0x1352   :  { %14723 = vmatpush1.bf16.msra.mxu0 %v18462_v3  ;;  %14758 = vmatpush1.bf16.msra.mxu1 %v18504_v37  ;;  %v18576_v3 = vld [vmem:[#allocation38 + $0xae0] ss:$24 sps:$4 sm:$0xff]   ;;  %v18584_v37 = vld [vmem:[#allocation38 + $0xab4] ss:$24 sps:$4 sm:$0xff]  }
0x1353   :  { %14724 = vmatprep.subr.bf16.mxu0 %v18467_v19  ;;  %14759 = vmatprep.subr.bf16.mxu1 %v18512_v54  ;;  %v10655_v19 = vrot.slane %v20213_v34, %v19869_v42 }
0x1356   :  { %14725 = vmatpush1.bf16.msra.mxu0 %v18465_v28  ;;  %14760 = vmatpush1.bf16.msra.mxu1 %v18510_v40 }
0x1357   :  { %14726 = vmatprep.subr.bf16.mxu0 %v18470_v31  ;;  %14761 = vmatprep.subr.bf16.mxu1 %v18518_v63  ;;  %v18582_v31 = vld [vmem:[#allocation38 + $0xab0] ss:$24 sps:$4 sm:$0xff]  }
0x135a   :  { %14727 = vmatpush1.bf16.msra.mxu0 %v18468_v58  ;;  %14762 = vmatpush1.bf16.msra.mxu1 %v18516_v52  ;;  %v18590_v58 = vld [vmem:[#allocation38 + $0xa84] ss:$24 sps:$4 sm:$0xff]  }
0x135b   :  { %14728 = vmatprep.subr.bf16.mxu0 %v18473_v62  ;;  %14763 = vmatprep.subr.bf16.mxu1 %v18524_v1 }
0x135e   :  { %14729 = vmatpush1.bf16.msra.mxu0 %v18471_v5  ;;  %14764 = vmatpush1.bf16.msra.mxu1 %v18522_v35 }
0x135f   :  { %14730 = vmatprep.subr.bf16.mxu0 %v18476_v49  ;;  %14765 = vmatprep.subr.bf16.mxu1 %v18530_v41  ;;  %v18588_v41 = vld [vmem:[#allocation38 + $0xa80] ss:$24 sps:$4 sm:$0xff]  }
0x1362   :  { %14731 = vmatpush2.bf16.msra.mxu0 %v18474_v23  ;;  %14766 = vmatpush1.bf16.msra.mxu1 %v18528_v55 }
0x1363   :  { %14732 = vmatprep.subr.bf16.mxu0 %v18479_v7  ;;  %14767 = vmatprep.subr.bf16.mxu1 %v18536_v22  ;;  %v18596_v7 = vld [vmem:[#allocation38 + $0x45c] ss:$24 sps:$4 sm:$0xff]  }
0x1366   :  { %14733 = vmatpush2.bf16.msra.mxu0 %v18477_v15  ;;  %14768 = vmatpush1.bf16.msra.mxu1 %v18534_v4 }
0x1367   :  { %14734 = vmatprep.subr.bf16.mxu0 %v18482_v0  ;;  %14769 = vmatprep.subr.bf16.mxu1 %v18542_v30  ;;  %v18501_v0 = vld [vmem:[#allocation38 + $0x158] ss:$24 sps:$4 sm:$0xff]  }
0x136a   :  { %14735 = vmatpush2.bf16.msra.mxu0 %v18480_v32  ;;  %14770 = vmatpush1.bf16.msra.mxu1 %v18540_v27  ;;  %v18509_v32 = vld [vmem:[#allocation38 + $0x12c] ss:$24 sps:$4 sm:$0xff]   ;;  %v18507_v27 = vld [vmem:[#allocation38 + $0x128] ss:$24 sps:$4 sm:$0xff]  }
0x136b   :  { %14736 = vmatprep.subr.bf16.mxu0 %v18485_v25  ;;  %14771 = vmatprep.subr.bf16.mxu1 %v18548_v9  ;;  %v18515_v25 = vld [vmem:[#allocation38 + $0xfc] ss:$24 sps:$4 sm:$0xff]   ;;  %v18513_v9 = vld [vmem:[#allocation38 + $0xf8] ss:$24 sps:$4 sm:$0xff]  }
0x136e   :  { %14737 = vmatpush2.bf16.msra.mxu0 %v18483_v13  ;;  %14772 = vmatpush2.bf16.msra.mxu1 %v18546_v51  ;;  %v18521_v13 = vld [vmem:[#allocation38 + $0xcc] ss:$24 sps:$4 sm:$0xff]   ;;  %v18519_v51 = vld [vmem:[#allocation38 + $0xc8] ss:$24 sps:$4 sm:$0xff]  }
0x136f   :  { %14738 = vmatprep.subr.bf16.mxu0 %v18488_v38  ;;  %14773 = vmatprep.subr.bf16.mxu1 %v18554_v14  ;;  %v18527_v38 = vld [vmem:[#allocation38 + $0x9c] ss:$24 sps:$4 sm:$0xff]   ;;  %v18525_v14 = vld [vmem:[#allocation38 + $0x98] ss:$24 sps:$4 sm:$0xff]  }
0x1372   :  { %14739 = vmatpush2.bf16.msra.mxu0 %v18486_v48  ;;  %14774 = vmatpush2.bf16.msra.mxu1 %v18552_v17  ;;  %v18533_v48 = vld [vmem:[#allocation38 + $0x6c] ss:$24 sps:$4 sm:$0xff]   ;;  %v18531_v17 = vld [vmem:[#allocation38 + $0x68] ss:$24 sps:$4 sm:$0xff]  }
0x1373   :  { %14740 = vmatprep.subr.bf16.mxu0 %v18491_v16  ;;  %14775 = vmatprep.subr.bf16.mxu1 %v18560_v6  ;;  %v18539_v16 = vld [vmem:[#allocation38 + $0x3c] ss:$24 sps:$4 sm:$0xff]   ;;  %v18537_v6 = vld [vmem:[#allocation38 + $0x38] ss:$24 sps:$4 sm:$0xff]  }
0x1376   :  { %14741 = vmatpush2.bf16.msra.mxu0 %v18489_v20  ;;  %14776 = vmatpush2.bf16.msra.mxu1 %v18558_v21  ;;  %v18545_v20 = vld [vmem:[#allocation38 + $0xc] ss:$24 sps:$4 sm:$0xff]   ;;  %v18543_v21 = vld [vmem:[#allocation38 + $0x8] ss:$24 sps:$4 sm:$0xff]  }
0x1377   :  { %14742 = vmatprep.subr.bf16.mxu0 %v18494_v24  ;;  %14777 = vmatprep.subr.bf16.mxu1 %v18566_v29  ;;  %v18551_v24 = vld [vmem:[#allocation38 + $0x2dc] ss:$24 sps:$4 sm:$0xff]   ;;  %v18549_v29 = vld [vmem:[#allocation38 + $0x2d8] ss:$24 sps:$4 sm:$0xff]  }
0x137a   :  { %14743 = vmatpush2.bf16.msra.mxu0 %v18492_v10  ;;  %14778 = vmatpush2.bf16.msra.mxu1 %v18564_v33  ;;  %v18557_v10 = vld [vmem:[#allocation38 + $0x2ac] ss:$24 sps:$4 sm:$0xff]   ;;  %v18555_v33 = vld [vmem:[#allocation38 + $0x2a8] ss:$24 sps:$4 sm:$0xff]  }
0x137b   :  { %14744 = vmatprep.subr.bf16.mxu0 %v18497_v56  ;;  %14779 = vmatprep.subr.bf16.mxu1 %v18572_v60  ;;  %v18563_v56 = vld [vmem:[#allocation38 + $0x27c] ss:$24 sps:$4 sm:$0xff]   ;;  %v18561_v60 = vld [vmem:[#allocation38 + $0x278] ss:$24 sps:$4 sm:$0xff]  }
0x137e   :  { %14745 = vmatpush2.bf16.msra.mxu0 %v18495_v57  ;;  %14780 = vmatpush2.bf16.msra.mxu1 %v18570_v8  ;;  %v18569_v57 = vld [vmem:[#allocation38 + $0x24c] ss:$24 sps:$4 sm:$0xff]   ;;  %v18567_v8 = vld [vmem:[#allocation38 + $0x248] ss:$24 sps:$4 sm:$0xff]  }
0x137f   :  { %14796 = vmatprep.subr.bf16.mxu0 %v18503_v18  ;;  %14781 = vmatprep.subr.bf16.mxu1 %v18578_v11  ;;  %v18575_v18 = vld [vmem:[#allocation38 + $0x21c] ss:$24 sps:$4 sm:$0xff]   ;;  %v18573_v11 = vld [vmem:[#allocation38 + $0x218] ss:$24 sps:$4 sm:$0xff]  }
0x1381   :  { %v12150_v54 = vpop.f32.mrf.mxu0 }
0x1382   :  { %v12151_v28 = vadd.f32 %v12150_v54, %v10651_v59  ;;  %v12191_v40 = vpop.f32.mrf.mxu1  ;;  %14782 = vmatpush2.bf16.msra.mxu1 %v18576_v3  ;;  %v18581_v59 = vld [vmem:[#allocation38 + $0x1ec] ss:$24 sps:$4 sm:$0xff]   ;;  %v18579_v3 = vld [vmem:[#allocation38 + $0x1e8] ss:$24 sps:$4 sm:$0xff]   ;;  %v10663_v54 = vrot.slane %v20213_v34, %v852_v47  ;;  %v18599_v47 = vld [vmem:[#allocation38 + $0x75c] ss:$24 sps:$4 sm:$0xff]  }
0x1383   :  { %v12152_v63 = vpop.f32.mrf.mxu0  ;;  %14783 = vmatprep.subr.bf16.mxu1 %v18584_v37  ;;  %v10659_v37 = vrot.slane %v20213_v34, %v848_v46 }
0x1384   :  { %v12192_v52 = vadd.f32 %v12191_v40, %v12151_v28  ;;  %v12153_v62 = vadd.f32 %v12152_v63, %v10655_v19  ;;  %v12193_v1 = vpop.f32.mrf.mxu1  ;;  %v18587_v19 = vld [vmem:[#allocation38 + $0x1bc] ss:$24 sps:$4 sm:$0xff]   ;;  %v18585_v63 = vld [vmem:[#allocation38 + $0x1b8] ss:$24 sps:$4 sm:$0xff]  }
0x1385   :  { %v12154_v5 = vpop.f32.mrf.mxu0 }
0x1386   :  { %v12194_v35 = vadd.f32 %v12193_v1, %v12153_v62  ;;  %v12195_v49 = vpop.f32.mrf.mxu1  ;;  %14784 = vmatpush2.bf16.msra.mxu1 %v18582_v31  ;;  %v12284_v23 = vmax.f32 %v12192_v52, 0.0  ;;  %v18593_v52 = vld [vmem:[#allocation38 + $0x18c] ss:$24 sps:$4 sm:$0xff]  }
0x1387   :  { %v12155_v55 = vpop.f32.mrf.mxu0  ;;  %14785 = vmatprep.subr.bf16.mxu1 %v18590_v58 }
0x1388   :  { %v12285_v22 = vmax.f32 %v12194_v35, 0.0  ;;  %v12196_v15 = vpop.f32.mrf.mxu1  ;;  %v20249_v30 = vpack.c.bf16 %v12284_v23, %v12284_v23 }
0x1389   :  { %v18597_v15 = vld [vmem:[#allocation38 + $0x758] ss:$24 sps:$4 sm:$0xff]  }
0x138a   :  { %v20247_v4 = vpack.c.bf16 %v12285_v22, %v12285_v22  ;;  %14786 = vmatpush2.bf16.msra.mxu1 %v18588_v41  ;;  %v18591_v41 = vld [vmem:[#allocation38 + $0x188] ss:$24 sps:$4 sm:$0xff]   ;;  %v18594_v22 = vld [vmem:[#allocation38 + $0x458] ss:$24 sps:$4 sm:$0xff]  }
0x138b   :  { %14837 = vmatprep.subr.bf16.mxu1 %v18596_v7 }
0x138c   :  { %14746 = vmatprep.mubr.bf16.mxu0 %v20247_v4 }
0x138d   :  { %14747 = vmatmul.mubr.bf16.vlgmr.msra.gmra.mxu0 %v20249_v30 }
0x138e   :  { %14797 = vmatpush1.bf16.msra.mxu0 %v18501_v0  ;;  %14828 = vmatprep.mubr.bf16.mxu0 %v20223_v45 }
0x138f   :  { %14798 = vmatprep.subr.bf16.mxu0 %v18509_v32  ;;  %v18602_v32 = vld [vmem:[#allocation38 + $0x42c] ss:$24 sps:$4 sm:$0xff]  }
0x1392   :  { %14799 = vmatpush1.bf16.msra.mxu0 %v18507_v27  ;;  %v18605_v27 = vld [vmem:[#allocation38 + $0x72c] ss:$24 sps:$4 sm:$0xff]  }
0x1393   :  { %14800 = vmatprep.subr.bf16.mxu0 %v18515_v25  ;;  %v18600_v25 = vld [vmem:[#allocation38 + $0x428] ss:$24 sps:$4 sm:$0xff]  }
0x1396   :  { %14801 = vmatpush1.bf16.msra.mxu0 %v18513_v9  ;;  %v18603_v9 = vld [vmem:[#allocation38 + $0x728] ss:$24 sps:$4 sm:$0xff]  }
0x1397   :  { %14802 = vmatprep.subr.bf16.mxu0 %v18521_v13  ;;  %v18608_v13 = vld [vmem:[#allocation38 + $0x3fc] ss:$24 sps:$4 sm:$0xff]  }
0x139a   :  { %14803 = vmatpush1.bf16.msra.mxu0 %v18519_v51  ;;  %v18611_v51 = vld [vmem:[#allocation38 + $0x6fc] ss:$24 sps:$4 sm:$0xff]  }
0x139b   :  { %14804 = vmatprep.subr.bf16.mxu0 %v18527_v38  ;;  %v18606_v38 = vld [vmem:[#allocation38 + $0x3f8] ss:$24 sps:$4 sm:$0xff]  }
0x139e   :  { %14805 = vmatpush1.bf16.msra.mxu0 %v18525_v14  ;;  %v18609_v14 = vld [vmem:[#allocation38 + $0x6f8] ss:$24 sps:$4 sm:$0xff]  }
0x139f   :  { %14806 = vmatprep.subr.bf16.mxu0 %v18533_v48  ;;  %v18614_v48 = vld [vmem:[#allocation38 + $0x3cc] ss:$24 sps:$4 sm:$0xff]  }
0x13a2   :  { %14807 = vmatpush1.bf16.msra.mxu0 %v18531_v17  ;;  %v18617_v17 = vld [vmem:[#allocation38 + $0x6cc] ss:$24 sps:$4 sm:$0xff]  }
0x13a3   :  { %14808 = vmatprep.subr.bf16.mxu0 %v18539_v16  ;;  %v18612_v16 = vld [vmem:[#allocation38 + $0x3c8] ss:$24 sps:$4 sm:$0xff]  }
0x13a6   :  { %14809 = vmatpush1.bf16.msra.mxu0 %v18537_v6  ;;  %v18615_v6 = vld [vmem:[#allocation38 + $0x6c8] ss:$24 sps:$4 sm:$0xff]  }
0x13a7   :  { %14810 = vmatprep.subr.bf16.mxu0 %v18545_v20  ;;  %v18620_v20 = vld [vmem:[#allocation38 + $0x39c] ss:$24 sps:$4 sm:$0xff]  }
0x13aa   :  { %14811 = vmatpush1.bf16.msra.mxu0 %v18543_v21  ;;  %v18623_v21 = vld [vmem:[#allocation38 + $0x69c] ss:$24 sps:$4 sm:$0xff]  }
0x13ab   :  { %14812 = vmatprep.subr.bf16.mxu0 %v18551_v24  ;;  %v18618_v24 = vld [vmem:[#allocation38 + $0x398] ss:$24 sps:$4 sm:$0xff]  }
0x13ae   :  { %14813 = vmatpush2.bf16.msra.mxu0 %v18549_v29  ;;  %v18621_v29 = vld [vmem:[#allocation38 + $0x698] ss:$24 sps:$4 sm:$0xff]  }
0x13af   :  { %14814 = vmatprep.subr.bf16.mxu0 %v18557_v10  ;;  %v18626_v10 = vld [vmem:[#allocation38 + $0x36c] ss:$24 sps:$4 sm:$0xff]  }
0x13b2   :  { %14815 = vmatpush2.bf16.msra.mxu0 %v18555_v33  ;;  %v18629_v33 = vld [vmem:[#allocation38 + $0x66c] ss:$24 sps:$4 sm:$0xff]  }
0x13b3   :  { %14816 = vmatprep.subr.bf16.mxu0 %v18563_v56  ;;  %v18624_v56 = vld [vmem:[#allocation38 + $0x368] ss:$24 sps:$4 sm:$0xff]  }
0x13b6   :  { %14817 = vmatpush2.bf16.msra.mxu0 %v18561_v60  ;;  %v18627_v60 = vld [vmem:[#allocation38 + $0x668] ss:$24 sps:$4 sm:$0xff]  }
0x13b7   :  { %14818 = vmatprep.subr.bf16.mxu0 %v18569_v57  ;;  %v18632_v57 = vld [vmem:[#allocation38 + $0x33c] ss:$24 sps:$4 sm:$0xff]  }
0x13ba   :  { %14819 = vmatpush2.bf16.msra.mxu0 %v18567_v8  ;;  %v18635_v8 = vld [vmem:[#allocation38 + $0x63c] ss:$24 sps:$4 sm:$0xff]  }
0x13bb   :  { %14820 = vmatprep.subr.bf16.mxu0 %v18575_v18  ;;  %v18630_v18 = vld [vmem:[#allocation38 + $0x338] ss:$24 sps:$4 sm:$0xff]  }
0x13be   :  { %14821 = vmatpush2.bf16.msra.mxu0 %v18573_v11  ;;  %v18633_v11 = vld [vmem:[#allocation38 + $0x638] ss:$24 sps:$4 sm:$0xff]  }
0x13bf   :  { %14822 = vmatprep.subr.bf16.mxu0 %v18581_v59  ;;  %v18638_v59 = vld [vmem:[#allocation38 + $0x30c] ss:$24 sps:$4 sm:$0xff]  }
0x13c1   :  { %v12232_v28 = vpop.f32.mrf.mxu0 }
0x13c2   :  { %v12233_v40 = vadd.f32 %v12232_v28, %v10659_v37  ;;  %v12273_v31 = vpop.f32.mrf.mxu1  ;;  %14823 = vmatpush2.bf16.msra.mxu0 %v18579_v3  ;;  %v18641_v3 = vld [vmem:[#allocation38 + $0x60c] ss:$24 sps:$4 sm:$0xff]   ;;  %v18636_v37 = vld [vmem:[#allocation38 + $0x308] ss:$24 sps:$4 sm:$0xff]   ;;  %v18647_v28 = vld [vmem:[#allocation38 + $0x8dc] ss:$24 sps:$4 sm:$0xff]  }
0x13c3   :  { %v12234_v58 = vpop.f32.mrf.mxu0  ;;  %14824 = vmatprep.subr.bf16.mxu0 %v18587_v19  ;;  %v18639_v19 = vld [vmem:[#allocation38 + $0x608] ss:$24 sps:$4 sm:$0xff]  }
0x13c4   :  { %v12274_v62 = vadd.f32 %v12273_v31, %v12233_v40  ;;  %v12235_v1 = vadd.f32 %v12234_v58, %v10663_v54  ;;  %v12275_v5 = vpop.f32.mrf.mxu1  ;;  %v18644_v54 = vld [vmem:[#allocation38 + $0x5dc] ss:$24 sps:$4 sm:$0xff]   ;;  %v18642_v40 = vld [vmem:[#allocation38 + $0x5d8] ss:$24 sps:$4 sm:$0xff]   ;;  %v18653_v58 = vld [vmem:[#allocation38 + $0x8ac] ss:$24 sps:$4 sm:$0xff]  }
0x13c5   :  { %v12236_v35 = vpop.f32.mrf.mxu0  ;;  %v18645_v31 = vld [vmem:[#allocation38 + $0x8d8] ss:$24 sps:$4 sm:$0xff]  }
0x13c6   :  { %v12276_v49 = vadd.f32 %v12275_v5, %v12235_v1  ;;  %v12277_v46 = vpop.f32.mrf.mxu1  ;;  %14825 = vmatpush2.bf16.msra.mxu0 %v18585_v63  ;;  %v12286_v23 = vmax.f32 %v12274_v62, 0.0  ;;  %v18650_v63 = vld [vmem:[#allocation38 + $0x5ac] ss:$24 sps:$4 sm:$0xff]   ;;  %v18651_v62 = vld [vmem:[#allocation38 + $0x8a8] ss:$24 sps:$4 sm:$0xff]  }
0x13c7   :  { %v12237_v44 = vpop.f32.mrf.mxu0  ;;  %14826 = vmatprep.subr.bf16.mxu0 %v18593_v52  ;;  %v18648_v52 = vld [vmem:[#allocation38 + $0x5a8] ss:$24 sps:$4 sm:$0xff]   ;;  %v18656_v1 = vld [vmem:[#allocation38 + $0x57c] ss:$24 sps:$4 sm:$0xff]   ;;  %v18654_v35 = vld [vmem:[#allocation38 + $0x578] ss:$24 sps:$4 sm:$0xff]  }
0x13c8   :  { %v12287_v34 = vmax.f32 %v12276_v49, 0.0  ;;  %v12278_v55 = vpop.f32.mrf.mxu1  ;;  %v20262_v0 = vpack.c.bf16 %v12286_v23, %v12286_v23  ;;  %v18659_v5 = vld [vmem:[#allocation38 + $0x87c] ss:$24 sps:$4 sm:$0xff]   ;;  %v18657_v49 = vld [vmem:[#allocation38 + $0x878] ss:$24 sps:$4 sm:$0xff]  }
0x13c9   :  { %v18662_v46 = vld [vmem:[#allocation38 + $0x54c] ss:$24 sps:$4 sm:$0xff]   ;;  %v18660_v23 = vld [vmem:[#allocation38 + $0x548] ss:$24 sps:$4 sm:$0xff]   ;;  %v18666_v55 = vld [vmem:[#allocation38 + $0x518] ss:$24 sps:$4 sm:$0xff]  }
0x13ca   :  { %v20260_v7 = vpack.c.bf16 %v12287_v34, %v12287_v34  ;;  %14827 = vmatpush2.bf16.msra.mxu0 %v18591_v41  ;;  %v18665_v41 = vld [vmem:[#allocation38 + $0x84c] ss:$24 sps:$4 sm:$0xff]   ;;  %v18663_v44 = vld [vmem:[#allocation38 + $0x848] ss:$24 sps:$4 sm:$0xff]   ;;  %v18671_v34 = vld [vmem:[#allocation38 + $0x81c] ss:$24 sps:$4 sm:$0xff]  }
0x13cb   :  { %14878 = vmatprep.subr.bf16.mxu0 %v18599_v47  ;;  %v18668_v47 = vld [vmem:[#allocation38 + $0x51c] ss:$24 sps:$4 sm:$0xff]  }
0x13cc   :  { %14787 = vmatprep.mubr.bf16.mxu1 %v20260_v7 }
0x13cd   :  { %14829 = vmatmul.mubr.bf16.vlgmr.msra.gmra.mxu0 %v20232_v50  ;;  %14788 = vmatmul.mubr.bf16.vlgmr.msra.gmra.mxu1 %v20262_v0 }
0x13ce   :  { %14838 = vmatpush1.bf16.msra.mxu1 %v18594_v22  ;;  %14879 = vmatpush1.bf16.msra.mxu0 %v18597_v15  ;;  %v18669_v22 = vld [vmem:[#allocation38 + $0x818] ss:$24 sps:$4 sm:$0xff]   ;;  %v18674_v15 = vld [vmem:[#allocation38 + $0x4ec] ss:$24 sps:$4 sm:$0xff]  }
0x13cf   :  { %14910 = vmatprep.mubr.bf16.mxu0 %v20247_v4  ;;  %14869 = vmatprep.mubr.bf16.mxu1 %v20237_v61 }
0x13d0   :  { %14839 = vmatprep.subr.bf16.mxu1 %v18602_v32  ;;  %14880 = vmatprep.subr.bf16.mxu0 %v18605_v27  ;;  %v18677_v32 = vld [vmem:[#allocation38 + $0x7ec] ss:$24 sps:$4 sm:$0xff]   ;;  %v18672_v27 = vld [vmem:[#allocation38 + $0x4e8] ss:$24 sps:$4 sm:$0xff]  }
0x13d2   :  { %14840 = vmatpush1.bf16.msra.mxu1 %v18600_v25  ;;  %14881 = vmatpush1.bf16.msra.mxu0 %v18603_v9  ;;  %v18675_v25 = vld [vmem:[#allocation38 + $0x7e8] ss:$24 sps:$4 sm:$0xff]   ;;  %v18680_v9 = vld [vmem:[#allocation38 + $0x4bc] ss:$24 sps:$4 sm:$0xff]  }
0x13d3   :  { %14841 = vmatprep.subr.bf16.mxu1 %v18608_v13  ;;  %14882 = vmatprep.subr.bf16.mxu0 %v18611_v51  ;;  %v18683_v13 = vld [vmem:[#allocation38 + $0x7bc] ss:$24 sps:$4 sm:$0xff]  }
0x13d6   :  { %14842 = vmatpush1.bf16.msra.mxu1 %v18606_v38  ;;  %14883 = vmatpush1.bf16.msra.mxu0 %v18609_v14  ;;  %v18678_v38 = vld [vmem:[#allocation38 + $0x4b8] ss:$24 sps:$4 sm:$0xff]  }
0x13d7   :  { %14843 = vmatprep.subr.bf16.mxu1 %v18614_v48  ;;  %14884 = vmatprep.subr.bf16.mxu0 %v18617_v17  ;;  %v18681_v14 = vld [vmem:[#allocation38 + $0x7b8] ss:$24 sps:$4 sm:$0xff]   ;;  %v18686_v17 = vld [vmem:[#allocation38 + $0x48c] ss:$24 sps:$4 sm:$0xff]  }
0x13da   :  { %14844 = vmatpush1.bf16.msra.mxu1 %v18612_v16  ;;  %14885 = vmatpush1.bf16.msra.mxu0 %v18615_v6  ;;  %v18689_v16 = vld [vmem:[#allocation38 + $0x78c] ss:$24 sps:$4 sm:$0xff]  }
0x13db   :  { %14845 = vmatprep.subr.bf16.mxu1 %v18620_v20  ;;  %14886 = vmatprep.subr.bf16.mxu0 %v18623_v21  ;;  %v20269_v6 = vld [vmem:[#allocation39] sm:$0x3f] }
0x13dc   :  { %v18684_v21 = vld [vmem:[#allocation38 + $0x488] ss:$24 sps:$4 sm:$0xff]  }
0x13de   :  { %14846 = vmatpush1.bf16.msra.mxu1 %v18618_v24  ;;  %14887 = vmatpush1.bf16.msra.mxu0 %v18621_v29  ;;  %v18687_v24 = vld [vmem:[#allocation38 + $0x788] ss:$24 sps:$4 sm:$0xff]  }
0x13df   :  { %14847 = vmatprep.subr.bf16.mxu1 %v18626_v10  ;;  %14888 = vmatprep.subr.bf16.mxu0 %v18629_v33  ;;  %v18692_v10 = vld [vmem:[#allocation38 + $0xa5c] ss:$24 sps:$4 sm:$0xff]  }
0x13e0   :  { %v18695_v33 = vld [vmem:[#allocation38 + $0x164] ss:$24 sps:$4 sm:$0xff]  }
0x13e2   :  { %14848 = vmatpush1.bf16.msra.mxu1 %v18624_v56  ;;  %14889 = vmatpush1.bf16.msra.mxu0 %v18627_v60  ;;  %v12685_v56 = vrot.slane %v20269_v6, %v19792_v26  ;;  %v12689_v60 = vrot.slane %v20269_v6, %v19795_v36  ;;  %v18696_v26 = vld [vmem:[#allocation38 + $0xa28] ss:$24 sps:$4 sm:$0xff]  }
0x13e3   :  { %14849 = vmatprep.subr.bf16.mxu1 %v18632_v57  ;;  %14890 = vmatprep.subr.bf16.mxu0 %v18635_v8  ;;  %v18690_v57 = vld [vmem:[#allocation38 + $0xa58] ss:$24 sps:$4 sm:$0xff]  }
0x13e4   :  { %v18693_v8 = vld [vmem:[#allocation38 + $0x160] ss:$24 sps:$4 sm:$0xff]  }
0x13e6   :  { %14850 = vmatpush1.bf16.msra.mxu1 %v18630_v18  ;;  %14891 = vmatpush1.bf16.msra.mxu0 %v18633_v11  ;;  %v18698_v11 = vld [vmem:[#allocation38 + $0xa2c] ss:$24 sps:$4 sm:$0xff]  }
0x13e7   :  { %14851 = vmatprep.subr.bf16.mxu1 %v18638_v59  ;;  %14892 = vmatprep.subr.bf16.mxu0 %v18641_v3  ;;  %v18701_v59 = vld [vmem:[#allocation38 + $0x134] ss:$24 sps:$4 sm:$0xff]  }
0x13ea   :  { %14852 = vmatpush1.bf16.msra.mxu1 %v18636_v37  ;;  %14893 = vmatpush1.bf16.msra.mxu0 %v18639_v19 }
0x13eb   :  { %14853 = vmatprep.subr.bf16.mxu1 %v18644_v54  ;;  %14894 = vmatprep.subr.bf16.mxu0 %v18647_v28  ;;  %v18699_v54 = vld [vmem:[#allocation38 + $0x130] ss:$24 sps:$4 sm:$0xff]   ;;  %v18704_v28 = vld [vmem:[#allocation38 + $0x9fc] ss:$24 sps:$4 sm:$0xff]  }
0x13ee   :  { %14854 = vmatpush2.bf16.msra.mxu1 %v18642_v40  ;;  %14895 = vmatpush2.bf16.msra.mxu0 %v18645_v31  ;;  %v18707_v31 = vld [vmem:[#allocation38 + $0x104] ss:$24 sps:$4 sm:$0xff]  }
0x13ef   :  { %14855 = vmatprep.subr.bf16.mxu1 %v18650_v63  ;;  %14896 = vmatprep.subr.bf16.mxu0 %v18653_v58  ;;  %v18702_v58 = vld [vmem:[#allocation38 + $0x9f8] ss:$24 sps:$4 sm:$0xff]  }
0x13f2   :  { %14856 = vmatpush2.bf16.msra.mxu1 %v18648_v52  ;;  %14897 = vmatpush2.bf16.msra.mxu0 %v18651_v62  ;;  %v18705_v62 = vld [vmem:[#allocation38 + $0x100] ss:$24 sps:$4 sm:$0xff]  }
0x13f3   :  { %14857 = vmatprep.subr.bf16.mxu1 %v18656_v1  ;;  %14898 = vmatprep.subr.bf16.mxu0 %v18659_v5  ;;  %v18710_v1 = vld [vmem:[#allocation38 + $0x9cc] ss:$24 sps:$4 sm:$0xff]  }
0x13f4   :  { %v18713_v5 = vld [vmem:[#allocation38 + $0xd4] ss:$24 sps:$4 sm:$0xff]  }
0x13f6   :  { %14858 = vmatpush2.bf16.msra.mxu1 %v18654_v35  ;;  %14899 = vmatpush2.bf16.msra.mxu0 %v18657_v49  ;;  %v18711_v35 = vld [vmem:[#allocation38 + $0xd0] ss:$24 sps:$4 sm:$0xff]   ;;  %v18716_v49 = vld [vmem:[#allocation38 + $0x99c] ss:$24 sps:$4 sm:$0xff]  }
0x13f7   :  { %14859 = vmatprep.subr.bf16.mxu1 %v18662_v46  ;;  %14900 = vmatprep.subr.bf16.mxu0 %v18665_v41  ;;  %v18719_v46 = vld [vmem:[#allocation38 + $0xa4] ss:$24 sps:$4 sm:$0xff]   ;;  %v18714_v41 = vld [vmem:[#allocation38 + $0x998] ss:$24 sps:$4 sm:$0xff]  }
0x13fa   :  { %14860 = vmatpush2.bf16.msra.mxu1 %v18660_v23  ;;  %14901 = vmatpush2.bf16.msra.mxu0 %v18663_v44  ;;  %v18717_v23 = vld [vmem:[#allocation38 + $0xa0] ss:$24 sps:$4 sm:$0xff]   ;;  %v18722_v44 = vld [vmem:[#allocation38 + $0x96c] ss:$24 sps:$4 sm:$0xff]  }
0x13fb   :  { %14861 = vmatprep.subr.bf16.mxu1 %v18668_v47  ;;  %14902 = vmatprep.subr.bf16.mxu0 %v18671_v34  ;;  %v18725_v47 = vld [vmem:[#allocation38 + $0x74] ss:$24 sps:$4 sm:$0xff]   ;;  %v18720_v34 = vld [vmem:[#allocation38 + $0x968] ss:$24 sps:$4 sm:$0xff]  }
0x13fe   :  { %14862 = vmatpush2.bf16.msra.mxu1 %v18666_v55  ;;  %14903 = vmatpush2.bf16.msra.mxu0 %v18669_v22  ;;  %v18723_v55 = vld [vmem:[#allocation38 + $0x70] ss:$24 sps:$4 sm:$0xff]   ;;  %v18728_v22 = vld [vmem:[#allocation38 + $0x93c] ss:$24 sps:$4 sm:$0xff]  }
0x13ff   :  { %14863 = vmatprep.subr.bf16.mxu1 %v18674_v15  ;;  %14904 = vmatprep.subr.bf16.mxu0 %v18677_v32  ;;  %v18731_v15 = vld [vmem:[#allocation38 + $0x44] ss:$24 sps:$4 sm:$0xff]   ;;  %v18726_v32 = vld [vmem:[#allocation38 + $0x938] ss:$24 sps:$4 sm:$0xff]  }
0x1401   :  { %v14666_v51 = vpop.f32.mrf.mxu0 }
0x1402   :  { %14864 = vmatpush2.bf16.msra.mxu1 %v18672_v27  ;;  %14905 = vmatpush2.bf16.msra.mxu0 %v18675_v25  ;;  %v14667_v18 = vadd.f32 %v14666_v51, %v12685_v56  ;;  %v18729_v27 = vld [vmem:[#allocation38 + $0x40] ss:$24 sps:$4 sm:$0xff]   ;;  %v18734_v25 = vld [vmem:[#allocation38 + $0x90c] ss:$24 sps:$4 sm:$0xff]   ;;  %v18735_v51 = vld [vmem:[#allocation38 + $0x10] ss:$24 sps:$4 sm:$0xff]  }
0x1403   :  { %v14668_v48 = vpop.f32.mrf.mxu0  ;;  %14865 = vmatprep.subr.bf16.mxu1 %v18680_v9  ;;  %14906 = vmatprep.subr.bf16.mxu0 %v18683_v13  ;;  %v18737_v9 = vld [vmem:[#allocation38 + $0x14] ss:$24 sps:$4 sm:$0xff]   ;;  %v18732_v13 = vld [vmem:[#allocation38 + $0x908] ss:$24 sps:$4 sm:$0xff]  }
0x1404   :  { %v14669_v37 = vadd.f32 %v14668_v48, %v12689_v60  ;;  %v18738_v48 = vld [vmem:[#allocation38 + $0xbd8] ss:$24 sps:$4 sm:$0xff]   ;;  %v18758_v60 = vld [vmem:[#allocation38 + $0xb4c] ss:$24 sps:$4 sm:$0xff]  }
0x1405   :  { %v14670_v20 = vpop.f32.mrf.mxu0  ;;  %v18753_v56 = vld [vmem:[#allocation38 + $0x280] ss:$24 sps:$4 sm:$0xff]  }
0x1406   :  { %14866 = vmatpush2.bf16.msra.mxu1 %v18678_v38  ;;  %14907 = vmatpush2.bf16.msra.mxu0 %v18681_v14  ;;  %v18740_v38 = vld [vmem:[#allocation38 + $0xbdc] ss:$24 sps:$4 sm:$0xff]  }
0x1407   :  { %v14671_v29 = vpop.f32.mrf.mxu0  ;;  %14867 = vmatprep.subr.bf16.mxu1 %v18686_v17  ;;  %14908 = vmatprep.subr.bf16.mxu0 %v18689_v16  ;;  %v18743_v14 = vld [vmem:[#allocation38 + $0x2e4] ss:$24 sps:$4 sm:$0xff]   ;;  %v18741_v17 = vld [vmem:[#allocation38 + $0x2e0] ss:$24 sps:$4 sm:$0xff]   ;;  %v18749_v20 = vld [vmem:[#allocation38 + $0x2b4] ss:$24 sps:$4 sm:$0xff]  }
0x1408   :  { %v18746_v16 = vld [vmem:[#allocation38 + $0xbac] ss:$24 sps:$4 sm:$0xff]   ;;  %v18752_v29 = vld [vmem:[#allocation38 + $0xb7c] ss:$24 sps:$4 sm:$0xff]  }
0x140a   :  { %14868 = vmatpush2.bf16.msra.mxu1 %v18684_v21  ;;  %14909 = vmatpush2.bf16.msra.mxu0 %v18687_v24  ;;  %v18744_v21 = vld [vmem:[#allocation38 + $0xba8] ss:$24 sps:$4 sm:$0xff]  }
0x140b   :  { %14919 = vmatprep.subr.bf16.mxu1 %v18692_v10  ;;  %14960 = vmatprep.subr.bf16.mxu0 %v18695_v33  ;;  %v18747_v24 = vld [vmem:[#allocation38 + $0x2b0] ss:$24 sps:$4 sm:$0xff]   ;;  %v18755_v10 = vld [vmem:[#allocation38 + $0x284] ss:$24 sps:$4 sm:$0xff]  }
0x140c   :  { %v18750_v33 = vld [vmem:[#allocation38 + $0xb78] ss:$24 sps:$4 sm:$0xff]  }
0x140d   :  { %14870 = vmatmul.mubr.bf16.vlgmr.msra.gmra.mxu1 %v20239_v12  ;;  %14911 = vmatmul.mubr.bf16.vlgmr.msra.gmra.mxu0 %v20249_v30  ;;  %v14707_v3 = vpop.f32.mrf.mxu1 }
0x140e   :  { %v20277_v19 = vadd.f32 %v14707_v3, %v14667_v18  ;;  %14920 = vmatpush1.bf16.msra.mxu1 %v18690_v57  ;;  %14951 = vmatprep.mubr.bf16.mxu1 %v20260_v7  ;;  %v18761_v57 = vld [vmem:[#allocation38 + $0x254] ss:$24 sps:$4 sm:$0xff]   ;;  %v18759_v18 = vld [vmem:[#allocation38 + $0x250] ss:$24 sps:$4 sm:$0xff]  }
0x140f   :  { %14961 = vmatpush1.bf16.msra.mxu0 %v18693_v8  ;;  %14992 = vmatprep.mubr.bf16.mxu0 %v20223_v45  ;;  %v14709_v36 = vpop.f32.mrf.mxu1  ;;  %v18708_v45 = vld [vmem:[#allocation38 + $0x9c8] ss:$24 sps:$4 sm:$0xff]   ;;  %v18762_v3 = vld [vmem:[#allocation38 + $0xb18] ss:$24 sps:$4 sm:$0xff]  }
0x1410   :  { %v20281_v40 = vadd.f32 %v14709_v36, %v14669_v37  ;;  %14921 = vmatprep.subr.bf16.mxu1 %v18698_v11  ;;  %14962 = vmatprep.subr.bf16.mxu0 %v18701_v59  ;;  %v18756_v8 = vld [vmem:[#allocation38 + $0xb48] ss:$24 sps:$4 sm:$0xff]   ;;  %v18764_v11 = vld [vmem:[#allocation38 + $0xb1c] ss:$24 sps:$4 sm:$0xff]  }
0x1411   :  { %v14711_v63 = vpop.f32.mrf.mxu1  ;;  %v18767_v59 = vld [vmem:[#allocation38 + $0x224] ss:$24 sps:$4 sm:$0xff]   ;;  %v18765_v37 = vld [vmem:[#allocation38 + $0x220] ss:$24 sps:$4 sm:$0xff]   ;;  %v18773_v36 = vld [vmem:[#allocation38 + $0x1f4] ss:$24 sps:$4 sm:$0xff]  }
0x1412   :  { %14922 = vmatpush1.bf16.msra.mxu1 %v18696_v26  ;;  %v18770_v26 = vld [vmem:[#allocation38 + $0xaec] ss:$24 sps:$4 sm:$0xff]  }
0x1413   :  { %14963 = vmatpush1.bf16.msra.mxu0 %v18699_v54  ;;  %v14712_v52 = vpop.f32.mrf.mxu1  ;;  %14923 = vmatprep.subr.bf16.mxu1 %v18704_v28  ;;  %v18768_v54 = vld [vmem:[#allocation38 + $0xae8] ss:$24 sps:$4 sm:$0xff]   ;;  %v18779_v63 = vld [vmem:[#allocation38 + $0x1c4] ss:$24 sps:$4 sm:$0xff]  }
0x1414   :  { %14964 = vmatprep.subr.bf16.mxu0 %v18707_v31  ;;  %v18771_v28 = vld [vmem:[#allocation38 + $0x1f0] ss:$24 sps:$4 sm:$0xff]   ;;  %v18776_v31 = vld [vmem:[#allocation38 + $0xabc] ss:$24 sps:$4 sm:$0xff]   ;;  %v18777_v52 = vld [vmem:[#allocation38 + $0x1c0] ss:$24 sps:$4 sm:$0xff]  }
0x1416   :  { %14924 = vmatpush1.bf16.msra.mxu1 %v18702_v58  ;;  %v18774_v58 = vld [vmem:[#allocation38 + $0xab8] ss:$24 sps:$4 sm:$0xff]  }
0x1417   :  { %14965 = vmatpush1.bf16.msra.mxu0 %v18705_v62  ;;  %14925 = vmatprep.subr.bf16.mxu1 %v18710_v1  ;;  %v18782_v62 = vld [vmem:[#allocation38 + $0xa8c] ss:$24 sps:$4 sm:$0xff]  }
0x1418   :  { %14966 = vmatprep.subr.bf16.mxu0 %v18713_v5  ;;  %v18785_v1 = vld [vmem:[#allocation38 + $0x194] ss:$24 sps:$4 sm:$0xff]   ;;  %v18780_v5 = vld [vmem:[#allocation38 + $0xa88] ss:$24 sps:$4 sm:$0xff]  }
0x141a   :  { %14926 = vmatpush1.bf16.msra.mxu1 %v18708_v45  ;;  %v18783_v45 = vld [vmem:[#allocation38 + $0x190] ss:$24 sps:$4 sm:$0xff]  }
0x141b   :  { %14967 = vmatpush1.bf16.msra.mxu0 %v18711_v35  ;;  %14927 = vmatprep.subr.bf16.mxu1 %v18716_v49  ;;  %v18788_v35 = vld [vmem:[#allocation38 + $0x464] ss:$24 sps:$4 sm:$0xff]  }
0x141c   :  { %14968 = vmatprep.subr.bf16.mxu0 %v18719_v46  ;;  %v18791_v49 = vld [vmem:[#allocation38 + $0x764] ss:$24 sps:$4 sm:$0xff]   ;;  %v18786_v46 = vld [vmem:[#allocation38 + $0x460] ss:$24 sps:$4 sm:$0xff]  }
0x141e   :  { %14928 = vmatpush1.bf16.msra.mxu1 %v18714_v41  ;;  %v18789_v41 = vld [vmem:[#allocation38 + $0x760] ss:$24 sps:$4 sm:$0xff]  }
0x141f   :  { %14969 = vmatpush1.bf16.msra.mxu0 %v18717_v23  ;;  %14929 = vmatprep.subr.bf16.mxu1 %v18722_v44  ;;  %v18794_v23 = vld [vmem:[#allocation38 + $0x434] ss:$24 sps:$4 sm:$0xff]  }
0x1420   :  { %14970 = vmatprep.subr.bf16.mxu0 %v18725_v47  ;;  %v18797_v47 = vld [vmem:[#allocation38 + $0x734] ss:$24 sps:$4 sm:$0xff]  }
0x1422   :  { %14930 = vmatpush1.bf16.msra.mxu1 %v18720_v34 }
0x1423   :  { %14971 = vmatpush1.bf16.msra.mxu0 %v18723_v55  ;;  %14931 = vmatprep.subr.bf16.mxu1 %v18728_v22  ;;  %v18792_v55 = vld [vmem:[#allocation38 + $0x430] ss:$24 sps:$4 sm:$0xff]  }
0x1424   :  { %14972 = vmatprep.subr.bf16.mxu0 %v18731_v15  ;;  %v18795_v15 = vld [vmem:[#allocation38 + $0x730] ss:$24 sps:$4 sm:$0xff]  }
0x1426   :  { %14932 = vmatpush1.bf16.msra.mxu1 %v18726_v32  ;;  %v18800_v32 = vld [vmem:[#allocation38 + $0x404] ss:$24 sps:$4 sm:$0xff]  }
0x1427   :  { %14973 = vmatpush1.bf16.msra.mxu0 %v18729_v27  ;;  %14933 = vmatprep.subr.bf16.mxu1 %v18734_v25  ;;  %v18803_v25 = vld [vmem:[#allocation38 + $0x704] ss:$24 sps:$4 sm:$0xff]  }
0x1428   :  { %14974 = vmatprep.subr.bf16.mxu0 %v18737_v9 }
0x142a   :  { %14934 = vmatpush1.bf16.msra.mxu1 %v18732_v13  ;;  %v18801_v13 = vld [vmem:[#allocation38 + $0x700] ss:$24 sps:$4 sm:$0xff]  }
0x142b   :  { %14975 = vmatpush1.bf16.msra.mxu0 %v18735_v51  ;;  %14935 = vmatprep.subr.bf16.mxu1 %v18740_v38  ;;  %v18809_v51 = vld [vmem:[#allocation38 + $0x6d4] ss:$24 sps:$4 sm:$0xff]   ;;  %v18804_v38 = vld [vmem:[#allocation38 + $0x3d0] ss:$24 sps:$4 sm:$0xff]  }
0x142c   :  { %14976 = vmatprep.subr.bf16.mxu0 %v18743_v14  ;;  %v18815_v14 = vld [vmem:[#allocation38 + $0x6a4] ss:$24 sps:$4 sm:$0xff]  }
0x142e   :  { %14936 = vmatpush2.bf16.msra.mxu1 %v18738_v48  ;;  %v18810_v48 = vld [vmem:[#allocation38 + $0x3a0] ss:$24 sps:$4 sm:$0xff]  }
0x142f   :  { %14977 = vmatpush2.bf16.msra.mxu0 %v18741_v17  ;;  %14937 = vmatprep.subr.bf16.mxu1 %v18746_v16  ;;  %v18813_v17 = vld [vmem:[#allocation38 + $0x6a0] ss:$24 sps:$4 sm:$0xff]   ;;  %v18818_v16 = vld [vmem:[#allocation38 + $0x374] ss:$24 sps:$4 sm:$0xff]  }
0x1430   :  { %14978 = vmatprep.subr.bf16.mxu0 %v18749_v20  ;;  %v18821_v20 = vld [vmem:[#allocation38 + $0x674] ss:$24 sps:$4 sm:$0xff]  }
0x1432   :  { %14938 = vmatpush2.bf16.msra.mxu1 %v18744_v21  ;;  %v18816_v21 = vld [vmem:[#allocation38 + $0x370] ss:$24 sps:$4 sm:$0xff]  }
0x1433   :  { %14979 = vmatpush2.bf16.msra.mxu0 %v18747_v24  ;;  %14939 = vmatprep.subr.bf16.mxu1 %v18752_v29  ;;  %v18819_v24 = vld [vmem:[#allocation38 + $0x670] ss:$24 sps:$4 sm:$0xff]   ;;  %v18824_v29 = vld [vmem:[#allocation38 + $0x344] ss:$24 sps:$4 sm:$0xff]  }
0x1434   :  { %14980 = vmatprep.subr.bf16.mxu0 %v18755_v10  ;;  %v18827_v10 = vld [vmem:[#allocation38 + $0x644] ss:$24 sps:$4 sm:$0xff]  }
0x1436   :  { %14940 = vmatpush2.bf16.msra.mxu1 %v18750_v33  ;;  %v18822_v33 = vld [vmem:[#allocation38 + $0x340] ss:$24 sps:$4 sm:$0xff]  }
0x1437   :  { %14981 = vmatpush2.bf16.msra.mxu0 %v18753_v56  ;;  %14941 = vmatprep.subr.bf16.mxu1 %v18758_v60  ;;  %v18825_v56 = vld [vmem:[#allocation38 + $0x640] ss:$24 sps:$4 sm:$0xff]   ;;  %v18830_v60 = vld [vmem:[#allocation38 + $0x314] ss:$24 sps:$4 sm:$0xff]  }
0x1438   :  { %14982 = vmatprep.subr.bf16.mxu0 %v18761_v57  ;;  %v18833_v57 = vld [vmem:[#allocation38 + $0x614] ss:$24 sps:$4 sm:$0xff]  }
0x143a   :  { %14942 = vmatpush2.bf16.msra.mxu1 %v18756_v8  ;;  %v18828_v8 = vld [vmem:[#allocation38 + $0x310] ss:$24 sps:$4 sm:$0xff]  }
0x143b   :  { %14983 = vmatpush2.bf16.msra.mxu0 %v18759_v18  ;;  %14943 = vmatprep.subr.bf16.mxu1 %v18764_v11  ;;  %v18831_v18 = vld [vmem:[#allocation38 + $0x610] ss:$24 sps:$4 sm:$0xff]   ;;  %v18836_v11 = vld [vmem:[#allocation38 + $0x5e4] ss:$24 sps:$4 sm:$0xff]  }
0x143c   :  { %14984 = vmatprep.subr.bf16.mxu0 %v18767_v59  ;;  %v18839_v59 = vld [vmem:[#allocation38 + $0x8e4] ss:$24 sps:$4 sm:$0xff]  }
0x143e   :  { %14944 = vmatpush2.bf16.msra.mxu1 %v18762_v3  ;;  %v18834_v3 = vld [vmem:[#allocation38 + $0x5e0] ss:$24 sps:$4 sm:$0xff]  }
0x143f   :  { %14985 = vmatpush2.bf16.msra.mxu0 %v18765_v37  ;;  %14945 = vmatprep.subr.bf16.mxu1 %v18770_v26  ;;  %v18837_v37 = vld [vmem:[#allocation38 + $0x8e0] ss:$24 sps:$4 sm:$0xff]   ;;  %v18842_v26 = vld [vmem:[#allocation38 + $0x5b4] ss:$24 sps:$4 sm:$0xff]  }
0x1440   :  { %14986 = vmatprep.subr.bf16.mxu0 %v18773_v36  ;;  %v18845_v36 = vld [vmem:[#allocation38 + $0x8b4] ss:$24 sps:$4 sm:$0xff]  }
0x1442   :  { %14946 = vmatpush2.bf16.msra.mxu1 %v18768_v54  ;;  %v18840_v54 = vld [vmem:[#allocation38 + $0x5b0] ss:$24 sps:$4 sm:$0xff]  }
0x1443   :  { %14987 = vmatpush2.bf16.msra.mxu0 %v18771_v28  ;;  %14947 = vmatprep.subr.bf16.mxu1 %v18776_v31  ;;  %v18843_v28 = vld [vmem:[#allocation38 + $0x8b0] ss:$24 sps:$4 sm:$0xff]   ;;  %v18848_v31 = vld [vmem:[#allocation38 + $0x584] ss:$24 sps:$4 sm:$0xff]  }
0x1444   :  { %14988 = vmatprep.subr.bf16.mxu0 %v18779_v63  ;;  %v18851_v63 = vld [vmem:[#allocation38 + $0x884] ss:$24 sps:$4 sm:$0xff]  }
0x1446   :  { %14948 = vmatpush2.bf16.msra.mxu1 %v18774_v58  ;;  %v18846_v58 = vld [vmem:[#allocation38 + $0x580] ss:$24 sps:$4 sm:$0xff]  }
0x1447   :  { %14989 = vmatpush2.bf16.msra.mxu0 %v18777_v52  ;;  %14949 = vmatprep.subr.bf16.mxu1 %v18782_v62  ;;  %v18849_v52 = vld [vmem:[#allocation38 + $0x880] ss:$24 sps:$4 sm:$0xff]   ;;  %v18854_v62 = vld [vmem:[#allocation38 + $0x554] ss:$24 sps:$4 sm:$0xff]  }
0x1448   :  { %14990 = vmatprep.subr.bf16.mxu0 %v18785_v1  ;;  %v18857_v1 = vld [vmem:[#allocation38 + $0x854] ss:$24 sps:$4 sm:$0xff]  }
0x144a   :  { %14950 = vmatpush2.bf16.msra.mxu1 %v18780_v5  ;;  %v18852_v5 = vld [vmem:[#allocation38 + $0x550] ss:$24 sps:$4 sm:$0xff]  }
0x144b   :  { %14991 = vmatpush2.bf16.msra.mxu0 %v18783_v45  ;;  %15001 = vmatprep.subr.bf16.mxu1 %v18788_v35  ;;  %v18855_v45 = vld [vmem:[#allocation38 + $0x850] ss:$24 sps:$4 sm:$0xff]   ;;  %v18860_v35 = vld [vmem:[#allocation38 + $0x524] ss:$24 sps:$4 sm:$0xff]  }
0x144c   :  { %15042 = vmatprep.subr.bf16.mxu0 %v18791_v49  ;;  %v18863_v49 = vld [vmem:[#allocation38 + $0x824] ss:$24 sps:$4 sm:$0xff]  }
0x144d   :  { %14952 = vmatmul.mubr.bf16.vlgmr.msra.gmra.mxu1 %v20262_v0  ;;  %v14748_v44 = vpop.f32.mrf.mxu0 }
0x144e   :  { %14993 = vmatmul.mubr.bf16.vlgmr.msra.gmra.mxu0 %v20232_v50  ;;  %v20286_v34 = vadd.f32 %v14748_v44, %v20277_v19  ;;  %15002 = vmatpush1.bf16.msra.mxu1 %v18786_v46  ;;  %v18798_v19 = vld [vmem:[#allocation38 + $0x400] ss:$24 sps:$4 sm:$0xff]   ;;  %v18869_v44 = vld [vmem:[#allocation38 + $0x7f4] ss:$24 sps:$4 sm:$0xff]  }
0x144f   :  { %15033 = vmatprep.mubr.bf16.mxu1 %v20237_v61  ;;  %15043 = vmatpush1.bf16.msra.mxu0 %v18789_v41  ;;  %v14750_v22 = vpop.f32.mrf.mxu0  ;;  %v18806_v61 = vld [vmem:[#allocation38 + $0x3d4] ss:$24 sps:$4 sm:$0xff]   ;;  %v18858_v46 = vld [vmem:[#allocation38 + $0x520] ss:$24 sps:$4 sm:$0xff]  }
0x1450   :  { %15074 = vmatprep.mubr.bf16.mxu0 %v20247_v4  ;;  %v20291_v27 = vadd.f32 %v14750_v22, %v20281_v40  ;;  %15003 = vmatprep.subr.bf16.mxu1 %v18794_v23  ;;  %v18807_v4 = vld [vmem:[#allocation38 + $0x6d0] ss:$24 sps:$4 sm:$0xff]   ;;  %v18812_v40 = vld [vmem:[#allocation38 + $0x3a4] ss:$24 sps:$4 sm:$0xff]   ;;  %v18861_v41 = vld [vmem:[#allocation38 + $0x820] ss:$24 sps:$4 sm:$0xff]  }
0x1451   :  { %15044 = vmatprep.subr.bf16.mxu0 %v18797_v47  ;;  %v14752_v50 = vpop.f32.mrf.mxu0  ;;  %v18866_v23 = vld [vmem:[#allocation38 + $0x4f4] ss:$24 sps:$4 sm:$0xff]   ;;  %v18864_v47 = vld [vmem:[#allocation38 + $0x4f0] ss:$24 sps:$4 sm:$0xff]   ;;  %v18872_v22 = vld [vmem:[#allocation38 + $0x4c4] ss:$24 sps:$4 sm:$0xff]  }
0x1452   :  { %15004 = vmatpush1.bf16.msra.mxu1 %v18792_v55  ;;  %v18867_v55 = vld [vmem:[#allocation38 + $0x7f0] ss:$24 sps:$4 sm:$0xff]   ;;  %v18878_v50 = vld [vmem:[#allocation38 + $0x494] ss:$24 sps:$4 sm:$0xff]  }
0x1453   :  { %15045 = vmatpush1.bf16.msra.mxu0 %v18795_v15  ;;  %v14753_v9 = vpop.f32.mrf.mxu0  ;;  %15005 = vmatprep.subr.bf16.mxu1 %v18800_v32  ;;  %v18875_v15 = vld [vmem:[#allocation38 + $0x7c4] ss:$24 sps:$4 sm:$0xff]   ;;  %v18870_v32 = vld [vmem:[#allocation38 + $0x4c0] ss:$24 sps:$4 sm:$0xff]  }
0x1454   :  { %15046 = vmatprep.subr.bf16.mxu0 %v18803_v25  ;;  %v18873_v25 = vld [vmem:[#allocation38 + $0x7c0] ss:$24 sps:$4 sm:$0xff]   ;;  %v18876_v9 = vld [vmem:[#allocation38 + $0x490] ss:$24 sps:$4 sm:$0xff]  }
0x1456   :  { %15006 = vmatpush1.bf16.msra.mxu1 %v18798_v19  ;;  %v18881_v19 = vld [vmem:[#allocation38 + $0x794] ss:$24 sps:$4 sm:$0xff]  }
0x1457   :  { %15047 = vmatpush1.bf16.msra.mxu0 %v18801_v13  ;;  %15007 = vmatprep.subr.bf16.mxu1 %v18806_v61  ;;  %v18879_v13 = vld [vmem:[#allocation38 + $0x790] ss:$24 sps:$4 sm:$0xff]   ;;  %v18884_v61 = vld [vmem:[#allocation38 + $0xa64] ss:$24 sps:$4 sm:$0xff]  }
0x1458   :  { %15048 = vmatprep.subr.bf16.mxu0 %v18809_v51  ;;  %v18882_v51 = vld [vmem:[#allocation38 + $0xa60] ss:$24 sps:$4 sm:$0xff]  }
0x145a   :  { %15008 = vmatpush1.bf16.msra.mxu1 %v18804_v38  ;;  %v18887_v38 = vld [vmem:[#allocation38 + $0xa34] ss:$24 sps:$4 sm:$0xff]  }
0x145b   :  { %15049 = vmatpush1.bf16.msra.mxu0 %v18807_v4  ;;  %15009 = vmatprep.subr.bf16.mxu1 %v18812_v40 }
0x145c   :  { %15050 = vmatprep.subr.bf16.mxu0 %v18815_v14 }
0x145e   :  { %15010 = vmatpush1.bf16.msra.mxu1 %v18810_v48  ;;  %v18885_v48 = vld [vmem:[#allocation38 + $0xa30] ss:$24 sps:$4 sm:$0xff]  }
0x145f   :  { %15051 = vmatpush1.bf16.msra.mxu0 %v18813_v17  ;;  %15011 = vmatprep.subr.bf16.mxu1 %v18818_v16 }
0x1460   :  { %15052 = vmatprep.subr.bf16.mxu0 %v18821_v20  ;;  %v18890_v20 = vld [vmem:[#allocation38 + $0xa04] ss:$24 sps:$4 sm:$0xff]  }
0x1462   :  { %15012 = vmatpush1.bf16.msra.mxu1 %v18816_v21 }
0x1463   :  { %15053 = vmatpush1.bf16.msra.mxu0 %v18819_v24  ;;  %15013 = vmatprep.subr.bf16.mxu1 %v18824_v29 }
0x1464   :  { %15054 = vmatprep.subr.bf16.mxu0 %v18827_v10 }
0x1466   :  { %15014 = vmatpush1.bf16.msra.mxu1 %v18822_v33  ;;  %v18893_v33 = vld [vmem:[#allocation38 + $0x9d4] ss:$24 sps:$4 sm:$0xff]  }
0x1467   :  { %15055 = vmatpush1.bf16.msra.mxu0 %v18825_v56  ;;  %15015 = vmatprep.subr.bf16.mxu1 %v18830_v60  ;;  %v18896_v56 = vld [vmem:[#allocation38 + $0x9a4] ss:$24 sps:$4 sm:$0xff]   ;;  %v18894_v60 = vld [vmem:[#allocation38 + $0x9a0] ss:$24 sps:$4 sm:$0xff]  }
0x1468   :  { %15056 = vmatprep.subr.bf16.mxu0 %v18833_v57  ;;  %v18897_v57 = vld [vmem:[#allocation38 + $0x970] ss:$24 sps:$4 sm:$0xff]  }
0x146a   :  { %15016 = vmatpush1.bf16.msra.mxu1 %v18828_v8  ;;  %v18902_v8 = vld [vmem:[#allocation38 + $0x944] ss:$24 sps:$4 sm:$0xff]  }
0x146b   :  { %15057 = vmatpush1.bf16.msra.mxu0 %v18831_v18  ;;  %15017 = vmatprep.subr.bf16.mxu1 %v18836_v11  ;;  %v18900_v18 = vld [vmem:[#allocation38 + $0x940] ss:$24 sps:$4 sm:$0xff]   ;;  %v18905_v11 = vld [vmem:[#allocation38 + $0x914] ss:$24 sps:$4 sm:$0xff]  }
0x146c   :  { %15058 = vmatprep.subr.bf16.mxu0 %v18839_v59  ;;  %v18903_v59 = vld [vmem:[#allocation38 + $0x910] ss:$24 sps:$4 sm:$0xff]  }
0x146e   :  { %15018 = vmatpush2.bf16.msra.mxu1 %v18834_v3  ;;  %v18908_v3 = vld [vmem:[#allocation38 + $0xbe4] ss:$24 sps:$4 sm:$0xff]  }
0x146f   :  { %15059 = vmatpush2.bf16.msra.mxu0 %v18837_v37  ;;  %15019 = vmatprep.subr.bf16.mxu1 %v18842_v26  ;;  %v18906_v37 = vld [vmem:[#allocation38 + $0xbe0] ss:$24 sps:$4 sm:$0xff]   ;;  %v18911_v26 = vld [vmem:[#allocation38 + $0xbb4] ss:$24 sps:$4 sm:$0xff]  }
0x1470   :  { %15060 = vmatprep.subr.bf16.mxu0 %v18845_v36  ;;  %v18909_v36 = vld [vmem:[#allocation38 + $0xbb0] ss:$24 sps:$4 sm:$0xff]  }
0x1472   :  { %15020 = vmatpush2.bf16.msra.mxu1 %v18840_v54  ;;  %v18914_v54 = vld [vmem:[#allocation38 + $0xb84] ss:$24 sps:$4 sm:$0xff]  }
0x1473   :  { %15061 = vmatpush2.bf16.msra.mxu0 %v18843_v28  ;;  %15021 = vmatprep.subr.bf16.mxu1 %v18848_v31  ;;  %v18912_v28 = vld [vmem:[#allocation38 + $0xb80] ss:$24 sps:$4 sm:$0xff]   ;;  %v18917_v31 = vld [vmem:[#allocation38 + $0xb54] ss:$24 sps:$4 sm:$0xff]  }
0x1474   :  { %15062 = vmatprep.subr.bf16.mxu0 %v18851_v63  ;;  %v18915_v63 = vld [vmem:[#allocation38 + $0xb50] ss:$24 sps:$4 sm:$0xff]  }
0x1476   :  { %15022 = vmatpush2.bf16.msra.mxu1 %v18846_v58  ;;  %v18920_v58 = vld [vmem:[#allocation38 + $0xb24] ss:$24 sps:$4 sm:$0xff]  }
0x1477   :  { %15063 = vmatpush2.bf16.msra.mxu0 %v18849_v52  ;;  %15023 = vmatprep.subr.bf16.mxu1 %v18854_v62  ;;  %v18918_v52 = vld [vmem:[#allocation38 + $0xb20] ss:$24 sps:$4 sm:$0xff]   ;;  %v18923_v62 = vld [vmem:[#allocation38 + $0xaf4] ss:$24 sps:$4 sm:$0xff]  }
0x1478   :  { %15064 = vmatprep.subr.bf16.mxu0 %v18857_v1  ;;  %v18921_v1 = vld [vmem:[#allocation38 + $0xaf0] ss:$24 sps:$4 sm:$0xff]  }
0x147a   :  { %15024 = vmatpush2.bf16.msra.mxu1 %v18852_v5  ;;  %v18926_v5 = vld [vmem:[#allocation38 + $0xac4] ss:$24 sps:$4 sm:$0xff]  }
0x147b   :  { %15065 = vmatpush2.bf16.msra.mxu0 %v18855_v45  ;;  %15025 = vmatprep.subr.bf16.mxu1 %v18860_v35  ;;  %v18924_v45 = vld [vmem:[#allocation38 + $0xac0] ss:$24 sps:$4 sm:$0xff]   ;;  %v18929_v35 = vld [vmem:[#allocation38 + $0xa94] ss:$24 sps:$4 sm:$0xff]  }
0x147c   :  { %15066 = vmatprep.subr.bf16.mxu0 %v18863_v49  ;;  %v18927_v49 = vld [vmem:[#allocation38 + $0xa90] ss:$24 sps:$4 sm:$0xff]  }
0x147e   :  { %15026 = vmatpush2.bf16.msra.mxu1 %v18858_v46  ;;  %v12693_v46 = vrot.slane %v20269_v6, %v19843_v2 }
0x147f   :  { %15067 = vmatpush2.bf16.msra.mxu0 %v18861_v41  ;;  %15027 = vmatprep.subr.bf16.mxu1 %v18866_v23 }
0x1480   :  { %15068 = vmatprep.subr.bf16.mxu0 %v18869_v44 }
0x1482   :  { %15028 = vmatpush2.bf16.msra.mxu1 %v18864_v47 }
0x1483   :  { %15069 = vmatpush2.bf16.msra.mxu0 %v18867_v55  ;;  %15029 = vmatprep.subr.bf16.mxu1 %v18872_v22 }
0x1484   :  { %15070 = vmatprep.subr.bf16.mxu0 %v18875_v15 }
0x1486   :  { %15030 = vmatpush2.bf16.msra.mxu1 %v18870_v32 }
0x1487   :  { %15071 = vmatpush2.bf16.msra.mxu0 %v18873_v25  ;;  %15031 = vmatprep.subr.bf16.mxu1 %v18878_v50 }
0x1488   :  { %15072 = vmatprep.subr.bf16.mxu0 %v18881_v19 }
0x148a   :  { %15032 = vmatpush2.bf16.msra.mxu1 %v18876_v9  ;;  %v12697_v9 = vrot.slane %v20269_v6, %v19823_v43 }
0x148b   :  { %15073 = vmatpush2.bf16.msra.mxu0 %v18879_v13  ;;  %15083 = vmatprep.subr.bf16.mxu1 %v18884_v61 }
0x148d   :  { %v20293_v4 = vpop.f32.mrf.mxu0  ;;  %15034 = vmatmul.mubr.bf16.vlgmr.msra.gmra.mxu1 %v20239_v12  ;;  %v14789_v40 = vpop.f32.mrf.mxu1 }
0x148e   :  { %15075 = vmatmul.mubr.bf16.vlgmr.msra.gmra.mxu0 %v20249_v30  ;;  %v20298_v14 = vadd.f32 %v14789_v40, %v20286_v34  ;;  %15084 = vmatpush1.bf16.msra.mxu1 %v18882_v51  ;;  %v18888_v34 = vld [vmem:[#allocation38 + $0xa00] ss:$24 sps:$4 sm:$0xff]   ;;  %v14831_v41 = vadd.f32 %v20293_v4, %v12693_v46 }
0x148f   :  { %15115 = vmatprep.mubr.bf16.mxu1 %v20260_v7  ;;  %v20301_v17 = vpop.f32.mrf.mxu0  ;;  %v14791_v16 = vpop.f32.mrf.mxu1  ;;  %15085 = vmatprep.subr.bf16.mxu1 %v18887_v38  ;;  %v18891_v7 = vld [vmem:[#allocation38 + $0x9d0] ss:$24 sps:$4 sm:$0xff]  }
0x1490   :  { %v20304_v21 = vadd.f32 %v14791_v16, %v20291_v27  ;;  %v18899_v27 = vld [vmem:[#allocation38 + $0x974] ss:$24 sps:$4 sm:$0xff]   ;;  %v14833_v2 = vadd.f32 %v20301_v17, %v12697_v9 }
0x1491   :  { %v14834_v24 = vpop.f32.mrf.mxu0  ;;  %v14793_v12 = vpop.f32.mrf.mxu1 }
0x1492   :  { %v15130_v30 = vcombine.low %v20298_v14, %v20304_v21  ;;  %15086 = vmatpush1.bf16.msra.mxu1 %v18885_v48  ;;  %v12701_v14 = vrot.slane %v20269_v6, %v19866_v39 }
0x1493   :  { %v14835_v29 = vpop.f32.mrf.mxu0  ;;  %v14794_v10 = vpop.f32.mrf.mxu1  ;;  %15087 = vmatprep.subr.bf16.mxu1 %v18890_v20 }
0x1496   :  { %15088 = vmatpush1.bf16.msra.mxu1 %v18888_v34  ;;  %v15138_v34 = vrot.slane %v15130_v30, %v19737_v53 }
0x1497   :  { %15089 = vmatprep.subr.bf16.mxu1 %v18893_v33 }
0x149a   :  { %15090 = vmatpush1.bf16.msra.mxu1 %v18891_v7 }
0x149b   :  { %15091 = vmatprep.subr.bf16.mxu1 %v18896_v56 }
0x149e   :  { %15092 = vmatpush1.bf16.msra.mxu1 %v18894_v60 }
0x149f   :  { %15093 = vmatprep.subr.bf16.mxu1 %v18899_v27 }
0x14a2   :  { %15094 = vmatpush1.bf16.msra.mxu1 %v18897_v57 }
0x14a3   :  { %15095 = vmatprep.subr.bf16.mxu1 %v18902_v8 }
0x14a6   :  { %15096 = vmatpush1.bf16.msra.mxu1 %v18900_v18 }
0x14a7   :  { %15097 = vmatprep.subr.bf16.mxu1 %v18905_v11 }
0x14aa   :  { %15098 = vmatpush1.bf16.msra.mxu1 %v18903_v59 }
0x14ab   :  { %15099 = vmatprep.subr.bf16.mxu1 %v18908_v3 }
0x14ae   :  { %15100 = vmatpush2.bf16.msra.mxu1 %v18906_v37 }
0x14af   :  { %15101 = vmatprep.subr.bf16.mxu1 %v18911_v26 }
0x14b2   :  { %15102 = vmatpush2.bf16.msra.mxu1 %v18909_v36 }
0x14b3   :  { %15103 = vmatprep.subr.bf16.mxu1 %v18914_v54 }
0x14b6   :  { %15104 = vmatpush2.bf16.msra.mxu1 %v18912_v28 }
0x14b7   :  { %15105 = vmatprep.subr.bf16.mxu1 %v18917_v31 }
0x14ba   :  { %15106 = vmatpush2.bf16.msra.mxu1 %v18915_v63 }
0x14bb   :  { %15107 = vmatprep.subr.bf16.mxu1 %v18920_v58 }
0x14be   :  { %15108 = vmatpush2.bf16.msra.mxu1 %v18918_v52 }
0x14bf   :  { %15109 = vmatprep.subr.bf16.mxu1 %v18923_v62 }
0x14c2   :  { %15110 = vmatpush2.bf16.msra.mxu1 %v18921_v1 }
0x14c3   :  { %15111 = vmatprep.subr.bf16.mxu1 %v18926_v5 }
0x14c6   :  { %15112 = vmatpush2.bf16.msra.mxu1 %v18924_v45 }
0x14c7   :  { %15113 = vmatprep.subr.bf16.mxu1 %v18929_v35 }
0x14ca   :  { %15114 = vmatpush2.bf16.msra.mxu1 %v18927_v49 }
0x14cd   :  { %v14871_v23 = vpop.f32.mrf.mxu1  ;;  %v14912_v44 = vpop.f32.mrf.mxu0  ;;  %15116 = vmatmul.mubr.bf16.vlgmr.msra.gmra.mxu1 %v20262_v0 }
0x14ce   :  { %v14872_v47 = vadd.f32 %v14871_v23, %v14831_v41 }
0x14cf   :  { %v14873_v55 = vpop.f32.mrf.mxu1  ;;  %v14914_v22 = vpop.f32.mrf.mxu0 }
0x14d0   :  { %v14913_v15 = vadd.f32 %v14912_v44, %v14872_v47  ;;  %v14874_v13 = vadd.f32 %v14873_v55, %v14833_v2 }
0x14d1   :  { %v14875_v32 = vpop.f32.mrf.mxu1  ;;  %v14916_v25 = vpop.f32.mrf.mxu0 }
0x14d2   :  { %v14915_v51 = vadd.f32 %v14914_v22, %v14874_v13 }
0x14d3   :  { %v14876_v50 = vpop.f32.mrf.mxu1  ;;  %v14917_v19 = vpop.f32.mrf.mxu0 }
0x150d   :  { %v14953_v61 = vpop.f32.mrf.mxu1 }
0x150e   :  { %v14994_v38 = vpop.f32.mrf.mxu0  ;;  %v14954_v40 = vadd.f32 %v14953_v61, %v14913_v15 }
0x150f   :  { %v14955_v4 = vpop.f32.mrf.mxu1  ;;  %v14995_v21 = vadd.f32 %v14994_v38, %v12701_v14 }
0x1510   :  { %v14956_v0 = vadd.f32 %v14955_v4, %v14915_v51  ;;  %v14996_v48 = vpop.f32.mrf.mxu0 }
0x1511   :  { %v14957_v16 = vpop.f32.mrf.mxu1 }
0x1512   :  { %v15131_v20 = vcombine.low %v14954_v40, %v14956_v0  ;;  %v14998_v24 = vpop.f32.mrf.mxu0 }
0x1513   :  { %v14958_v12 = vpop.f32.mrf.mxu1 }
0x1514   :  { %v15145_v43 = vrot.slane %v15131_v20, %v19737_v53  ;;  %v14999_v17 = vpop.f32.mrf.mxu0  ;;  %v12705_v53 = vrot.slane %v20269_v6, %v19869_v42 }
0x1516   :  { %v15146_v29 = vcombine.low %v15138_v34, %v15145_v43  ;;  %v14997_v30 = vadd.f32 %v14996_v48, %v12705_v53 }
0x1518   :  { %15157 = vst [vmem:[%s20356_s26] sm:$0xff] %v15146_v29 }
0x154d   :  { %v15035_v10 = vpop.f32.mrf.mxu1 }
0x154e   :  { %v15076_v33 = vpop.f32.mrf.mxu0  ;;  %v15036_v18 = vadd.f32 %v15035_v10, %v14995_v21 }
0x154f   :  { %v15037_v7 = vpop.f32.mrf.mxu1 }
0x1550   :  { %v15078_v56 = vpop.f32.mrf.mxu0  ;;  %v15038_v11 = vadd.f32 %v15037_v7, %v14997_v30  ;;  %v15077_v3 = vadd.f32 %v15076_v33, %v15036_v18 }
0x1551   :  { %v15039_v60 = vpop.f32.mrf.mxu1 }
0x1552   :  { %v15080_v27 = vpop.f32.mrf.mxu0  ;;  %v15079_v37 = vadd.f32 %v15078_v56, %v15038_v11 }
0x1553   :  { %v15040_v57 = vpop.f32.mrf.mxu1 }
0x1554   :  { %v15081_v8 = vpop.f32.mrf.mxu0 }
0x158d   :  { %v15117_v59 = vpop.f32.mrf.mxu1 }
0x158e   :  { %v15118_v36 = vadd.f32 %v15117_v59, %v15077_v3 }
0x158f   :  { %v15119_v26 = vpop.f32.mrf.mxu1 }
0x1590   :  { %v15120_v54 = vadd.f32 %v15119_v26, %v15079_v37 }
0x1591   :  { %v15121_v28 = vpop.f32.mrf.mxu1 }
0x1592   :  { %v15147_v31 = vcombine.low %v15118_v36, %v15120_v54 }
0x1593   :  { %v15122_v63 = vpop.f32.mrf.mxu1 }
0x1594   :  { %17015 = vst.sshfl [vmem:[%s20356_s26 + $0x8] sm:$0x33 pattern:$0x76325410] %v15147_v31 }
0x1595   :  { %15167 = vsyncpa [#allocation5], 1 }
0x1596   :  { %15168 = vsyncpa [#allocation7], 1 }
0x1597   :  { %15169 = vsyncpa [#allocation10], 1 }
0x1598   :  { %15170 = vsyncpa [#allocation13], 1 }
0x1599   :  { %15171 = vsyncpa [#allocation16], 1 }
0x159a   :  { %15172 = vsyncpa [#allocation19], 1 }
0x159b   :  { %15173 = vsyncpa [#allocation22], 1 }
0x159c   :  { %15174 = vsyncpa [#allocation25], 1 }
0x159d   :  { %15175 = vsyncpa [#allocation28], 1 }
0x159e   :  { %15176 = vsyncpa [#allocation31], 1 }
0x159f   :  { %15177 = vsyncpa [#allocation34], 1 }
0x15a0   :  { %15178 = vsyncpa [#allocation37], 1 }
0x15a1   :  { %15179 = vsyncpa [#allocation40], 1 }

</bundles_post_ra>
